<compile_context>
chip_gen: v7x
topology: tpu7x:2x2x1
jax: 0.10.0
libtpu: 0.0.40
codegen_flags: <defaults>
</compile_context>

<pallas_src>
import functools

import jax
import jax.numpy as jnp
from jax.experimental import pallas as pl
from jax.experimental.pallas import tpu as pltpu

LRELU_SLOPE = 0.01   # self.para and nn.LeakyReLU default
BN_EPS = 1e-5        # nn.BatchNorm2d default eps


# ------------------------------ fused kernel -------------------------------

def _resblock_kernel(*refs, n, ho, wo, cout, stride, n_phase, slope, eps,
                     use_downsample):
    """Fused residual block.

    Inputs (all full-array VMEM blocks):
      phases[s*s] : (N, Hp, Wp, Cin) f32  strided views of the padded input
      w1          : (9, Cin, Cout)  bf16  conv1 taps
      g1, be1     : (1, Cout)       f32   BN1 gamma / beta
      w2          : (9, Cout, Cout) bf16  conv2 taps
      g2, be2     : (1, Cout)       f32   BN2 gamma / beta
      [wd         : (Cin, Cout) bf16, bd : (1, Cout) f32]  iff use_downsample
    Output:
      o           : (M, Cout) f32   (M = N*Ho*Wo, NHWC row order)
    Scratch (VMEM only, never touches HBM):
      t1pad       : (N, Ho+2, Wo+2, Cout) f32  zero-padded conv1 activation
    """
    phase_refs = refs[:n_phase]
    w1_ref, g1_ref, be1_ref, w2_ref, g2_ref, be2_ref = refs[n_phase:n_phase + 6]
    idx = n_phase + 6
    if use_downsample:
        wd_ref, bd_ref = refs[idx:idx + 2]
        idx += 2
    else:
        wd_ref = bd_ref = None
    o_ref, t1pad_ref = refs[idx], refs[idx + 1]

    m = n * ho * wo
    inv_m = 1.0 / float(m)

    def bn_lrelu(acc, g_ref, be_ref):
        # Fused single-pass batch statistics (training-mode, biased variance),
        # folded into one scale/shift, LeakyReLU via maximum.
        mu = jnp.sum(acc, axis=0, keepdims=True) * inv_m
        ex2 = jnp.sum(acc * acc, axis=0, keepdims=True) * inv_m
        var = jnp.maximum(ex2 - mu * mu, 0.0)
        scale = g_ref[...] * jax.lax.rsqrt(var + eps)
        shift = be_ref[...] - mu * scale
        t = acc * scale + shift
        return jnp.maximum(t, slope * t)

    # ---- conv1: 9 tap matmuls on shifted phase views (im2col never leaves
    #      VMEM; operands bf16, f32 accumulate on the MXU).
    acc1 = None
    for ky in range(3):
        for kx in range(3):
            ph = phase_refs[(ky % stride) * stride + (kx % stride)]
            r0, c0 = ky // stride, kx // stride
            tap = ph[:, r0:r0 + ho, c0:c0 + wo, :].reshape(m, -1)
            d = jnp.dot(tap.astype(jnp.bfloat16), w1_ref[ky * 3 + kx],
                        preferred_element_type=jnp.float32)
            acc1 = d if acc1 is None else acc1 + d

    t1 = bn_lrelu(acc1, g1_ref, be1_ref)                       # (M, Cout) f32

    # ---- zero-pad t1 spatially inside VMEM: halo-only zero fill, interior
    #      written exactly once (intermediate never hits HBM).
    zrow = jnp.zeros((n, 1, wo + 2, cout), jnp.float32)
    zcol = jnp.zeros((n, ho, 1, cout), jnp.float32)
    t1pad_ref[:, 0:1, :, :] = zrow
    t1pad_ref[:, ho + 1:ho + 2, :, :] = zrow
    t1pad_ref[:, 1:1 + ho, 0:1, :] = zcol
    t1pad_ref[:, 1:1 + ho, wo + 1:wo + 2, :] = zcol
    t1pad_ref[:, 1:1 + ho, 1:1 + wo, :] = t1.reshape(n, ho, wo, cout)

    # ---- conv2: 9 tap matmuls on shifted views of the padded scratch.
    acc2 = None
    for ky in range(3):
        for kx in range(3):
            tap = t1pad_ref[:, ky:ky + ho, kx:kx + wo, :].reshape(m, cout)
            d = jnp.dot(tap.astype(jnp.bfloat16), w2_ref[ky * 3 + kx],
                        preferred_element_type=jnp.float32)
            acc2 = d if acc2 is None else acc2 + d

    t2 = bn_lrelu(acc2, g2_ref, be2_ref)                       # (M, Cout) f32

    # ---- skip path: 1x1 conv (iff channel count changes, as in PyTorch) or
    #      identity, sliced from the same phase views already in VMEM.
    if use_downsample:
        ph = phase_refs[(1 % stride) * stride + (1 % stride)]
        st = 1 // stride
        xs = ph[:, st:st + ho, st:st + wo, :].reshape(m, -1)
        skip = jnp.dot(xs.astype(jnp.bfloat16), wd_ref[...],
                       preferred_element_type=jnp.float32) + bd_ref[...]
    else:
        ph = phase_refs[0]                                     # stride == 1
        skip = ph[:, 1:1 + ho, 1:1 + wo, :].reshape(m, cout)   # exact f32 x

    y = skip + t2
    o_ref[...] = jnp.maximum(y, slope * y).astype(o_ref.dtype)


# ------------------------------ VMEM budgeting ------------------------------

def _padded_bytes(shape, dtype):
    """Tile-padded VMEM footprint of one buffer (last dim -> 128 lanes,
    second-minor -> 8*(4/itemsize) sublanes)."""
    itemsize = jnp.dtype(dtype).itemsize
    dims = list(shape) if len(shape) >= 2 else [1] + list(shape or (1,))
    lane = -(-dims[-1] // 128) * 128
    sub_mult = 8 * max(1, 4 // itemsize)
    sub = -(-dims[-2] // sub_mult) * sub_mult
    lead = 1
    for d in dims[:-2]:
        lead *= d
    return lead * sub * lane * itemsize


def _vmem_limit_bytes(buffers):
    total = sum(_padded_bytes(s, d) for s, d in buffers)
    # 2x for compiler temporaries / buffering + 4 MiB headroom, capped so a
    # tile tuned here still fits v7x's 64 MiB physical VMEM.
    return int(min(64 << 20, max(16 << 20, 2 * total + (4 << 20))))


# ------------------------------ block wrapper -------------------------------

def residual_block_forward(x, kp, *, stride=1):
    """x: (N,H,W,Cin) NHWC float32 -> (N,Ho,Wo,Cout).  One fused Pallas call."""
    n, h, w, cin = x.shape
    cout = kp['w1'].shape[-1]
    use_ds = (cout != cin)   # PyTorch: downsample iff t.size(1) != x.size(1)
    if (not use_ds) and stride != 1:
        raise ValueError(
            "identity skip with stride != 1 shape-mismatches at x + t "
            "(same failure as the PyTorch module); use outc != inc.")

    ho = (h + 2 - 3) // stride + 1
    wo = (w + 2 - 3) // stride + 1
    m = n * ho * wo
    s = stride

    # Phase views of the padded input: phase (py, px) holds xpad[:, py::s,
    # px::s, :] (cropped to what the taps / skip actually read), so every
    # conv1 tap and the skip slice are STATIC contiguous slices in-kernel.
    # Total HBM traffic ~1x the input instead of a 9x im2col.
    xpad = jnp.pad(x, ((0, 0), (1, 1), (1, 1), (0, 0)))

    def extent(p_idx, out_len):
        starts = [k // s for k in range(3) if k % s == p_idx]
        if p_idx == 1 % s:
            starts.append(1 // s)          # skip-path slice start
        return (max(starts) if starts else 0) + out_len

    phases = []
    for py in range(s):
        er = extent(py, ho)
        for px in range(s):
            ec = extent(px, wo)
            phases.append(jax.lax.slice(
                xpad, (0, py, px, 0),
                (n, py + s * (er - 1) + 1, px + s * (ec - 1) + 1, cin),
                (1, s, s, 1)))

    args = list(phases) + [kp['w1'], kp['g1'], kp['be1'],
                           kp['w2'], kp['g2'], kp['be2']]
    if use_ds:
        args += [kp['wd'], kp['bd']]

    kern = functools.partial(
        _resblock_kernel, n=n, ho=ho, wo=wo, cout=cout, stride=s,
        n_phase=s * s, slope=LRELU_SLOPE, eps=BN_EPS, use_downsample=use_ds)

    t1pad_shape = (n, ho + 2, wo + 2, cout)
    vmem_limit = _vmem_limit_bytes(
        [(a.shape, a.dtype) for a in args]
        + [((m, cout), jnp.float32), (t1pad_shape, jnp.float32)])

    out = pl.pallas_call(
        kern,
        out_shape=jax.ShapeDtypeStruct((m, cout), jnp.float32),
        in_specs=[pl.BlockSpec(memory_space=pltpu.MemorySpace.VMEM)] * len(args),
        out_specs=pl.BlockSpec(memory_space=pltpu.MemorySpace.VMEM),
        scratch_shapes=[pltpu.VMEM(t1pad_shape, jnp.float32)],
        compiler_params=pltpu.CompilerParams(vmem_limit_bytes=vmem_limit),
    )(*args)
    return out.reshape(n, ho, wo, cout)


# ------------------------------ params / reference --------------------------

def init_residual_block(key, inc, outc):
    """PyTorch-style init (f32, HWIO).  Conv1/Conv2 biases are omitted: a
    per-channel bias before BatchNorm is cancelled by the mean subtraction."""
    k1, k2, kd, kdb = jax.random.split(key, 4)

    def conv_w(k, cin, co, ks):
        bound = 1.0 / ((cin * ks * ks) ** 0.5)
        return jax.random.uniform(k, (ks, ks, cin, co), jnp.float32, -bound, bound)

    bound_d = 1.0 / (inc ** 0.5)
    return dict(
        w1=conv_w(k1, inc, outc, 3),
        g1=jnp.ones((outc,), jnp.float32), be1=jnp.zeros((outc,), jnp.float32),
        w2=conv_w(k2, outc, outc, 3),
        g2=jnp.ones((outc,), jnp.float32), be2=jnp.zeros((outc,), jnp.float32),
        wd=conv_w(kd, inc, outc, 1),
        bd=jax.random.uniform(kdb, (outc,), jnp.float32, -bound_d, bound_d))


def prepare_block_params(p):
    """One-time (outside jit) repack: bf16 tap matrices + (1, Cout) BN rows."""
    _, _, cin, cout = p['w1'].shape
    return dict(
        w1=p['w1'].reshape(9, cin, cout).astype(jnp.bfloat16),
        g1=p['g1'].reshape(1, cout), be1=p['be1'].reshape(1, cout),
        w2=p['w2'].reshape(9, cout, cout).astype(jnp.bfloat16),
        g2=p['g2'].reshape(1, cout), be2=p['be2'].reshape(1, cout),
        wd=p['wd'].reshape(cin, cout).astype(jnp.bfloat16),
        bd=p['bd'].reshape(1, cout))


def reference_block(x, p, *, stride):
    """Pure-JAX (f32) reference of the PyTorch Residual_Block forward."""
    dn = ('NHWC', 'HWIO', 'NHWC')

    def bn_lrelu(z, g, b):
        mu = jnp.mean(z, axis=(0, 1, 2), keepdims=True)
        var = jnp.mean((z - mu) ** 2, axis=(0, 1, 2), keepdims=True)
        y = (z - mu) * jax.lax.rsqrt(var + BN_EPS) * g + b
        return jnp.where(y >= 0, y, LRELU_SLOPE * y)

    t = jax.lax.conv_general_dilated(x, p['w1'], (stride, stride),
                                     ((1, 1), (1, 1)), dimension_numbers=dn)
    t = bn_lrelu(t, p['g1'], p['be1'])
    t = jax.lax.conv_general_dilated(t, p['w2'], (1, 1),
                                     ((1, 1), (1, 1)), dimension_numbers=dn)
    t = bn_lrelu(t, p['g2'], p['be2'])
    if t.shape[-1] != x.shape[-1]:
        x = jax.lax.conv_general_dilated(x, p['wd'], (stride, stride),
                                         'VALID', dimension_numbers=dn) + p['bd']
    y = x + t
    return jnp.where(y >= 0, y, LRELU_SLOPE * y)


# ----------------------------------- main ------------------------------------

if __name__ == "__main__":
    key = jax.random.PRNGKey(0)
    n, hw = 2, 16
    configs = [
        dict(inc=4, outc=8, s=1),   # channel change -> 1x1 downsample path
        dict(inc=4, outc=8, s=2),   # strided variant (4 input phases)
        dict(inc=8, outc=8, s=1),   # identity skip (t.size(1) == x.size(1))
    ]
    for cfg in configs:
        key, kx, kp_key = jax.random.split(key, 3)
        params = init_residual_block(kp_key, cfg['inc'], cfg['outc'])
        kparams = prepare_block_params(params)      # bf16 repack, outside jit
        # PyTorch would see NCHW (2, inc, 16, 16); kernels use NHWC.
        x_nchw = jax.random.normal(kx, (n, cfg['inc'], hw, hw), jnp.float32)
        x_nhwc = jnp.transpose(x_nchw, (0, 2, 3, 1))

        fwd = jax.jit(functools.partial(residual_block_forward, stride=cfg['s']))
        out = jax.block_until_ready(fwd(x_nhwc, kparams))

        ref = reference_block(x_nhwc, params, stride=cfg['s'])
        assert out.shape == ref.shape, (out.shape, ref.shape)
        assert bool(jnp.all(jnp.isfinite(out)))
        err = float(jnp.max(jnp.abs(out - ref)))
        assert err < 0.1, f"mismatch {err} for {cfg}"   # bf16 matmul tolerance
    print("KERNEL_OK")
</pallas_src>

<mosaic_0001>
module attributes {stable_mosaic.version = 11 : i64} {
  func.func @_resblock_kernel(%arg0: memref<2x18x18x4xf32, #tpu.memory_space<vmem>>, %arg1: memref<9x4x8xbf16, #tpu.memory_space<vmem>>, %arg2: memref<1x8xf32, #tpu.memory_space<vmem>>, %arg3: memref<1x8xf32, #tpu.memory_space<vmem>>, %arg4: memref<9x8x8xbf16, #tpu.memory_space<vmem>>, %arg5: memref<1x8xf32, #tpu.memory_space<vmem>>, %arg6: memref<1x8xf32, #tpu.memory_space<vmem>>, %arg7: memref<4x8xbf16, #tpu.memory_space<vmem>>, %arg8: memref<1x8xf32, #tpu.memory_space<vmem>>, %arg9: memref<512x8xf32, #tpu.memory_space<vmem>>, %arg10: memref<2x18x18x8xf32, #tpu.memory_space<vmem>>) attributes {dimension_semantics = [], scalar_prefetch = 0 : i64, scratch_operands = 1 : i64, tpu.core_type = #tpu.core_type<tc>} {
    %c0 = arith.constant 0 : index
    %c0_0 = arith.constant 0 : index
    %c0_1 = arith.constant 0 : index
    %c0_2 = arith.constant 0 : index
    %0 = vector.load %arg0[%c0, %c0_0, %c0_1, %c0_2] : memref<2x18x18x4xf32, #tpu.memory_space<vmem>>, vector<2x16x16x4xf32>
    %1 = vector.shape_cast %0 : vector<2x16x16x4xf32> to vector<512x4xf32>
    %2 = arith.truncf %1 : vector<512x4xf32> to vector<512x4xbf16>
    %c0_3 = arith.constant 0 : index
    %c0_4 = arith.constant 0 : index
    %c0_5 = arith.constant 0 : index
    %3 = vector.load %arg1[%c0_3, %c0_4, %c0_5] : memref<9x4x8xbf16, #tpu.memory_space<vmem>>, vector<1x4x8xbf16>
    %4 = vector.shape_cast %3 : vector<1x4x8xbf16> to vector<4x8xbf16>
    %cst = arith.constant dense<0.000000e+00> : vector<512x8xf32>
    %5 = tpu.matmul %2, %4, %cst {dimension_numbers = #tpu.dot_dimension_numbers<[1], [0], [0], [1], [0, 0, 1, 1], [], []>} : vector<512x4xbf16>, vector<4x8xbf16>, vector<512x8xf32> -> vector<512x8xf32>
    %c0_6 = arith.constant 0 : index
    %c0_7 = arith.constant 0 : index
    %c1 = arith.constant 1 : index
    %c0_8 = arith.constant 0 : index
    %6 = vector.load %arg0[%c0_6, %c0_7, %c1, %c0_8] : memref<2x18x18x4xf32, #tpu.memory_space<vmem>>, vector<2x16x16x4xf32>
    %7 = vector.shape_cast %6 : vector<2x16x16x4xf32> to vector<512x4xf32>
    %8 = arith.truncf %7 : vector<512x4xf32> to vector<512x4xbf16>
    %c1_9 = arith.constant 1 : index
    %c0_10 = arith.constant 0 : index
    %c0_11 = arith.constant 0 : index
    %9 = vector.load %arg1[%c1_9, %c0_10, %c0_11] : memref<9x4x8xbf16, #tpu.memory_space<vmem>>, vector<1x4x8xbf16>
    %10 = vector.shape_cast %9 : vector<1x4x8xbf16> to vector<4x8xbf16>
    %cst_12 = arith.constant dense<0.000000e+00> : vector<512x8xf32>
    %11 = tpu.matmul %8, %10, %cst_12 {dimension_numbers = #tpu.dot_dimension_numbers<[1], [0], [0], [1], [0, 0, 1, 1], [], []>} : vector<512x4xbf16>, vector<4x8xbf16>, vector<512x8xf32> -> vector<512x8xf32>
    %12 = arith.addf %5, %11 : vector<512x8xf32>
    %c0_13 = arith.constant 0 : index
    %c0_14 = arith.constant 0 : index
    %c2 = arith.constant 2 : index
    %c0_15 = arith.constant 0 : index
    %13 = vector.load %arg0[%c0_13, %c0_14, %c2, %c0_15] : memref<2x18x18x4xf32, #tpu.memory_space<vmem>>, vector<2x16x16x4xf32>
    %14 = vector.shape_cast %13 : vector<2x16x16x4xf32> to vector<512x4xf32>
    %15 = arith.truncf %14 : vector<512x4xf32> to vector<512x4xbf16>
    %c2_16 = arith.constant 2 : index
    %c0_17 = arith.constant 0 : index
    %c0_18 = arith.constant 0 : index
    %16 = vector.load %arg1[%c2_16, %c0_17, %c0_18] : memref<9x4x8xbf16, #tpu.memory_space<vmem>>, vector<1x4x8xbf16>
    %17 = vector.shape_cast %16 : vector<1x4x8xbf16> to vector<4x8xbf16>
    %cst_19 = arith.constant dense<0.000000e+00> : vector<512x8xf32>
    %18 = tpu.matmul %15, %17, %cst_19 {dimension_numbers = #tpu.dot_dimension_numbers<[1], [0], [0], [1], [0, 0, 1, 1], [], []>} : vector<512x4xbf16>, vector<4x8xbf16>, vector<512x8xf32> -> vector<512x8xf32>
    %19 = arith.addf %12, %18 : vector<512x8xf32>
    %c0_20 = arith.constant 0 : index
    %c1_21 = arith.constant 1 : index
    %c0_22 = arith.constant 0 : index
    %c0_23 = arith.constant 0 : index
    %20 = vector.load %arg0[%c0_20, %c1_21, %c0_22, %c0_23] : memref<2x18x18x4xf32, #tpu.memory_space<vmem>>, vector<2x16x16x4xf32>
    %21 = vector.shape_cast %20 : vector<2x16x16x4xf32> to vector<512x4xf32>
    %22 = arith.truncf %21 : vector<512x4xf32> to vector<512x4xbf16>
    %c3 = arith.constant 3 : index
    %c0_24 = arith.constant 0 : index
    %c0_25 = arith.constant 0 : index
    %23 = vector.load %arg1[%c3, %c0_24, %c0_25] : memref<9x4x8xbf16, #tpu.memory_space<vmem>>, vector<1x4x8xbf16>
    %24 = vector.shape_cast %23 : vector<1x4x8xbf16> to vector<4x8xbf16>
    %cst_26 = arith.constant dense<0.000000e+00> : vector<512x8xf32>
    %25 = tpu.matmul %22, %24, %cst_26 {dimension_numbers = #tpu.dot_dimension_numbers<[1], [0], [0], [1], [0, 0, 1, 1], [], []>} : vector<512x4xbf16>, vector<4x8xbf16>, vector<512x8xf32> -> vector<512x8xf32>
    %26 = arith.addf %19, %25 : vector<512x8xf32>
    %c0_27 = arith.constant 0 : index
    %c1_28 = arith.constant 1 : index
    %c1_29 = arith.constant 1 : index
    %c0_30 = arith.constant 0 : index
    %27 = vector.load %arg0[%c0_27, %c1_28, %c1_29, %c0_30] : memref<2x18x18x4xf32, #tpu.memory_space<vmem>>, vector<2x16x16x4xf32>
    %28 = vector.shape_cast %27 : vector<2x16x16x4xf32> to vector<512x4xf32>
    %29 = arith.truncf %28 : vector<512x4xf32> to vector<512x4xbf16>
    %c4 = arith.constant 4 : index
    %c0_31 = arith.constant 0 : index
    %c0_32 = arith.constant 0 : index
    %30 = vector.load %arg1[%c4, %c0_31, %c0_32] : memref<9x4x8xbf16, #tpu.memory_space<vmem>>, vector<1x4x8xbf16>
    %31 = vector.shape_cast %30 : vector<1x4x8xbf16> to vector<4x8xbf16>
    %cst_33 = arith.constant dense<0.000000e+00> : vector<512x8xf32>
    %32 = tpu.matmul %29, %31, %cst_33 {dimension_numbers = #tpu.dot_dimension_numbers<[1], [0], [0], [1], [0, 0, 1, 1], [], []>} : vector<512x4xbf16>, vector<4x8xbf16>, vector<512x8xf32> -> vector<512x8xf32>
    %33 = arith.addf %26, %32 : vector<512x8xf32>
    %c0_34 = arith.constant 0 : index
    %c1_35 = arith.constant 1 : index
    %c2_36 = arith.constant 2 : index
    %c0_37 = arith.constant 0 : index
    %34 = vector.load %arg0[%c0_34, %c1_35, %c2_36, %c0_37] : memref<2x18x18x4xf32, #tpu.memory_space<vmem>>, vector<2x16x16x4xf32>
    %35 = vector.shape_cast %34 : vector<2x16x16x4xf32> to vector<512x4xf32>
    %36 = arith.truncf %35 : vector<512x4xf32> to vector<512x4xbf16>
    %c5 = arith.constant 5 : index
    %c0_38 = arith.constant 0 : index
    %c0_39 = arith.constant 0 : index
    %37 = vector.load %arg1[%c5, %c0_38, %c0_39] : memref<9x4x8xbf16, #tpu.memory_space<vmem>>, vector<1x4x8xbf16>
    %38 = vector.shape_cast %37 : vector<1x4x8xbf16> to vector<4x8xbf16>
    %cst_40 = arith.constant dense<0.000000e+00> : vector<512x8xf32>
    %39 = tpu.matmul %36, %38, %cst_40 {dimension_numbers = #tpu.dot_dimension_numbers<[1], [0], [0], [1], [0, 0, 1, 1], [], []>} : vector<512x4xbf16>, vector<4x8xbf16>, vector<512x8xf32> -> vector<512x8xf32>
    %40 = arith.addf %33, %39 : vector<512x8xf32>
    %c0_41 = arith.constant 0 : index
    %c2_42 = arith.constant 2 : index
    %c0_43 = arith.constant 0 : index
    %c0_44 = arith.constant 0 : index
    %41 = vector.load %arg0[%c0_41, %c2_42, %c0_43, %c0_44] : memref<2x18x18x4xf32, #tpu.memory_space<vmem>>, vector<2x16x16x4xf32>
    %42 = vector.shape_cast %41 : vector<2x16x16x4xf32> to vector<512x4xf32>
    %43 = arith.truncf %42 : vector<512x4xf32> to vector<512x4xbf16>
    %c6 = arith.constant 6 : index
    %c0_45 = arith.constant 0 : index
    %c0_46 = arith.constant 0 : index
    %44 = vector.load %arg1[%c6, %c0_45, %c0_46] : memref<9x4x8xbf16, #tpu.memory_space<vmem>>, vector<1x4x8xbf16>
    %45 = vector.shape_cast %44 : vector<1x4x8xbf16> to vector<4x8xbf16>
    %cst_47 = arith.constant dense<0.000000e+00> : vector<512x8xf32>
    %46 = tpu.matmul %43, %45, %cst_47 {dimension_numbers = #tpu.dot_dimension_numbers<[1], [0], [0], [1], [0, 0, 1, 1], [], []>} : vector<512x4xbf16>, vector<4x8xbf16>, vector<512x8xf32> -> vector<512x8xf32>
    %47 = arith.addf %40, %46 : vector<512x8xf32>
    %c0_48 = arith.constant 0 : index
    %c2_49 = arith.constant 2 : index
    %c1_50 = arith.constant 1 : index
    %c0_51 = arith.constant 0 : index
    %48 = vector.load %arg0[%c0_48, %c2_49, %c1_50, %c0_51] : memref<2x18x18x4xf32, #tpu.memory_space<vmem>>, vector<2x16x16x4xf32>
    %49 = vector.shape_cast %48 : vector<2x16x16x4xf32> to vector<512x4xf32>
    %50 = arith.truncf %49 : vector<512x4xf32> to vector<512x4xbf16>
    %c7 = arith.constant 7 : index
    %c0_52 = arith.constant 0 : index
    %c0_53 = arith.constant 0 : index
    %51 = vector.load %arg1[%c7, %c0_52, %c0_53] : memref<9x4x8xbf16, #tpu.memory_space<vmem>>, vector<1x4x8xbf16>
    %52 = vector.shape_cast %51 : vector<1x4x8xbf16> to vector<4x8xbf16>
    %cst_54 = arith.constant dense<0.000000e+00> : vector<512x8xf32>
    %53 = tpu.matmul %50, %52, %cst_54 {dimension_numbers = #tpu.dot_dimension_numbers<[1], [0], [0], [1], [0, 0, 1, 1], [], []>} : vector<512x4xbf16>, vector<4x8xbf16>, vector<512x8xf32> -> vector<512x8xf32>
    %54 = arith.addf %47, %53 : vector<512x8xf32>
    %c0_55 = arith.constant 0 : index
    %c2_56 = arith.constant 2 : index
    %c2_57 = arith.constant 2 : index
    %c0_58 = arith.constant 0 : index
    %55 = vector.load %arg0[%c0_55, %c2_56, %c2_57, %c0_58] : memref<2x18x18x4xf32, #tpu.memory_space<vmem>>, vector<2x16x16x4xf32>
    %56 = vector.shape_cast %55 : vector<2x16x16x4xf32> to vector<512x4xf32>
    %57 = arith.truncf %56 : vector<512x4xf32> to vector<512x4xbf16>
    %c8 = arith.constant 8 : index
    %c0_59 = arith.constant 0 : index
    %c0_60 = arith.constant 0 : index
    %58 = vector.load %arg1[%c8, %c0_59, %c0_60] : memref<9x4x8xbf16, #tpu.memory_space<vmem>>, vector<1x4x8xbf16>
    %59 = vector.shape_cast %58 : vector<1x4x8xbf16> to vector<4x8xbf16>
    %cst_61 = arith.constant dense<0.000000e+00> : vector<512x8xf32>
    %60 = tpu.matmul %57, %59, %cst_61 {dimension_numbers = #tpu.dot_dimension_numbers<[1], [0], [0], [1], [0, 0, 1, 1], [], []>} : vector<512x4xbf16>, vector<4x8xbf16>, vector<512x8xf32> -> vector<512x8xf32>
    %61 = arith.addf %54, %60 : vector<512x8xf32>
    %cst_62 = arith.constant dense<0.000000e+00> : vector<8xf32>
    %62 = vector.multi_reduction <add>, %61, %cst_62 [0] : vector<512x8xf32> to vector<8xf32>
    %63 = vector.shape_cast %62 : vector<8xf32> to vector<1x8xf32>
    %cst_63 = arith.constant 0.001953125 : f32
    %64 = vector.broadcast %cst_63 : f32 to vector<1x8xf32>
    %65 = arith.mulf %63, %64 : vector<1x8xf32>
    %66 = arith.mulf %61, %61 : vector<512x8xf32>
    %cst_64 = arith.constant dense<0.000000e+00> : vector<8xf32>
    %67 = vector.multi_reduction <add>, %66, %cst_64 [0] : vector<512x8xf32> to vector<8xf32>
    %68 = vector.shape_cast %67 : vector<8xf32> to vector<1x8xf32>
    %cst_65 = arith.constant 0.001953125 : f32
    %69 = vector.broadcast %cst_65 : f32 to vector<1x8xf32>
    %70 = arith.mulf %68, %69 : vector<1x8xf32>
    %71 = arith.mulf %65, %65 : vector<1x8xf32>
    %72 = arith.subf %70, %71 : vector<1x8xf32>
    %cst_66 = arith.constant 0.000000e+00 : f32
    %73 = vector.broadcast %cst_66 : f32 to vector<1x8xf32>
    %74 = arith.maximumf %72, %73 : vector<1x8xf32>
    %c0_67 = arith.constant 0 : index
    %c0_68 = arith.constant 0 : index
    %75 = vector.load %arg2[%c0_67, %c0_68] : memref<1x8xf32, #tpu.memory_space<vmem>>, vector<1x8xf32>
    %cst_69 = arith.constant 9.99999974E-6 : f32
    %76 = vector.broadcast %cst_69 : f32 to vector<1x8xf32>
    %77 = arith.addf %74, %76 : vector<1x8xf32>
    %78 = math.rsqrt %77 : vector<1x8xf32>
    %79 = arith.mulf %75, %78 : vector<1x8xf32>
    %c0_70 = arith.constant 0 : index
    %c0_71 = arith.constant 0 : index
    %80 = vector.load %arg3[%c0_70, %c0_71] : memref<1x8xf32, #tpu.memory_space<vmem>>, vector<1x8xf32>
    %81 = arith.mulf %65, %79 : vector<1x8xf32>
    %82 = arith.subf %80, %81 : vector<1x8xf32>
    %83 = vector.broadcast %79 : vector<1x8xf32> to vector<512x8xf32>
    %84 = arith.mulf %61, %83 : vector<512x8xf32>
    %85 = vector.broadcast %82 : vector<1x8xf32> to vector<512x8xf32>
    %86 = arith.addf %84, %85 : vector<512x8xf32>
    %cst_72 = arith.constant 0.00999999977 : f32
    %87 = vector.broadcast %cst_72 : f32 to vector<512x8xf32>
    %88 = arith.mulf %87, %86 : vector<512x8xf32>
    %89 = arith.maximumf %86, %88 : vector<512x8xf32>
    %cst_73 = arith.constant 0.000000e+00 : f32
    %90 = vector.broadcast %cst_73 : f32 to vector<2x1x18x8xf32>
    %cst_74 = arith.constant 0.000000e+00 : f32
    %91 = vector.broadcast %cst_74 : f32 to vector<2x16x1x8xf32>
    %c0_75 = arith.constant 0 : index
    %c0_76 = arith.constant 0 : index
    %c0_77 = arith.constant 0 : index
    %c0_78 = arith.constant 0 : index
    %92 = vector.load %arg10[%c0_75, %c0_76, %c0_77, %c0_78] : memref<2x18x18x8xf32, #tpu.memory_space<vmem>>, vector<2x1x18x8xf32>
    tpu.vector_store %arg10[%c0_75, %c0_76, %c0_77, %c0_78], %90 {strides = array<i32>} : memref<2x18x18x8xf32, #tpu.memory_space<vmem>>, vector<2x1x18x8xf32>,
    %c0_79 = arith.constant 0 : index
    %c17 = arith.constant 17 : index
    %c0_80 = arith.constant 0 : index
    %c0_81 = arith.constant 0 : index
    %93 = vector.load %arg10[%c0_79, %c17, %c0_80, %c0_81] : memref<2x18x18x8xf32, #tpu.memory_space<vmem>>, vector<2x1x18x8xf32>
    tpu.vector_store %arg10[%c0_79, %c17, %c0_80, %c0_81], %90 {strides = array<i32>} : memref<2x18x18x8xf32, #tpu.memory_space<vmem>>, vector<2x1x18x8xf32>,
    %c0_82 = arith.constant 0 : index
    %c1_83 = arith.constant 1 : index
    %c0_84 = arith.constant 0 : index
    %c0_85 = arith.constant 0 : index
    %94 = vector.load %arg10[%c0_82, %c1_83, %c0_84, %c0_85] : memref<2x18x18x8xf32, #tpu.memory_space<vmem>>, vector<2x16x1x8xf32>
    tpu.vector_store %arg10[%c0_82, %c1_83, %c0_84, %c0_85], %91 {strides = array<i32>} : memref<2x18x18x8xf32, #tpu.memory_space<vmem>>, vector<2x16x1x8xf32>,
    %c0_86 = arith.constant 0 : index
    %c1_87 = arith.constant 1 : index
    %c17_88 = arith.constant 17 : index
    %c0_89 = arith.constant 0 : index
    %95 = vector.load %arg10[%c0_86, %c1_87, %c17_88, %c0_89] : memref<2x18x18x8xf32, #tpu.memory_space<vmem>>, vector<2x16x1x8xf32>
    tpu.vector_store %arg10[%c0_86, %c1_87, %c17_88, %c0_89], %91 {strides = array<i32>} : memref<2x18x18x8xf32, #tpu.memory_space<vmem>>, vector<2x16x1x8xf32>,
    %96 = vector.shape_cast %89 : vector<512x8xf32> to vector<2x16x16x8xf32>
    %c0_90 = arith.constant 0 : index
    %c1_91 = arith.constant 1 : index
    %c1_92 = arith.constant 1 : index
    %c0_93 = arith.constant 0 : index
    %97 = vector.load %arg10[%c0_90, %c1_91, %c1_92, %c0_93] : memref<2x18x18x8xf32, #tpu.memory_space<vmem>>, vector<2x16x16x8xf32>
    tpu.vector_store %arg10[%c0_90, %c1_91, %c1_92, %c0_93], %96 {strides = array<i32>} : memref<2x18x18x8xf32, #tpu.memory_space<vmem>>, vector<2x16x16x8xf32>,
    %c0_94 = arith.constant 0 : index
    %c0_95 = arith.constant 0 : index
    %c0_96 = arith.constant 0 : index
    %c0_97 = arith.constant 0 : index
    %98 = vector.load %arg10[%c0_94, %c0_95, %c0_96, %c0_97] : memref<2x18x18x8xf32, #tpu.memory_space<vmem>>, vector<2x16x16x8xf32>
    %99 = vector.shape_cast %98 : vector<2x16x16x8xf32> to vector<512x8xf32>
    %100 = arith.truncf %99 : vector<512x8xf32> to vector<512x8xbf16>
    %c0_98 = arith.constant 0 : index
    %c0_99 = arith.constant 0 : index
    %c0_100 = arith.constant 0 : index
    %101 = vector.load %arg4[%c0_98, %c0_99, %c0_100] : memref<9x8x8xbf16, #tpu.memory_space<vmem>>, vector<1x8x8xbf16>
    %102 = vector.shape_cast %101 : vector<1x8x8xbf16> to vector<8x8xbf16>
    %cst_101 = arith.constant dense<0.000000e+00> : vector<512x8xf32>
    %103 = tpu.matmul %100, %102, %cst_101 {dimension_numbers = #tpu.dot_dimension_numbers<[1], [0], [0], [1], [0, 0, 1, 1], [], []>} : vector<512x8xbf16>, vector<8x8xbf16>, vector<512x8xf32> -> vector<512x8xf32>
    %c0_102 = arith.constant 0 : index
    %c0_103 = arith.constant 0 : index
    %c1_104 = arith.constant 1 : index
    %c0_105 = arith.constant 0 : index
    %104 = vector.load %arg10[%c0_102, %c0_103, %c1_104, %c0_105] : memref<2x18x18x8xf32, #tpu.memory_space<vmem>>, vector<2x16x16x8xf32>
    %105 = vector.shape_cast %104 : vector<2x16x16x8xf32> to vector<512x8xf32>
    %106 = arith.truncf %105 : vector<512x8xf32> to vector<512x8xbf16>
    %c1_106 = arith.constant 1 : index
    %c0_107 = arith.constant 0 : index
    %c0_108 = arith.constant 0 : index
    %107 = vector.load %arg4[%c1_106, %c0_107, %c0_108] : memref<9x8x8xbf16, #tpu.memory_space<vmem>>, vector<1x8x8xbf16>
    %108 = vector.shape_cast %107 : vector<1x8x8xbf16> to vector<8x8xbf16>
    %cst_109 = arith.constant dense<0.000000e+00> : vector<512x8xf32>
    %109 = tpu.matmul %106, %108, %cst_109 {dimension_numbers = #tpu.dot_dimension_numbers<[1], [0], [0], [1], [0, 0, 1, 1], [], []>} : vector<512x8xbf16>, vector<8x8xbf16>, vector<512x8xf32> -> vector<512x8xf32>
    %110 = arith.addf %103, %109 : vector<512x8xf32>
    %c0_110 = arith.constant 0 : index
    %c0_111 = arith.constant 0 : index
    %c2_112 = arith.constant 2 : index
    %c0_113 = arith.constant 0 : index
    %111 = vector.load %arg10[%c0_110, %c0_111, %c2_112, %c0_113] : memref<2x18x18x8xf32, #tpu.memory_space<vmem>>, vector<2x16x16x8xf32>
    %112 = vector.shape_cast %111 : vector<2x16x16x8xf32> to vector<512x8xf32>
    %113 = arith.truncf %112 : vector<512x8xf32> to vector<512x8xbf16>
    %c2_114 = arith.constant 2 : index
    %c0_115 = arith.constant 0 : index
    %c0_116 = arith.constant 0 : index
    %114 = vector.load %arg4[%c2_114, %c0_115, %c0_116] : memref<9x8x8xbf16, #tpu.memory_space<vmem>>, vector<1x8x8xbf16>
    %115 = vector.shape_cast %114 : vector<1x8x8xbf16> to vector<8x8xbf16>
    %cst_117 = arith.constant dense<0.000000e+00> : vector<512x8xf32>
    %116 = tpu.matmul %113, %115, %cst_117 {dimension_numbers = #tpu.dot_dimension_numbers<[1], [0], [0], [1], [0, 0, 1, 1], [], []>} : vector<512x8xbf16>, vector<8x8xbf16>, vector<512x8xf32> -> vector<512x8xf32>
    %117 = arith.addf %110, %116 : vector<512x8xf32>
    %c0_118 = arith.constant 0 : index
    %c1_119 = arith.constant 1 : index
    %c0_120 = arith.constant 0 : index
    %c0_121 = arith.constant 0 : index
    %118 = vector.load %arg10[%c0_118, %c1_119, %c0_120, %c0_121] : memref<2x18x18x8xf32, #tpu.memory_space<vmem>>, vector<2x16x16x8xf32>
    %119 = vector.shape_cast %118 : vector<2x16x16x8xf32> to vector<512x8xf32>
    %120 = arith.truncf %119 : vector<512x8xf32> to vector<512x8xbf16>
    %c3_122 = arith.constant 3 : index
    %c0_123 = arith.constant 0 : index
    %c0_124 = arith.constant 0 : index
    %121 = vector.load %arg4[%c3_122, %c0_123, %c0_124] : memref<9x8x8xbf16, #tpu.memory_space<vmem>>, vector<1x8x8xbf16>
    %122 = vector.shape_cast %121 : vector<1x8x8xbf16> to vector<8x8xbf16>
    %cst_125 = arith.constant dense<0.000000e+00> : vector<512x8xf32>
    %123 = tpu.matmul %120, %122, %cst_125 {dimension_numbers = #tpu.dot_dimension_numbers<[1], [0], [0], [1], [0, 0, 1, 1], [], []>} : vector<512x8xbf16>, vector<8x8xbf16>, vector<512x8xf32> -> vector<512x8xf32>
    %124 = arith.addf %117, %123 : vector<512x8xf32>
    %c0_126 = arith.constant 0 : index
    %c1_127 = arith.constant 1 : index
    %c1_128 = arith.constant 1 : index
    %c0_129 = arith.constant 0 : index
    %125 = vector.load %arg10[%c0_126, %c1_127, %c1_128, %c0_129] : memref<2x18x18x8xf32, #tpu.memory_space<vmem>>, vector<2x16x16x8xf32>
    %126 = vector.shape_cast %125 : vector<2x16x16x8xf32> to vector<512x8xf32>
    %127 = arith.truncf %126 : vector<512x8xf32> to vector<512x8xbf16>
    %c4_130 = arith.constant 4 : index
    %c0_131 = arith.constant 0 : index
    %c0_132 = arith.constant 0 : index
    %128 = vector.load %arg4[%c4_130, %c0_131, %c0_132] : memref<9x8x8xbf16, #tpu.memory_space<vmem>>, vector<1x8x8xbf16>
    %129 = vector.shape_cast %128 : vector<1x8x8xbf16> to vector<8x8xbf16>
    %cst_133 = arith.constant dense<0.000000e+00> : vector<512x8xf32>
    %130 = tpu.matmul %127, %129, %cst_133 {dimension_numbers = #tpu.dot_dimension_numbers<[1], [0], [0], [1], [0, 0, 1, 1], [], []>} : vector<512x8xbf16>, vector<8x8xbf16>, vector<512x8xf32> -> vector<512x8xf32>
    %131 = arith.addf %124, %130 : vector<512x8xf32>
    %c0_134 = arith.constant 0 : index
    %c1_135 = arith.constant 1 : index
    %c2_136 = arith.constant 2 : index
    %c0_137 = arith.constant 0 : index
    %132 = vector.load %arg10[%c0_134, %c1_135, %c2_136, %c0_137] : memref<2x18x18x8xf32, #tpu.memory_space<vmem>>, vector<2x16x16x8xf32>
    %133 = vector.shape_cast %132 : vector<2x16x16x8xf32> to vector<512x8xf32>
    %134 = arith.truncf %133 : vector<512x8xf32> to vector<512x8xbf16>
    %c5_138 = arith.constant 5 : index
    %c0_139 = arith.constant 0 : index
    %c0_140 = arith.constant 0 : index
    %135 = vector.load %arg4[%c5_138, %c0_139, %c0_140] : memref<9x8x8xbf16, #tpu.memory_space<vmem>>, vector<1x8x8xbf16>
    %136 = vector.shape_cast %135 : vector<1x8x8xbf16> to vector<8x8xbf16>
    %cst_141 = arith.constant dense<0.000000e+00> : vector<512x8xf32>
    %137 = tpu.matmul %134, %136, %cst_141 {dimension_numbers = #tpu.dot_dimension_numbers<[1], [0], [0], [1], [0, 0, 1, 1], [], []>} : vector<512x8xbf16>, vector<8x8xbf16>, vector<512x8xf32> -> vector<512x8xf32>
    %138 = arith.addf %131, %137 : vector<512x8xf32>
    %c0_142 = arith.constant 0 : index
    %c2_143 = arith.constant 2 : index
    %c0_144 = arith.constant 0 : index
    %c0_145 = arith.constant 0 : index
    %139 = vector.load %arg10[%c0_142, %c2_143, %c0_144, %c0_145] : memref<2x18x18x8xf32, #tpu.memory_space<vmem>>, vector<2x16x16x8xf32>
    %140 = vector.shape_cast %139 : vector<2x16x16x8xf32> to vector<512x8xf32>
    %141 = arith.truncf %140 : vector<512x8xf32> to vector<512x8xbf16>
    %c6_146 = arith.constant 6 : index
    %c0_147 = arith.constant 0 : index
    %c0_148 = arith.constant 0 : index
    %142 = vector.load %arg4[%c6_146, %c0_147, %c0_148] : memref<9x8x8xbf16, #tpu.memory_space<vmem>>, vector<1x8x8xbf16>
    %143 = vector.shape_cast %142 : vector<1x8x8xbf16> to vector<8x8xbf16>
    %cst_149 = arith.constant dense<0.000000e+00> : vector<512x8xf32>
    %144 = tpu.matmul %141, %143, %cst_149 {dimension_numbers = #tpu.dot_dimension_numbers<[1], [0], [0], [1], [0, 0, 1, 1], [], []>} : vector<512x8xbf16>, vector<8x8xbf16>, vector<512x8xf32> -> vector<512x8xf32>
    %145 = arith.addf %138, %144 : vector<512x8xf32>
    %c0_150 = arith.constant 0 : index
    %c2_151 = arith.constant 2 : index
    %c1_152 = arith.constant 1 : index
    %c0_153 = arith.constant 0 : index
    %146 = vector.load %arg10[%c0_150, %c2_151, %c1_152, %c0_153] : memref<2x18x18x8xf32, #tpu.memory_space<vmem>>, vector<2x16x16x8xf32>
    %147 = vector.shape_cast %146 : vector<2x16x16x8xf32> to vector<512x8xf32>
    %148 = arith.truncf %147 : vector<512x8xf32> to vector<512x8xbf16>
    %c7_154 = arith.constant 7 : index
    %c0_155 = arith.constant 0 : index
    %c0_156 = arith.constant 0 : index
    %149 = vector.load %arg4[%c7_154, %c0_155, %c0_156] : memref<9x8x8xbf16, #tpu.memory_space<vmem>>, vector<1x8x8xbf16>
    %150 = vector.shape_cast %149 : vector<1x8x8xbf16> to vector<8x8xbf16>
    %cst_157 = arith.constant dense<0.000000e+00> : vector<512x8xf32>
    %151 = tpu.matmul %148, %150, %cst_157 {dimension_numbers = #tpu.dot_dimension_numbers<[1], [0], [0], [1], [0, 0, 1, 1], [], []>} : vector<512x8xbf16>, vector<8x8xbf16>, vector<512x8xf32> -> vector<512x8xf32>
    %152 = arith.addf %145, %151 : vector<512x8xf32>
    %c0_158 = arith.constant 0 : index
    %c2_159 = arith.constant 2 : index
    %c2_160 = arith.constant 2 : index
    %c0_161 = arith.constant 0 : index
    %153 = vector.load %arg10[%c0_158, %c2_159, %c2_160, %c0_161] : memref<2x18x18x8xf32, #tpu.memory_space<vmem>>, vector<2x16x16x8xf32>
    %154 = vector.shape_cast %153 : vector<2x16x16x8xf32> to vector<512x8xf32>
    %155 = arith.truncf %154 : vector<512x8xf32> to vector<512x8xbf16>
    %c8_162 = arith.constant 8 : index
    %c0_163 = arith.constant 0 : index
    %c0_164 = arith.constant 0 : index
    %156 = vector.load %arg4[%c8_162, %c0_163, %c0_164] : memref<9x8x8xbf16, #tpu.memory_space<vmem>>, vector<1x8x8xbf16>
    %157 = vector.shape_cast %156 : vector<1x8x8xbf16> to vector<8x8xbf16>
    %cst_165 = arith.constant dense<0.000000e+00> : vector<512x8xf32>
    %158 = tpu.matmul %155, %157, %cst_165 {dimension_numbers = #tpu.dot_dimension_numbers<[1], [0], [0], [1], [0, 0, 1, 1], [], []>} : vector<512x8xbf16>, vector<8x8xbf16>, vector<512x8xf32> -> vector<512x8xf32>
    %159 = arith.addf %152, %158 : vector<512x8xf32>
    %cst_166 = arith.constant dense<0.000000e+00> : vector<8xf32>
    %160 = vector.multi_reduction <add>, %159, %cst_166 [0] : vector<512x8xf32> to vector<8xf32>
    %161 = vector.shape_cast %160 : vector<8xf32> to vector<1x8xf32>
    %cst_167 = arith.constant 0.001953125 : f32
    %162 = vector.broadcast %cst_167 : f32 to vector<1x8xf32>
    %163 = arith.mulf %161, %162 : vector<1x8xf32>
    %164 = arith.mulf %159, %159 : vector<512x8xf32>
    %cst_168 = arith.constant dense<0.000000e+00> : vector<8xf32>
    %165 = vector.multi_reduction <add>, %164, %cst_168 [0] : vector<512x8xf32> to vector<8xf32>
    %166 = vector.shape_cast %165 : vector<8xf32> to vector<1x8xf32>
    %cst_169 = arith.constant 0.001953125 : f32
    %167 = vector.broadcast %cst_169 : f32 to vector<1x8xf32>
    %168 = arith.mulf %166, %167 : vector<1x8xf32>
    %169 = arith.mulf %163, %163 : vector<1x8xf32>
    %170 = arith.subf %168, %169 : vector<1x8xf32>
    %cst_170 = arith.constant 0.000000e+00 : f32
    %171 = vector.broadcast %cst_170 : f32 to vector<1x8xf32>
    %172 = arith.maximumf %170, %171 : vector<1x8xf32>
    %c0_171 = arith.constant 0 : index
    %c0_172 = arith.constant 0 : index
    %173 = vector.load %arg5[%c0_171, %c0_172] : memref<1x8xf32, #tpu.memory_space<vmem>>, vector<1x8xf32>
    %cst_173 = arith.constant 9.99999974E-6 : f32
    %174 = vector.broadcast %cst_173 : f32 to vector<1x8xf32>
    %175 = arith.addf %172, %174 : vector<1x8xf32>
    %176 = math.rsqrt %175 : vector<1x8xf32>
    %177 = arith.mulf %173, %176 : vector<1x8xf32>
    %c0_174 = arith.constant 0 : index
    %c0_175 = arith.constant 0 : index
    %178 = vector.load %arg6[%c0_174, %c0_175] : memref<1x8xf32, #tpu.memory_space<vmem>>, vector<1x8xf32>
    %179 = arith.mulf %163, %177 : vector<1x8xf32>
    %180 = arith.subf %178, %179 : vector<1x8xf32>
    %181 = vector.broadcast %177 : vector<1x8xf32> to vector<512x8xf32>
    %182 = arith.mulf %159, %181 : vector<512x8xf32>
    %183 = vector.broadcast %180 : vector<1x8xf32> to vector<512x8xf32>
    %184 = arith.addf %182, %183 : vector<512x8xf32>
    %cst_176 = arith.constant 0.00999999977 : f32
    %185 = vector.broadcast %cst_176 : f32 to vector<512x8xf32>
    %186 = arith.mulf %185, %184 : vector<512x8xf32>
    %187 = arith.maximumf %184, %186 : vector<512x8xf32>
    %c0_177 = arith.constant 0 : index
    %c1_178 = arith.constant 1 : index
    %c1_179 = arith.constant 1 : index
    %c0_180 = arith.constant 0 : index
    %188 = vector.load %arg0[%c0_177, %c1_178, %c1_179, %c0_180] : memref<2x18x18x4xf32, #tpu.memory_space<vmem>>, vector<2x16x16x4xf32>
    %189 = vector.shape_cast %188 : vector<2x16x16x4xf32> to vector<512x4xf32>
    %190 = arith.truncf %189 : vector<512x4xf32> to vector<512x4xbf16>
    %c0_181 = arith.constant 0 : index
    %c0_182 = arith.constant 0 : index
    %191 = vector.load %arg7[%c0_181, %c0_182] : memref<4x8xbf16, #tpu.memory_space<vmem>>, vector<4x8xbf16>
    %cst_183 = arith.constant dense<0.000000e+00> : vector<512x8xf32>
    %192 = tpu.matmul %190, %191, %cst_183 {dimension_numbers = #tpu.dot_dimension_numbers<[1], [0], [0], [1], [0, 0, 1, 1], [], []>} : vector<512x4xbf16>, vector<4x8xbf16>, vector<512x8xf32> -> vector<512x8xf32>
    %c0_184 = arith.constant 0 : index
    %c0_185 = arith.constant 0 : index
    %193 = vector.load %arg8[%c0_184, %c0_185] : memref<1x8xf32, #tpu.memory_space<vmem>>, vector<1x8xf32>
    %194 = vector.broadcast %193 : vector<1x8xf32> to vector<512x8xf32>
    %195 = arith.addf %192, %194 : vector<512x8xf32>
    %196 = arith.addf %195, %187 : vector<512x8xf32>
    %cst_186 = arith.constant 0.00999999977 : f32
    %197 = vector.broadcast %cst_186 : f32 to vector<512x8xf32>
    %198 = arith.mulf %197, %196 : vector<512x8xf32>
    %199 = arith.maximumf %196, %198 : vector<512x8xf32>
    %c0_187 = arith.constant 0 : index
    %c0_188 = arith.constant 0 : index
    %200 = vector.load %arg9[%c0_187, %c0_188] : memref<512x8xf32, #tpu.memory_space<vmem>>, vector<512x8xf32>
    tpu.vector_store %arg9[%c0_187, %c0_188], %199 {strides = array<i32>} : memref<512x8xf32, #tpu.memory_space<vmem>>, vector<512x8xf32>,
    return
  }
}

</mosaic_0001>

<bundles_post_ra>
// kernel: residual_block_forward.1
= control target key start
LH: loop header
LB: loop body
LE: loop exit
PB: predicated region body
PF: predicated region fallthrough
CT: control target
= control target key end

     0   :  { %vm325_vm0 = vcmask 1041408   ;;  %vm228_vm1 = vcmask 31744   ;;  %vm4858_vm2 = vcmask 64512   ;;  %vm5904_vm3 = vcmask 1043456   ;;  %s22108_s1 = inlined_call_operand.vmem [shape: bf16[9,4,8], index: 1, kind: input, shape index: {}]   ;;  %s22109_s0 = inlined_call_operand.vmem [shape: f32[2,18,18,4], index: 0, kind: input, shape index: {}]   ;;  %s22110_s4 = inlined_call_operand.vmem [shape: bf16[9,8,8], index: 4, kind: input, shape index: {}]   ;;  %s22111_s2 = inlined_call_operand.vmem [shape: f32[1,8], index: 2, kind: input, shape index: {}]   ;;  %s22112_s3 = inlined_call_operand.vmem [shape: f32[1,8], index: 3, kind: input, shape index: {}]   ;;  %s22113_s7 = inlined_call_operand.vmem [shape: bf16[4,8], index: 7, kind: input, shape index: {}]   ;;  %s22114_s8 = inlined_call_operand.vmem [shape: f32[1,8], index: 8, kind: input, shape index: {}]   ;;  %s22115_s5 = inlined_call_operand.vmem [shape: f32[1,8], index: 5, kind: input, shape index: {}]   ;;  %s22116_s6 = inlined_call_operand.vmem [shape: f32[1,8], index: 6, kind: input, shape index: {}]   ;;  %s22117_s9 = inlined_call_operand.vmem [shape: f32[512,8], index: 9, kind: output, shape index: {}]  }
   0x1   :  { %v11798_v0 = vld [vmem:[%s22108_s1 + $0x2] sm:$0x3]  ;;  %v131_v2 = vld [vmem:[%s22109_s0 + $0x9] sm:$0xff]  ;;  %v132_v5 = vld [vmem:[%s22109_s0 + $0x19] sm:$0xff]  ;;  %vm5471_vm4 = vcmask 58368   ;;  %vm5484_vm5 = vcmask 57344  }
   0x2   :  { %v130_v1 = vld [vmem:[%s22109_s0 + $0x1] sm:$0xff]  ;;  %15778 = vmatprep.subr.msk.bf16.mxu0 %vm325_vm0, %v11798_v0  ;;  %v327_v3 = vsel %vm325_vm0, %v11798_v0, 0  ;;  %15779 = vmatprep.subr.msk.bf16.mxu1 %vm325_vm0, %v11798_v0  ;;  %v134_v9 = vld [vmem:[%s22109_s0 + $0x31] sm:$0xff]  ;;  %v135_v10 = vld [vmem:[%s22109_s0 + $0x39] sm:$0xff] }
   0x3   :  { %v194_v4 = vpack.c.bf16 %v131_v2, %v130_v1  ;;  %v133_v6 = vld [vmem:[%s22109_s0 + $0x21] sm:$0xff]  ;;  %13499 = vmatpush3.bf16.msra.mxu0 %v327_v3  ;;  %14753 = vmatpush3.bf16.msra.mxu1 %v327_v3  ;;  %v15887_v12 = vpack.c.bf16 %v135_v10, %v134_v9  ;;  %v136_v13 = vld [vmem:[%s22109_s0 + $0x49] sm:$0xff]  ;;  %v137_v14 = vld [vmem:[%s22109_s0 + $0x51] sm:$0xff] }
   0x4   :  { %v129_v7 = vld [vmem:[%s22108_s1] sm:$0x3]  ;;  %v15876_v8 = vpack.c.bf16 %v133_v6, %v132_v5  ;;  %v139_v16 = vld [vmem:[%s22109_s0 + $0x69] sm:$0xff]  ;;  %v15905_v17 = vpack.c.bf16 %v137_v14, %v136_v13  ;;  %v11863_v19 = vld [vmem:[%s22108_s1 + $0x4] sm:$0x3] }
   0x5   :  { %13500 = vmatprep.mubr.msk.bf16.mxu0 %vm228_vm1, %v194_v4  ;;  %15780 = vmatprep.subr.msk.bf16.mxu0 %vm325_vm0, %v129_v7  ;;  %v715_v11 = vsel %vm325_vm0, %v129_v7, 0  ;;  %v138_v15 = vld [vmem:[%s22109_s0 + $0x61] sm:$0xff]  ;;  %v140_v20 = vld [vmem:[%s22109_s0 + $0x79] sm:$0xff]  ;;  %v142_v22 = vld [vmem:[%s22109_s0 + $0x91] sm:$0xff]  ;;  %v1201_v62 = vsel %vm325_vm0, %v11863_v19, 0 }
   0x6   :  { %13501 = vmatmul.mubr.msk.bf16.vlgmr.msra.gmra.mrb[0].mxu0 %vm228_vm1, %v15876_v8  ;;  %v15907_v18 = vpack.c.bf16 %v139_v16, %v138_v15  ;;  %v141_v21 = vld [vmem:[%s22109_s0 + $0x81] sm:$0xff]  ;;  %v143_v23 = vld [vmem:[%s22109_s0 + $0x99] sm:$0xff]  ;;  %v144_v26 = vld [vmem:[%s22109_s0 + $0xa9] sm:$0xff] }
   0x7   :  { %13565 = vmatpush3.bf16.msra.mxu0 %v715_v11  ;;  %13504 = vmatprep.mubr.msk.bf16.mxu0 %vm228_vm1, %v15887_v12  ;;  %v15929_v24 = vpack.c.bf16 %v141_v21, %v140_v20  ;;  %v15931_v25 = vpack.c.bf16 %v143_v23, %v142_v22  ;;  %v145_v27 = vld [vmem:[%s22109_s0 + $0xb1] sm:$0xff]  ;;  %v146_v28 = vld [vmem:[%s22109_s0 + $0xc1] sm:$0xff]  ;;  %v147_v29 = vld [vmem:[%s22109_s0 + $0xc9] sm:$0xff] }
   0x8   :  { %15781 = vmatprep.subr.msk.bf16.mxu0 %vm325_vm0, %v11863_v19  ;;  %v15949_v30 = vpack.c.bf16 %v145_v27, %v144_v26  ;;  %v15951_v31 = vpack.c.bf16 %v147_v29, %v146_v28  ;;  %v148_v32 = vld [vmem:[%s22109_s0 + $0xd9] sm:$0xff]  ;;  %v149_v33 = vld [vmem:[%s22109_s0 + $0xe1] sm:$0xff]  ;;  %v150_v34 = vld [vmem:[%s22109_s0 + $0xf1] sm:$0xff] }
   0x9   :  { %v151_v35 = vld [vmem:[%s22109_s0 + $0xf9] sm:$0xff]  ;;  %v15969_v36 = vpack.c.bf16 %v149_v33, %v148_v32  ;;  %v152_v38 = vld [vmem:[%s22109_s0 + $0x109] sm:$0xff]  ;;  %v153_v39 = vld [vmem:[%s22109_s0 + $0x111] sm:$0xff] }
   0xa   :  { %v15971_v37 = vpack.c.bf16 %v151_v35, %v150_v34  ;;  %v154_v40 = vld [vmem:[%s22109_s0 + $0x121] sm:$0xff]  ;;  %v155_v41 = vld [vmem:[%s22109_s0 + $0x129] sm:$0xff]  ;;  %v15989_v42 = vpack.c.bf16 %v153_v39, %v152_v38  ;;  %v156_v44 = vld [vmem:[%s22109_s0 + $0x139] sm:$0xff] }
   0xb   :  { %v15991_v43 = vpack.c.bf16 %v155_v41, %v154_v40  ;;  %v157_v45 = vld [vmem:[%s22109_s0 + $0x141] sm:$0xff]  ;;  %v158_v46 = vld [vmem:[%s22109_s0 + $0x151] sm:$0xff]  ;;  %v159_v47 = vld [vmem:[%s22109_s0 + $0x159] sm:$0xff] }
   0xc   :  { %v16009_v48 = vpack.c.bf16 %v157_v45, %v156_v44  ;;  %v16011_v49 = vpack.c.bf16 %v159_v47, %v158_v46  ;;  %v160_v50 = vld [vmem:[%s22109_s0 + $0x169] sm:$0xff]  ;;  %v161_v51 = vld [vmem:[%s22109_s0 + $0x171] sm:$0xff]  ;;  %v33_v52 = vld [vmem:[%s22109_s0] sm:$0xff] }
   0xd   :  { %v34_v53 = vld [vmem:[%s22109_s0 + $0x8] sm:$0xff]  ;;  %v16029_v54 = vpack.c.bf16 %v161_v51, %v160_v50  ;;  %v35_v56 = vld [vmem:[%s22109_s0 + $0x18] sm:$0xff]  ;;  %v36_v57 = vld [vmem:[%s22109_s0 + $0x20] sm:$0xff] }
   0xe   :  { %13505 = vmatmul.mubr.msk.bf16.gmra.mrb[4].mxu0 %vm228_vm1, %v15905_v17  ;;  %v97_v55 = vpack.c.bf16 %v34_v53, %v33_v52  ;;  %v37_v58 = vld [vmem:[%s22109_s0 + $0x30] sm:$0xff]  ;;  %v38_v59 = vld [vmem:[%s22109_s0 + $0x38] sm:$0xff]  ;;  %v16046_v60 = vpack.c.bf16 %v36_v57, %v35_v56  ;;  %v16056_v63 = vld [vmem:[%s22108_s1 + $0x6] sm:$0x3] }
   0xf   :  { %13508 = vmatprep.mubr.msk.bf16.mxu0 %vm228_vm1, %v15907_v18  ;;  %v16048_v61 = vpack.c.bf16 %v38_v59, %v37_v58  ;;  %v39_v0 = vld [vmem:[%s22109_s0 + $0x48] sm:$0xff]  ;;  %v40_v1 = vld [vmem:[%s22109_s0 + $0x50] sm:$0xff]  ;;  %v41_v2 = vld [vmem:[%s22109_s0 + $0x60] sm:$0xff] }
  0x10   :  { %v42_v3 = vld [vmem:[%s22109_s0 + $0x68] sm:$0xff]  ;;  %v16074_v4 = vpack.c.bf16 %v40_v1, %v39_v0  ;;  %v43_v6 = vld [vmem:[%s22109_s0 + $0x78] sm:$0xff]  ;;  %v44_v7 = vld [vmem:[%s22109_s0 + $0x80] sm:$0xff] }
  0x11   :  { %v16076_v5 = vpack.c.bf16 %v42_v3, %v41_v2  ;;  %v45_v9 = vld [vmem:[%s22109_s0 + $0x90] sm:$0xff]  ;;  %v46_v10 = vld [vmem:[%s22109_s0 + $0x98] sm:$0xff]  ;;  %v16094_v11 = vpack.c.bf16 %v44_v7, %v43_v6  ;;  %v47_v14 = vld [vmem:[%s22109_s0 + $0xa8] sm:$0xff] }
  0x12   :  { %v16096_v13 = vpack.c.bf16 %v46_v10, %v45_v9  ;;  %v48_v15 = vld [vmem:[%s22109_s0 + $0xb0] sm:$0xff]  ;;  %v49_v16 = vld [vmem:[%s22109_s0 + $0xc0] sm:$0xff]  ;;  %v50_v19 = vld [vmem:[%s22109_s0 + $0xc8] sm:$0xff] }
  0x13   :  { %v16114_v20 = vpack.c.bf16 %v48_v15, %v47_v14  ;;  %v16116_v21 = vpack.c.bf16 %v50_v19, %v49_v16  ;;  %v51_v22 = vld [vmem:[%s22109_s0 + $0xd8] sm:$0xff]  ;;  %v52_v23 = vld [vmem:[%s22109_s0 + $0xe0] sm:$0xff]  ;;  %v53_v26 = vld [vmem:[%s22109_s0 + $0xf0] sm:$0xff] }
  0x14   :  { %v54_v27 = vld [vmem:[%s22109_s0 + $0xf8] sm:$0xff]  ;;  %v16134_v28 = vpack.c.bf16 %v52_v23, %v51_v22  ;;  %v55_v32 = vld [vmem:[%s22109_s0 + $0x108] sm:$0xff]  ;;  %v56_v33 = vld [vmem:[%s22109_s0 + $0x110] sm:$0xff] }
  0x15   :  { %v16136_v29 = vpack.c.bf16 %v54_v27, %v53_v26  ;;  %v57_v34 = vld [vmem:[%s22109_s0 + $0x120] sm:$0xff]  ;;  %v58_v35 = vld [vmem:[%s22109_s0 + $0x128] sm:$0xff]  ;;  %v16154_v38 = vpack.c.bf16 %v56_v33, %v55_v32  ;;  %v59_v40 = vld [vmem:[%s22109_s0 + $0x138] sm:$0xff] }
  0x16   :  { %13509 = vmatmul.mubr.msk.bf16.gmra.mrb[8].mxu0 %vm228_vm1, %v15929_v24  ;;  %v16156_v39 = vpack.c.bf16 %v58_v35, %v57_v34  ;;  %v60_v41 = vld [vmem:[%s22109_s0 + $0x140] sm:$0xff]  ;;  %v61_v44 = vld [vmem:[%s22109_s0 + $0x150] sm:$0xff]  ;;  %v62_v45 = vld [vmem:[%s22109_s0 + $0x158] sm:$0xff] }
  0x17   :  { %13512 = vmatprep.mubr.msk.bf16.mxu0 %vm228_vm1, %v15931_v25  ;;  %v16174_v46 = vpack.c.bf16 %v60_v41, %v59_v40  ;;  %v16176_v47 = vpack.c.bf16 %v62_v45, %v61_v44  ;;  %v63_v50 = vld [vmem:[%s22109_s0 + $0x168] sm:$0xff]  ;;  %v64_v51 = vld [vmem:[%s22109_s0 + $0x170] sm:$0xff]  ;;  %v66_v53 = vld [vmem:[%s22109_s0 + $0x1b8] sm:$0xff] }
  0x18   :  { %v65_v52 = vld [vmem:[%s22109_s0 + $0x1b0] sm:$0xff]  ;;  %v67_v57 = vld [vmem:[%s22109_s0 + $0x1c8] sm:$0xff]  ;;  %v69_v59 = vld [vmem:[%s22109_s0 + $0x1e0] sm:$0xff] }
  0x19   :  { %v113_v56 = vpack.c.bf16 %v66_v53, %v65_v52  ;;  %v68_v58 = vld [vmem:[%s22109_s0 + $0x1d0] sm:$0xff]  ;;  %v71_v2 = vld [vmem:[%s22109_s0 + $0x1f8] sm:$0xff]  ;;  %v72_v3 = vld [vmem:[%s22109_s0 + $0x200] sm:$0xff] }
  0x1a   :  { %v16211_v0 = vpack.c.bf16 %v68_v58, %v67_v57  ;;  %v73_v6 = vld [vmem:[%s22109_s0 + $0x210] sm:$0xff]  ;;  %v74_v7 = vld [vmem:[%s22109_s0 + $0x218] sm:$0xff]  ;;  %v16231_v9 = vpack.c.bf16 %v72_v3, %v71_v2  ;;  %v75_v14 = vld [vmem:[%s22109_s0 + $0x228] sm:$0xff] }
  0x1b   :  { %v16233_v10 = vpack.c.bf16 %v74_v7, %v73_v6  ;;  %v76_v15 = vld [vmem:[%s22109_s0 + $0x230] sm:$0xff]  ;;  %v77_v16 = vld [vmem:[%s22109_s0 + $0x240] sm:$0xff]  ;;  %v78_v19 = vld [vmem:[%s22109_s0 + $0x248] sm:$0xff] }
  0x1c   :  { %v16251_v22 = vpack.c.bf16 %v76_v15, %v75_v14  ;;  %v16253_v23 = vpack.c.bf16 %v78_v19, %v77_v16  ;;  %v79_v26 = vld [vmem:[%s22109_s0 + $0x258] sm:$0xff]  ;;  %v80_v27 = vld [vmem:[%s22109_s0 + $0x260] sm:$0xff]  ;;  %v81_v32 = vld [vmem:[%s22109_s0 + $0x270] sm:$0xff] }
  0x1d   :  { %v82_v33 = vld [vmem:[%s22109_s0 + $0x278] sm:$0xff]  ;;  %v16271_v34 = vpack.c.bf16 %v80_v27, %v79_v26  ;;  %v83_v40 = vld [vmem:[%s22109_s0 + $0x288] sm:$0xff]  ;;  %v84_v41 = vld [vmem:[%s22109_s0 + $0x290] sm:$0xff] }
  0x1e   :  { %13513 = vmatmul.mubr.msk.bf16.gmra.mrb[12].mxu0 %vm228_vm1, %v15949_v30  ;;  %v16273_v35 = vpack.c.bf16 %v82_v33, %v81_v32  ;;  %v85_v44 = vld [vmem:[%s22109_s0 + $0x2a0] sm:$0xff]  ;;  %v86_v45 = vld [vmem:[%s22109_s0 + $0x2a8] sm:$0xff]  ;;  %v87_v52 = vld [vmem:[%s22109_s0 + $0x2b8] sm:$0xff] }
  0x1f   :  { %13516 = vmatprep.mubr.msk.bf16.mxu0 %vm228_vm1, %v15951_v31  ;;  %v88_v53 = vld [vmem:[%s22109_s0 + $0x2c0] sm:$0xff]  ;;  %v90_v57 = vld [vmem:[%s22109_s0 + $0x2d8] sm:$0xff]  ;;  %v92_v2 = vld [vmem:[%s22109_s0 + $0x2f0] sm:$0xff] }
  0x20   :  { %v16311_v58 = vpack.c.bf16 %v88_v53, %v87_v52  ;;  %v93_v3 = vld [vmem:[%s22109_s0 + $0x300] sm:$0xff]  ;;  %v94_v6 = vld [vmem:[%s22109_s0 + $0x308] sm:$0xff]  ;;  %v95_v15 = vld [vmem:[%s22109_s0 + $0x318] sm:$0xff]  ;;  %v1752_v53 = vsel %vm325_vm0, %v16056_v63, 0 }
  0x21   :  { %v16333_v14 = vpack.c.bf16 %v94_v6, %v93_v3  ;;  %v96_v16 = vld [vmem:[%s22109_s0 + $0x320] sm:$0xff]  ;;  %v1007_v26 = vld [vmem:[%s22109_s0 + $0xa] sm:$0xff] }
  0x22   :  { %v1006_v19 = vld [vmem:[%s22109_s0 + $0x2] sm:$0xff]  ;;  %v16351_v27 = vpack.c.bf16 %v96_v16, %v95_v15  ;;  %v1008_v33 = vld [vmem:[%s22109_s0 + $0x1a] sm:$0xff] }
  0x23   :  { %v1070_v32 = vpack.c.bf16 %v1007_v26, %v1006_v19  ;;  %v1016_v15 = vld [vmem:[%s22109_s0 + $0x7a] sm:$0xff]  ;;  %v1017_v16 = vld [vmem:[%s22109_s0 + $0x82] sm:$0xff]  ;;  %v1018_v19 = vld [vmem:[%s22109_s0 + $0x92] sm:$0xff] }
  0x24   :  { %v1019_v26 = vld [vmem:[%s22109_s0 + $0x9a] sm:$0xff] }
  0x26   :  { %13517 = vmatmul.mubr.msk.bf16.gmra.mrb[16].mxu0 %vm228_vm1, %v15969_v36 }
  0x27   :  { %13520 = vmatprep.mubr.msk.bf16.mxu0 %vm228_vm1, %v15971_v37 }
  0x2e   :  { %13521 = vmatmul.mubr.msk.bf16.gmra.mrb[20].mxu0 %vm228_vm1, %v15989_v42 }
  0x2f   :  { %13524 = vmatprep.mubr.msk.bf16.mxu0 %vm228_vm1, %v15991_v43 }
  0x36   :  { %13525 = vmatmul.mubr.msk.bf16.gmra.mrb[24].mxu0 %vm228_vm1, %v16009_v48 }
  0x37   :  { %13528 = vmatprep.mubr.msk.bf16.mxu0 %vm228_vm1, %v16011_v49 }
  0x3e   :  { %13529 = vmatmul.mubr.msk.bf16.gmra.mrb[28].mxu0 %vm228_vm1, %v16029_v54 }
  0x3f   :  { %13566 = vmatprep.mubr.msk.bf16.mxu0 %vm228_vm1, %v97_v55  ;;  %v16194_v55 = vpack.c.bf16 %v64_v51, %v63_v50  ;;  %v16291_v50 = vpack.c.bf16 %v84_v41, %v83_v40  ;;  %v16293_v51 = vpack.c.bf16 %v86_v45, %v85_v44  ;;  %v1009_v40 = vld [vmem:[%s22109_s0 + $0x22] sm:$0xff]  ;;  %v1010_v41 = vld [vmem:[%s22109_s0 + $0x32] sm:$0xff]  ;;  %v1011_v44 = vld [vmem:[%s22109_s0 + $0x3a] sm:$0xff] }
  0x40   :  { %v16368_v45 = vpack.c.bf16 %v1009_v40, %v1008_v33  ;;  %v16370_v52 = vpack.c.bf16 %v1011_v44, %v1010_v41  ;;  %v16419_v33 = vpack.c.bf16 %v1019_v26, %v1018_v19  ;;  %v1020_v40 = vld [vmem:[%s22109_s0 + $0xaa] sm:$0xff]  ;;  %v1021_v41 = vld [vmem:[%s22109_s0 + $0xb2] sm:$0xff]  ;;  %v1022_v44 = vld [vmem:[%s22109_s0 + $0xc2] sm:$0xff] }
  0x46   :  { %13567 = vmatmul.mubr.msk.bf16.vlgmr.msra.gmra.mrb[0].mxu0 %vm228_vm1, %v16046_v60 }
  0x47   :  { %13631 = vmatpush3.bf16.msra.mxu0 %v1201_v62  ;;  %13570 = vmatprep.mubr.msk.bf16.mxu0 %vm228_vm1, %v16048_v61  ;;  %v70_v62 = vld [vmem:[%s22109_s0 + $0x1e8] sm:$0xff] }
  0x48   :  { %15782 = vmatprep.subr.msk.bf16.mxu0 %vm325_vm0, %v16056_v63  ;;  %v16213_v1 = vpack.c.bf16 %v70_v62, %v69_v59  ;;  %v91_v62 = vld [vmem:[%s22109_s0 + $0x2e8] sm:$0xff]  ;;  %v1013_v63 = vld [vmem:[%s22109_s0 + $0x52] sm:$0xff] }
  0x49   :  { %v16331_v7 = vpack.c.bf16 %v92_v2, %v91_v62  ;;  %v1014_v62 = vld [vmem:[%s22109_s0 + $0x62] sm:$0xff]  ;;  %v1015_v2 = vld [vmem:[%s22109_s0 + $0x6a] sm:$0xff] }
  0x4a   :  { %v16399_v6 = vpack.c.bf16 %v1015_v2, %v1014_v62  ;;  %v1024_v62 = vld [vmem:[%s22109_s0 + $0xda] sm:$0xff]  ;;  %v1025_v2 = vld [vmem:[%s22109_s0 + $0xe2] sm:$0xff] }
  0x4b   :  { %v16457_v19 = vpack.c.bf16 %v1025_v2, %v1024_v62 }
  0x4e   :  { %13571 = vmatmul.mubr.msk.bf16.gmra.mrb[4].mxu0 %vm228_vm1, %v16074_v4 }
  0x4f   :  { %13574 = vmatprep.mubr.msk.bf16.mxu0 %vm228_vm1, %v16076_v5 }
  0x56   :  { %13575 = vmatmul.mubr.msk.bf16.gmra.mrb[8].mxu0 %vm228_vm1, %v16094_v11 }
  0x57   :  { %13578 = vmatprep.mubr.msk.bf16.mxu0 %vm228_vm1, %v16096_v13 }
  0x5e   :  { %13579 = vmatmul.mubr.msk.bf16.gmra.mrb[12].mxu0 %vm228_vm1, %v16114_v20 }
  0x5f   :  { %13582 = vmatprep.mubr.msk.bf16.mxu0 %vm228_vm1, %v16116_v21 }
  0x66   :  { %13583 = vmatmul.mubr.msk.bf16.gmra.mrb[16].mxu0 %vm228_vm1, %v16134_v28 }
  0x67   :  { %13586 = vmatprep.mubr.msk.bf16.mxu0 %vm228_vm1, %v16136_v29 }
  0x6e   :  { %13587 = vmatmul.mubr.msk.bf16.gmra.mrb[20].mxu0 %vm228_vm1, %v16154_v38 }
  0x6f   :  { %13590 = vmatprep.mubr.msk.bf16.mxu0 %vm228_vm1, %v16156_v39 }
  0x76   :  { %13591 = vmatmul.mubr.msk.bf16.gmra.mrb[24].mxu0 %vm228_vm1, %v16174_v46 }
  0x77   :  { %13594 = vmatprep.mubr.msk.bf16.mxu0 %vm228_vm1, %v16176_v47 }
  0x7e   :  { %13595 = vmatmul.mubr.msk.bf16.gmra.mrb[28].mxu0 %vm228_vm1, %v16194_v55 }
  0x7f   :  { %13598 = vmatprep.mubr.msk.bf16.mxu0 %vm228_vm1, %v113_v56  ;;  %v89_v56 = vld [vmem:[%s22109_s0 + $0x2d0] sm:$0xff] }
  0x80   :  { %v16313_v59 = vpack.c.bf16 %v90_v57, %v89_v56  ;;  %v16379_v56 = vld [vmem:[%s22108_s1 + $0x8] sm:$0x3]  ;;  %v1012_v57 = vld [vmem:[%s22109_s0 + $0x4a] sm:$0xff] }
  0x81   :  { %v16397_v3 = vpack.c.bf16 %v1013_v63, %v1012_v57  ;;  %v16437_v57 = vpack.c.bf16 %v1021_v41, %v1020_v40  ;;  %v1028_v40 = vld [vmem:[%s22109_s0 + $0x10a] sm:$0xff]  ;;  %v1029_v41 = vld [vmem:[%s22109_s0 + $0x112] sm:$0xff] }
  0x82   :  { %v16477_v62 = vpack.c.bf16 %v1029_v41, %v1028_v40  ;;  %v1034_v40 = vld [vmem:[%s22109_s0 + $0x152] sm:$0xff]  ;;  %v1035_v41 = vld [vmem:[%s22109_s0 + $0x15a] sm:$0xff] }
  0x84   :  { %22283 = vst [vmem:[#allocation4_spill] sm:$0xff] %v16477_v62 }
  0x86   :  { %13599 = vmatmul.mubr.msk.bf16.gmra.mrb[32].mxu0 %vm228_vm1, %v16211_v0 }
  0x87   :  { %13602 = vmatprep.mubr.msk.bf16.mxu0 %vm228_vm1, %v16213_v1 }
  0x8e   :  { %13603 = vmatmul.mubr.msk.bf16.gmra.mrb[36].mxu0 %vm228_vm1, %v16231_v9 }
  0x8f   :  { %13606 = vmatprep.mubr.msk.bf16.mxu0 %vm228_vm1, %v16233_v10 }
  0x96   :  { %13607 = vmatmul.mubr.msk.bf16.gmra.mrb[40].mxu0 %vm228_vm1, %v16251_v22 }
  0x97   :  { %13610 = vmatprep.mubr.msk.bf16.mxu0 %vm228_vm1, %v16253_v23 }
  0x9e   :  { %13611 = vmatmul.mubr.msk.bf16.gmra.mrb[44].mxu0 %vm228_vm1, %v16271_v34 }
  0x9f   :  { %13614 = vmatprep.mubr.msk.bf16.mxu0 %vm228_vm1, %v16273_v35 }
  0xa6   :  { %13615 = vmatmul.mubr.msk.bf16.gmra.mrb[48].mxu0 %vm228_vm1, %v16291_v50 }
  0xa7   :  { %13618 = vmatprep.mubr.msk.bf16.mxu0 %vm228_vm1, %v16293_v51 }
  0xae   :  { %13619 = vmatmul.mubr.msk.bf16.gmra.mrb[52].mxu0 %vm228_vm1, %v16311_v58 }
  0xaf   :  { %13622 = vmatprep.mubr.msk.bf16.mxu0 %vm228_vm1, %v16313_v59 }
  0xb6   :  { %13623 = vmatmul.mubr.msk.bf16.gmra.mrb[56].mxu0 %vm228_vm1, %v16331_v7 }
  0xb7   :  { %13626 = vmatprep.mubr.msk.bf16.mxu0 %vm228_vm1, %v16333_v14 }
  0xbe   :  { %13627 = vmatmul.mubr.msk.bf16.gmra.mrb[60].mxu0 %vm228_vm1, %v16351_v27 }
  0xbf   :  { %13632 = vmatprep.mubr.msk.bf16.mxu0 %vm228_vm1, %v1070_v32  ;;  %v16417_v32 = vpack.c.bf16 %v1017_v16, %v1016_v15  ;;  %v1026_v15 = vld [vmem:[%s22109_s0 + $0xf2] sm:$0xff]  ;;  %v1027_v16 = vld [vmem:[%s22109_s0 + $0xfa] sm:$0xff] }
  0xc0   :  { %v16459_v26 = vpack.c.bf16 %v1027_v16, %v1026_v15  ;;  %v1032_v15 = vld [vmem:[%s22109_s0 + $0x13a] sm:$0xff]  ;;  %v1033_v16 = vld [vmem:[%s22109_s0 + $0x142] sm:$0xff] }
  0xc2   :  { %22282 = vst [vmem:[#allocation3_spill] sm:$0xff] %v16459_v26 }
  0xc6   :  { %13633 = vmatmul.mubr.msk.bf16.vlgmr.msra.gmra.mrb[0].mxu0 %vm228_vm1, %v16368_v45 }
  0xc7   :  { %13697 = vmatpush3.bf16.msra.mxu0 %v1752_v53  ;;  %13636 = vmatprep.mubr.msk.bf16.mxu0 %vm228_vm1, %v16370_v52  ;;  %v1023_v53 = vld [vmem:[%s22109_s0 + $0xca] sm:$0xff] }
  0xc8   :  { %15783 = vmatprep.subr.msk.bf16.mxu0 %vm325_vm0, %v16379_v56  ;;  %v16439_v63 = vpack.c.bf16 %v1023_v53, %v1022_v44  ;;  %v1030_v44 = vld [vmem:[%s22109_s0 + $0x122] sm:$0xff]  ;;  %v1031_v53 = vld [vmem:[%s22109_s0 + $0x12a] sm:$0xff] }
  0xc9   :  { %v16479_v2 = vpack.c.bf16 %v1031_v53, %v1030_v44  ;;  %v16497_v44 = vpack.c.bf16 %v1033_v16, %v1032_v15  ;;  %v16499_v53 = vpack.c.bf16 %v1035_v41, %v1034_v40  ;;  %v1038_v15 = vld [vmem:[%s22109_s0 + $0x1b2] sm:$0xff]  ;;  %v1039_v16 = vld [vmem:[%s22109_s0 + $0x1ba] sm:$0xff] }
  0xca   :  { %v1086_v41 = vpack.c.bf16 %v1039_v16, %v1038_v15  ;;  %v1044_v16 = vld [vmem:[%s22109_s0 + $0x1fa] sm:$0xff] }
  0xcb   :  { %22284 = vst [vmem:[#allocation5_spill] sm:$0xff] %v16479_v2  ;;  %22285 = vst [vmem:[#allocation6_spill] sm:$0xff] %v16497_v44 }
  0xcc   :  { %22286 = vst [vmem:[#allocation7_spill] sm:$0xff] %v16499_v53 }
  0xce   :  { %13637 = vmatmul.mubr.msk.bf16.gmra.mrb[4].mxu0 %vm228_vm1, %v16397_v3 }
  0xcf   :  { %13640 = vmatprep.mubr.msk.bf16.mxu0 %vm228_vm1, %v16399_v6 }
  0xd6   :  { %13641 = vmatmul.mubr.msk.bf16.gmra.mrb[8].mxu0 %vm228_vm1, %v16417_v32 }
  0xd7   :  { %13644 = vmatprep.mubr.msk.bf16.mxu0 %vm228_vm1, %v16419_v33 }
  0xde   :  { %13645 = vmatmul.mubr.msk.bf16.gmra.mrb[12].mxu0 %vm228_vm1, %v16437_v57 }
  0xdf   :  { %13648 = vmatprep.mubr.msk.bf16.mxu0 %vm228_vm1, %v16439_v63 }
  0xe6   :  { %13649 = vmatmul.mubr.msk.bf16.gmra.mrb[16].mxu0 %vm228_vm1, %v16457_v19 }
  0xe7   :  { %13652 = vmatprep.mubr.msk.bf16.mxu0 %vm228_vm1, %v16459_v26  ;;  %v1042_v26 = vld [vmem:[%s22109_s0 + $0x1e2] sm:$0xff] }
  0xee   :  { %13653 = vmatmul.mubr.msk.bf16.gmra.mrb[20].mxu0 %vm228_vm1, %v16477_v62  ;;  %v1037_v62 = vld [vmem:[%s22109_s0 + $0x172] sm:$0xff] }
  0xef   :  { %13656 = vmatprep.mubr.msk.bf16.mxu0 %vm228_vm1, %v16479_v2  ;;  %v1036_v2 = vld [vmem:[%s22109_s0 + $0x16a] sm:$0xff] }
  0xf0   :  { %v16517_v40 = vpack.c.bf16 %v1037_v62, %v1036_v2  ;;  %v1043_v62 = vld [vmem:[%s22109_s0 + $0x1ea] sm:$0xff] }
  0xf1   :  { %v16536_v15 = vpack.c.bf16 %v1043_v62, %v1042_v26  ;;  %v1047_v26 = vld [vmem:[%s22109_s0 + $0x21a] sm:$0xff] }
  0xf2   :  { %22287 = vst [vmem:[#allocation8_spill] sm:$0xff] %v16517_v40 }
  0xf3   :  { %22289 = vst [vmem:[#allocation10_spill] sm:$0xff] %v16536_v15 }
  0xf6   :  { %13657 = vmatmul.mubr.msk.bf16.gmra.mrb[24].mxu0 %vm228_vm1, %v16497_v44  ;;  %v1041_v44 = vld [vmem:[%s22109_s0 + $0x1d2] sm:$0xff] }
  0xf7   :  { %13660 = vmatprep.mubr.msk.bf16.mxu0 %vm228_vm1, %v16499_v53  ;;  %v1040_v53 = vld [vmem:[%s22109_s0 + $0x1ca] sm:$0xff] }
  0xf8   :  { %v16534_v2 = vpack.c.bf16 %v1041_v44, %v1040_v53  ;;  %v1046_v44 = vld [vmem:[%s22109_s0 + $0x212] sm:$0xff] }
  0xf9   :  { %v16556_v62 = vpack.c.bf16 %v1047_v26, %v1046_v44 }
  0xfa   :  { %22288 = vst [vmem:[#allocation9_spill] sm:$0xff] %v16534_v2 }
  0xfb   :  { %22291 = vst [vmem:[#allocation12_spill] sm:$0xff] %v16556_v62 }
  0xfe   :  { %13661 = vmatmul.mubr.msk.bf16.gmra.mrb[28].mxu0 %vm228_vm1, %v16517_v40 }
  0xff   :  { %13664 = vmatprep.mubr.msk.bf16.mxu0 %vm228_vm1, %v1086_v41  ;;  %v1045_v41 = vld [vmem:[%s22109_s0 + $0x202] sm:$0xff] }
 0x100   :  { %v16554_v53 = vpack.c.bf16 %v1045_v41, %v1044_v16  ;;  %v1050_v16 = vld [vmem:[%s22109_s0 + $0x242] sm:$0xff]  ;;  %v1051_v41 = vld [vmem:[%s22109_s0 + $0x24a] sm:$0xff] }
 0x101   :  { %v16576_v26 = vpack.c.bf16 %v1051_v41, %v1050_v16 }
 0x102   :  { %22290 = vst [vmem:[#allocation11_spill] sm:$0xff] %v16554_v53 }
 0x103   :  { %22293 = vst [vmem:[#allocation14_spill] sm:$0xff] %v16576_v26 }
 0x106   :  { %13665 = vmatmul.mubr.msk.bf16.gmra.mrb[32].mxu0 %vm228_vm1, %v16534_v2  ;;  %v1049_v2 = vld [vmem:[%s22109_s0 + $0x232] sm:$0xff] }
 0x107   :  { %13668 = vmatprep.mubr.msk.bf16.mxu0 %vm228_vm1, %v16536_v15  ;;  %v1048_v15 = vld [vmem:[%s22109_s0 + $0x22a] sm:$0xff] }
 0x108   :  { %v16574_v44 = vpack.c.bf16 %v1049_v2, %v1048_v15  ;;  %v1054_v2 = vld [vmem:[%s22109_s0 + $0x272] sm:$0xff]  ;;  %v1055_v15 = vld [vmem:[%s22109_s0 + $0x27a] sm:$0xff] }
 0x109   :  { %v16596_v41 = vpack.c.bf16 %v1055_v15, %v1054_v2 }
 0x10a   :  { %22292 = vst [vmem:[#allocation13_spill] sm:$0xff] %v16574_v44 }
 0x10b   :  { %22295 = vst [vmem:[#allocation16_spill] sm:$0xff] %v16596_v41 }
 0x10e   :  { %13669 = vmatmul.mubr.msk.bf16.gmra.mrb[36].mxu0 %vm228_vm1, %v16554_v53  ;;  %v1053_v53 = vld [vmem:[%s22109_s0 + $0x262] sm:$0xff] }
 0x10f   :  { %13672 = vmatprep.mubr.msk.bf16.mxu0 %vm228_vm1, %v16556_v62  ;;  %v1052_v62 = vld [vmem:[%s22109_s0 + $0x25a] sm:$0xff] }
 0x110   :  { %v16594_v16 = vpack.c.bf16 %v1053_v53, %v1052_v62  ;;  %v1058_v53 = vld [vmem:[%s22109_s0 + $0x2a2] sm:$0xff]  ;;  %v1059_v62 = vld [vmem:[%s22109_s0 + $0x2aa] sm:$0xff] }
 0x111   :  { %v16616_v15 = vpack.c.bf16 %v1059_v62, %v1058_v53 }
 0x112   :  { %22294 = vst [vmem:[#allocation15_spill] sm:$0xff] %v16594_v16 }
 0x113   :  { %22297 = vst [vmem:[#allocation18_spill] sm:$0xff] %v16616_v15 }
 0x116   :  { %13673 = vmatmul.mubr.msk.bf16.gmra.mrb[40].mxu0 %vm228_vm1, %v16574_v44  ;;  %v1057_v44 = vld [vmem:[%s22109_s0 + $0x292] sm:$0xff] }
 0x117   :  { %13676 = vmatprep.mubr.msk.bf16.mxu0 %vm228_vm1, %v16576_v26  ;;  %v1056_v26 = vld [vmem:[%s22109_s0 + $0x28a] sm:$0xff] }
 0x118   :  { %v16614_v2 = vpack.c.bf16 %v1057_v44, %v1056_v26  ;;  %v1062_v44 = vld [vmem:[%s22109_s0 + $0x2d2] sm:$0xff]  ;;  %v1063_v26 = vld [vmem:[%s22109_s0 + $0x2da] sm:$0xff] }
 0x119   :  { %v16636_v62 = vpack.c.bf16 %v1063_v26, %v1062_v44 }
 0x11a   :  { %22296 = vst [vmem:[#allocation17_spill] sm:$0xff] %v16614_v2 }
 0x11b   :  { %22299 = vst [vmem:[#allocation20_spill] sm:$0xff] %v16636_v62 }
 0x11e   :  { %13677 = vmatmul.mubr.msk.bf16.gmra.mrb[44].mxu0 %vm228_vm1, %v16594_v16  ;;  %v1061_v16 = vld [vmem:[%s22109_s0 + $0x2c2] sm:$0xff] }
 0x11f   :  { %13680 = vmatprep.mubr.msk.bf16.mxu0 %vm228_vm1, %v16596_v41  ;;  %v1060_v41 = vld [vmem:[%s22109_s0 + $0x2ba] sm:$0xff] }
 0x120   :  { %v16634_v53 = vpack.c.bf16 %v1061_v16, %v1060_v41  ;;  %v1066_v16 = vld [vmem:[%s22109_s0 + $0x302] sm:$0xff]  ;;  %v1067_v41 = vld [vmem:[%s22109_s0 + $0x30a] sm:$0xff] }
 0x121   :  { %v16656_v26 = vpack.c.bf16 %v1067_v41, %v1066_v16 }
 0x122   :  { %22298 = vst [vmem:[#allocation19_spill] sm:$0xff] %v16634_v53 }
 0x126   :  { %13681 = vmatmul.mubr.msk.bf16.gmra.mrb[48].mxu0 %vm228_vm1, %v16614_v2  ;;  %v1065_v2 = vld [vmem:[%s22109_s0 + $0x2f2] sm:$0xff] }
 0x127   :  { %13684 = vmatprep.mubr.msk.bf16.mxu0 %vm228_vm1, %v16616_v15  ;;  %v1064_v15 = vld [vmem:[%s22109_s0 + $0x2ea] sm:$0xff] }
 0x128   :  { %v16654_v44 = vpack.c.bf16 %v1065_v2, %v1064_v15  ;;  %v2302_v2 = vsel %vm325_vm0, %v16379_v56, 0  ;;  %v12154_v15 = vld [vmem:[%s22108_s1 + $0xa] sm:$0x3]  ;;  %v12048_v56 = vld [vmem:[%s22109_s0 + $0x2d9] sm:$0xff] }
 0x12e   :  { %13685 = vmatmul.mubr.msk.bf16.gmra.mrb[52].mxu0 %vm228_vm1, %v16634_v53  ;;  %v1069_v53 = vld [vmem:[%s22109_s0 + $0x322] sm:$0xff] }
 0x12f   :  { %13688 = vmatprep.mubr.msk.bf16.mxu0 %vm228_vm1, %v16636_v62  ;;  %v1068_v62 = vld [vmem:[%s22109_s0 + $0x31a] sm:$0xff] }
 0x130   :  { %v16668_v40 = vpack.c.bf16 %v1069_v53, %v1068_v62  ;;  %v12049_v53 = vld [vmem:[%s22109_s0 + $0x2e9] sm:$0xff]  ;;  %v12050_v62 = vld [vmem:[%s22109_s0 + $0x2f1] sm:$0xff] }
 0x131   :  { %v16927_v41 = vpack.c.bf16 %v12050_v62, %v12049_v53  ;;  %v12194_v53 = vld [vmem:[%s22109_s0 + $0x80] sm:$0xff]  ;;  %v12195_v62 = vld [vmem:[%s22109_s0 + $0x90] sm:$0xff] }
 0x136   :  { %13689 = vmatmul.mubr.msk.bf16.gmra.mrb[56].mxu0 %vm228_vm1, %v16654_v44 }
 0x137   :  { %13692 = vmatprep.mubr.msk.bf16.mxu0 %vm228_vm1, %v16656_v26 }
 0x13e   :  { %13693 = vmatmul.mubr.msk.bf16.gmra.mrb[60].mxu0 %vm228_vm1, %v16668_v40 }
 0x13f   :  { %13698 = vmatprep.mubr.msk.bf16.mxu0 %vm228_vm1, %v16046_v60  ;;  %v11926_v60 = vld [vmem:[%s22109_s0 + $0x180] sm:$0xff] }
 0x146   :  { %13699 = vmatmul.mubr.msk.bf16.vlgmr.msra.gmra.mrb[0].mxu0 %vm228_vm1, %v16048_v61  ;;  %v11927_v61 = vld [vmem:[%s22109_s0 + $0x188] sm:$0xff] }
 0x147   :  { %13763 = vmatpush3.bf16.msra.mxu0 %v2302_v2  ;;  %13702 = vmatprep.mubr.msk.bf16.mxu0 %vm228_vm1, %v16074_v4  ;;  %v16714_v4 = vpack.c.bf16 %v11927_v61, %v11926_v60  ;;  %v12051_v2 = vld [vmem:[%s22109_s0 + $0x301] sm:$0xff]  ;;  %v12053_v60 = vld [vmem:[%s22109_s0 + $0x319] sm:$0xff] }
 0x148   :  { %15784 = vmatprep.subr.msk.bf16.mxu0 %vm325_vm0, %v12154_v15  ;;  %v12054_v61 = vld [vmem:[%s22109_s0 + $0x321] sm:$0xff] }
 0x14e   :  { %13703 = vmatmul.mubr.msk.bf16.gmra.mrb[4].mxu0 %vm228_vm1, %v16076_v5  ;;  %v11958_v5 = vld [vmem:[%s22109_s0 + $0x330] sm:$0xff] }
 0x14f   :  { %13706 = vmatprep.mubr.msk.bf16.mxu0 %vm228_vm1, %v16094_v11  ;;  %v11959_v11 = vld [vmem:[%s22109_s0 + $0x338] sm:$0xff] }
 0x156   :  { %13707 = vmatmul.mubr.msk.bf16.gmra.mrb[8].mxu0 %vm228_vm1, %v16096_v13  ;;  %v16754_v13 = vpack.c.bf16 %v11959_v11, %v11958_v5  ;;  %v16947_v11 = vpack.c.bf16 %v12054_v61, %v12053_v60  ;;  %v12197_v61 = vld [vmem:[%s22109_s0 + $0xa8] sm:$0xff] }
 0x157   :  { %13710 = vmatprep.mubr.msk.bf16.mxu0 %vm228_vm1, %v16114_v20  ;;  %v2852_v20 = vsel %vm325_vm0, %v12154_v15, 0  ;;  %v12052_v15 = vld [vmem:[%s22109_s0 + $0x309] sm:$0xff] }
 0x158   :  { %v16945_v5 = vpack.c.bf16 %v12052_v15, %v12051_v2  ;;  %v12196_v2 = vld [vmem:[%s22109_s0 + $0x98] sm:$0xff] }
 0x159   :  { %v3276_v60 = vpack.c.bf16 %v12196_v2, %v12195_v62  ;;  %v12226_v62 = vld [vmem:[%s22109_s0 + $0x230] sm:$0xff]  ;;  %v12227_v2 = vld [vmem:[%s22109_s0 + $0x240] sm:$0xff] }
 0x15e   :  { %13711 = vmatmul.mubr.msk.bf16.gmra.mrb[12].mxu0 %vm228_vm1, %v16116_v21  ;;  %v16766_v21 = vld [vmem:[%s22108_s1 + $0xc] sm:$0x3] }
 0x15f   :  { %13714 = vmatprep.mubr.msk.bf16.mxu0 %vm228_vm1, %v16134_v28  ;;  %v12034_v28 = vld [vmem:[%s22109_s0 + $0x231] sm:$0xff] }
 0x166   :  { %13715 = vmatmul.mubr.msk.bf16.gmra.mrb[16].mxu0 %vm228_vm1, %v16136_v29 }
 0x167   :  { %13718 = vmatprep.mubr.msk.bf16.mxu0 %vm228_vm1, %v16154_v38 }
 0x16e   :  { %13719 = vmatmul.mubr.msk.bf16.gmra.mrb[20].mxu0 %vm228_vm1, %v16156_v39  ;;  %v12035_v39 = vld [vmem:[%s22109_s0 + $0x241] sm:$0xff] }
 0x16f   :  { %13722 = vmatprep.mubr.msk.bf16.mxu0 %vm228_vm1, %v16174_v46  ;;  %v12036_v46 = vld [vmem:[%s22109_s0 + $0x249] sm:$0xff] }
 0x176   :  { %13723 = vmatmul.mubr.msk.bf16.gmra.mrb[24].mxu0 %vm228_vm1, %v16176_v47  ;;  %v12037_v47 = vld [vmem:[%s22109_s0 + $0x259] sm:$0xff] }
 0x177   :  { %13726 = vmatprep.mubr.msk.bf16.mxu0 %vm228_vm1, %v16194_v55  ;;  %v12038_v55 = vld [vmem:[%s22109_s0 + $0x261] sm:$0xff] }
 0x17e   :  { %13727 = vmatmul.mubr.msk.bf16.gmra.mrb[28].mxu0 %vm228_vm1, %v16714_v4 }
 0x17f   :  { %13730 = vmatprep.mubr.msk.bf16.mxu0 %vm228_vm1, %v16211_v0  ;;  %v16865_v0 = vpack.c.bf16 %v12036_v46, %v12035_v39  ;;  %v22316_v39 = vld [vmem:[#allocation19_spill] sm:$0xff]  ;;  %v22317_v46 = vld [vmem:[#allocation20_spill] sm:$0xff] }
 0x186   :  { %13731 = vmatmul.mubr.msk.bf16.gmra.mrb[32].mxu0 %vm228_vm1, %v16213_v1  ;;  %v16867_v1 = vpack.c.bf16 %v12038_v55, %v12037_v47  ;;  %v12152_v47 = vld [vmem:[%s22109_s0 + $0x332] sm:$0xff]  ;;  %v12153_v55 = vld [vmem:[%s22109_s0 + $0x33a] sm:$0xff] }
 0x187   :  { %13734 = vmatprep.mubr.msk.bf16.mxu0 %vm228_vm1, %v16231_v9  ;;  %v12039_v9 = vld [vmem:[%s22109_s0 + $0x271] sm:$0xff] }
 0x18e   :  { %13735 = vmatmul.mubr.msk.bf16.gmra.mrb[36].mxu0 %vm228_vm1, %v16233_v10  ;;  %v12040_v10 = vld [vmem:[%s22109_s0 + $0x279] sm:$0xff] }
 0x18f   :  { %13738 = vmatprep.mubr.msk.bf16.mxu0 %vm228_vm1, %v16251_v22  ;;  %v12041_v22 = vld [vmem:[%s22109_s0 + $0x289] sm:$0xff] }
 0x196   :  { %13739 = vmatmul.mubr.msk.bf16.gmra.mrb[40].mxu0 %vm228_vm1, %v16253_v23  ;;  %v12042_v23 = vld [vmem:[%s22109_s0 + $0x291] sm:$0xff] }
 0x197   :  { %13742 = vmatprep.mubr.msk.bf16.mxu0 %vm228_vm1, %v16271_v34  ;;  %v16885_v34 = vpack.c.bf16 %v12040_v10, %v12039_v9  ;;  %v12187_v9 = vld [vmem:[%s22109_s0 + $0x30] sm:$0xff] }
 0x19e   :  { %13743 = vmatmul.mubr.msk.bf16.gmra.mrb[44].mxu0 %vm228_vm1, %v16273_v35  ;;  %v16887_v35 = vpack.c.bf16 %v12042_v23, %v12041_v22  ;;  %v12190_v22 = vld [vmem:[%s22109_s0 + $0x50] sm:$0xff]  ;;  %v12191_v23 = vld [vmem:[%s22109_s0 + $0x60] sm:$0xff] }
 0x19f   :  { %13746 = vmatprep.mubr.msk.bf16.mxu0 %vm228_vm1, %v16291_v50  ;;  %v12043_v50 = vld [vmem:[%s22109_s0 + $0x2a1] sm:$0xff] }
 0x1a6   :  { %13747 = vmatmul.mubr.msk.bf16.gmra.mrb[48].mxu0 %vm228_vm1, %v16293_v51  ;;  %v12044_v51 = vld [vmem:[%s22109_s0 + $0x2a9] sm:$0xff] }
 0x1a7   :  { %13750 = vmatprep.mubr.msk.bf16.mxu0 %vm228_vm1, %v16311_v58  ;;  %v12045_v58 = vld [vmem:[%s22109_s0 + $0x2b9] sm:$0xff] }
 0x1ae   :  { %13751 = vmatmul.mubr.msk.bf16.gmra.mrb[52].mxu0 %vm228_vm1, %v16313_v59  ;;  %v12046_v59 = vld [vmem:[%s22109_s0 + $0x2c1] sm:$0xff] }
 0x1af   :  { %13754 = vmatprep.mubr.msk.bf16.mxu0 %vm228_vm1, %v16331_v7  ;;  %v16905_v7 = vpack.c.bf16 %v12044_v51, %v12043_v50  ;;  %v12192_v50 = vld [vmem:[%s22109_s0 + $0x68] sm:$0xff] }
 0x1b6   :  { %13755 = vmatmul.mubr.msk.bf16.gmra.mrb[56].mxu0 %vm228_vm1, %v16333_v14  ;;  %v16907_v14 = vpack.c.bf16 %v12046_v59, %v12045_v58  ;;  %v3274_v58 = vpack.c.bf16 %v12192_v50, %v12191_v23  ;;  %v12222_v50 = vld [vmem:[%s22109_s0 + $0x200] sm:$0xff] }
 0x1b7   :  { %13758 = vmatprep.mubr.msk.bf16.mxu0 %vm228_vm1, %v16351_v27  ;;  %v12047_v27 = vld [vmem:[%s22109_s0 + $0x2d1] sm:$0xff] }
 0x1b8   :  { %v16925_v16 = vpack.c.bf16 %v12048_v56, %v12047_v27  ;;  %v17073_v27 = vld [vmem:[%s22108_s1 + $0x10] sm:$0x3]  ;;  %v12193_v56 = vld [vmem:[%s22109_s0 + $0x78] sm:$0xff] }
 0x1b9   :  { %v3275_v15 = vpack.c.bf16 %v12194_v53, %v12193_v56  ;;  %v12225_v53 = vld [vmem:[%s22109_s0 + $0x228] sm:$0xff] }
 0x1be   :  { %13759 = vmatmul.mubr.msk.bf16.gmra.mrb[60].mxu0 %vm228_vm1, %v16754_v13 }
 0x1bf   :  { %13764 = vmatprep.mubr.msk.bf16.mxu0 %vm228_vm1, %v15876_v8  ;;  %v12023_v8 = vld [vmem:[%s22109_s0 + $0x181] sm:$0xff] }
 0x1c6   :  { %13765 = vmatmul.mubr.msk.bf16.vlgmr.msra.gmra.mrb[0].mxu0 %vm228_vm1, %v15887_v12  ;;  %v12024_v12 = vld [vmem:[%s22109_s0 + $0x189] sm:$0xff] }
 0x1c7   :  { %13829 = vmatpush3.bf16.msra.mxu0 %v2852_v20  ;;  %13768 = vmatprep.mubr.msk.bf16.mxu0 %vm228_vm1, %v15905_v17  ;;  %v12025_v17 = vld [vmem:[%s22109_s0 + $0x1c9] sm:$0xff]  ;;  %v12055_v20 = vld [vmem:[%s22109_s0 + $0x331] sm:$0xff] }
 0x1c8   :  { %15785 = vmatprep.subr.msk.bf16.mxu0 %vm325_vm0, %v16766_v21 }
 0x1ce   :  { %13769 = vmatmul.mubr.msk.bf16.gmra.mrb[4].mxu0 %vm228_vm1, %v15907_v18  ;;  %v12026_v18 = vld [vmem:[%s22109_s0 + $0x1d1] sm:$0xff] }
 0x1cf   :  { %13772 = vmatprep.mubr.msk.bf16.mxu0 %vm228_vm1, %v15929_v24  ;;  %v16808_v24 = vpack.c.bf16 %v12024_v12, %v12023_v8  ;;  %v12056_v8 = vld [vmem:[%s22109_s0 + $0x339] sm:$0xff] }
 0x1d0   :  { %v16959_v12 = vpack.c.bf16 %v12056_v8, %v12055_v20  ;;  %v12198_v20 = vld [vmem:[%s22109_s0 + $0xb0] sm:$0xff]  ;;  %v12199_v8 = vld [vmem:[%s22109_s0 + $0xc0] sm:$0xff] }
 0x1d6   :  { %13773 = vmatmul.mubr.msk.bf16.gmra.mrb[8].mxu0 %vm228_vm1, %v15931_v25  ;;  %v2187_v25 = vpack.c.bf16 %v12026_v18, %v12025_v17  ;;  %v3403_v17 = vsel %vm325_vm0, %v16766_v21, 0  ;;  %v12348_v18 = vld [vmem:[%s22108_s1 + $0xe] sm:$0x3]  ;;  %v22306_v21 = vld [vmem:[#allocation9_spill] sm:$0xff] }
 0x1d7   :  { %13776 = vmatprep.mubr.msk.bf16.mxu0 %vm228_vm1, %v15949_v30  ;;  %v12027_v30 = vld [vmem:[%s22109_s0 + $0x1e1] sm:$0xff]  ;;  %v3953_v59 = vsel %vm325_vm0, %v12348_v18, 0 }
 0x1de   :  { %13777 = vmatmul.mubr.msk.bf16.gmra.mrb[12].mxu0 %vm228_vm1, %v15951_v31  ;;  %v12028_v31 = vld [vmem:[%s22109_s0 + $0x1e9] sm:$0xff] }
 0x1df   :  { %13780 = vmatprep.mubr.msk.bf16.mxu0 %vm228_vm1, %v15969_v36  ;;  %v12029_v36 = vld [vmem:[%s22109_s0 + $0x1f9] sm:$0xff] }
 0x1e6   :  { %13781 = vmatmul.mubr.msk.bf16.gmra.mrb[16].mxu0 %vm228_vm1, %v15971_v37  ;;  %v12030_v37 = vld [vmem:[%s22109_s0 + $0x201] sm:$0xff] }
 0x1e7   :  { %13784 = vmatprep.mubr.msk.bf16.mxu0 %vm228_vm1, %v15989_v42  ;;  %v16825_v42 = vpack.c.bf16 %v12028_v31, %v12027_v30  ;;  %v22308_v30 = vld [vmem:[#allocation11_spill] sm:$0xff]  ;;  %v22309_v31 = vld [vmem:[#allocation12_spill] sm:$0xff] }
 0x1ee   :  { %13785 = vmatmul.mubr.msk.bf16.gmra.mrb[20].mxu0 %vm228_vm1, %v15991_v43  ;;  %v16827_v43 = vpack.c.bf16 %v12030_v37, %v12029_v36  ;;  %v22310_v36 = vld [vmem:[#allocation13_spill] sm:$0xff]  ;;  %v22311_v37 = vld [vmem:[#allocation14_spill] sm:$0xff] }
 0x1ef   :  { %13788 = vmatprep.mubr.msk.bf16.mxu0 %vm228_vm1, %v16009_v48  ;;  %v12031_v48 = vld [vmem:[%s22109_s0 + $0x211] sm:$0xff] }
 0x1f6   :  { %13789 = vmatmul.mubr.msk.bf16.gmra.mrb[24].mxu0 %vm228_vm1, %v16011_v49  ;;  %v12032_v49 = vld [vmem:[%s22109_s0 + $0x219] sm:$0xff] }
 0x1f7   :  { %13792 = vmatprep.mubr.msk.bf16.mxu0 %vm228_vm1, %v16029_v54  ;;  %v12033_v54 = vld [vmem:[%s22109_s0 + $0x229] sm:$0xff]  ;;  %v16845_v29 = vpack.c.bf16 %v12032_v49, %v12031_v48  ;;  %v22312_v48 = vld [vmem:[#allocation15_spill] sm:$0xff] }
 0x1f8   :  { %v16847_v38 = vpack.c.bf16 %v12034_v28, %v12033_v54  ;;  %v22313_v49 = vld [vmem:[#allocation16_spill] sm:$0xff]  ;;  %v22314_v54 = vld [vmem:[#allocation17_spill] sm:$0xff]  ;;  %v22315_v28 = vld [vmem:[#allocation18_spill] sm:$0xff] }
 0x1fe   :  { %13793 = vmatmul.mubr.msk.bf16.gmra.mrb[28].mxu0 %vm228_vm1, %v16808_v24 }
 0x1ff   :  { %13796 = vmatprep.mubr.msk.bf16.mxu0 %vm228_vm1, %v2187_v25  ;;  %v22307_v25 = vld [vmem:[#allocation10_spill] sm:$0xff] }
 0x206   :  { %13797 = vmatmul.mubr.msk.bf16.gmra.mrb[32].mxu0 %vm228_vm1, %v16825_v42 }
 0x207   :  { %13800 = vmatprep.mubr.msk.bf16.mxu0 %vm228_vm1, %v16827_v43 }
 0x20e   :  { %13801 = vmatmul.mubr.msk.bf16.gmra.mrb[36].mxu0 %vm228_vm1, %v16845_v29 }
 0x20f   :  { %13804 = vmatprep.mubr.msk.bf16.mxu0 %vm228_vm1, %v16847_v38 }
 0x216   :  { %13805 = vmatmul.mubr.msk.bf16.gmra.mrb[40].mxu0 %vm228_vm1, %v16865_v0 }
 0x217   :  { %13808 = vmatprep.mubr.msk.bf16.mxu0 %vm228_vm1, %v16867_v1 }
 0x21e   :  { %13809 = vmatmul.mubr.msk.bf16.gmra.mrb[44].mxu0 %vm228_vm1, %v16885_v34 }
 0x21f   :  { %13812 = vmatprep.mubr.msk.bf16.mxu0 %vm228_vm1, %v16887_v35 }
 0x226   :  { %13813 = vmatmul.mubr.msk.bf16.gmra.mrb[48].mxu0 %vm228_vm1, %v16905_v7 }
 0x227   :  { %13816 = vmatprep.mubr.msk.bf16.mxu0 %vm228_vm1, %v16907_v14 }
 0x22e   :  { %13817 = vmatmul.mubr.msk.bf16.gmra.mrb[52].mxu0 %vm228_vm1, %v16925_v16 }
 0x22f   :  { %13820 = vmatprep.mubr.msk.bf16.mxu0 %vm228_vm1, %v16927_v41 }
 0x236   :  { %13821 = vmatmul.mubr.msk.bf16.gmra.mrb[56].mxu0 %vm228_vm1, %v16945_v5 }
 0x237   :  { %13824 = vmatprep.mubr.msk.bf16.mxu0 %vm228_vm1, %v16947_v11 }
 0x23e   :  { %13825 = vmatmul.mubr.msk.bf16.gmra.mrb[60].mxu0 %vm228_vm1, %v16959_v12 }
 0x23f   :  { %13830 = vmatprep.mubr.msk.bf16.mxu0 %vm228_vm1, %v16368_v45  ;;  %v22300_v45 = vld [vmem:[#allocation3_spill] sm:$0xff] }
 0x246   :  { %13831 = vmatmul.mubr.msk.bf16.vlgmr.msra.gmra.mrb[0].mxu0 %vm228_vm1, %v16370_v52  ;;  %v22301_v52 = vld [vmem:[#allocation4_spill] sm:$0xff] }
 0x247   :  { %13895 = vmatpush3.bf16.msra.mxu0 %v3403_v17  ;;  %13834 = vmatprep.mubr.msk.bf16.mxu0 %vm228_vm1, %v16397_v3  ;;  %v22302_v3 = vld [vmem:[#allocation5_spill] sm:$0xff]  ;;  %v12200_v17 = vld [vmem:[%s22109_s0 + $0xc8] sm:$0xff] }
 0x248   :  { %15786 = vmatprep.subr.msk.bf16.mxu0 %vm325_vm0, %v12348_v18  ;;  %v3277_v18 = vpack.c.bf16 %v12198_v20, %v12197_v61  ;;  %v12229_v20 = vld [vmem:[%s22109_s0 + $0x258] sm:$0xff] }
 0x24e   :  { %13835 = vmatmul.mubr.msk.bf16.gmra.mrb[4].mxu0 %vm228_vm1, %v16399_v6  ;;  %v22303_v6 = vld [vmem:[#allocation6_spill] sm:$0xff] }
 0x24f   :  { %13838 = vmatprep.mubr.msk.bf16.mxu0 %vm228_vm1, %v16417_v32  ;;  %v22304_v32 = vld [vmem:[#allocation7_spill] sm:$0xff] }
 0x256   :  { %13839 = vmatmul.mubr.msk.bf16.gmra.mrb[8].mxu0 %vm228_vm1, %v16419_v33  ;;  %v22305_v33 = vld [vmem:[#allocation8_spill] sm:$0xff] }
 0x257   :  { %13842 = vmatprep.mubr.msk.bf16.mxu0 %vm228_vm1, %v16437_v57  ;;  %v12120_v57 = vld [vmem:[%s22109_s0 + $0x182] sm:$0xff] }
 0x25e   :  { %13843 = vmatmul.mubr.msk.bf16.gmra.mrb[12].mxu0 %vm228_vm1, %v16439_v63  ;;  %v12121_v63 = vld [vmem:[%s22109_s0 + $0x18a] sm:$0xff] }
 0x25f   :  { %13846 = vmatprep.mubr.msk.bf16.mxu0 %vm228_vm1, %v16457_v19  ;;  %v17005_v19 = vpack.c.bf16 %v12121_v63, %v12120_v57  ;;  %v12205_v63 = vld [vmem:[%s22109_s0 + $0x108] sm:$0xff] }
 0x266   :  { %13847 = vmatmul.mubr.msk.bf16.gmra.mrb[16].mxu0 %vm228_vm1, %v22300_v45  ;;  %v3278_v45 = vpack.c.bf16 %v12200_v17, %v12199_v8  ;;  %v12230_v8 = vld [vmem:[%s22109_s0 + $0x260] sm:$0xff]  ;;  %v12231_v17 = vld [vmem:[%s22109_s0 + $0x270] sm:$0xff] }
 0x267   :  { %13850 = vmatprep.mubr.msk.bf16.mxu0 %vm228_vm1, %v22301_v52  ;;  %v12201_v52 = vld [vmem:[%s22109_s0 + $0xd8] sm:$0xff] }
 0x26e   :  { %13851 = vmatmul.mubr.msk.bf16.gmra.mrb[20].mxu0 %vm228_vm1, %v22302_v3  ;;  %v12202_v3 = vld [vmem:[%s22109_s0 + $0xe0] sm:$0xff] }
 0x26f   :  { %13854 = vmatprep.mubr.msk.bf16.mxu0 %vm228_vm1, %v22303_v6  ;;  %v12203_v6 = vld [vmem:[%s22109_s0 + $0xf0] sm:$0xff] }
 0x276   :  { %13855 = vmatmul.mubr.msk.bf16.gmra.mrb[24].mxu0 %vm228_vm1, %v22304_v32  ;;  %v12204_v32 = vld [vmem:[%s22109_s0 + $0xf8] sm:$0xff] }
 0x277   :  { %13858 = vmatprep.mubr.msk.bf16.mxu0 %vm228_vm1, %v22305_v33  ;;  %v3279_v33 = vpack.c.bf16 %v12202_v3, %v12201_v52  ;;  %v3280_v57 = vpack.c.bf16 %v12204_v32, %v12203_v6  ;;  %v12233_v3 = vld [vmem:[%s22109_s0 + $0x288] sm:$0xff]  ;;  %v12234_v6 = vld [vmem:[%s22109_s0 + $0x290] sm:$0xff]  ;;  %v12235_v32 = vld [vmem:[%s22109_s0 + $0x2a0] sm:$0xff] }
 0x27e   :  { %13859 = vmatmul.mubr.msk.bf16.gmra.mrb[28].mxu0 %vm228_vm1, %v17005_v19 }
 0x27f   :  { %13862 = vmatprep.mubr.msk.bf16.mxu0 %vm228_vm1, %v22306_v21  ;;  %v12206_v21 = vld [vmem:[%s22109_s0 + $0x110] sm:$0xff] }
 0x286   :  { %13863 = vmatmul.mubr.msk.bf16.gmra.mrb[32].mxu0 %vm228_vm1, %v22307_v25  ;;  %v12207_v25 = vld [vmem:[%s22109_s0 + $0x120] sm:$0xff] }
 0x287   :  { %13866 = vmatprep.mubr.msk.bf16.mxu0 %vm228_vm1, %v22308_v30  ;;  %v12208_v30 = vld [vmem:[%s22109_s0 + $0x128] sm:$0xff] }
 0x28e   :  { %13867 = vmatmul.mubr.msk.bf16.gmra.mrb[36].mxu0 %vm228_vm1, %v22309_v31  ;;  %v3281_v31 = vpack.c.bf16 %v12206_v21, %v12205_v63  ;;  %v12237_v21 = vld [vmem:[%s22109_s0 + $0x2b8] sm:$0xff] }
 0x28f   :  { %13870 = vmatprep.mubr.msk.bf16.mxu0 %vm228_vm1, %v22310_v36  ;;  %v3282_v36 = vpack.c.bf16 %v12208_v30, %v12207_v25  ;;  %v12238_v25 = vld [vmem:[%s22109_s0 + $0x2c0] sm:$0xff]  ;;  %v12239_v30 = vld [vmem:[%s22109_s0 + $0x2d0] sm:$0xff] }
 0x296   :  { %13871 = vmatmul.mubr.msk.bf16.gmra.mrb[40].mxu0 %vm228_vm1, %v22311_v37  ;;  %v12209_v37 = vld [vmem:[%s22109_s0 + $0x138] sm:$0xff] }
 0x297   :  { %13874 = vmatprep.mubr.msk.bf16.mxu0 %vm228_vm1, %v22312_v48  ;;  %v12210_v48 = vld [vmem:[%s22109_s0 + $0x140] sm:$0xff] }
 0x29e   :  { %13875 = vmatmul.mubr.msk.bf16.gmra.mrb[44].mxu0 %vm228_vm1, %v22313_v49  ;;  %v12211_v49 = vld [vmem:[%s22109_s0 + $0x150] sm:$0xff] }
 0x29f   :  { %13878 = vmatprep.mubr.msk.bf16.mxu0 %vm228_vm1, %v22314_v54  ;;  %v12212_v54 = vld [vmem:[%s22109_s0 + $0x158] sm:$0xff] }
 0x2a6   :  { %13879 = vmatmul.mubr.msk.bf16.gmra.mrb[48].mxu0 %vm228_vm1, %v22315_v28  ;;  %v3283_v28 = vpack.c.bf16 %v12210_v48, %v12209_v37  ;;  %v12241_v48 = vld [vmem:[%s22109_s0 + $0x2e8] sm:$0xff] }
 0x2a7   :  { %13882 = vmatprep.mubr.msk.bf16.mxu0 %vm228_vm1, %v22316_v39  ;;  %v3284_v39 = vpack.c.bf16 %v12212_v54, %v12211_v49  ;;  %v12242_v49 = vld [vmem:[%s22109_s0 + $0x2f0] sm:$0xff]  ;;  %v12243_v54 = vld [vmem:[%s22109_s0 + $0x300] sm:$0xff] }
 0x2ae   :  { %13883 = vmatmul.mubr.msk.bf16.gmra.mrb[52].mxu0 %vm228_vm1, %v22317_v46  ;;  %v12213_v46 = vld [vmem:[%s22109_s0 + $0x168] sm:$0xff] }
 0x2af   :  { %13886 = vmatprep.mubr.msk.bf16.mxu0 %vm228_vm1, %v16654_v44  ;;  %v12188_v44 = vld [vmem:[%s22109_s0 + $0x38] sm:$0xff] }
 0x2b0   :  { %v3272_v10 = vpack.c.bf16 %v12188_v44, %v12187_v9  ;;  %v12217_v9 = vld [vmem:[%s22109_s0 + $0x198] sm:$0xff]  ;;  %v12218_v44 = vld [vmem:[%s22109_s0 + $0x1a0] sm:$0xff] }
 0x2b6   :  { %13887 = vmatmul.mubr.msk.bf16.gmra.mrb[56].mxu0 %vm228_vm1, %v16656_v26  ;;  %v17051_v26 = vpack.c.bf16 %v12153_v55, %v12152_v47  ;;  %v12214_v47 = vld [vmem:[%s22109_s0 + $0x170] sm:$0xff] }
 0x2b7   :  { %13890 = vmatprep.mubr.msk.bf16.mxu0 %vm228_vm1, %v16668_v40  ;;  %v12189_v40 = vld [vmem:[%s22109_s0 + $0x48] sm:$0xff]  ;;  %v3285_v55 = vpack.c.bf16 %v12214_v47, %v12213_v46  ;;  %v12245_v47 = vld [vmem:[%s22109_s0 + $0x318] sm:$0xff] }
 0x2b8   :  { %v3273_v51 = vpack.c.bf16 %v12190_v22, %v12189_v40  ;;  %v12220_v40 = vld [vmem:[%s22109_s0 + $0x1e8] sm:$0xff]  ;;  %v3287_v22 = vpack.c.bf16 %v12218_v44, %v12217_v9 }
 0x2b9   :  { %v12249_v44 = vld [vmem:[%s22109_s0 + $0x348] sm:$0xff] }
 0x2be   :  { %13891 = vmatmul.mubr.msk.bf16.gmra.mrb[60].mxu0 %vm228_vm1, %v17051_v26 }
 0x2bf   :  { %13896 = vmatprep.mubr.msk.bf16.mxu0 %vm228_vm1, %v3272_v10  ;;  %v12219_v10 = vld [vmem:[%s22109_s0 + $0x1e0] sm:$0xff] }
 0x2c0   :  { %v3288_v23 = vpack.c.bf16 %v12220_v40, %v12219_v10  ;;  %v12250_v10 = vld [vmem:[%s22109_s0 + $0x350] sm:$0xff] }
 0x2c1   :  { %v12284_v40 = vld [vmem:[%s22109_s0 + $0x31] sm:$0xff] }
 0x2c6   :  { %13897 = vmatmul.mubr.msk.bf16.vlgmr.msra.gmra.mrb[0].mxu0 %vm228_vm1, %v3273_v51  ;;  %v12223_v51 = vld [vmem:[%s22109_s0 + $0x210] sm:$0xff] }
 0x2c7   :  { %13961 = vmatpush3.bf16.msra.mxu0 %v3953_v59  ;;  %13900 = vmatprep.mubr.msk.bf16.mxu0 %vm228_vm1, %v3274_v58  ;;  %v12224_v58 = vld [vmem:[%s22109_s0 + $0x218] sm:$0xff] }
 0x2c8   :  { %15787 = vmatprep.subr.msk.bf16.mxu0 %vm325_vm0, %v17073_v27  ;;  %v3290_v56 = vpack.c.bf16 %v12224_v58, %v12223_v51  ;;  %v12288_v51 = vld [vmem:[%s22109_s0 + $0x61] sm:$0xff]  ;;  %v12289_v58 = vld [vmem:[%s22109_s0 + $0x69] sm:$0xff] }
 0x2ce   :  { %13901 = vmatmul.mubr.msk.bf16.gmra.mrb[4].mxu0 %vm228_vm1, %v3275_v15  ;;  %v12228_v15 = vld [vmem:[%s22109_s0 + $0x248] sm:$0xff] }
 0x2cf   :  { %13904 = vmatprep.mubr.msk.bf16.mxu0 %vm228_vm1, %v3276_v60  ;;  %v3291_v60 = vpack.c.bf16 %v12226_v62, %v12225_v53  ;;  %v3292_v61 = vpack.c.bf16 %v12228_v15, %v12227_v2  ;;  %v4503_v53 = vsel %vm325_vm0, %v17073_v27, 0  ;;  %v12290_v62 = vld [vmem:[%s22109_s0 + $0x79] sm:$0xff]  ;;  %v12291_v2 = vld [vmem:[%s22109_s0 + $0x81] sm:$0xff]  ;;  %v12292_v15 = vld [vmem:[%s22109_s0 + $0x91] sm:$0xff] }
 0x2d0   :  { %v12293_v27 = vld [vmem:[%s22109_s0 + $0x99] sm:$0xff] }
 0x2d6   :  { %13905 = vmatmul.mubr.msk.bf16.gmra.mrb[8].mxu0 %vm228_vm1, %v3277_v18  ;;  %v12232_v18 = vld [vmem:[%s22109_s0 + $0x278] sm:$0xff] }
 0x2d7   :  { %13908 = vmatprep.mubr.msk.bf16.mxu0 %vm228_vm1, %v3278_v45  ;;  %v3293_v45 = vpack.c.bf16 %v12230_v8, %v12229_v20  ;;  %v3294_v52 = vpack.c.bf16 %v12232_v18, %v12231_v17  ;;  %v12294_v20 = vld [vmem:[%s22109_s0 + $0xa9] sm:$0xff]  ;;  %v12295_v8 = vld [vmem:[%s22109_s0 + $0xb1] sm:$0xff]  ;;  %v12296_v17 = vld [vmem:[%s22109_s0 + $0xc1] sm:$0xff] }
 0x2d8   :  { %v12297_v18 = vld [vmem:[%s22109_s0 + $0xc9] sm:$0xff] }
 0x2de   :  { %13909 = vmatmul.mubr.msk.bf16.gmra.mrb[12].mxu0 %vm228_vm1, %v3279_v33  ;;  %v12236_v33 = vld [vmem:[%s22109_s0 + $0x2a8] sm:$0xff] }
 0x2df   :  { %13912 = vmatprep.mubr.msk.bf16.mxu0 %vm228_vm1, %v3280_v57  ;;  %v3295_v57 = vpack.c.bf16 %v12234_v6, %v12233_v3  ;;  %v3296_v63 = vpack.c.bf16 %v12236_v33, %v12235_v32  ;;  %v12298_v3 = vld [vmem:[%s22109_s0 + $0xd9] sm:$0xff]  ;;  %v12299_v6 = vld [vmem:[%s22109_s0 + $0xe1] sm:$0xff]  ;;  %v12300_v32 = vld [vmem:[%s22109_s0 + $0xf1] sm:$0xff] }
 0x2e0   :  { %v12301_v33 = vld [vmem:[%s22109_s0 + $0xf9] sm:$0xff] }
 0x2e6   :  { %13913 = vmatmul.mubr.msk.bf16.gmra.mrb[16].mxu0 %vm228_vm1, %v3281_v31  ;;  %v12240_v31 = vld [vmem:[%s22109_s0 + $0x2d8] sm:$0xff] }
 0x2e7   :  { %13916 = vmatprep.mubr.msk.bf16.mxu0 %vm228_vm1, %v3282_v36  ;;  %v3297_v36 = vpack.c.bf16 %v12238_v25, %v12237_v21  ;;  %v3298_v37 = vpack.c.bf16 %v12240_v31, %v12239_v30  ;;  %v12302_v21 = vld [vmem:[%s22109_s0 + $0x109] sm:$0xff]  ;;  %v12303_v25 = vld [vmem:[%s22109_s0 + $0x111] sm:$0xff]  ;;  %v12304_v30 = vld [vmem:[%s22109_s0 + $0x121] sm:$0xff] }
 0x2e8   :  { %v12305_v31 = vld [vmem:[%s22109_s0 + $0x129] sm:$0xff] }
 0x2ee   :  { %13917 = vmatmul.mubr.msk.bf16.gmra.mrb[20].mxu0 %vm228_vm1, %v3283_v28  ;;  %v12244_v28 = vld [vmem:[%s22109_s0 + $0x308] sm:$0xff] }
 0x2ef   :  { %13920 = vmatprep.mubr.msk.bf16.mxu0 %vm228_vm1, %v3284_v39  ;;  %v3299_v39 = vpack.c.bf16 %v12242_v49, %v12241_v48  ;;  %v3300_v46 = vpack.c.bf16 %v12244_v28, %v12243_v54  ;;  %v12306_v48 = vld [vmem:[%s22109_s0 + $0x139] sm:$0xff]  ;;  %v12307_v49 = vld [vmem:[%s22109_s0 + $0x141] sm:$0xff]  ;;  %v12308_v54 = vld [vmem:[%s22109_s0 + $0x151] sm:$0xff] }
 0x2f0   :  { %v12309_v28 = vld [vmem:[%s22109_s0 + $0x159] sm:$0xff] }
 0x2f6   :  { %13921 = vmatmul.mubr.msk.bf16.gmra.mrb[24].mxu0 %vm228_vm1, %v3285_v55  ;;  %v12246_v55 = vld [vmem:[%s22109_s0 + $0x320] sm:$0xff] }
 0x2f7   :  { %13924 = vmatprep.mubr.msk.bf16.mxu0 %vm228_vm1, %v16714_v4  ;;  %v12221_v4 = vld [vmem:[%s22109_s0 + $0x1f8] sm:$0xff]  ;;  %v3301_v9 = vpack.c.bf16 %v12246_v55, %v12245_v47  ;;  %v12310_v47 = vld [vmem:[%s22109_s0 + $0x169] sm:$0xff] }
 0x2f8   :  { %v3289_v59 = vpack.c.bf16 %v12222_v50, %v12221_v4  ;;  %v12287_v50 = vld [vmem:[%s22109_s0 + $0x51] sm:$0xff] }
 0x2f9   :  { %v12311_v55 = vld [vmem:[%s22109_s0 + $0x171] sm:$0xff] }
 0x2fe   :  { %13925 = vmatmul.mubr.msk.bf16.gmra.mrb[28].mxu0 %vm228_vm1, %v3287_v22  ;;  %v12285_v22 = vld [vmem:[%s22109_s0 + $0x39] sm:$0xff] }
 0x2ff   :  { %13928 = vmatprep.mubr.msk.bf16.mxu0 %vm228_vm1, %v3288_v23  ;;  %v3303_v23 = vpack.c.bf16 %v12250_v10, %v12249_v44  ;;  %v3822_v4 = vpack.c.bf16 %v12285_v22, %v12284_v40  ;;  %v12314_v44 = vld [vmem:[%s22109_s0 + $0x199] sm:$0xff]  ;;  %v12315_v10 = vld [vmem:[%s22109_s0 + $0x1a1] sm:$0xff]  ;;  %v162_v22 = vld [vmem:[%s22109_s0 + $0x1b1] sm:$0xff] }
 0x300   :  { %v3837_v40 = vpack.c.bf16 %v12315_v10, %v12314_v44  ;;  %v12387_v10 = vld [vmem:[%s22109_s0 + $0x7a] sm:$0xff] }
 0x306   :  { %13929 = vmatmul.mubr.msk.bf16.gmra.mrb[32].mxu0 %vm228_vm1, %v3289_v59 }
 0x307   :  { %13932 = vmatprep.mubr.msk.bf16.mxu0 %vm228_vm1, %v3290_v56  ;;  %v3824_v56 = vpack.c.bf16 %v12289_v58, %v12288_v51  ;;  %v166_v51 = vld [vmem:[%s22109_s0 + $0x1e1] sm:$0xff]  ;;  %v168_v58 = vld [vmem:[%s22109_s0 + $0x1f9] sm:$0xff] }
 0x30e   :  { %13933 = vmatmul.mubr.msk.bf16.gmra.mrb[36].mxu0 %vm228_vm1, %v3291_v60  ;;  %v3825_v60 = vpack.c.bf16 %v12291_v2, %v12290_v62  ;;  %v172_v62 = vld [vmem:[%s22109_s0 + $0x229] sm:$0xff] }
 0x30f   :  { %13936 = vmatprep.mubr.msk.bf16.mxu0 %vm228_vm1, %v3292_v61  ;;  %v3826_v61 = vpack.c.bf16 %v12293_v27, %v12292_v15  ;;  %v174_v27 = vld [vmem:[%s22109_s0 + $0x241] sm:$0xff] }
 0x316   :  { %13937 = vmatmul.mubr.msk.bf16.gmra.mrb[40].mxu0 %vm228_vm1, %v3293_v45  ;;  %v3827_v45 = vpack.c.bf16 %v12295_v8, %v12294_v20  ;;  %v178_v8 = vld [vmem:[%s22109_s0 + $0x271] sm:$0xff] }
 0x317   :  { %13940 = vmatprep.mubr.msk.bf16.mxu0 %vm228_vm1, %v3294_v52  ;;  %v3828_v52 = vpack.c.bf16 %v12297_v18, %v12296_v17  ;;  %v180_v17 = vld [vmem:[%s22109_s0 + $0x289] sm:$0xff] }
 0x31e   :  { %13941 = vmatmul.mubr.msk.bf16.gmra.mrb[44].mxu0 %vm228_vm1, %v3295_v57  ;;  %v3829_v57 = vpack.c.bf16 %v12299_v6, %v12298_v3  ;;  %v184_v3 = vld [vmem:[%s22109_s0 + $0x2b9] sm:$0xff] }
 0x31f   :  { %13944 = vmatprep.mubr.msk.bf16.mxu0 %vm228_vm1, %v3296_v63  ;;  %v3830_v63 = vpack.c.bf16 %v12301_v33, %v12300_v32  ;;  %v186_v33 = vld [vmem:[%s22109_s0 + $0x2d1] sm:$0xff] }
 0x326   :  { %13945 = vmatmul.mubr.msk.bf16.gmra.mrb[48].mxu0 %vm228_vm1, %v3297_v36  ;;  %v3831_v36 = vpack.c.bf16 %v12303_v25, %v12302_v21  ;;  %v190_v25 = vld [vmem:[%s22109_s0 + $0x301] sm:$0xff] }
 0x327   :  { %13948 = vmatprep.mubr.msk.bf16.mxu0 %vm228_vm1, %v3298_v37  ;;  %v3832_v37 = vpack.c.bf16 %v12305_v31, %v12304_v30  ;;  %v192_v30 = vld [vmem:[%s22109_s0 + $0x319] sm:$0xff]  ;;  %v12346_v31 = vld [vmem:[%s22109_s0 + $0x349] sm:$0xff] }
 0x32e   :  { %13949 = vmatmul.mubr.msk.bf16.gmra.mrb[52].mxu0 %vm228_vm1, %v3299_v39  ;;  %v3833_v39 = vpack.c.bf16 %v12307_v49, %v12306_v48  ;;  %v12381_v48 = vld [vmem:[%s22109_s0 + $0x32] sm:$0xff] }
 0x32f   :  { %13952 = vmatprep.mubr.msk.bf16.mxu0 %vm228_vm1, %v3300_v46  ;;  %v3834_v46 = vpack.c.bf16 %v12309_v28, %v12308_v54 }
 0x336   :  { %13953 = vmatmul.mubr.msk.bf16.gmra.mrb[56].mxu0 %vm228_vm1, %v3301_v9  ;;  %v3835_v9 = vpack.c.bf16 %v12311_v55, %v12310_v47  ;;  %v12385_v47 = vld [vmem:[%s22109_s0 + $0x62] sm:$0xff]  ;;  %v12386_v55 = vld [vmem:[%s22109_s0 + $0x6a] sm:$0xff] }
 0x337   :  { %13956 = vmatprep.mubr.msk.bf16.mxu0 %vm228_vm1, %v16754_v13  ;;  %v12286_v13 = vld [vmem:[%s22109_s0 + $0x49] sm:$0xff]  ;;  %v4374_v44 = vpack.c.bf16 %v12386_v55, %v12385_v47 }
 0x338   :  { %v3823_v59 = vpack.c.bf16 %v12287_v50, %v12286_v13  ;;  %v165_v13 = vld [vmem:[%s22109_s0 + $0x1d1] sm:$0xff]  ;;  %v12429_v47 = vld [vmem:[%s22109_s0 + $0x2a2] sm:$0xff] }
 0x339   :  { %v12430_v55 = vld [vmem:[%s22109_s0 + $0x2aa] sm:$0xff] }
 0x33e   :  { %13957 = vmatmul.mubr.msk.bf16.gmra.mrb[60].mxu0 %vm228_vm1, %v3303_v23  ;;  %v163_v23 = vld [vmem:[%s22109_s0 + $0x1b9] sm:$0xff] }
 0x33f   :  { %13962 = vmatprep.mubr.msk.bf16.mxu0 %vm228_vm1, %v3822_v4  ;;  %v210_v4 = vpack.c.bf16 %v163_v23, %v162_v22  ;;  %v12389_v22 = vld [vmem:[%s22109_s0 + $0x92] sm:$0xff]  ;;  %v12390_v23 = vld [vmem:[%s22109_s0 + $0x9a] sm:$0xff] }
 0x341   :  { %13532 = vmatprep.mubr.msk.bf16.mxu1 %vm228_vm1, %v210_v4  ;;  %v4376_v4 = vpack.c.bf16 %v12390_v23, %v12389_v22  ;;  %v12433_v22 = vld [vmem:[%s22109_s0 + $0x2d2] sm:$0xff]  ;;  %v12434_v23 = vld [vmem:[%s22109_s0 + $0x2da] sm:$0xff] }
 0x346   :  { %13963 = vmatmul.mubr.msk.bf16.vlgmr.msra.gmra.mrb[0].mxu0 %vm228_vm1, %v3823_v59 }
 0x347   :  { %14027 = vmatpush3.bf16.msra.mxu0 %v4503_v53  ;;  %13966 = vmatprep.mubr.msk.bf16.mxu0 %vm228_vm1, %v3824_v56  ;;  %v170_v53 = vld [vmem:[%s22109_s0 + $0x211] sm:$0xff] }
 0x34e   :  { %13967 = vmatmul.mubr.msk.bf16.gmra.mrb[4].mxu0 %vm228_vm1, %v3825_v60  ;;  %v176_v60 = vld [vmem:[%s22109_s0 + $0x259] sm:$0xff] }
 0x34f   :  { %13970 = vmatprep.mubr.msk.bf16.mxu0 %vm228_vm1, %v3826_v61 }
 0x356   :  { %13971 = vmatmul.mubr.msk.bf16.gmra.mrb[8].mxu0 %vm228_vm1, %v3827_v45 }
 0x357   :  { %13974 = vmatprep.mubr.msk.bf16.mxu0 %vm228_vm1, %v3828_v52  ;;  %v182_v52 = vld [vmem:[%s22109_s0 + $0x2a1] sm:$0xff] }
 0x35e   :  { %13975 = vmatmul.mubr.msk.bf16.gmra.mrb[12].mxu0 %vm228_vm1, %v3829_v57  ;;  %v188_v57 = vld [vmem:[%s22109_s0 + $0x2e9] sm:$0xff] }
 0x35f   :  { %13978 = vmatprep.mubr.msk.bf16.mxu0 %vm228_vm1, %v3830_v63 }
 0x366   :  { %13979 = vmatmul.mubr.msk.bf16.gmra.mrb[16].mxu0 %vm228_vm1, %v3831_v36 }
 0x367   :  { %13982 = vmatprep.mubr.msk.bf16.mxu0 %vm228_vm1, %v3832_v37  ;;  %v193_v37 = vld [vmem:[%s22109_s0 + $0x321] sm:$0xff] }
 0x368   :  { %v225_v49 = vpack.c.bf16 %v193_v37, %v192_v30  ;;  %v12421_v30 = vld [vmem:[%s22109_s0 + $0x242] sm:$0xff]  ;;  %v12423_v37 = vld [vmem:[%s22109_s0 + $0x25a] sm:$0xff] }
 0x36e   :  { %13983 = vmatmul.mubr.msk.bf16.gmra.mrb[20].mxu0 %vm228_vm1, %v3833_v39  ;;  %v12383_v39 = vld [vmem:[%s22109_s0 + $0x4a] sm:$0xff] }
 0x36f   :  { %13986 = vmatprep.mubr.msk.bf16.mxu0 %vm228_vm1, %v3834_v46  ;;  %v12384_v46 = vld [vmem:[%s22109_s0 + $0x52] sm:$0xff] }
 0x376   :  { %13987 = vmatmul.mubr.msk.bf16.gmra.mrb[24].mxu0 %vm228_vm1, %v3835_v9  ;;  %v4373_v9 = vpack.c.bf16 %v12384_v46, %v12383_v39  ;;  %v12427_v39 = vld [vmem:[%s22109_s0 + $0x28a] sm:$0xff]  ;;  %v12428_v46 = vld [vmem:[%s22109_s0 + $0x292] sm:$0xff] }
 0x377   :  { %13990 = vmatprep.mubr.msk.bf16.mxu0 %vm228_vm1, %v16808_v24  ;;  %v164_v24 = vld [vmem:[%s22109_s0 + $0x1c9] sm:$0xff] }
 0x378   :  { %v211_v50 = vpack.c.bf16 %v165_v13, %v164_v24  ;;  %v12391_v13 = vld [vmem:[%s22109_s0 + $0xaa] sm:$0xff] }
 0x37a   :  { %13533 = vmatmul.mubr.msk.bf16.vlgmr.msra.gmra.mrb[0].mxu1 %vm228_vm1, %v211_v50  ;;  %v12392_v50 = vld [vmem:[%s22109_s0 + $0xb2] sm:$0xff] }
 0x37e   :  { %13991 = vmatmul.mubr.msk.bf16.gmra.mrb[28].mxu0 %vm228_vm1, %v3837_v40  ;;  %v12388_v40 = vld [vmem:[%s22109_s0 + $0x82] sm:$0xff] }
 0x37f   :  { %13994 = vmatprep.mubr.msk.bf16.mxu0 %vm228_vm1, %v16825_v42  ;;  %v167_v42 = vld [vmem:[%s22109_s0 + $0x1e9] sm:$0xff]  ;;  %v4375_v24 = vpack.c.bf16 %v12388_v40, %v12387_v10  ;;  %v12431_v10 = vld [vmem:[%s22109_s0 + $0x2ba] sm:$0xff] }
 0x380   :  { %v212_v59 = vpack.c.bf16 %v167_v42, %v166_v51  ;;  %v12393_v51 = vld [vmem:[%s22109_s0 + $0xc2] sm:$0xff]  ;;  %v12394_v42 = vld [vmem:[%s22109_s0 + $0xca] sm:$0xff] }
 0x381   :  { %v12432_v40 = vld [vmem:[%s22109_s0 + $0x2c2] sm:$0xff] }
 0x382   :  { %13536 = vmatprep.mubr.msk.bf16.mxu1 %vm228_vm1, %v212_v59  ;;  %v4378_v59 = vpack.c.bf16 %v12394_v42, %v12393_v51  ;;  %v12437_v51 = vld [vmem:[%s22109_s0 + $0x302] sm:$0xff]  ;;  %v12438_v42 = vld [vmem:[%s22109_s0 + $0x30a] sm:$0xff] }
 0x386   :  { %13995 = vmatmul.mubr.msk.bf16.gmra.mrb[32].mxu0 %vm228_vm1, %v16827_v43  ;;  %v169_v43 = vld [vmem:[%s22109_s0 + $0x201] sm:$0xff] }
 0x387   :  { %13998 = vmatprep.mubr.msk.bf16.mxu0 %vm228_vm1, %v16845_v29  ;;  %v213_v56 = vpack.c.bf16 %v169_v43, %v168_v58  ;;  %v171_v29 = vld [vmem:[%s22109_s0 + $0x219] sm:$0xff]  ;;  %v4377_v58 = vpack.c.bf16 %v12392_v50, %v12391_v13  ;;  %v12435_v13 = vld [vmem:[%s22109_s0 + $0x2ea] sm:$0xff] }
 0x388   :  { %v214_v2 = vpack.c.bf16 %v171_v29, %v170_v53  ;;  %v12395_v43 = vld [vmem:[%s22109_s0 + $0xda] sm:$0xff]  ;;  %v12397_v53 = vld [vmem:[%s22109_s0 + $0xf2] sm:$0xff] }
 0x389   :  { %13537 = vmatmul.mubr.msk.bf16.gmra.mrb[4].mxu1 %vm228_vm1, %v213_v56  ;;  %v12396_v56 = vld [vmem:[%s22109_s0 + $0xe2] sm:$0xff]  ;;  %v12398_v29 = vld [vmem:[%s22109_s0 + $0xfa] sm:$0xff]  ;;  %v12436_v50 = vld [vmem:[%s22109_s0 + $0x2f2] sm:$0xff] }
 0x38a   :  { %13540 = vmatprep.mubr.msk.bf16.mxu1 %vm228_vm1, %v214_v2  ;;  %v4380_v2 = vpack.c.bf16 %v12398_v29, %v12397_v53  ;;  %v12443_v29 = vld [vmem:[%s22109_s0 + $0x34a] sm:$0xff] }
 0x38e   :  { %13999 = vmatmul.mubr.msk.bf16.gmra.mrb[36].mxu0 %vm228_vm1, %v16847_v38  ;;  %v173_v38 = vld [vmem:[%s22109_s0 + $0x231] sm:$0xff] }
 0x38f   :  { %14002 = vmatprep.mubr.msk.bf16.mxu0 %vm228_vm1, %v16865_v0  ;;  %v215_v15 = vpack.c.bf16 %v173_v38, %v172_v62  ;;  %v175_v0 = vld [vmem:[%s22109_s0 + $0x249] sm:$0xff]  ;;  %v4379_v62 = vpack.c.bf16 %v12396_v56, %v12395_v43  ;;  %v12439_v43 = vld [vmem:[%s22109_s0 + $0x31a] sm:$0xff] }
 0x390   :  { %v216_v61 = vpack.c.bf16 %v175_v0, %v174_v27  ;;  %v12399_v38 = vld [vmem:[%s22109_s0 + $0x10a] sm:$0xff]  ;;  %v12401_v27 = vld [vmem:[%s22109_s0 + $0x122] sm:$0xff] }
 0x391   :  { %13541 = vmatmul.mubr.msk.bf16.gmra.mrb[8].mxu1 %vm228_vm1, %v215_v15  ;;  %v12400_v15 = vld [vmem:[%s22109_s0 + $0x112] sm:$0xff]  ;;  %v12402_v0 = vld [vmem:[%s22109_s0 + $0x12a] sm:$0xff]  ;;  %v12440_v56 = vld [vmem:[%s22109_s0 + $0x322] sm:$0xff] }
 0x392   :  { %13544 = vmatprep.mubr.msk.bf16.mxu1 %vm228_vm1, %v216_v61  ;;  %v4382_v61 = vpack.c.bf16 %v12402_v0, %v12401_v27  ;;  %v4401_v53 = vpack.c.bf16 %v12440_v56, %v12439_v43 }
 0x396   :  { %14003 = vmatmul.mubr.msk.bf16.gmra.mrb[40].mxu0 %vm228_vm1, %v16867_v1  ;;  %v177_v1 = vld [vmem:[%s22109_s0 + $0x261] sm:$0xff] }
 0x397   :  { %14006 = vmatprep.mubr.msk.bf16.mxu0 %vm228_vm1, %v16885_v34  ;;  %v217_v20 = vpack.c.bf16 %v177_v1, %v176_v60  ;;  %v179_v34 = vld [vmem:[%s22109_s0 + $0x279] sm:$0xff]  ;;  %v4381_v60 = vpack.c.bf16 %v12400_v15, %v12399_v38 }
 0x398   :  { %v218_v18 = vpack.c.bf16 %v179_v34, %v178_v8  ;;  %v12403_v1 = vld [vmem:[%s22109_s0 + $0x13a] sm:$0xff]  ;;  %v12405_v8 = vld [vmem:[%s22109_s0 + $0x152] sm:$0xff] }
 0x399   :  { %13545 = vmatmul.mubr.msk.bf16.gmra.mrb[12].mxu1 %vm228_vm1, %v217_v20  ;;  %v12404_v20 = vld [vmem:[%s22109_s0 + $0x142] sm:$0xff]  ;;  %v12406_v34 = vld [vmem:[%s22109_s0 + $0x15a] sm:$0xff] }
 0x39a   :  { %13548 = vmatprep.mubr.msk.bf16.mxu1 %vm228_vm1, %v218_v18  ;;  %v4384_v18 = vpack.c.bf16 %v12406_v34, %v12405_v8 }
 0x39e   :  { %14007 = vmatmul.mubr.msk.bf16.gmra.mrb[44].mxu0 %vm228_vm1, %v16887_v35  ;;  %v181_v35 = vld [vmem:[%s22109_s0 + $0x291] sm:$0xff] }
 0x39f   :  { %14010 = vmatprep.mubr.msk.bf16.mxu0 %vm228_vm1, %v16905_v7  ;;  %v219_v45 = vpack.c.bf16 %v181_v35, %v180_v17  ;;  %v183_v7 = vld [vmem:[%s22109_s0 + $0x2a9] sm:$0xff]  ;;  %v4383_v17 = vpack.c.bf16 %v12404_v20, %v12403_v1 }
 0x3a0   :  { %v220_v6 = vpack.c.bf16 %v183_v7, %v182_v52  ;;  %v12407_v35 = vld [vmem:[%s22109_s0 + $0x16a] sm:$0xff]  ;;  %v12411_v7 = vld [vmem:[%s22109_s0 + $0x19a] sm:$0xff] }
 0x3a1   :  { %13549 = vmatmul.mubr.msk.bf16.gmra.mrb[16].mxu1 %vm228_vm1, %v219_v45  ;;  %v12408_v45 = vld [vmem:[%s22109_s0 + $0x172] sm:$0xff] }
 0x3a2   :  { %13552 = vmatprep.mubr.msk.bf16.mxu1 %vm228_vm1, %v220_v6  ;;  %v4385_v52 = vpack.c.bf16 %v12408_v45, %v12407_v35  ;;  %v12413_v6 = vld [vmem:[%s22109_s0 + $0x1e2] sm:$0xff] }
 0x3a6   :  { %14011 = vmatmul.mubr.msk.bf16.gmra.mrb[48].mxu0 %vm228_vm1, %v16907_v14  ;;  %v185_v14 = vld [vmem:[%s22109_s0 + $0x2c1] sm:$0xff] }
 0x3a7   :  { %14014 = vmatprep.mubr.msk.bf16.mxu0 %vm228_vm1, %v16925_v16  ;;  %v221_v32 = vpack.c.bf16 %v185_v14, %v184_v3  ;;  %v187_v16 = vld [vmem:[%s22109_s0 + $0x2d9] sm:$0xff]  ;;  %v12412_v3 = vld [vmem:[%s22109_s0 + $0x1a2] sm:$0xff]  ;;  %v12414_v14 = vld [vmem:[%s22109_s0 + $0x1ea] sm:$0xff] }
 0x3a8   :  { %v222_v63 = vpack.c.bf16 %v187_v16, %v186_v33  ;;  %v4388_v33 = vpack.c.bf16 %v12414_v14, %v12413_v6  ;;  %v12416_v16 = vld [vmem:[%s22109_s0 + $0x202] sm:$0xff] }
 0x3a9   :  { %13553 = vmatmul.mubr.msk.bf16.gmra.mrb[20].mxu1 %vm228_vm1, %v221_v32  ;;  %v4387_v32 = vpack.c.bf16 %v12412_v3, %v12411_v7 }
 0x3aa   :  { %13556 = vmatprep.mubr.msk.bf16.mxu1 %vm228_vm1, %v222_v63  ;;  %v12418_v63 = vld [vmem:[%s22109_s0 + $0x21a] sm:$0xff] }
 0x3ae   :  { %14015 = vmatmul.mubr.msk.bf16.gmra.mrb[52].mxu0 %vm228_vm1, %v16927_v41  ;;  %v189_v41 = vld [vmem:[%s22109_s0 + $0x2f1] sm:$0xff] }
 0x3af   :  { %14018 = vmatprep.mubr.msk.bf16.mxu0 %vm228_vm1, %v16945_v5  ;;  %v223_v21 = vpack.c.bf16 %v189_v41, %v188_v57  ;;  %v191_v5 = vld [vmem:[%s22109_s0 + $0x309] sm:$0xff]  ;;  %v12417_v57 = vld [vmem:[%s22109_s0 + $0x212] sm:$0xff] }
 0x3b0   :  { %v224_v36 = vpack.c.bf16 %v191_v5, %v190_v25  ;;  %v12419_v25 = vld [vmem:[%s22109_s0 + $0x22a] sm:$0xff]  ;;  %v12420_v5 = vld [vmem:[%s22109_s0 + $0x232] sm:$0xff] }
 0x3b1   :  { %13557 = vmatmul.mubr.msk.bf16.gmra.mrb[24].mxu1 %vm228_vm1, %v223_v21  ;;  %v4390_v21 = vpack.c.bf16 %v12418_v63, %v12417_v57 }
 0x3b2   :  { %13560 = vmatprep.mubr.msk.bf16.mxu1 %vm228_vm1, %v224_v36 }
 0x3b6   :  { %14019 = vmatmul.mubr.msk.bf16.gmra.mrb[56].mxu0 %vm228_vm1, %v16947_v11  ;;  %v12347_v11 = vld [vmem:[%s22109_s0 + $0x351] sm:$0xff] }
 0x3b7   :  { %14022 = vmatprep.mubr.msk.bf16.mxu0 %vm228_vm1, %v16959_v12  ;;  %v12382_v12 = vld [vmem:[%s22109_s0 + $0x3a] sm:$0xff]  ;;  %v3853_v54 = vpack.c.bf16 %v12347_v11, %v12346_v31  ;;  %v12422_v31 = vld [vmem:[%s22109_s0 + $0x24a] sm:$0xff]  ;;  %v4391_v11 = vpack.c.bf16 %v12420_v5, %v12419_v25 }
 0x3b8   :  { %v4372_v28 = vpack.c.bf16 %v12382_v12, %v12381_v48  ;;  %v4392_v36 = vpack.c.bf16 %v12422_v31, %v12421_v30  ;;  %v12424_v48 = vld [vmem:[%s22109_s0 + $0x262] sm:$0xff]  ;;  %v12425_v12 = vld [vmem:[%s22109_s0 + $0x272] sm:$0xff] }
 0x3b9   :  { %13561 = vmatmul.mubr.msk.bf16.gmra.mrb[28].mxu1 %vm228_vm1, %v225_v49  ;;  %v12426_v49 = vld [vmem:[%s22109_s0 + $0x27a] sm:$0xff] }
 0x3be   :  { %14023 = vmatmul.mubr.msk.bf16.gmra.mrb[60].mxu0 %vm228_vm1, %v3853_v54  ;;  %v4393_v54 = vpack.c.bf16 %v12424_v48, %v12423_v37 }
 0x3bf   :  { %14028 = vmatprep.mubr.msk.bf16.mxu0 %vm228_vm1, %v4372_v28  ;;  %v4394_v28 = vpack.c.bf16 %v12426_v49, %v12425_v12 }
 0x3c6   :  { %14029 = vmatmul.mubr.msk.bf16.vlgmr.msra.gmra.mrb[0].mxu0 %vm228_vm1, %v4373_v9  ;;  %v4395_v9 = vpack.c.bf16 %v12428_v46, %v12427_v39 }
 0x3c7   :  { %14032 = vmatprep.mubr.msk.bf16.mxu0 %vm228_vm1, %v4374_v44  ;;  %v4396_v44 = vpack.c.bf16 %v12430_v55, %v12429_v47 }
 0x3ce   :  { %14033 = vmatmul.mubr.msk.bf16.gmra.mrb[4].mxu0 %vm228_vm1, %v4375_v24  ;;  %v4397_v24 = vpack.c.bf16 %v12432_v40, %v12431_v10 }
 0x3cf   :  { %14036 = vmatprep.mubr.msk.bf16.mxu0 %vm228_vm1, %v4376_v4  ;;  %v4398_v4 = vpack.c.bf16 %v12434_v23, %v12433_v22 }
 0x3d6   :  { %14037 = vmatmul.mubr.msk.bf16.gmra.mrb[8].mxu0 %vm228_vm1, %v4377_v58  ;;  %v4399_v58 = vpack.c.bf16 %v12436_v50, %v12435_v13 }
 0x3d7   :  { %14040 = vmatprep.mubr.msk.bf16.mxu0 %vm228_vm1, %v4378_v59  ;;  %v4400_v59 = vpack.c.bf16 %v12438_v42, %v12437_v51 }
 0x3de   :  { %14041 = vmatmul.mubr.msk.bf16.gmra.mrb[12].mxu0 %vm228_vm1, %v4379_v62  ;;  %v12444_v62 = vld [vmem:[%s22109_s0 + $0x352] sm:$0xff] }
 0x3df   :  { %14044 = vmatprep.mubr.msk.bf16.mxu0 %vm228_vm1, %v4380_v2  ;;  %v4403_v2 = vpack.c.bf16 %v12444_v62, %v12443_v29 }
 0x3e6   :  { %14045 = vmatmul.mubr.msk.bf16.gmra.mrb[16].mxu0 %vm228_vm1, %v4381_v60 }
 0x3e7   :  { %14048 = vmatprep.mubr.msk.bf16.mxu0 %vm228_vm1, %v4382_v61 }
 0x3ee   :  { %14049 = vmatmul.mubr.msk.bf16.gmra.mrb[20].mxu0 %vm228_vm1, %v4383_v17 }
 0x3ef   :  { %14052 = vmatprep.mubr.msk.bf16.mxu0 %vm228_vm1, %v4384_v18 }
 0x3f6   :  { %14053 = vmatmul.mubr.msk.bf16.gmra.mrb[24].mxu0 %vm228_vm1, %v4385_v52 }
 0x3f7   :  { %14056 = vmatprep.mubr.msk.bf16.mxu0 %vm228_vm1, %v17005_v19  ;;  %v12415_v19 = vld [vmem:[%s22109_s0 + $0x1fa] sm:$0xff] }
 0x3f8   :  { %v4389_v41 = vpack.c.bf16 %v12416_v16, %v12415_v19 }
 0x3fe   :  { %14057 = vmatmul.mubr.msk.bf16.gmra.mrb[28].mxu0 %vm228_vm1, %v4387_v32 }
 0x3ff   :  { %14060 = vmatprep.mubr.msk.bf16.mxu0 %vm228_vm1, %v4388_v33 }
 0x406   :  { %14061 = vmatmul.mubr.msk.bf16.gmra.mrb[32].mxu0 %vm228_vm1, %v4389_v41 }
 0x407   :  { %14064 = vmatprep.mubr.msk.bf16.mxu0 %vm228_vm1, %v4390_v21 }
 0x40e   :  { %14065 = vmatmul.mubr.msk.bf16.gmra.mrb[36].mxu0 %vm228_vm1, %v4391_v11 }
 0x40f   :  { %14068 = vmatprep.mubr.msk.bf16.mxu0 %vm228_vm1, %v4392_v36 }
 0x416   :  { %14069 = vmatmul.mubr.msk.bf16.gmra.mrb[40].mxu0 %vm228_vm1, %v4393_v54 }
 0x417   :  { %14072 = vmatprep.mubr.msk.bf16.mxu0 %vm228_vm1, %v4394_v28 }
 0x41e   :  { %14073 = vmatmul.mubr.msk.bf16.gmra.mrb[44].mxu0 %vm228_vm1, %v4395_v9 }
 0x41f   :  { %14076 = vmatprep.mubr.msk.bf16.mxu0 %vm228_vm1, %v4396_v44 }
 0x426   :  { %14077 = vmatmul.mubr.msk.bf16.gmra.mrb[48].mxu0 %vm228_vm1, %v4397_v24 }
 0x427   :  { %14080 = vmatprep.mubr.msk.bf16.mxu0 %vm228_vm1, %v4398_v4 }
 0x42e   :  { %14081 = vmatmul.mubr.msk.bf16.gmra.mrb[52].mxu0 %vm228_vm1, %v4399_v58 }
 0x42f   :  { %14084 = vmatprep.mubr.msk.bf16.mxu0 %vm228_vm1, %v4400_v59 }
 0x436   :  { %14085 = vmatmul.mubr.msk.bf16.gmra.mrb[56].mxu0 %vm228_vm1, %v4401_v53 }
 0x437   :  { %14088 = vmatprep.mubr.msk.bf16.mxu0 %vm228_vm1, %v17051_v26 }
 0x43e   :  { %14089 = vmatmul.mubr.msk.bf16.gmra.mrb[60].mxu0 %vm228_vm1, %v4403_v2 }
 0x44d   :  { %v17743_v38 = vpop.f32.mrb[0].mxu1 }
 0x44e   :  { %v17745_v15 = vpop.f32.mrb[1].mxu1 }
 0x44f   :  { %v17747_v27 = vpop.f32.mrb[2].mxu1 }
 0x450   :  { %v17749_v0 = vpop.f32.mrb[3].mxu1 }
 0x45c   :  { %v17751_v26 = vpop.f32.mrb[4].mxu1 }
 0x45d   :  { %v17753_v60 = vpop.f32.mrb[5].mxu1 }
 0x45e   :  { %v17755_v61 = vpop.f32.mrb[6].mxu1 }
 0x45f   :  { %v17757_v1 = vpop.f32.mrb[7].mxu1 }
 0x464   :  { %v17759_v20 = vpop.f32.mrb[8].mxu1 }
 0x465   :  { %v17761_v8 = vpop.f32.mrb[9].mxu1 }
 0x466   :  { %v17763_v34 = vpop.f32.mrb[10].mxu1 }
 0x467   :  { %v17765_v17 = vpop.f32.mrb[11].mxu1 }
 0x46c   :  { %v17767_v18 = vpop.f32.mrb[12].mxu1 }
 0x46d   :  { %v17769_v35 = vpop.f32.mrb[13].mxu1 }
 0x46e   :  { %v17771_v45 = vpop.f32.mrb[14].mxu1 }
 0x46f   :  { %v17773_v52 = vpop.f32.mrb[15].mxu1 }
 0x474   :  { %v17775_v7 = vpop.f32.mrb[16].mxu1 }
 0x475   :  { %v17777_v3 = vpop.f32.mrb[17].mxu1 }
 0x476   :  { %v17779_v6 = vpop.f32.mrb[18].mxu1 }
 0x477   :  { %v17781_v14 = vpop.f32.mrb[19].mxu1 }
 0x47c   :  { %v17783_v32 = vpop.f32.mrb[20].mxu1 }
 0x47d   :  { %v17785_v33 = vpop.f32.mrb[21].mxu1 }
 0x47e   :  { %v17787_v19 = vpop.f32.mrb[22].mxu1 }
 0x47f   :  { %v17789_v16 = vpop.f32.mrb[23].mxu1 }
 0x484   :  { %v17791_v57 = vpop.f32.mrb[24].mxu1 }
 0x485   :  { %v17793_v63 = vpop.f32.mrb[25].mxu1 }
 0x486   :  { %v17795_v41 = vpop.f32.mrb[26].mxu1 }
 0x487   :  { %v17797_v21 = vpop.f32.mrb[27].mxu1 }
 0x48c   :  { %v17799_v25 = vpop.f32.mrb[28].mxu1 }
 0x48d   :  { %v17801_v5 = vpop.f32.mrb[29].mxu1 }
 0x48e   :  { %v17803_v30 = vpop.f32.mrb[30].mxu1 }
 0x48f   :  { %v17805_v31 = vpop.f32.mrb[31].mxu1 }
 0x499   :  { %v17807_v11 = vpop.f32.mrb[0].mxu0 }
 0x49a   :  { %v17809_v36 = vpop.f32.mrb[1].mxu0  ;;  %v4995_v49 = vmul.f32 %v17807_v11, %v17807_v11  ;;  %v4862_v47 = vsel %vm4858_vm2, %v17807_v11, 0.0 }
 0x49b   :  { %v4993_v37 = vmul.f32 %v17809_v36, %v17809_v36  ;;  %v17813_v48 = vpop.f32.mrb[2].mxu0  ;;  %v4859_v54 = vsel %vm4858_vm2, %v17809_v36, 0.0 }
 0x49c   :  { %v17815_v12 = vpop.f32.mrb[3].mxu0  ;;  %v4996_v9 = vmul.f32 %v17813_v48, %v17813_v48  ;;  %v5060_v22 = vsel %vm4858_vm2, %v4995_v49, 0.0  ;;  %v4864_v23 = vsel %vm4858_vm2, %v17813_v48, 0.0 }
 0x49d   :  { %v4860_v28 = vsel %vm4858_vm2, %v17815_v12, 0.0  ;;  %v4994_v39 = vmul.f32 %v17815_v12, %v17815_v12  ;;  %v5057_v55 = vsel %vm4858_vm2, %v4993_v37, 0.0 }
 0x49e   :  { %v4861_v46 = vadd.f32 %v4860_v28, %v4859_v54  ;;  %v5062_v51 = vsel %vm4858_vm2, %v4996_v9, 0.0 }
 0x49f   :  { %v5058_v44 = vsel %vm4858_vm2, %v4994_v39, 0.0 }
 0x4a0   :  { %v4863_v10 = vadd.f32 %v4862_v47, %v4861_v46  ;;  %v5059_v40 = vadd.f32 %v5058_v44, %v5057_v55 }
 0x4a1   :  { %v17834_v24 = vpop.f32.mrb[4].mxu0 }
 0x4a2   :  { %v5061_v4 = vadd.f32 %v5060_v22, %v5059_v40  ;;  %v17836_v13 = vpop.f32.mrb[5].mxu0  ;;  %v4865_v50 = vadd.f32 %v4864_v23, %v4863_v10  ;;  %v4999_v29 = vmul.f32 %v17834_v24, %v17834_v24  ;;  %v4870_v28 = vsel %vm4858_vm2, %v17834_v24, 0.0 }
 0x4a3   :  { %v4866_v42 = vsel %vm4858_vm2, %v17836_v13, 0.0  ;;  %v4997_v58 = vmul.f32 %v17836_v13, %v17836_v13  ;;  %v17843_v59 = vpop.f32.mrb[6].mxu0 }
 0x4a4   :  { %v4867_v43 = vadd.f32 %v4866_v42, %v4865_v50  ;;  %v5063_v56 = vadd.f32 %v5062_v51, %v5061_v4  ;;  %v17845_v53 = vpop.f32.mrb[7].mxu0  ;;  %v5000_v39 = vmul.f32 %v17843_v59, %v17843_v59  ;;  %v5068_v9 = vsel %vm4858_vm2, %v4999_v29, 0.0 }
 0x4a5   :  { %v5064_v62 = vsel %vm4858_vm2, %v4997_v58, 0.0  ;;  %v4868_v2 = vsel %vm4858_vm2, %v17845_v53, 0.0  ;;  %v4998_v37 = vmul.f32 %v17845_v53, %v17845_v53  ;;  %v4872_v44 = vsel %vm4858_vm2, %v17843_v59, 0.0 }
 0x4a6   :  { %v5065_v49 = vadd.f32 %v5064_v62, %v5063_v56  ;;  %v4869_v54 = vadd.f32 %v4868_v2, %v4867_v43  ;;  %v5070_v4 = vsel %vm4858_vm2, %v5000_v39, 0.0 }
 0x4a7   :  { %v5066_v46 = vsel %vm4858_vm2, %v4998_v37, 0.0 }
 0x4a8   :  { %v4871_v47 = vadd.f32 %v4870_v28, %v4869_v54  ;;  %v5067_v55 = vadd.f32 %v5066_v46, %v5065_v49 }
 0x4a9   :  { %v17862_v10 = vpop.f32.mrb[8].mxu0 }
 0x4aa   :  { %v5069_v40 = vadd.f32 %v5068_v9, %v5067_v55  ;;  %v17864_v22 = vpop.f32.mrb[9].mxu0  ;;  %v4873_v23 = vadd.f32 %v4872_v44, %v4871_v47  ;;  %v5003_v29 = vmul.f32 %v17862_v10, %v17862_v10  ;;  %v4878_v28 = vsel %vm4858_vm2, %v17862_v10, 0.0 }
 0x4ab   :  { %v4874_v50 = vsel %vm4858_vm2, %v17864_v22, 0.0  ;;  %v5001_v51 = vmul.f32 %v17864_v22, %v17864_v22  ;;  %v17871_v42 = vpop.f32.mrb[10].mxu0 }
 0x4ac   :  { %v4875_v58 = vadd.f32 %v4874_v50, %v4873_v23  ;;  %v5071_v43 = vadd.f32 %v5070_v4, %v5069_v40  ;;  %v17873_v56 = vpop.f32.mrb[11].mxu0  ;;  %v5004_v39 = vmul.f32 %v17871_v42, %v17871_v42  ;;  %v5076_v9 = vsel %vm4858_vm2, %v5003_v29, 0.0 }
 0x4ad   :  { %v5072_v62 = vsel %vm4858_vm2, %v5001_v51, 0.0  ;;  %v4876_v2 = vsel %vm4858_vm2, %v17873_v56, 0.0  ;;  %v5002_v37 = vmul.f32 %v17873_v56, %v17873_v56  ;;  %v4880_v44 = vsel %vm4858_vm2, %v17871_v42, 0.0 }
 0x4ae   :  { %v5073_v49 = vadd.f32 %v5072_v62, %v5071_v43  ;;  %v4877_v54 = vadd.f32 %v4876_v2, %v4875_v58  ;;  %v5078_v51 = vsel %vm4858_vm2, %v5004_v39, 0.0 }
 0x4af   :  { %v5074_v46 = vsel %vm4858_vm2, %v5002_v37, 0.0 }
 0x4b0   :  { %v4879_v47 = vadd.f32 %v4878_v28, %v4877_v54  ;;  %v5075_v55 = vadd.f32 %v5074_v46, %v5073_v49 }
 0x4b1   :  { %v17890_v40 = vpop.f32.mrb[12].mxu0 }
 0x4b2   :  { %22318 = vst [vmem:[#allocation3_spill] sm:$0xff] %v17890_v40  ;;  %v5077_v23 = vadd.f32 %v5076_v9, %v5075_v55  ;;  %v17892_v4 = vpop.f32.mrb[13].mxu0  ;;  %v4881_v50 = vadd.f32 %v4880_v44, %v4879_v47  ;;  %v5007_v49 = vmul.f32 %v17890_v40, %v17890_v40  ;;  %v4886_v55 = vsel %vm4858_vm2, %v17890_v40, 0.0 }
 0x4b3   :  { %22319 = vst [vmem:[#allocation4_spill] sm:$0xff] %v17892_v4  ;;  %v4882_v58 = vsel %vm4858_vm2, %v17892_v4, 0.0  ;;  %v5005_v43 = vmul.f32 %v17892_v4, %v17892_v4  ;;  %v17899_v62 = vpop.f32.mrb[14].mxu0 }
 0x4b4   :  { %22320 = vst [vmem:[#allocation5_spill] sm:$0xff] %v17899_v62  ;;  %v4883_v29 = vadd.f32 %v4882_v58, %v4881_v50  ;;  %v5079_v2 = vadd.f32 %v5078_v51, %v5077_v23  ;;  %v17901_v37 = vpop.f32.mrb[15].mxu0  ;;  %v5008_v9 = vmul.f32 %v17899_v62, %v17899_v62  ;;  %v5084_v51 = vsel %vm4858_vm2, %v5007_v49, 0.0 }
 0x4b5   :  { %22321 = vst [vmem:[#allocation6_spill] sm:$0xff] %v17901_v37  ;;  %v5080_v54 = vsel %vm4858_vm2, %v5005_v43, 0.0  ;;  %v4884_v28 = vsel %vm4858_vm2, %v17901_v37, 0.0  ;;  %v5006_v39 = vmul.f32 %v17901_v37, %v17901_v37  ;;  %v4888_v58 = vsel %vm4858_vm2, %v17899_v62, 0.0 }
 0x4b6   :  { %v5081_v46 = vadd.f32 %v5080_v54, %v5079_v2  ;;  %v4885_v47 = vadd.f32 %v4884_v28, %v4883_v29  ;;  %v5086_v54 = vsel %vm4858_vm2, %v5008_v9, 0.0 }
 0x4b7   :  { %v5082_v44 = vsel %vm4858_vm2, %v5006_v39, 0.0 }
 0x4b8   :  { %v4887_v23 = vadd.f32 %v4886_v55, %v4885_v47  ;;  %v5083_v50 = vadd.f32 %v5082_v44, %v5081_v46 }
 0x4b9   :  { %v17918_v43 = vpop.f32.mrb[16].mxu0 }
 0x4ba   :  { %22322 = vst [vmem:[#allocation7_spill] sm:$0xff] %v17918_v43  ;;  %v5085_v37 = vadd.f32 %v5084_v51, %v5083_v50  ;;  %v17920_v2 = vpop.f32.mrb[17].mxu0  ;;  %v4889_v29 = vadd.f32 %v4888_v58, %v4887_v23  ;;  %v5011_v44 = vmul.f32 %v17918_v43, %v17918_v43 }
 0x4bb   :  { %22323 = vst [vmem:[#allocation8_spill] sm:$0xff] %v17920_v2  ;;  %v4890_v28 = vsel %vm4858_vm2, %v17920_v2, 0.0  ;;  %v5009_v39 = vmul.f32 %v17920_v2, %v17920_v2  ;;  %v17927_v46 = vpop.f32.mrb[18].mxu0  ;;  %v4894_v2 = vsel %vm4858_vm2, %v17918_v43, 0.0 }
 0x4bc   :  { %22324 = vst [vmem:[#allocation9_spill] sm:$0xff] %v17927_v46  ;;  %v4891_v49 = vadd.f32 %v4890_v28, %v4889_v29  ;;  %v5087_v47 = vadd.f32 %v5086_v54, %v5085_v37  ;;  %v17929_v55 = vpop.f32.mrb[19].mxu0  ;;  %v5012_v37 = vmul.f32 %v17927_v46, %v17927_v46  ;;  %v4896_v62 = vsel %vm4858_vm2, %v17927_v46, 0.0 }
 0x4bd   :  { %22325 = vst [vmem:[#allocation10_spill] sm:$0xff] %v17929_v55  ;;  %v5088_v50 = vsel %vm4858_vm2, %v5009_v39, 0.0  ;;  %v4892_v9 = vsel %vm4858_vm2, %v17929_v55, 0.0  ;;  %v5010_v23 = vmul.f32 %v17929_v55, %v17929_v55  ;;  %v5092_v39 = vsel %vm4858_vm2, %v5011_v44, 0.0 }
 0x4be   :  { %v5089_v51 = vadd.f32 %v5088_v50, %v5087_v47  ;;  %v4893_v58 = vadd.f32 %v4892_v9, %v4891_v49  ;;  %v5094_v50 = vsel %vm4858_vm2, %v5012_v37, 0.0 }
 0x4bf   :  { %v5090_v29 = vsel %vm4858_vm2, %v5010_v23, 0.0 }
 0x4c0   :  { %v4895_v54 = vadd.f32 %v4894_v2, %v4893_v58  ;;  %v5091_v28 = vadd.f32 %v5090_v29, %v5089_v51 }
 0x4c1   :  { %v17946_v40 = vpop.f32.mrb[20].mxu0 }
 0x4c2   :  { %22326 = vst [vmem:[#allocation11_spill] sm:$0xff] %v17946_v40  ;;  %v5093_v55 = vadd.f32 %v5092_v39, %v5091_v28  ;;  %v17948_v47 = vpop.f32.mrb[21].mxu0  ;;  %v4897_v49 = vadd.f32 %v4896_v62, %v4895_v54  ;;  %v5015_v29 = vmul.f32 %v17946_v40, %v17946_v40 }
 0x4c3   :  { %22327 = vst [vmem:[#allocation12_spill] sm:$0xff] %v17948_v47  ;;  %v4898_v9 = vsel %vm4858_vm2, %v17948_v47, 0.0  ;;  %v5013_v2 = vmul.f32 %v17948_v47, %v17948_v47  ;;  %v17955_v23 = vpop.f32.mrb[22].mxu0  ;;  %v4902_v47 = vsel %vm4858_vm2, %v17946_v40, 0.0 }
 0x4c4   :  { %22328 = vst [vmem:[#allocation13_spill] sm:$0xff] %v17955_v23  ;;  %v4899_v44 = vadd.f32 %v4898_v9, %v4897_v49  ;;  %v5095_v51 = vadd.f32 %v5094_v50, %v5093_v55  ;;  %v17957_v58 = vpop.f32.mrb[23].mxu0  ;;  %v5016_v55 = vmul.f32 %v17955_v23, %v17955_v23  ;;  %v4904_v46 = vsel %vm4858_vm2, %v17955_v23, 0.0 }
 0x4c5   :  { %22329 = vst [vmem:[#allocation14_spill] sm:$0xff] %v17957_v58  ;;  %v5096_v28 = vsel %vm4858_vm2, %v5013_v2, 0.0  ;;  %v4900_v62 = vsel %vm4858_vm2, %v17957_v58, 0.0  ;;  %v5014_v37 = vmul.f32 %v17957_v58, %v17957_v58  ;;  %v5100_v2 = vsel %vm4858_vm2, %v5015_v29, 0.0 }
 0x4c6   :  { %v5097_v54 = vadd.f32 %v5096_v28, %v5095_v51  ;;  %v4901_v39 = vadd.f32 %v4900_v62, %v4899_v44  ;;  %v5102_v28 = vsel %vm4858_vm2, %v5016_v55, 0.0 }
 0x4c7   :  { %v5098_v49 = vsel %vm4858_vm2, %v5014_v37, 0.0 }
 0x4c8   :  { %v4903_v50 = vadd.f32 %v4902_v47, %v4901_v39  ;;  %v5099_v9 = vadd.f32 %v5098_v49, %v5097_v54 }
 0x4c9   :  { %v17974_v43 = vpop.f32.mrb[24].mxu0 }
 0x4ca   :  { %22330 = vst [vmem:[#allocation15_spill] sm:$0xff] %v17974_v43  ;;  %v5101_v58 = vadd.f32 %v5100_v2, %v5099_v9  ;;  %v17976_v51 = vpop.f32.mrb[25].mxu0  ;;  %v4905_v44 = vadd.f32 %v4904_v46, %v4903_v50  ;;  %v5019_v49 = vmul.f32 %v17974_v43, %v17974_v43 }
 0x4cb   :  { %22331 = vst [vmem:[#allocation16_spill] sm:$0xff] %v17976_v51  ;;  %v4906_v62 = vsel %vm4858_vm2, %v17976_v51, 0.0  ;;  %v5017_v47 = vmul.f32 %v17976_v51, %v17976_v51  ;;  %v17983_v37 = vpop.f32.mrb[26].mxu0  ;;  %v4910_v51 = vsel %vm4858_vm2, %v17974_v43, 0.0 }
 0x4cc   :  { %22332 = vst [vmem:[#allocation17_spill] sm:$0xff] %v17983_v37  ;;  %v4907_v29 = vadd.f32 %v4906_v62, %v4905_v44  ;;  %v5103_v54 = vadd.f32 %v5102_v28, %v5101_v58  ;;  %v17985_v39 = vpop.f32.mrb[27].mxu0  ;;  %v5020_v58 = vmul.f32 %v17983_v37, %v17983_v37  ;;  %v4912_v23 = vsel %vm4858_vm2, %v17983_v37, 0.0 }
 0x4cd   :  { %22333 = vst [vmem:[#allocation18_spill] sm:$0xff] %v17985_v39  ;;  %v5104_v9 = vsel %vm4858_vm2, %v5017_v47, 0.0  ;;  %v4908_v46 = vsel %vm4858_vm2, %v17985_v39, 0.0  ;;  %v5018_v55 = vmul.f32 %v17985_v39, %v17985_v39  ;;  %v5108_v47 = vsel %vm4858_vm2, %v5019_v49, 0.0 }
 0x4ce   :  { %v5105_v50 = vadd.f32 %v5104_v9, %v5103_v54  ;;  %v4909_v2 = vadd.f32 %v4908_v46, %v4907_v29  ;;  %v5110_v9 = vsel %vm4858_vm2, %v5020_v58, 0.0 }
 0x4cf   :  { %v5106_v44 = vsel %vm4858_vm2, %v5018_v55, 0.0 }
 0x4d0   :  { %v4911_v28 = vadd.f32 %v4910_v51, %v4909_v2  ;;  %v5107_v62 = vadd.f32 %v5106_v44, %v5105_v50 }
 0x4d1   :  { %v18002_v40 = vpop.f32.mrb[28].mxu0 }
 0x4d2   :  { %22334 = vst [vmem:[#allocation19_spill] sm:$0xff] %v18002_v40  ;;  %v5109_v39 = vadd.f32 %v5108_v47, %v5107_v62  ;;  %v18004_v54 = vpop.f32.mrb[29].mxu0  ;;  %v4913_v29 = vadd.f32 %v4912_v23, %v4911_v28  ;;  %v5023_v44 = vmul.f32 %v18002_v40, %v18002_v40 }
 0x4d3   :  { %22335 = vst [vmem:[#allocation20_spill] sm:$0xff] %v18004_v54  ;;  %v4914_v46 = vsel %vm4858_vm2, %v18004_v54, 0.0  ;;  %v5021_v51 = vmul.f32 %v18004_v54, %v18004_v54  ;;  %v18011_v55 = vpop.f32.mrb[30].mxu0  ;;  %v4918_v54 = vsel %vm4858_vm2, %v18002_v40, 0.0 }
 0x4d4   :  { %v4915_v49 = vadd.f32 %v4914_v46, %v4913_v29  ;;  %v5111_v50 = vadd.f32 %v5110_v9, %v5109_v39  ;;  %v18013_v2 = vpop.f32.mrb[31].mxu0  ;;  %v5024_v39 = vmul.f32 %v18011_v55, %v18011_v55  ;;  %v4920_v37 = vsel %vm4858_vm2, %v18011_v55, 0.0 }
 0x4d5   :  { %v5112_v62 = vsel %vm4858_vm2, %v5021_v51, 0.0  ;;  %v4916_v23 = vsel %vm4858_vm2, %v18013_v2, 0.0  ;;  %v5022_v58 = vmul.f32 %v18013_v2, %v18013_v2  ;;  %v5116_v51 = vsel %vm4858_vm2, %v5023_v44, 0.0 }
 0x4d6   :  { %v5113_v28 = vadd.f32 %v5112_v62, %v5111_v50  ;;  %v4917_v47 = vadd.f32 %v4916_v23, %v4915_v49  ;;  %v5118_v23 = vsel %vm4858_vm2, %v5024_v39, 0.0 }
 0x4d7   :  { %v5114_v29 = vsel %vm4858_vm2, %v5022_v58, 0.0 }
 0x4d8   :  { %v4919_v9 = vadd.f32 %v4918_v54, %v4917_v47  ;;  %v5115_v46 = vadd.f32 %v5114_v29, %v5113_v28 }
 0x4d9   :  { %v14062_v43 = vpop.f32.mrb[32].mxu0 }
 0x4da   :  { %v5117_v4 = vadd.f32 %v5116_v51, %v5115_v46  ;;  %v18031_v50 = vadd.f32 %v14062_v43, %v17743_v38  ;;  %v4667_v49 = vpop.f32.mrb[33].mxu0  ;;  %v4921_v62 = vadd.f32 %v4920_v37, %v4919_v9 }
 0x4db   :  { %v18035_v40 = vadd.f32 %v4667_v49, %v17745_v15  ;;  %v14063_v58 = vpop.f32.mrb[34].mxu0 }
 0x4dc   :  { %22336 = vst [vmem:[#allocation21_spill] sm:$0xff] %v18031_v50  ;;  %v5119_v54 = vadd.f32 %v5118_v23, %v5117_v4  ;;  %v18038_v28 = vadd.f32 %v14063_v58, %v17747_v27  ;;  %v4670_v44 = vpop.f32.mrb[35].mxu0  ;;  %v5027_v15 = vmul.f32 %v18031_v50, %v18031_v50 }
 0x4dd   :  { %v4922_v47 = vsel %vm4858_vm2, %v18035_v40, 0.0  ;;  %v5025_v38 = vmul.f32 %v18035_v40, %v18035_v40  ;;  %v18045_v43 = vadd.f32 %v4670_v44, %v17749_v0  ;;  %v4926_v0 = vsel %vm4858_vm2, %v18031_v50, 0.0 }
 0x4de   :  { %v4923_v37 = vadd.f32 %v4922_v47, %v4921_v62  ;;  %v5028_v9 = vmul.f32 %v18038_v28, %v18038_v28  ;;  %v5124_v47 = vsel %vm4858_vm2, %v5027_v15, 0.0 }
 0x4df   :  { %v5120_v39 = vsel %vm4858_vm2, %v5025_v38, 0.0  ;;  %v4924_v27 = vsel %vm4858_vm2, %v18045_v43, 0.0  ;;  %v5026_v4 = vmul.f32 %v18045_v43, %v18045_v43 }
 0x4e0   :  { %v5121_v29 = vadd.f32 %v5120_v39, %v5119_v54  ;;  %v4925_v46 = vadd.f32 %v4924_v27, %v4923_v37  ;;  %v4928_v54 = vsel %vm4858_vm2, %v18038_v28, 0.0  ;;  %v5126_v39 = vsel %vm4858_vm2, %v5028_v9, 0.0 }
 0x4e1   :  { %v5122_v51 = vsel %vm4858_vm2, %v5026_v4, 0.0  ;;  %v14066_v49 = vpop.f32.mrb[36].mxu0 }
 0x4e2   :  { %v4927_v62 = vadd.f32 %v4926_v0, %v4925_v46  ;;  %v5123_v23 = vadd.f32 %v5122_v51, %v5121_v29  ;;  %v18060_v58 = vadd.f32 %v14066_v49, %v17751_v26  ;;  %v4683_v44 = vpop.f32.mrb[37].mxu0 }
 0x4e3   :  { %v18066_v38 = vadd.f32 %v4683_v44, %v17753_v60  ;;  %v14067_v37 = vpop.f32.mrb[38].mxu0 }
 0x4e4   :  { %v5125_v27 = vadd.f32 %v5124_v47, %v5123_v23  ;;  %v4929_v4 = vadd.f32 %v4928_v54, %v4927_v62  ;;  %v4686_v50 = vpop.f32.mrb[39].mxu0  ;;  %v18074_v15 = vadd.f32 %v14067_v37, %v17755_v61  ;;  %v5031_v49 = vmul.f32 %v18060_v58, %v18060_v58 }
 0x4e5   :  { %v4930_v29 = vsel %vm4858_vm2, %v18066_v38, 0.0  ;;  %v5029_v26 = vmul.f32 %v18066_v38, %v18066_v38  ;;  %v18077_v46 = vadd.f32 %v4686_v50, %v17757_v1  ;;  %v4934_v61 = vsel %vm4858_vm2, %v18060_v58, 0.0 }
 0x4e6   :  { %v4931_v60 = vadd.f32 %v4930_v29, %v4929_v4  ;;  %v5127_v0 = vadd.f32 %v5126_v39, %v5125_v27  ;;  %v5032_v50 = vmul.f32 %v18074_v15, %v18074_v15  ;;  %v4936_v27 = vsel %vm4858_vm2, %v18074_v15, 0.0 }
 0x4e7   :  { %v5128_v51 = vsel %vm4858_vm2, %v5029_v26, 0.0  ;;  %v4932_v9 = vsel %vm4858_vm2, %v18077_v46, 0.0  ;;  %v5030_v44 = vmul.f32 %v18077_v46, %v18077_v46 }
 0x4e8   :  { %v5129_v62 = vadd.f32 %v5128_v51, %v5127_v0  ;;  %v4933_v23 = vadd.f32 %v4932_v9, %v4931_v60  ;;  %v5132_v60 = vsel %vm4858_vm2, %v5031_v49, 0.0 }
 0x4e9   :  { %v14070_v1 = vpop.f32.mrb[40].mxu0  ;;  %v5130_v54 = vsel %vm4858_vm2, %v5030_v44, 0.0 }
 0x4ea   :  { %v4935_v47 = vadd.f32 %v4934_v61, %v4933_v23  ;;  %v18092_v37 = vadd.f32 %v14070_v1, %v17759_v20  ;;  %v4699_v39 = vpop.f32.mrb[41].mxu0  ;;  %v5131_v4 = vadd.f32 %v5130_v54, %v5129_v62 }
 0x4eb   :  { %v18097_v29 = vadd.f32 %v4699_v39, %v17761_v8  ;;  %v14071_v26 = vpop.f32.mrb[42].mxu0  ;;  %v5134_v8 = vsel %vm4858_vm2, %v5032_v50, 0.0 }
 0x4ec   :  { %v4937_v0 = vadd.f32 %v4936_v27, %v4935_v47  ;;  %v18101_v51 = vadd.f32 %v14071_v26, %v17763_v34  ;;  %v4702_v9 = vpop.f32.mrb[43].mxu0  ;;  %v5133_v23 = vadd.f32 %v5132_v60, %v5131_v4  ;;  %v5035_v54 = vmul.f32 %v18092_v37, %v18092_v37 }
 0x4ed   :  { %v4938_v20 = vsel %vm4858_vm2, %v18097_v29, 0.0  ;;  %v5033_v44 = vmul.f32 %v18097_v29, %v18097_v29  ;;  %v18108_v62 = vadd.f32 %v4702_v9, %v17765_v17  ;;  %v4942_v17 = vsel %vm4858_vm2, %v18092_v37, 0.0 }
 0x4ee   :  { %v4939_v61 = vadd.f32 %v4938_v20, %v4937_v0  ;;  %v5135_v1 = vadd.f32 %v5134_v8, %v5133_v23  ;;  %v5036_v26 = vmul.f32 %v18101_v51, %v18101_v51  ;;  %v4944_v23 = vsel %vm4858_vm2, %v18101_v51, 0.0 }
 0x4ef   :  { %v5136_v49 = vsel %vm4858_vm2, %v5033_v44, 0.0  ;;  %v4940_v34 = vsel %vm4858_vm2, %v18108_v62, 0.0  ;;  %v5034_v47 = vmul.f32 %v18108_v62, %v18108_v62 }
 0x4f0   :  { %v4941_v39 = vadd.f32 %v4940_v34, %v4939_v61  ;;  %v5137_v27 = vadd.f32 %v5136_v49, %v5135_v1  ;;  %v5140_v61 = vsel %vm4858_vm2, %v5035_v54, 0.0 }
 0x4f1   :  { %v5138_v50 = vsel %vm4858_vm2, %v5034_v47, 0.0  ;;  %v14074_v4 = vpop.f32.mrb[44].mxu0 }
 0x4f2   :  { %v4943_v60 = vadd.f32 %v4942_v17, %v4941_v39  ;;  %v18124_v0 = vadd.f32 %v14074_v4, %v17767_v18  ;;  %v4715_v9 = vpop.f32.mrb[45].mxu0  ;;  %v5139_v20 = vadd.f32 %v5138_v50, %v5137_v27 }
 0x4f3   :  { %v18129_v44 = vadd.f32 %v4715_v9, %v17769_v35  ;;  %v14075_v8 = vpop.f32.mrb[46].mxu0  ;;  %v5142_v35 = vsel %vm4858_vm2, %v5036_v26, 0.0 }
 0x4f4   :  { %v4945_v1 = vadd.f32 %v4944_v23, %v4943_v60  ;;  %v18133_v49 = vadd.f32 %v14075_v8, %v17771_v45  ;;  %v4718_v34 = vpop.f32.mrb[47].mxu0  ;;  %v5141_v47 = vadd.f32 %v5140_v61, %v5139_v20  ;;  %v5039_v60 = vmul.f32 %v18124_v0, %v18124_v0 }
 0x4f5   :  { %v4946_v18 = vsel %vm4858_vm2, %v18129_v44, 0.0  ;;  %v5037_v39 = vmul.f32 %v18129_v44, %v18129_v44  ;;  %v18140_v17 = vadd.f32 %v4718_v34, %v17773_v52  ;;  %v4950_v52 = vsel %vm4858_vm2, %v18124_v0, 0.0 }
 0x4f6   :  { %v4947_v27 = vadd.f32 %v4946_v18, %v4945_v1  ;;  %v5143_v50 = vadd.f32 %v5142_v35, %v5141_v47  ;;  %v5040_v8 = vmul.f32 %v18133_v49, %v18133_v49  ;;  %v4952_v47 = vsel %vm4858_vm2, %v18133_v49, 0.0 }
 0x4f7   :  { %v5144_v54 = vsel %vm4858_vm2, %v5037_v39, 0.0  ;;  %v4948_v45 = vsel %vm4858_vm2, %v18140_v17, 0.0  ;;  %v5038_v4 = vmul.f32 %v18140_v17, %v18140_v17 }
 0x4f8   :  { %v4949_v9 = vadd.f32 %v4948_v45, %v4947_v27  ;;  %v5145_v23 = vadd.f32 %v5144_v54, %v5143_v50  ;;  %v5148_v27 = vsel %vm4858_vm2, %v5039_v60, 0.0 }
 0x4f9   :  { %v5146_v26 = vsel %vm4858_vm2, %v5038_v4, 0.0  ;;  %v14078_v20 = vpop.f32.mrb[48].mxu0 }
 0x4fa   :  { %v4951_v61 = vadd.f32 %v4950_v52, %v4949_v9  ;;  %v18156_v1 = vadd.f32 %v14078_v20, %v17775_v7  ;;  %v4731_v34 = vpop.f32.mrb[49].mxu0  ;;  %v5147_v18 = vadd.f32 %v5146_v26, %v5145_v23 }
 0x4fb   :  { %v18161_v39 = vadd.f32 %v4731_v34, %v17777_v3  ;;  %v14079_v35 = vpop.f32.mrb[50].mxu0  ;;  %v5150_v3 = vsel %vm4858_vm2, %v5040_v8, 0.0 }
 0x4fc   :  { %v4953_v50 = vadd.f32 %v4952_v47, %v4951_v61  ;;  %v18165_v54 = vadd.f32 %v14079_v35, %v17779_v6  ;;  %v4734_v45 = vpop.f32.mrb[51].mxu0  ;;  %v5149_v4 = vadd.f32 %v5148_v27, %v5147_v18  ;;  %v5043_v61 = vmul.f32 %v18156_v1, %v18156_v1 }
 0x4fd   :  { %v4954_v7 = vsel %vm4858_vm2, %v18161_v39, 0.0  ;;  %v5041_v9 = vmul.f32 %v18161_v39, %v18161_v39  ;;  %v18172_v52 = vadd.f32 %v4734_v45, %v17781_v14  ;;  %v4958_v14 = vsel %vm4858_vm2, %v18156_v1, 0.0 }
 0x4fe   :  { %v4955_v23 = vadd.f32 %v4954_v7, %v4953_v50  ;;  %v5151_v26 = vadd.f32 %v5150_v3, %v5149_v4  ;;  %v5044_v35 = vmul.f32 %v18165_v54, %v18165_v54  ;;  %v4960_v4 = vsel %vm4858_vm2, %v18165_v54, 0.0 }
 0x4ff   :  { %v5152_v60 = vsel %vm4858_vm2, %v5041_v9, 0.0  ;;  %v4956_v6 = vsel %vm4858_vm2, %v18172_v52, 0.0  ;;  %v5042_v20 = vmul.f32 %v18172_v52, %v18172_v52 }
 0x500   :  { %v4957_v34 = vadd.f32 %v4956_v6, %v4955_v23  ;;  %v5153_v47 = vadd.f32 %v5152_v60, %v5151_v26  ;;  %v5156_v23 = vsel %vm4858_vm2, %v5043_v61, 0.0 }
 0x501   :  { %v5154_v8 = vsel %vm4858_vm2, %v5042_v20, 0.0  ;;  %v14082_v18 = vpop.f32.mrb[52].mxu0 }
 0x502   :  { %v4959_v27 = vadd.f32 %v4958_v14, %v4957_v34  ;;  %v18188_v50 = vadd.f32 %v14082_v18, %v17783_v32  ;;  %v4747_v45 = vpop.f32.mrb[53].mxu0  ;;  %v5155_v7 = vadd.f32 %v5154_v8, %v5153_v47 }
 0x503   :  { %v18193_v9 = vadd.f32 %v4747_v45, %v17785_v33  ;;  %v14083_v3 = vpop.f32.mrb[54].mxu0  ;;  %v5158_v33 = vsel %vm4858_vm2, %v5044_v35, 0.0 }
 0x504   :  { %v4961_v26 = vadd.f32 %v4960_v4, %v4959_v27  ;;  %v18197_v60 = vadd.f32 %v14083_v3, %v17787_v19  ;;  %v4750_v6 = vpop.f32.mrb[55].mxu0  ;;  %v5157_v20 = vadd.f32 %v5156_v23, %v5155_v7  ;;  %v4966_v61 = vsel %vm4858_vm2, %v18188_v50, 0.0  ;;  %v12478_v19 = vld [vmem:[%s22110_s4 + $0x4] sm:$0xf]  ;;  %v18224_v4 = vld [vmem:[%s22110_s4] sm:$0xf] }
 0x505   :  { %v4962_v32 = vsel %vm4858_vm2, %v18193_v9, 0.0  ;;  %v5045_v34 = vmul.f32 %v18193_v9, %v18193_v9  ;;  %v18204_v14 = vadd.f32 %v4750_v6, %v17789_v16  ;;  %v18219_v35 = vmul.f32 %v18188_v50, %v18188_v50  ;;  %22337 = vst [vmem:[#allocation22_spill] sm:$0xff] %v18224_v4  ;;  %15788 = vmatprep.subr.msk.bf16.mxu1 %vm5904_vm3, %v12478_v19 }
 0x506   :  { %v4963_v47 = vadd.f32 %v4962_v32, %v4961_v26  ;;  %v5159_v8 = vadd.f32 %v5158_v33, %v5157_v20  ;;  %v5906_v26 = vsel %vm5904_vm3, %v12478_v19, 0  ;;  %v15804_v6 = vmov 0.0  }
 0x507   :  { %v5160_v18 = vsel %vm4858_vm2, %v5045_v34, 0.0  ;;  %v4964_v27 = vsel %vm4858_vm2, %v18204_v14, 0.0  ;;  %v5046_v16 = vmul.f32 %v18204_v14, %v18204_v14  ;;  %5469 = vst.msk [vmem:[#allocation2] sm:$0xff] %vm4858_vm2, %v15804_v6  ;;  %5470 = vst.msk [vmem:[#allocation2 + $0x8] sm:$0xff] %vm4858_vm2, %v15804_v6  ;;  %v18247_v20 = vmul.f32 %v18197_v60, %v18197_v60  ;;  %14093 = vmatpush3.bf16.msra.mxu1 %v5906_v26 }
 0x508   :  { %v4965_v45 = vadd.f32 %v4964_v27, %v4963_v47  ;;  %v5161_v7 = vadd.f32 %v5160_v18, %v5159_v8  ;;  %5473 = vst.msk [vmem:[#allocation2 + $0x1b0] sm:$0xff] %vm4858_vm2, %v15804_v6  ;;  %5474 = vst.msk [vmem:[#allocation2 + $0x1b8] sm:$0xff] %vm4858_vm2, %v15804_v6  ;;  %v18260_v47 = vsel %vm4858_vm2, %v18197_v60, 0.0  ;;  %15789 = vmatprep.subr.msk.bf16.mxu1 %vm5904_vm3, %v18224_v4 }
 0x509   :  { %v5162_v3 = vsel %vm4858_vm2, %v5046_v16, 0.0  ;;  %v14086_v23 = vpop.f32.mrb[56].mxu0  ;;  %5477 = vst.msk [vmem:[#allocation2 + $0x198] sm:$0xff] %vm4858_vm2, %v15804_v6  ;;  %5478 = vst.msk [vmem:[#allocation2 + $0x1a0] sm:$0xff] %vm4858_vm2, %v15804_v6 }
 0x50a   :  { %5480 = vst.msk [vmem:[#allocation2 + $0x348] sm:$0xff] %vm4858_vm2, %v15804_v6  ;;  %5481 = vst.msk [vmem:[#allocation2 + $0x350] sm:$0xff] %vm4858_vm2, %v15804_v6  ;;  %v18249_v32 = vadd.f32 %v4966_v61, %v4965_v45  ;;  %v18252_v34 = vadd.f32 %v14086_v23, %v17791_v57  ;;  %v4763_v33 = vpop.f32.mrb[57].mxu0  ;;  %v18262_v61 = vadd.f32 %v5162_v3, %v5161_v7 }
 0x50b   :  { %5472 = vst.msk [vmem:[#allocation2 + $0x10] sm:$0x3] %vm5471_vm4, %v15804_v6  ;;  %5475 = vst.msk [vmem:[#allocation2 + $0x1c0] sm:$0x3] %vm5471_vm4, %v15804_v6  ;;  %v18265_v57 = vadd.f32 %v4763_v33, %v17793_v63  ;;  %v18267_v19 = vpop.f32.mrb[58].mxu0  ;;  %v5164_v63 = vsel %vm4858_vm2, %v18219_v35, 0.0 }
 0x50c   :  { %22338 = vst [vmem:[#allocation23_spill] sm:$0xff] %v18252_v34  ;;  %5479 = vst.msk [vmem:[#allocation2 + $0x1a8] sm:$0x3] %vm5471_vm4, %v15804_v6  ;;  %v4969_v8 = vadd.f32 %v18260_v47, %v18249_v32  ;;  %v18405_v18 = vadd.f32 %v18267_v19, %v17795_v41  ;;  %v4766_v27 = vpop.f32.mrb[59].mxu0  ;;  %v5165_v16 = vadd.f32 %v5164_v63, %v18262_v61  ;;  %v5166_v35 = vsel %vm4858_vm2, %v18247_v20, 0.0 }
 0x50d   :  { %5482 = vst.msk [vmem:[#allocation2 + $0x358] sm:$0x3] %vm5471_vm4, %v15804_v6  ;;  %v4970_v45 = vsel %vm4858_vm2, %v18265_v57, 0.0  ;;  %v5049_v7 = vmul.f32 %v18265_v57, %v18265_v57  ;;  %v18413_v3 = vadd.f32 %v4766_v27, %v17797_v21  ;;  %v5051_v33 = vmul.f32 %v18252_v34, %v18252_v34 }
 0x50e   :  { %5485 = vst.msk [vmem:[#allocation2 + $0x18] sm:$0x1] %vm5484_vm5, %v15804_v6  ;;  %5486 = vst.msk [vmem:[#allocation2 + $0x30] sm:$0x1] %vm5484_vm5, %v15804_v6  ;;  %v4971_v23 = vadd.f32 %v4970_v45, %v4969_v8  ;;  %v5167_v26 = vadd.f32 %v5166_v35, %v5165_v16  ;;  %v5710_v61 = vld [vmem:[#allocation2 + $0x1] sm:$0xff]  ;;  %v4974_v21 = vsel %vm4858_vm2, %v18252_v34, 0.0  ;;  %v5052_v27 = vmul.f32 %v18405_v18, %v18405_v18 }
 0x50f   :  { %5487 = vst.msk [vmem:[#allocation2 + $0x48] sm:$0x1] %vm5484_vm5, %v15804_v6  ;;  %5488 = vst.msk [vmem:[#allocation2 + $0x60] sm:$0x1] %vm5484_vm5, %v15804_v6  ;;  %v5168_v41 = vsel %vm4858_vm2, %v5049_v7, 0.0  ;;  %v5050_v32 = vmul.f32 %v18413_v3, %v18413_v3 }
 0x510   :  { %5489 = vst.msk [vmem:[#allocation2 + $0x78] sm:$0x1] %vm5484_vm5, %v15804_v6  ;;  %5490 = vst.msk [vmem:[#allocation2 + $0x90] sm:$0x1] %vm5484_vm5, %v15804_v6  ;;  %v5169_v19 = vadd.f32 %v5168_v41, %v5167_v26  ;;  %v5172_v41 = vsel %vm4858_vm2, %v5051_v33, 0.0 }
 0x511   :  { %5491 = vst.msk [vmem:[#allocation2 + $0xa8] sm:$0x1] %vm5484_vm5, %v15804_v6  ;;  %5492 = vst.msk [vmem:[#allocation2 + $0xc0] sm:$0x1] %vm5484_vm5, %v15804_v6  ;;  %v5170_v20 = vsel %vm4858_vm2, %v5050_v32, 0.0  ;;  %v14090_v63 = vpop.f32.mrb[60].mxu0 }
 0x512   :  { %5493 = vst.msk [vmem:[#allocation2 + $0xd8] sm:$0x1] %vm5484_vm5, %v15804_v6  ;;  %5494 = vst.msk [vmem:[#allocation2 + $0xf0] sm:$0x1] %vm5484_vm5, %v15804_v6  ;;  %v5711_v8 = vld [vmem:[#allocation2 + $0x9] sm:$0xff]  ;;  %v18430_v45 = vadd.f32 %v14090_v63, %v17799_v25  ;;  %v4779_v7 = vpop.f32.mrb[61].mxu0 }
 0x513   :  { %5495 = vst.msk [vmem:[#allocation2 + $0x108] sm:$0x1] %vm5484_vm5, %v15804_v6  ;;  %5496 = vst.msk [vmem:[#allocation2 + $0x120] sm:$0x1] %vm5484_vm5, %v15804_v6  ;;  %v5774_v35 = vpack.c.bf16 %v5711_v8, %v5710_v61  ;;  %v18435_v4 = vadd.f32 %v4779_v7, %v17801_v5  ;;  %v14091_v26 = vpop.f32.mrb[62].mxu0 }
 0x514   :  { %5497 = vst.msk [vmem:[#allocation2 + $0x138] sm:$0x1] %vm5484_vm5, %v15804_v6  ;;  %5498 = vst.msk [vmem:[#allocation2 + $0x150] sm:$0x1] %vm5484_vm5, %v15804_v6  ;;  %v18439_v34 = vadd.f32 %v14091_v26, %v17803_v30 }
 0x515   :  { %5499 = vst.msk [vmem:[#allocation2 + $0x168] sm:$0x1] %vm5484_vm5, %v15804_v6  ;;  %5500 = vst.msk [vmem:[#allocation2 + $0x180] sm:$0x1] %vm5484_vm5, %v15804_v6  ;;  %14094 = vmatprep.mubr.msk.bf16.mxu1 %vm4858_vm2, %v5774_v35  ;;  %v4978_v61 = vsel %vm4858_vm2, %v18435_v4, 0.0  ;;  %v4982_v35 = vsel %vm4858_vm2, %v18430_v45, 0.0 }
 0x516   :  { %5501 = vst.msk [vmem:[#allocation2 + $0x1c8] sm:$0x1] %vm5484_vm5, %v15804_v6  ;;  %5502 = vst.msk [vmem:[#allocation2 + $0x1e0] sm:$0x1] %vm5484_vm5, %v15804_v6  ;;  %v4984_v26 = vsel %vm4858_vm2, %v18439_v34, 0.0 }
 0x517   :  { %5503 = vst.msk [vmem:[#allocation2 + $0x1f8] sm:$0x1] %vm5484_vm5, %v15804_v6  ;;  %5504 = vst.msk [vmem:[#allocation2 + $0x210] sm:$0x1] %vm5484_vm5, %v15804_v6 }
 0x518   :  { %5505 = vst.msk [vmem:[#allocation2 + $0x228] sm:$0x1] %vm5484_vm5, %v15804_v6  ;;  %5506 = vst.msk [vmem:[#allocation2 + $0x240] sm:$0x1] %vm5484_vm5, %v15804_v6 }
 0x519   :  { %5507 = vst.msk [vmem:[#allocation2 + $0x258] sm:$0x1] %vm5484_vm5, %v15804_v6  ;;  %5508 = vst.msk [vmem:[#allocation2 + $0x270] sm:$0x1] %vm5484_vm5, %v15804_v6 }
 0x51a   :  { %5509 = vst.msk [vmem:[#allocation2 + $0x288] sm:$0x1] %vm5484_vm5, %v15804_v6  ;;  %5510 = vst.msk [vmem:[#allocation2 + $0x2a0] sm:$0x1] %vm5484_vm5, %v15804_v6 }
 0x51b   :  { %5511 = vst.msk [vmem:[#allocation2 + $0x2b8] sm:$0x1] %vm5484_vm5, %v15804_v6  ;;  %5512 = vst.msk [vmem:[#allocation2 + $0x2d0] sm:$0x1] %vm5484_vm5, %v15804_v6 }
 0x51c   :  { %5513 = vst.msk [vmem:[#allocation2 + $0x2e8] sm:$0x1] %vm5484_vm5, %v15804_v6  ;;  %5514 = vst.msk [vmem:[#allocation2 + $0x300] sm:$0x1] %vm5484_vm5, %v15804_v6 }
 0x51d   :  { %5515 = vst.msk [vmem:[#allocation2 + $0x318] sm:$0x1] %vm5484_vm5, %v15804_v6  ;;  %5516 = vst.msk [vmem:[#allocation2 + $0x330] sm:$0x1] %vm5484_vm5, %v15804_v6 }
 0x51e   :  { %5517 = vst.msk [vmem:[#allocation2 + $0x29] sm:$0x1] %vm5484_vm5, %v15804_v6  ;;  %5518 = vst.msk [vmem:[#allocation2 + $0x41] sm:$0x1] %vm5484_vm5, %v15804_v6 }
 0x51f   :  { %5519 = vst.msk [vmem:[#allocation2 + $0x59] sm:$0x1] %vm5484_vm5, %v15804_v6  ;;  %5520 = vst.msk [vmem:[#allocation2 + $0x71] sm:$0x1] %vm5484_vm5, %v15804_v6 }
 0x520   :  { %5521 = vst.msk [vmem:[#allocation2 + $0x89] sm:$0x1] %vm5484_vm5, %v15804_v6  ;;  %5522 = vst.msk [vmem:[#allocation2 + $0xa1] sm:$0x1] %vm5484_vm5, %v15804_v6 }
 0x521   :  { %5523 = vst.msk [vmem:[#allocation2 + $0xb9] sm:$0x1] %vm5484_vm5, %v15804_v6  ;;  %5524 = vst.msk [vmem:[#allocation2 + $0xd1] sm:$0x1] %vm5484_vm5, %v15804_v6 }
 0x522   :  { %5525 = vst.msk [vmem:[#allocation2 + $0xe9] sm:$0x1] %vm5484_vm5, %v15804_v6  ;;  %5526 = vst.msk [vmem:[#allocation2 + $0x101] sm:$0x1] %vm5484_vm5, %v15804_v6 }
 0x523   :  { %5527 = vst.msk [vmem:[#allocation2 + $0x119] sm:$0x1] %vm5484_vm5, %v15804_v6  ;;  %5528 = vst.msk [vmem:[#allocation2 + $0x131] sm:$0x1] %vm5484_vm5, %v15804_v6 }
 0x524   :  { %5529 = vst.msk [vmem:[#allocation2 + $0x149] sm:$0x1] %vm5484_vm5, %v15804_v6  ;;  %5530 = vst.msk [vmem:[#allocation2 + $0x161] sm:$0x1] %vm5484_vm5, %v15804_v6 }
 0x525   :  { %5531 = vst.msk [vmem:[#allocation2 + $0x179] sm:$0x1] %vm5484_vm5, %v15804_v6  ;;  %5532 = vst.msk [vmem:[#allocation2 + $0x191] sm:$0x1] %vm5484_vm5, %v15804_v6 }
 0x526   :  { %5533 = vst.msk [vmem:[#allocation2 + $0x1d9] sm:$0x1] %vm5484_vm5, %v15804_v6  ;;  %5534 = vst.msk [vmem:[#allocation2 + $0x1f1] sm:$0x1] %vm5484_vm5, %v15804_v6 }
 0x527   :  { %5535 = vst.msk [vmem:[#allocation2 + $0x209] sm:$0x1] %vm5484_vm5, %v15804_v6  ;;  %5536 = vst.msk [vmem:[#allocation2 + $0x221] sm:$0x1] %vm5484_vm5, %v15804_v6 }
 0x528   :  { %5537 = vst.msk [vmem:[#allocation2 + $0x239] sm:$0x1] %vm5484_vm5, %v15804_v6  ;;  %5538 = vst.msk [vmem:[#allocation2 + $0x251] sm:$0x1] %vm5484_vm5, %v15804_v6 }
 0x529   :  { %5539 = vst.msk [vmem:[#allocation2 + $0x269] sm:$0x1] %vm5484_vm5, %v15804_v6  ;;  %5540 = vst.msk [vmem:[#allocation2 + $0x281] sm:$0x1] %vm5484_vm5, %v15804_v6 }
 0x52a   :  { %5541 = vst.msk [vmem:[#allocation2 + $0x299] sm:$0x1] %vm5484_vm5, %v15804_v6  ;;  %5542 = vst.msk [vmem:[#allocation2 + $0x2b1] sm:$0x1] %vm5484_vm5, %v15804_v6 }
 0x52b   :  { %5543 = vst.msk [vmem:[#allocation2 + $0x2c9] sm:$0x1] %vm5484_vm5, %v15804_v6  ;;  %5544 = vst.msk [vmem:[#allocation2 + $0x2e1] sm:$0x1] %vm5484_vm5, %v15804_v6 }
 0x52c   :  { %5545 = vst.msk [vmem:[#allocation2 + $0x2f9] sm:$0x1] %vm5484_vm5, %v15804_v6  ;;  %5546 = vst.msk [vmem:[#allocation2 + $0x311] sm:$0x1] %vm5484_vm5, %v15804_v6 }
 0x52d   :  { %5547 = vst.msk [vmem:[#allocation2 + $0x329] sm:$0x1] %vm5484_vm5, %v15804_v6  ;;  %5548 = vst.msk [vmem:[#allocation2 + $0x341] sm:$0x1] %vm5484_vm5, %v15804_v6  ;;  %v4972_v6 = vsel %vm4858_vm2, %v18413_v3, 0.0 }
 0x52e   :  { %22339 = vst [vmem:[#allocation24_spill] sm:$0xff] %v18405_v18  ;;  %v4973_v47 = vadd.f32 %v4972_v6, %v4971_v23  ;;  %22340 = vst [vmem:[#allocation25_spill] sm:$0xff] %v18430_v45  ;;  %v4976_v23 = vsel %vm4858_vm2, %v18405_v18, 0.0  ;;  %v5171_v6 = vadd.f32 %v5170_v20, %v5169_v19  ;;  %v5174_v19 = vsel %vm4858_vm2, %v5052_v27, 0.0 }
 0x52f   :  { %22341 = vst [vmem:[#allocation26_spill] sm:$0xff] %v18435_v4  ;;  %22342 = vst [vmem:[#allocation27_spill] sm:$0xff] %v18439_v34 }
 0x530   :  { %v4975_v16 = vadd.f32 %v4974_v21, %v4973_v47  ;;  %v4782_v47 = vpop.f32.mrb[63].mxu0  ;;  %v5173_v25 = vadd.f32 %v5172_v41, %v5171_v6  ;;  %v5053_v21 = vmul.f32 %v18435_v4, %v18435_v4 }
 0x531   :  { %v14785_v5 = vadd.f32 %v4782_v47, %v17805_v31  ;;  %v5056_v31 = vmul.f32 %v18439_v34, %v18439_v34 }
 0x532   :  { %v4977_v32 = vadd.f32 %v4976_v23, %v4975_v16  ;;  %v5175_v33 = vadd.f32 %v5174_v19, %v5173_v25  ;;  %v5176_v63 = vsel %vm4858_vm2, %v5053_v21, 0.0  ;;  %v5055_v16 = vmul.f32 %v18430_v45, %v18430_v45 }
 0x533   :  { %v4980_v30 = vsel %vm4858_vm2, %v14785_v5, 0.0  ;;  %v5054_v8 = vmul.f32 %v14785_v5, %v14785_v5 }
 0x534   :  { %v4979_v20 = vadd.f32 %v4978_v61, %v4977_v32  ;;  %v5177_v23 = vadd.f32 %v5176_v63, %v5175_v33  ;;  %v5180_v32 = vsel %vm4858_vm2, %v5055_v16, 0.0  ;;  %v5182_v61 = vsel %vm4858_vm2, %v5056_v31, 0.0 }
 0x535   :  { %v5178_v6 = vsel %vm4858_vm2, %v5054_v8, 0.0  ;;  %v5202_v31 = vlaneseq }
 0x536   :  { %v4981_v7 = vadd.f32 %v4980_v30, %v4979_v20  ;;  %v5179_v41 = vadd.f32 %v5178_v6, %v5177_v23 }
 0x538   :  { %v4983_v27 = vadd.f32 %v4982_v35, %v4981_v7  ;;  %v5181_v25 = vadd.f32 %v5180_v32, %v5179_v41  ;;  %v5203_v32 = vshrl.u32 %v5202_v31, 7  ;;  %v22350_v31 = vld [vmem:[#allocation7_spill] sm:$0xff] }
 0x53a   :  { %v4985_v47 = vadd.f32 %v4984_v26, %v4983_v27  ;;  %v5183_v19 = vadd.f32 %v5182_v61, %v5181_v25  ;;  %v18464_v25 = vsub.s32 0, %v5203_v32 }
 0x53c   :  { %v4986_v21 = vrot.slane %v4985_v47, 4  ;;  %v5184_v33 = vrot.slane %v5183_v19, 4  ;;  %22343 = vst [vmem:[#allocation28_spill] sm:$0xff] %v18464_v25 }
 0x53e   :  { %v4987_v20 = vadd.f32 %v4986_v21, %v4985_v47  ;;  %v5185_v30 = vadd.f32 %v5184_v33, %v5183_v19  ;;  %v5194_v47 = vld [vmem:[%s22111_s2] sm:$0x1] }
 0x540   :  { %v4988_v63 = vrot.slane %v4987_v20, 2  ;;  %v5186_v45 = vrot.slane %v5185_v30, 2 }
 0x542   :  { %v4989_v8 = vadd.f32 %v4988_v63, %v4987_v20  ;;  %v5187_v7 = vadd.f32 %v5186_v45, %v5185_v30 }
 0x544   :  { %v4990_v4 = vrot.slane %v4989_v8, 1  ;;  %v5188_v18 = vrot.slane %v5187_v7, 1 }
 0x546   :  { %v4991_v35 = vadd.f32 %v4990_v4, %v4989_v8  ;;  %v5189_v23 = vadd.f32 %v5188_v18, %v5187_v7  ;;  %v5198_v4 = vld [vmem:[%s22112_s3] sm:$0x1]  ;;  %v22344_v7 = vld [vmem:[#allocation4_spill] sm:$0xff] }
 0x548   :  { %v4992_v34 = vmul.f32 0.001953125, %v4991_v35  ;;  %v5190_v16 = vmul.f32 0.001953125, %v5189_v23 }
 0x54a   :  { %v5191_v6 = vmul.f32 %v4992_v34, %v4992_v34 }
 0x54c   :  { %v5192_v27 = vsub.f32 %v5190_v16, %v5191_v6 }
 0x54e   :  { %v5193_v26 = vmax.f32 %v5192_v27, 0.0 }
 0x550   :  { %v5195_v41 = vadd.f32 1e-05, %v5193_v26  ;;  %v22349_v26 = vld [vmem:[#allocation10_spill] sm:$0xff] }
 0x552   :  { %15799 = vrsqrt.f32 %v5195_v41 }
 0x55c   :  { %v15800_v61 = vpop.eup %15799 }
 0x55d   :  { %v5197_v45 = vmul.f32 %v15800_v61, %v5194_v47  ;;  %v22351_v47 = vld [vmem:[#allocation9_spill] sm:$0xff] }
 0x55f   :  { %v5199_v18 = vmul.f32 %v5197_v45, %v4992_v34  ;;  %v18470_v21 = vrot.slane %v5197_v45, %v18464_v25 }
 0x561   :  { %v5200_v19 = vsub.f32 %v5198_v4, %v5199_v18  ;;  %v5268_v20 = vmul.f32 %v14785_v5, %v18470_v21  ;;  %v18475_v33 = vmul.f32 %v18470_v21, %v17809_v36  ;;  %v18479_v63 = vmul.f32 %v18470_v21, %v17815_v12  ;;  %v22352_v4 = vld [vmem:[#allocation12_spill] sm:$0xff] }
 0x562   :  { %v18483_v30 = vmul.f32 %v17807_v11, %v18470_v21  ;;  %v18487_v34 = vmul.f32 %v17813_v48, %v18470_v21  ;;  %v18491_v8 = vmul.f32 %v18470_v21, %v17836_v13  ;;  %v18495_v36 = vmul.f32 %v18470_v21, %v17845_v53 }
 0x563   :  { %v18498_v5 = vrot.slane %v5200_v19, %v18464_v25  ;;  %v18502_v12 = vmul.f32 %v17834_v24, %v18470_v21  ;;  %v18506_v11 = vmul.f32 %v17843_v59, %v18470_v21  ;;  %v18510_v48 = vmul.f32 %v18470_v21, %v17864_v22  ;;  %v22345_v22 = vld [vmem:[#allocation6_spill] sm:$0xff] }
 0x564   :  { %v18514_v13 = vmul.f32 %v18470_v21, %v17873_v56  ;;  %v18518_v53 = vmul.f32 %v17862_v10, %v18470_v21  ;;  %v18522_v24 = vmul.f32 %v17871_v42, %v18470_v21  ;;  %v18526_v59 = vmul.f32 %v18470_v21, %v22344_v7  ;;  %v22346_v56 = vld [vmem:[#allocation3_spill] sm:$0xff]  ;;  %v22347_v10 = vld [vmem:[#allocation5_spill] sm:$0xff]  ;;  %v22348_v42 = vld [vmem:[#allocation8_spill] sm:$0xff] }
 0x565   :  { %v5338_v35 = vadd.f32 %v18498_v5, %v5268_v20  ;;  %v18531_v23 = vmul.f32 %v18470_v21, %v22345_v22  ;;  %v18535_v6 = vmul.f32 %v22346_v56, %v18470_v21  ;;  %v18539_v16 = vmul.f32 %v22347_v10, %v18470_v21  ;;  %v22353_v19 = vld [vmem:[#allocation14_spill] sm:$0xff]  ;;  %v22355_v7 = vld [vmem:[#allocation11_spill] sm:$0xff]  ;;  %v22357_v56 = vld [vmem:[#allocation13_spill] sm:$0xff] }
 0x566   :  { %v18543_v27 = vmul.f32 %v18470_v21, %v22348_v42  ;;  %v18547_v41 = vmul.f32 %v18470_v21, %v22349_v26  ;;  %v18551_v32 = vmul.f32 %v22350_v31, %v18470_v21  ;;  %v18555_v61 = vmul.f32 %v22351_v47, %v18470_v21  ;;  %v22358_v42 = vld [vmem:[#allocation16_spill] sm:$0xff]  ;;  %v22359_v31 = vld [vmem:[#allocation18_spill] sm:$0xff] }
 0x567   :  { %v5402_v45 = vmul.f32 0.01, %v5338_v35  ;;  %v18559_v18 = vmul.f32 %v18470_v21, %v22352_v4  ;;  %v18563_v20 = vmul.f32 %v18470_v21, %v22353_v19  ;;  %v18567_v22 = vmul.f32 %v22355_v7, %v18470_v21  ;;  %v22361_v4 = vld [vmem:[#allocation15_spill] sm:$0xff]  ;;  %v22362_v7 = vld [vmem:[#allocation17_spill] sm:$0xff] }
 0x568   :  { %v18571_v10 = vmul.f32 %v22357_v56, %v18470_v21  ;;  %v18575_v26 = vmul.f32 %v18470_v21, %v22358_v42  ;;  %v18579_v47 = vmul.f32 %v18470_v21, %v22359_v31  ;;  %v18583_v19 = vmul.f32 %v22361_v4, %v18470_v21  ;;  %v22364_v31 = vld [vmem:[#allocation19_spill] sm:$0xff] }
 0x569   :  { %22354 = vst [vmem:[#allocation4_spill] sm:$0xff] %v18563_v20  ;;  %22356 = vst [vmem:[#allocation6_spill] sm:$0xff] %v18567_v22  ;;  %v5466_v25 = vmax.f32 %v5338_v35, %v5402_v45  ;;  %v18587_v22 = vmul.f32 %v22362_v7, %v18470_v21  ;;  %v22363_v20 = vld [vmem:[#allocation20_spill] sm:$0xff]  ;;  %v18595_v42 = vmul.f32 %v18470_v21, %v18013_v2  ;;  %v22365_v2 = vld [vmem:[#allocation21_spill] sm:$0xff] }
 0x56a   :  { %22360 = vst [vmem:[#allocation3_spill] sm:$0xff] %v18579_v47  ;;  %v18591_v56 = vmul.f32 %v18470_v21, %v22363_v20  ;;  %v18599_v47 = vmul.f32 %v22364_v31, %v18470_v21  ;;  %v18603_v4 = vmul.f32 %v18011_v55, %v18470_v21  ;;  %v18607_v35 = vmul.f32 %v18035_v40, %v18470_v21  ;;  %v22369_v31 = vld [vmem:[#allocation23_spill] sm:$0xff] }
 0x56b   :  { %v18611_v45 = vmul.f32 %v18045_v43, %v18470_v21  ;;  %5610 = vst.msk [vmem:[#allocation2 + $0x321] sm:$0xff] %vm4858_vm2, %v5466_v25  ;;  %v18616_v20 = vmul.f32 %v22365_v2, %v18470_v21  ;;  %v18620_v7 = vmul.f32 %v18038_v28, %v18470_v21  ;;  %v18624_v55 = vmul.f32 %v18066_v38, %v18470_v21  ;;  %v22370_v2 = vld [vmem:[#allocation24_spill] sm:$0xff] }
 0x56c   :  { %v18628_v40 = vmul.f32 %v18077_v46, %v18470_v21  ;;  %v18632_v43 = vmul.f32 %v18060_v58, %v18470_v21  ;;  %v18636_v25 = vmul.f32 %v18074_v15, %v18470_v21  ;;  %v18640_v28 = vmul.f32 %v18097_v29, %v18470_v21 }
 0x56d   :  { %v18644_v38 = vmul.f32 %v18108_v62, %v18470_v21  ;;  %v18648_v46 = vmul.f32 %v18092_v37, %v18470_v21  ;;  %v18652_v58 = vmul.f32 %v18101_v51, %v18470_v21  ;;  %v18656_v15 = vmul.f32 %v18129_v44, %v18470_v21 }
 0x56e   :  { %v18660_v29 = vmul.f32 %v18140_v17, %v18470_v21  ;;  %v18664_v62 = vmul.f32 %v18124_v0, %v18470_v21  ;;  %v18668_v37 = vmul.f32 %v18133_v49, %v18470_v21  ;;  %v18672_v51 = vmul.f32 %v18161_v39, %v18470_v21 }
 0x56f   :  { %v18676_v44 = vmul.f32 %v18172_v52, %v18470_v21  ;;  %v18680_v17 = vmul.f32 %v18156_v1, %v18470_v21  ;;  %v18684_v0 = vmul.f32 %v18165_v54, %v18470_v21  ;;  %v18688_v49 = vmul.f32 %v18193_v9, %v18470_v21 }
 0x570   :  { %v18692_v39 = vmul.f32 %v18204_v14, %v18470_v21  ;;  %v18696_v52 = vmul.f32 %v18188_v50, %v18470_v21  ;;  %v18700_v1 = vmul.f32 %v18197_v60, %v18470_v21  ;;  %v18704_v54 = vmul.f32 %v18265_v57, %v18470_v21 }
 0x571   :  { %v18708_v9 = vmul.f32 %v18413_v3, %v18470_v21  ;;  %v18712_v14 = vmul.f32 %v22369_v31, %v18470_v21  ;;  %v18716_v50 = vmul.f32 %v22370_v2, %v18470_v21  ;;  %v18732_v31 = vadd.f32 %v18498_v5, %v18475_v33 }
 0x572   :  { %22366 = vst [vmem:[#allocation5_spill] sm:$0xff] %v18696_v52  ;;  %22367 = vst [vmem:[#allocation8_spill] sm:$0xff] %v18700_v1  ;;  %v22371_v52 = vld [vmem:[#allocation26_spill] sm:$0xff]  ;;  %v22372_v1 = vld [vmem:[#allocation25_spill] sm:$0xff]  ;;  %v18736_v2 = vadd.f32 %v18498_v5, %v18479_v63  ;;  %v18752_v33 = vadd.f32 %v18498_v5, %v18495_v36  ;;  %v18756_v63 = vadd.f32 %v18498_v5, %v18502_v12 }
 0x573   :  { %22368 = vst [vmem:[#allocation10_spill] sm:$0xff] %v18704_v54  ;;  %v18720_v60 = vmul.f32 %v22371_v52, %v18470_v21  ;;  %v18724_v57 = vmul.f32 %v22372_v1, %v18470_v21  ;;  %v22373_v54 = vld [vmem:[#allocation27_spill] sm:$0xff]  ;;  %v18740_v52 = vadd.f32 %v18498_v5, %v18483_v30  ;;  %v18744_v1 = vadd.f32 %v18498_v5, %v18487_v34 }
 0x574   :  { %v18728_v3 = vmul.f32 %v22373_v54, %v18470_v21  ;;  %v18748_v21 = vadd.f32 %v18498_v5, %v18491_v8  ;;  %v18760_v30 = vadd.f32 %v18498_v5, %v18506_v11  ;;  %v18764_v34 = vadd.f32 %v18498_v5, %v18510_v48  ;;  %v22379_v54 = vld [vmem:[#allocation4_spill] sm:$0xff] }
 0x575   :  { %v18768_v8 = vadd.f32 %v18498_v5, %v18514_v13  ;;  %v18772_v36 = vadd.f32 %v18498_v5, %v18518_v53  ;;  %v18776_v12 = vadd.f32 %v18498_v5, %v18522_v24  ;;  %v18780_v11 = vadd.f32 %v18498_v5, %v18526_v59 }
 0x576   :  { %v18784_v48 = vadd.f32 %v18498_v5, %v18531_v23  ;;  %v18788_v13 = vadd.f32 %v18498_v5, %v18535_v6  ;;  %v18792_v53 = vadd.f32 %v18498_v5, %v18539_v16  ;;  %v18796_v24 = vadd.f32 %v18498_v5, %v18543_v27 }
 0x577   :  { %v18800_v59 = vadd.f32 %v18498_v5, %v18547_v41  ;;  %v18804_v23 = vadd.f32 %v18498_v5, %v18551_v32  ;;  %v18808_v6 = vadd.f32 %v18498_v5, %v18555_v61  ;;  %v18812_v16 = vadd.f32 %v18498_v5, %v18559_v18 }
 0x578   :  { %22374 = vst [vmem:[#allocation7_spill] sm:$0xff] %v18788_v13  ;;  %22375 = vst [vmem:[#allocation9_spill] sm:$0xff] %v18796_v24  ;;  %v18816_v27 = vadd.f32 %v18498_v5, %v22379_v54  ;;  %v22380_v24 = vld [vmem:[#allocation6_spill] sm:$0xff]  ;;  %v18824_v32 = vadd.f32 %v18498_v5, %v18571_v10  ;;  %v18828_v61 = vadd.f32 %v18498_v5, %v18575_v26 }
 0x579   :  { %22376 = vst [vmem:[#allocation12_spill] sm:$0xff] %v18800_v59  ;;  %22377 = vst [vmem:[#allocation14_spill] sm:$0xff] %v18808_v6  ;;  %v18820_v41 = vadd.f32 %v18498_v5, %v22380_v24  ;;  %v22382_v6 = vld [vmem:[#allocation3_spill] sm:$0xff]  ;;  %v18836_v54 = vadd.f32 %v18498_v5, %v18583_v19  ;;  %v18840_v24 = vadd.f32 %v18498_v5, %v18587_v22 }
 0x57a   :  { %22378 = vst [vmem:[#allocation11_spill] sm:$0xff] %v18812_v16  ;;  %22381 = vst [vmem:[#allocation13_spill] sm:$0xff] %v18824_v32  ;;  %v18832_v18 = vadd.f32 %v18498_v5, %v22382_v6  ;;  %v18844_v10 = vadd.f32 %v18498_v5, %v18591_v56  ;;  %v18848_v26 = vadd.f32 %v18498_v5, %v18595_v42 }
 0x57b   :  { %22383 = vst [vmem:[#allocation16_spill] sm:$0xff] %v18836_v54  ;;  %v18852_v6 = vadd.f32 %v18498_v5, %v18599_v47  ;;  %v18856_v19 = vadd.f32 %v18498_v5, %v18603_v4  ;;  %v18860_v22 = vadd.f32 %v18498_v5, %v18607_v35  ;;  %v18864_v56 = vadd.f32 %v18498_v5, %v18611_v45 }
 0x57c   :  { %22384 = vst [vmem:[#allocation18_spill] sm:$0xff] %v18848_v26  ;;  %v18868_v42 = vadd.f32 %v18498_v5, %v18616_v20  ;;  %v18872_v47 = vadd.f32 %v18498_v5, %v18620_v7  ;;  %v18876_v4 = vadd.f32 %v18498_v5, %v18624_v55  ;;  %v18880_v35 = vadd.f32 %v18498_v5, %v18628_v40 }
 0x57d   :  { %22385 = vst [vmem:[#allocation15_spill] sm:$0xff] %v18860_v22  ;;  %v18884_v45 = vadd.f32 %v18498_v5, %v18632_v43  ;;  %v18888_v20 = vadd.f32 %v18498_v5, %v18636_v25  ;;  %v18892_v7 = vadd.f32 %v18498_v5, %v18640_v28  ;;  %v18896_v55 = vadd.f32 %v18498_v5, %v18644_v38 }
 0x57e   :  { %22386 = vst [vmem:[#allocation17_spill] sm:$0xff] %v18872_v47  ;;  %v18900_v40 = vadd.f32 %v18498_v5, %v18648_v46  ;;  %v18904_v43 = vadd.f32 %v18498_v5, %v18652_v58  ;;  %v18908_v25 = vadd.f32 %v18498_v5, %v18656_v15  ;;  %v18912_v28 = vadd.f32 %v18498_v5, %v18660_v29 }
 0x57f   :  { %22387 = vst [vmem:[#allocation20_spill] sm:$0xff] %v18884_v45  ;;  %22388 = vst [vmem:[#allocation19_spill] sm:$0xff] %v18896_v55  ;;  %v18916_v38 = vadd.f32 %v18498_v5, %v18664_v62  ;;  %v18920_v46 = vadd.f32 %v18498_v5, %v18668_v37  ;;  %v18924_v58 = vadd.f32 %v18498_v5, %v18672_v51 }
 0x580   :  { %22389 = vst [vmem:[#allocation21_spill] sm:$0xff] %v18904_v43  ;;  %22390 = vst [vmem:[#allocation23_spill] sm:$0xff] %v18908_v25  ;;  %v18928_v15 = vadd.f32 %v18498_v5, %v18676_v44  ;;  %v18932_v29 = vadd.f32 %v18498_v5, %v18680_v17  ;;  %v18936_v62 = vadd.f32 %v18498_v5, %v18684_v0 }
 0x581   :  { %22391 = vst [vmem:[#allocation24_spill] sm:$0xff] %v18912_v28  ;;  %22392 = vst [vmem:[#allocation26_spill] sm:$0xff] %v18916_v38  ;;  %v18940_v37 = vadd.f32 %v18498_v5, %v18688_v49  ;;  %v18944_v51 = vadd.f32 %v18498_v5, %v18692_v39  ;;  %v18960_v49 = vadd.f32 %v18498_v5, %v18708_v9 }
 0x582   :  { %22393 = vst [vmem:[#allocation25_spill] sm:$0xff] %v18920_v46  ;;  %22394 = vst [vmem:[#allocation27_spill] sm:$0xff] %v18924_v58  ;;  %v22400_v58 = vld [vmem:[#allocation5_spill] sm:$0xff]  ;;  %v18964_v39 = vadd.f32 %v18498_v5, %v18712_v14  ;;  %v18980_v9 = vadd.f32 %v18498_v5, %v18728_v3  ;;  %v5342_v14 = vmul.f32 0.01, %v18736_v2 }
 0x583   :  { %22395 = vst [vmem:[#allocation4_spill] sm:$0xff] %v18928_v15  ;;  %22396 = vst [vmem:[#allocation6_spill] sm:$0xff] %v18932_v29  ;;  %v18948_v44 = vadd.f32 %v18498_v5, %v22400_v58  ;;  %v22402_v15 = vld [vmem:[#allocation8_spill] sm:$0xff]  ;;  %v22404_v29 = vld [vmem:[#allocation10_spill] sm:$0xff]  ;;  %v18968_v58 = vadd.f32 %v18498_v5, %v18716_v50  ;;  %v5344_v50 = vmul.f32 0.01, %v18744_v1 }
 0x584   :  { %22397 = vst [vmem:[#allocation3_spill] sm:$0xff] %v18936_v62  ;;  %22398 = vst [vmem:[#allocation29_spill] sm:$0xff] %v18940_v37  ;;  %v18952_v17 = vadd.f32 %v18498_v5, %v22402_v15  ;;  %v18956_v0 = vadd.f32 %v18498_v5, %v22404_v29  ;;  %v18972_v15 = vadd.f32 %v18498_v5, %v18720_v60  ;;  %v5346_v60 = vmul.f32 0.01, %v18752_v33 }
 0x585   :  { %22399 = vst [vmem:[#allocation30_spill] sm:$0xff] %v18944_v51  ;;  %22401 = vst [vmem:[#allocation5_spill] sm:$0xff] %v18948_v44  ;;  %v18976_v29 = vadd.f32 %v18498_v5, %v18724_v57  ;;  %v5348_v57 = vmul.f32 0.01, %v18760_v30  ;;  %v5350_v3 = vmul.f32 0.01, %v18768_v8 }
 0x586   :  { %22403 = vst [vmem:[#allocation8_spill] sm:$0xff] %v18952_v17  ;;  %22405 = vst [vmem:[#allocation10_spill] sm:$0xff] %v18956_v0  ;;  %v5352_v0 = vmul.f32 0.01, %v18776_v12  ;;  %v5406_v17 = vmax.f32 %v18736_v2, %v5342_v14  ;;  %v18997_v44 = vmul.f32 0.01, %v18780_v11  ;;  %v5408_v14 = vmax.f32 %v18744_v1, %v5344_v50 }
 0x587   :  { %22406 = vst [vmem:[#allocation31_spill] sm:$0xff] %v18960_v49  ;;  %22407 = vst [vmem:[#allocation32_spill] sm:$0xff] %v18964_v39  ;;  %v5341_v49 = vmul.f32 0.01, %v18732_v31  ;;  %v5343_v39 = vmul.f32 0.01, %v18740_v52  ;;  %v5410_v50 = vmax.f32 %v18752_v33, %v5346_v60 }
 0x588   :  { %22408 = vst [vmem:[#allocation33_spill] sm:$0xff] %v18968_v58  ;;  %22409 = vst [vmem:[#allocation34_spill] sm:$0xff] %v18972_v15  ;;  %v5345_v58 = vmul.f32 0.01, %v18748_v21  ;;  %v5347_v15 = vmul.f32 0.01, %v18756_v63 }
 0x589   :  { %22410 = vst [vmem:[#allocation35_spill] sm:$0xff] %v18976_v29  ;;  %22411 = vst [vmem:[#allocation36_spill] sm:$0xff] %v18980_v9  ;;  %v5349_v29 = vmul.f32 0.01, %v18764_v34  ;;  %v5405_v5 = vmax.f32 %v18732_v31, %v5341_v49  ;;  %v5351_v9 = vmul.f32 0.01, %v18772_v36  ;;  %v5407_v62 = vmax.f32 %v18740_v52, %v5343_v39 }
 0x58a   :  { %v19000_v51 = vmul.f32 0.01, %v18784_v48  ;;  %v19003_v37 = vmul.f32 0.01, %v18788_v13  ;;  %v19008_v31 = vmul.f32 0.01, %v18792_v53 }
 0x58b   :  { %5549 = vst.msk [vmem:[#allocation2 + $0x19] sm:$0xff] %vm4858_vm2, %v5405_v5  ;;  %v22413_v49 = vld [vmem:[#allocation9_spill] sm:$0xff]  ;;  %v19014_v2 = vmul.f32 0.01, %v18800_v59  ;;  %5550 = vst.msk [vmem:[#allocation2 + $0x21] sm:$0xff] %vm4858_vm2, %v5406_v17  ;;  %v5409_v5 = vmax.f32 %v18748_v21, %v5345_v58  ;;  %v5411_v58 = vmax.f32 %v18756_v63, %v5347_v15 }
 0x58c   :  { %22412 = vst [vmem:[#allocation37_spill] sm:$0xff] %v19003_v37  ;;  %v19011_v46 = vmul.f32 0.01, %v22413_v49  ;;  %v19019_v13 = vmul.f32 0.01, %v18804_v23  ;;  %v22414_v37 = vld [vmem:[#allocation14_spill] sm:$0xff] }
 0x58d   :  { %v19022_v52 = vmul.f32 0.01, %v22414_v37  ;;  %v19025_v39 = vmul.f32 0.01, %v18812_v16  ;;  %5551 = vst.msk [vmem:[#allocation2 + $0x31] sm:$0xff] %vm4858_vm2, %v5407_v62  ;;  %5552 = vst.msk [vmem:[#allocation2 + $0x39] sm:$0xff] %vm4858_vm2, %v5408_v14  ;;  %v5412_v14 = vmax.f32 %v18760_v30, %v5348_v57 }
 0x58e   :  { %v19030_v59 = vmul.f32 0.01, %v18816_v27  ;;  %v19033_v1 = vmul.f32 0.01, %v18820_v41  ;;  %v19036_v17 = vmul.f32 0.01, %v18824_v32 }
 0x58f   :  { %v19041_v16 = vmul.f32 0.01, %v18828_v61  ;;  %v19044_v21 = vmul.f32 0.01, %v18832_v18  ;;  %v19047_v62 = vmul.f32 0.01, %v18836_v54 }
 0x590   :  { %5553 = vst.msk [vmem:[#allocation2 + $0x49] sm:$0xff] %vm4858_vm2, %v5409_v5  ;;  %v19052_v32 = vmul.f32 0.01, %v18840_v24  ;;  %v19055_v33 = vmul.f32 0.01, %v18844_v10  ;;  %5554 = vst.msk [vmem:[#allocation2 + $0x51] sm:$0xff] %vm4858_vm2, %v5410_v50  ;;  %v5413_v5 = vmax.f32 %v18764_v34, %v5349_v29  ;;  %v5414_v50 = vmax.f32 %v18768_v8, %v5350_v3 }
 0x591   :  { %v19058_v60 = vmul.f32 0.01, %v18848_v26  ;;  %v19063_v54 = vmul.f32 0.01, %v18852_v6  ;;  %v19066_v63 = vmul.f32 0.01, %v18856_v19 }
 0x592   :  { %v19069_v15 = vmul.f32 0.01, %v18860_v22  ;;  %5555 = vst.msk [vmem:[#allocation2 + $0x61] sm:$0xff] %vm4858_vm2, %v5411_v58  ;;  %v19074_v26 = vmul.f32 0.01, %v18864_v56  ;;  %5556 = vst.msk [vmem:[#allocation2 + $0x69] sm:$0xff] %vm4858_vm2, %v5412_v14  ;;  %v5415_v58 = vmax.f32 %v18772_v36, %v5351_v9  ;;  %v5416_v14 = vmax.f32 %v18776_v12, %v5352_v0 }
 0x593   :  { %v19077_v30 = vmul.f32 0.01, %v18868_v42  ;;  %v19080_v57 = vmul.f32 0.01, %v18872_v47  ;;  %v19085_v22 = vmul.f32 0.01, %v18876_v4 }
 0x594   :  { %v19088_v34 = vmul.f32 0.01, %v18880_v35  ;;  %v19091_v29 = vmul.f32 0.01, %v18884_v45  ;;  %5557 = vst.msk [vmem:[#allocation2 + $0x79] sm:$0xff] %vm4858_vm2, %v5413_v5  ;;  %5558 = vst.msk [vmem:[#allocation2 + $0x81] sm:$0xff] %vm4858_vm2, %v5414_v50  ;;  %v5417_v5 = vmax.f32 %v18780_v11, %v18997_v44 }
 0x595   :  { %v19096_v47 = vmul.f32 0.01, %v18888_v20  ;;  %v19099_v8 = vmul.f32 0.01, %v18892_v7  ;;  %v19102_v3 = vmul.f32 0.01, %v18896_v55 }
 0x596   :  { %v19107_v45 = vmul.f32 0.01, %v18900_v40  ;;  %v19110_v36 = vmul.f32 0.01, %v18904_v43  ;;  %v19113_v9 = vmul.f32 0.01, %v18908_v25  ;;  %v5418_v43 = vmax.f32 %v18784_v48, %v19000_v51 }
 0x597   :  { %5559 = vst.msk [vmem:[#allocation2 + $0x91] sm:$0xff] %vm4858_vm2, %v5415_v58  ;;  %v19119_v55 = vmul.f32 0.01, %v18912_v28  ;;  %v19122_v12 = vmul.f32 0.01, %v18916_v38  ;;  %v22418_v0 = vld [vmem:[#allocation25_spill] sm:$0xff] }
 0x598   :  { %22415 = vst [vmem:[#allocation9_spill] sm:$0xff] %v19113_v9  ;;  %v19125_v50 = vmul.f32 0.01, %v22418_v0  ;;  %5560 = vst.msk [vmem:[#allocation2 + $0x99] sm:$0xff] %vm4858_vm2, %v5416_v14  ;;  %v22420_v25 = vld [vmem:[#allocation27_spill] sm:$0xff]  ;;  %v22421_v11 = vld [vmem:[#allocation4_spill] sm:$0xff] }
 0x599   :  { %22416 = vst [vmem:[#allocation14_spill] sm:$0xff] %v19119_v55  ;;  %22417 = vst [vmem:[#allocation38_spill] sm:$0xff] %v19122_v12  ;;  %v19131_v9 = vmul.f32 0.01, %v22420_v25  ;;  %v19134_v44 = vmul.f32 0.01, %v22421_v11  ;;  %v5420_v11 = vmax.f32 %v18792_v53, %v19008_v31 }
 0x59a   :  { %22419 = vst [vmem:[#allocation39_spill] sm:$0xff] %v19125_v50  ;;  %v22422_v58 = vld [vmem:[#allocation6_spill] sm:$0xff]  ;;  %v22424_v55 = vld [vmem:[#allocation37_spill] sm:$0xff]  ;;  %v22425_v38 = vld [vmem:[#allocation7_spill] sm:$0xff] }
 0x59b   :  { %v19137_v28 = vmul.f32 0.01, %v22422_v58  ;;  %v5419_v12 = vmax.f32 %v22425_v38, %v22424_v55  ;;  %5561 = vst.msk [vmem:[#allocation2 + $0xa9] sm:$0xff] %vm4858_vm2, %v5417_v5  ;;  %v22426_v0 = vld [vmem:[#allocation3_spill] sm:$0xff]  ;;  %v22427_v48 = vld [vmem:[#allocation29_spill] sm:$0xff]  ;;  %v22428_v14 = vld [vmem:[#allocation30_spill] sm:$0xff] }
 0x59c   :  { %v19143_v50 = vmul.f32 0.01, %v22426_v0  ;;  %v19146_v51 = vmul.f32 0.01, %v22427_v48  ;;  %v19149_v25 = vmul.f32 0.01, %v22428_v14  ;;  %v5421_v48 = vmax.f32 %v22413_v49, %v19011_v46 }
 0x59d   :  { %22423 = vst [vmem:[#allocation40_spill] sm:$0xff] %v19137_v28  ;;  %5562 = vst.msk [vmem:[#allocation2 + $0xb1] sm:$0xff] %vm4858_vm2, %v5418_v43  ;;  %v22430_v58 = vld [vmem:[#allocation5_spill] sm:$0xff]  ;;  %v22431_v55 = vld [vmem:[#allocation8_spill] sm:$0xff] }
 0x59e   :  { %22429 = vst [vmem:[#allocation37_spill] sm:$0xff] %v19149_v25  ;;  %v19155_v28 = vmul.f32 0.01, %v22430_v58  ;;  %v19158_v38 = vmul.f32 0.01, %v22431_v55  ;;  %v22433_v5 = vld [vmem:[#allocation10_spill] sm:$0xff] }
 0x59f   :  { %v19161_v0 = vmul.f32 0.01, %v22433_v5  ;;  %5563 = vst.msk [vmem:[#allocation2 + $0xc1] sm:$0xff] %vm4858_vm2, %v5419_v12  ;;  %v22435_v14 = vld [vmem:[#allocation31_spill] sm:$0xff]  ;;  %v22436_v53 = vld [vmem:[#allocation32_spill] sm:$0xff]  ;;  %v22437_v43 = vld [vmem:[#allocation33_spill] sm:$0xff] }
 0x5a0   :  { %22432 = vst [vmem:[#allocation7_spill] sm:$0xff] %v19158_v38  ;;  %v19167_v25 = vmul.f32 0.01, %v22435_v14  ;;  %v19170_v31 = vmul.f32 0.01, %v22436_v53  ;;  %v22438_v55 = vld [vmem:[#allocation12_spill] sm:$0xff]  ;;  %v5423_v53 = vmax.f32 %v18804_v23, %v19019_v13  ;;  %v5429_v13 = vmax.f32 %v18828_v61, %v19041_v16 }
 0x5a1   :  { %22434 = vst [vmem:[#allocation41_spill] sm:$0xff] %v19161_v0  ;;  %v19173_v58 = vmul.f32 0.01, %v22437_v43  ;;  %v5422_v38 = vmax.f32 %v22438_v55, %v19014_v2  ;;  %5564 = vst.msk [vmem:[#allocation2 + $0xc9] sm:$0xff] %vm4858_vm2, %v5420_v11  ;;  %v22439_v5 = vld [vmem:[#allocation34_spill] sm:$0xff]  ;;  %v22440_v46 = vld [vmem:[#allocation35_spill] sm:$0xff]  ;;  %v5424_v43 = vmax.f32 %v22414_v37, %v19022_v52  ;;  %v5426_v55 = vmax.f32 %v18816_v27, %v19030_v59 }
 0x5a2   :  { %v19179_v0 = vmul.f32 0.01, %v22439_v5  ;;  %v19182_v49 = vmul.f32 0.01, %v22440_v46  ;;  %v22441_v12 = vld [vmem:[#allocation36_spill] sm:$0xff]  ;;  %5565 = vst.msk [vmem:[#allocation2 + $0xd9] sm:$0xff] %vm4858_vm2, %v5421_v48  ;;  %v5427_v46 = vmax.f32 %v18820_v41, %v19033_v1  ;;  %v5430_v23 = vmax.f32 %v18832_v18, %v19044_v21 }
 0x5a3   :  { %v19185_v14 = vmul.f32 0.01, %v22441_v12  ;;  %v22443_v2 = vld [vmem:[#allocation11_spill] sm:$0xff]  ;;  %5566 = vst.msk [vmem:[#allocation2 + $0xe1] sm:$0xff] %vm4858_vm2, %v5422_v38  ;;  %v22444_v12 = vld [vmem:[#allocation13_spill] sm:$0xff]  ;;  %v22445_v37 = vld [vmem:[#allocation16_spill] sm:$0xff]  ;;  %v5432_v59 = vmax.f32 %v18840_v24, %v19052_v32  ;;  %v5433_v27 = vmax.f32 %v18844_v10, %v19055_v33  ;;  %v5435_v16 = vmax.f32 %v18852_v6, %v19063_v54 }
 0x5a4   :  { %v5425_v11 = vmax.f32 %v22443_v2, %v19025_v39  ;;  %v5431_v52 = vmax.f32 %v22445_v37, %v19047_v62  ;;  %5567 = vst.msk [vmem:[#allocation2 + $0xf1] sm:$0xff] %vm4858_vm2, %v5423_v53  ;;  %v22446_v41 = vld [vmem:[#allocation18_spill] sm:$0xff]  ;;  %5568 = vst.msk [vmem:[#allocation2 + $0xf9] sm:$0xff] %vm4858_vm2, %v5424_v43  ;;  %v5436_v32 = vmax.f32 %v18856_v19, %v19066_v63  ;;  %v22447_v61 = vld [vmem:[#allocation15_spill] sm:$0xff] }
 0x5a5   :  { %22442 = vst [vmem:[#allocation12_spill] sm:$0xff] %v19185_v14  ;;  %v5428_v14 = vmax.f32 %v22444_v12, %v19036_v17  ;;  %v5434_v39 = vmax.f32 %v22446_v41, %v19058_v60  ;;  %5570 = vst.msk [vmem:[#allocation2 + $0x111] sm:$0xff] %vm4858_vm2, %v5426_v55  ;;  %v5437_v18 = vmax.f32 %v22447_v61, %v19069_v15  ;;  %v22448_v10 = vld [vmem:[#allocation17_spill] sm:$0xff]  ;;  %v22453_v62 = vld [vmem:[#allocation23_spill] sm:$0xff] }
 0x5a6   :  { %5569 = vst.msk [vmem:[#allocation2 + $0x109] sm:$0xff] %vm4858_vm2, %v5425_v11  ;;  %5571 = vst.msk [vmem:[#allocation2 + $0x121] sm:$0xff] %vm4858_vm2, %v5427_v46  ;;  %v5438_v24 = vmax.f32 %v18864_v56, %v19074_v26  ;;  %v5439_v54 = vmax.f32 %v18868_v42, %v19077_v30  ;;  %v5440_v6 = vmax.f32 %v22448_v10, %v19080_v57  ;;  %v22449_v56 = vld [vmem:[#allocation20_spill] sm:$0xff]  ;;  %v22451_v21 = vld [vmem:[#allocation21_spill] sm:$0xff] }
 0x5a7   :  { %5572 = vst.msk [vmem:[#allocation2 + $0x129] sm:$0xff] %vm4858_vm2, %v5428_v14  ;;  %5573 = vst.msk [vmem:[#allocation2 + $0x139] sm:$0xff] %vm4858_vm2, %v5429_v13  ;;  %v5441_v19 = vmax.f32 %v18876_v4, %v19085_v22  ;;  %v5442_v26 = vmax.f32 %v18880_v35, %v19088_v34  ;;  %v5443_v42 = vmax.f32 %v22449_v56, %v19091_v29  ;;  %v22450_v4 = vld [vmem:[#allocation19_spill] sm:$0xff]  ;;  %v22454_v33 = vld [vmem:[#allocation14_spill] sm:$0xff] }
 0x5a8   :  { %5574 = vst.msk [vmem:[#allocation2 + $0x141] sm:$0xff] %vm4858_vm2, %v5430_v23  ;;  %5575 = vst.msk [vmem:[#allocation2 + $0x151] sm:$0xff] %vm4858_vm2, %v5431_v52  ;;  %v5444_v1 = vmax.f32 %v18888_v20, %v19096_v47  ;;  %v5445_v22 = vmax.f32 %v18892_v7, %v19099_v8  ;;  %v5446_v35 = vmax.f32 %v22450_v4, %v19102_v3  ;;  %v22452_v20 = vld [vmem:[#allocation9_spill] sm:$0xff]  ;;  %v22455_v60 = vld [vmem:[#allocation24_spill] sm:$0xff] }
 0x5a9   :  { %5576 = vst.msk [vmem:[#allocation2 + $0x159] sm:$0xff] %vm4858_vm2, %v5432_v59  ;;  %5577 = vst.msk [vmem:[#allocation2 + $0x169] sm:$0xff] %vm4858_vm2, %v5433_v27  ;;  %v5447_v17 = vmax.f32 %v18900_v40, %v19107_v45  ;;  %v5448_v47 = vmax.f32 %v22451_v21, %v19110_v36  ;;  %v5449_v7 = vmax.f32 %v22453_v62, %v22452_v20  ;;  %v22456_v15 = vld [vmem:[#allocation38_spill] sm:$0xff]  ;;  %v22458_v40 = vld [vmem:[#allocation39_spill] sm:$0xff] }
 0x5aa   :  { %5578 = vst.msk [vmem:[#allocation2 + $0x171] sm:$0xff] %vm4858_vm2, %v5434_v39  ;;  %5579 = vst.msk [vmem:[#allocation2 + $0x181] sm:$0xff] %vm4858_vm2, %v5435_v16  ;;  %v5450_v63 = vmax.f32 %v22455_v60, %v22454_v33  ;;  %v22457_v30 = vld [vmem:[#allocation26_spill] sm:$0xff]  ;;  %v22459_v57 = vld [vmem:[#allocation25_spill] sm:$0xff] }
 0x5ab   :  { %5580 = vst.msk [vmem:[#allocation2 + $0x189] sm:$0xff] %vm4858_vm2, %v5436_v32  ;;  %5581 = vst.msk [vmem:[#allocation2 + $0x1c9] sm:$0xff] %vm4858_vm2, %v5437_v18  ;;  %v5451_v45 = vmax.f32 %v22457_v30, %v22456_v15  ;;  %v5452_v34 = vmax.f32 %v22459_v57, %v22458_v40  ;;  %v22460_v29 = vld [vmem:[#allocation27_spill] sm:$0xff]  ;;  %v22461_v3 = vld [vmem:[#allocation4_spill] sm:$0xff] }
 0x5ac   :  { %5582 = vst.msk [vmem:[#allocation2 + $0x1d1] sm:$0xff] %vm4858_vm2, %v5438_v24  ;;  %5583 = vst.msk [vmem:[#allocation2 + $0x1e1] sm:$0xff] %vm4858_vm2, %v5439_v54  ;;  %v5453_v8 = vmax.f32 %v22460_v29, %v19131_v9  ;;  %v5454_v36 = vmax.f32 %v22461_v3, %v19134_v44  ;;  %v22462_v48 = vld [vmem:[#allocation40_spill] sm:$0xff]  ;;  %v22463_v14 = vld [vmem:[#allocation6_spill] sm:$0xff]  ;;  %v5465_v54 = vmax.f32 %v22439_v5, %v19179_v0 }
 0x5ad   :  { %5584 = vst.msk [vmem:[#allocation2 + $0x1e9] sm:$0xff] %vm4858_vm2, %v5440_v6  ;;  %5585 = vst.msk [vmem:[#allocation2 + $0x1f9] sm:$0xff] %vm4858_vm2, %v5441_v19  ;;  %v5455_v38 = vmax.f32 %v22463_v14, %v22462_v48  ;;  %v5712_v53 = vld [vmem:[#allocation2 + $0x19] sm:$0xff]  ;;  %v22465_v9 = vld [vmem:[#allocation29_spill] sm:$0xff] }
 0x5ae   :  { %5586 = vst.msk [vmem:[#allocation2 + $0x201] sm:$0xff] %vm4858_vm2, %v5442_v26  ;;  %5587 = vst.msk [vmem:[#allocation2 + $0x211] sm:$0xff] %vm4858_vm2, %v5443_v42  ;;  %v22464_v43 = vld [vmem:[#allocation3_spill] sm:$0xff]  ;;  %v5457_v12 = vmax.f32 %v22465_v9, %v19146_v51  ;;  %v22466_v2 = vld [vmem:[#allocation37_spill] sm:$0xff] }
 0x5af   :  { %5588 = vst.msk [vmem:[#allocation2 + $0x219] sm:$0xff] %vm4858_vm2, %v5444_v1  ;;  %5589 = vst.msk [vmem:[#allocation2 + $0x229] sm:$0xff] %vm4858_vm2, %v5445_v22  ;;  %v5456_v46 = vmax.f32 %v22464_v43, %v19143_v50  ;;  %v22467_v44 = vld [vmem:[#allocation30_spill] sm:$0xff]  ;;  %v22468_v55 = vld [vmem:[#allocation5_spill] sm:$0xff] }
 0x5b0   :  { %5590 = vst.msk [vmem:[#allocation2 + $0x231] sm:$0xff] %vm4858_vm2, %v5446_v35  ;;  %5591 = vst.msk [vmem:[#allocation2 + $0x241] sm:$0xff] %vm4858_vm2, %v5447_v17  ;;  %v5458_v11 = vmax.f32 %v22467_v44, %v22466_v2  ;;  %v5459_v13 = vmax.f32 %v22468_v55, %v19155_v28  ;;  %v5713_v23 = vld [vmem:[#allocation2 + $0x21] sm:$0xff]  ;;  %v5714_v37 = vld [vmem:[#allocation2 + $0x31] sm:$0xff] }
 0x5b1   :  { %5592 = vst.msk [vmem:[#allocation2 + $0x249] sm:$0xff] %vm4858_vm2, %v5448_v47  ;;  %5593 = vst.msk [vmem:[#allocation2 + $0x259] sm:$0xff] %vm4858_vm2, %v5449_v7  ;;  %v5715_v50 = vld [vmem:[#allocation2 + $0x39] sm:$0xff]  ;;  %v22470_v59 = vld [vmem:[#allocation8_spill] sm:$0xff]  ;;  %v5775_v0 = vpack.c.bf16 %v5713_v23, %v5712_v53 }
 0x5b2   :  { %5594 = vst.msk [vmem:[#allocation2 + $0x261] sm:$0xff] %vm4858_vm2, %v5450_v63  ;;  %5595 = vst.msk [vmem:[#allocation2 + $0x271] sm:$0xff] %vm4858_vm2, %v5451_v45  ;;  %v22469_v52 = vld [vmem:[#allocation7_spill] sm:$0xff]  ;;  %v22471_v27 = vld [vmem:[#allocation41_spill] sm:$0xff] }
 0x5b3   :  { %v5460_v51 = vmax.f32 %v22470_v59, %v22469_v52  ;;  %v22472_v41 = vld [vmem:[#allocation10_spill] sm:$0xff]  ;;  %v22473_v16 = vld [vmem:[#allocation31_spill] sm:$0xff]  ;;  %v22474_v32 = vld [vmem:[#allocation32_spill] sm:$0xff]  ;;  %5596 = vst.msk [vmem:[#allocation2 + $0x279] sm:$0xff] %vm4858_vm2, %v5452_v34  ;;  %14095 = vmatmul.mubr.msk.bf16.vlgmr.msra.gmra.mrb[32].mxu1 %vm4858_vm2, %v5775_v0 }
 0x5b4   :  { %v5461_v39 = vmax.f32 %v22472_v41, %v22471_v27  ;;  %v5462_v28 = vmax.f32 %v22473_v16, %v19167_v25  ;;  %v5463_v61 = vmax.f32 %v22474_v32, %v19170_v31  ;;  %5597 = vst.msk [vmem:[#allocation2 + $0x289] sm:$0xff] %vm4858_vm2, %v5453_v8  ;;  %5598 = vst.msk [vmem:[#allocation2 + $0x291] sm:$0xff] %vm4858_vm2, %v5454_v36  ;;  %v22475_v18 = vld [vmem:[#allocation33_spill] sm:$0xff]  ;;  %v22476_v10 = vld [vmem:[#allocation35_spill] sm:$0xff] }
 0x5b5   :  { %5599 = vst.msk [vmem:[#allocation2 + $0x2a1] sm:$0xff] %vm4858_vm2, %v5455_v38  ;;  %v5464_v24 = vmax.f32 %v22475_v18, %v19173_v58  ;;  %v5467_v25 = vmax.f32 %v22476_v10, %v19182_v49  ;;  %v22477_v6 = vld [vmem:[#allocation12_spill] sm:$0xff]  ;;  %5600 = vst.msk [vmem:[#allocation2 + $0x2a9] sm:$0xff] %vm4858_vm2, %v5456_v46  ;;  %v5776_v58 = vpack.c.bf16 %v5715_v50, %v5714_v37  ;;  %v22479_v5 = vld [vmem:[#allocation22_spill] sm:$0xff] }
 0x5b6   :  { %v22478_v19 = vld [vmem:[#allocation36_spill] sm:$0xff]  ;;  %5601 = vst.msk [vmem:[#allocation2 + $0x2b9] sm:$0xff] %vm4858_vm2, %v5457_v12  ;;  %5602 = vst.msk [vmem:[#allocation2 + $0x2c1] sm:$0xff] %vm4858_vm2, %v5458_v11  ;;  %v6294_v49 = vsel %vm5904_vm3, %v22479_v5, 0  ;;  %v5717_v56 = vld [vmem:[#allocation2 + $0x51] sm:$0xff] }
 0x5b7   :  { %v5468_v31 = vmax.f32 %v22478_v19, %v22477_v6  ;;  %5603 = vst.msk [vmem:[#allocation2 + $0x2d1] sm:$0xff] %vm4858_vm2, %v5459_v13  ;;  %5604 = vst.msk [vmem:[#allocation2 + $0x2d9] sm:$0xff] %vm4858_vm2, %v5460_v51  ;;  %14098 = vmatprep.mubr.msk.bf16.mxu1 %vm4858_vm2, %v5776_v58  ;;  %14159 = vmatpush3.bf16.msra.mxu1 %v6294_v49  ;;  %v5716_v26 = vld [vmem:[#allocation2 + $0x49] sm:$0xff]  ;;  %v5718_v42 = vld [vmem:[#allocation2 + $0x61] sm:$0xff] }
 0x5b8   :  { %5605 = vst.msk [vmem:[#allocation2 + $0x2e9] sm:$0xff] %vm4858_vm2, %v5461_v39  ;;  %5606 = vst.msk [vmem:[#allocation2 + $0x2f1] sm:$0xff] %vm4858_vm2, %v5462_v28  ;;  %v5719_v1 = vld [vmem:[#allocation2 + $0x69] sm:$0xff]  ;;  %v5777_v22 = vpack.c.bf16 %v5717_v56, %v5716_v26  ;;  %v5720_v17 = vld [vmem:[#allocation2 + $0x79] sm:$0xff] }
 0x5b9   :  { %5607 = vst.msk [vmem:[#allocation2 + $0x301] sm:$0xff] %vm4858_vm2, %v5463_v61  ;;  %5608 = vst.msk [vmem:[#allocation2 + $0x309] sm:$0xff] %vm4858_vm2, %v5464_v24  ;;  %v5778_v4 = vpack.c.bf16 %v5719_v1, %v5718_v42  ;;  %v19333_v35 = vld [vmem:[%s22110_s4 + $0x8] sm:$0xf]  ;;  %v5722_v47 = vld [vmem:[#allocation2 + $0x91] sm:$0xff] }
 0x5ba   :  { %5609 = vst.msk [vmem:[#allocation2 + $0x319] sm:$0xff] %vm4858_vm2, %v5465_v54  ;;  %5611 = vst.msk [vmem:[#allocation2 + $0x331] sm:$0xff] %vm4858_vm2, %v5467_v25  ;;  %15790 = vmatprep.subr.msk.bf16.mxu1 %vm5904_vm3, %v19333_v35  ;;  %v5721_v21 = vld [vmem:[#allocation2 + $0x81] sm:$0xff]  ;;  %v5723_v20 = vld [vmem:[#allocation2 + $0x99] sm:$0xff] }
 0x5bb   :  { %5612 = vst.msk [vmem:[#allocation2 + $0x339] sm:$0xff] %vm4858_vm2, %v5468_v31  ;;  %14099 = vmatmul.mubr.msk.bf16.gmra.mrb[36].mxu1 %vm4858_vm2, %v5777_v22  ;;  %v5779_v62 = vpack.c.bf16 %v5721_v21, %v5720_v17  ;;  %v5780_v7 = vpack.c.bf16 %v5723_v20, %v5722_v47  ;;  %v5724_v33 = vld [vmem:[#allocation2 + $0xa9] sm:$0xff]  ;;  %v5725_v60 = vld [vmem:[#allocation2 + $0xb1] sm:$0xff]  ;;  %v5726_v63 = vld [vmem:[#allocation2 + $0xc1] sm:$0xff] }
 0x5bc   :  { %14102 = vmatprep.mubr.msk.bf16.mxu1 %vm4858_vm2, %v5778_v4  ;;  %v5727_v15 = vld [vmem:[#allocation2 + $0xc9] sm:$0xff]  ;;  %v5781_v30 = vpack.c.bf16 %v5725_v60, %v5724_v33  ;;  %v5728_v40 = vld [vmem:[#allocation2 + $0xd9] sm:$0xff]  ;;  %v5729_v57 = vld [vmem:[#allocation2 + $0xe1] sm:$0xff] }
 0x5bd   :  { %v5782_v45 = vpack.c.bf16 %v5727_v15, %v5726_v63  ;;  %v5730_v34 = vld [vmem:[#allocation2 + $0xf1] sm:$0xff]  ;;  %v5731_v29 = vld [vmem:[#allocation2 + $0xf9] sm:$0xff]  ;;  %v5783_v8 = vpack.c.bf16 %v5729_v57, %v5728_v40  ;;  %v5732_v36 = vld [vmem:[#allocation2 + $0x109] sm:$0xff] }
 0x5be   :  { %v5784_v3 = vpack.c.bf16 %v5731_v29, %v5730_v34  ;;  %v5733_v48 = vld [vmem:[#allocation2 + $0x111] sm:$0xff]  ;;  %v5734_v14 = vld [vmem:[#allocation2 + $0x121] sm:$0xff]  ;;  %v5735_v38 = vld [vmem:[#allocation2 + $0x129] sm:$0xff] }
 0x5bf   :  { %v5785_v53 = vpack.c.bf16 %v5733_v48, %v5732_v36  ;;  %v5786_v43 = vpack.c.bf16 %v5735_v38, %v5734_v14  ;;  %v5736_v46 = vld [vmem:[#allocation2 + $0x139] sm:$0xff]  ;;  %v5737_v9 = vld [vmem:[#allocation2 + $0x141] sm:$0xff]  ;;  %v5738_v12 = vld [vmem:[#allocation2 + $0x151] sm:$0xff] }
 0x5c0   :  { %v5739_v2 = vld [vmem:[#allocation2 + $0x159] sm:$0xff]  ;;  %v5787_v44 = vpack.c.bf16 %v5737_v9, %v5736_v46  ;;  %v5742_v55 = vld [vmem:[#allocation2 + $0x1b1] sm:$0xff]  ;;  %v5740_v23 = vld [vmem:[#allocation2 + $0x169] sm:$0xff] }
 0x5c1   :  { %v5788_v11 = vpack.c.bf16 %v5739_v2, %v5738_v12  ;;  %v5743_v13 = vld [vmem:[#allocation2 + $0x1b9] sm:$0xff]  ;;  %v5741_v37 = vld [vmem:[#allocation2 + $0x171] sm:$0xff]  ;;  %v5744_v59 = vld [vmem:[#allocation2 + $0x1c9] sm:$0xff]  ;;  %v6780_v12 = vsel %vm5904_vm3, %v19333_v35, 0 }
 0x5c2   :  { %v5790_v50 = vpack.c.bf16 %v5743_v13, %v5742_v55  ;;  %v5789_v52 = vpack.c.bf16 %v5741_v37, %v5740_v23  ;;  %v5745_v51 = vld [vmem:[#allocation2 + $0x1d1] sm:$0xff]  ;;  %v5746_v27 = vld [vmem:[#allocation2 + $0x1e1] sm:$0xff]  ;;  %v5747_v41 = vld [vmem:[#allocation2 + $0x1e9] sm:$0xff] }
 0x5c3   :  { %14103 = vmatmul.mubr.msk.bf16.gmra.mrb[40].mxu1 %vm4858_vm2, %v5779_v62  ;;  %v5791_v39 = vpack.c.bf16 %v5745_v51, %v5744_v59  ;;  %v5792_v16 = vpack.c.bf16 %v5747_v41, %v5746_v27  ;;  %v5748_v28 = vld [vmem:[#allocation2 + $0x1f9] sm:$0xff]  ;;  %v5749_v32 = vld [vmem:[#allocation2 + $0x201] sm:$0xff]  ;;  %v5750_v61 = vld [vmem:[#allocation2 + $0x211] sm:$0xff] }
 0x5c4   :  { %14106 = vmatprep.mubr.msk.bf16.mxu1 %vm4858_vm2, %v5780_v7  ;;  %v5751_v18 = vld [vmem:[#allocation2 + $0x219] sm:$0xff]  ;;  %v5793_v24 = vpack.c.bf16 %v5749_v32, %v5748_v28  ;;  %v5752_v10 = vld [vmem:[#allocation2 + $0x229] sm:$0xff]  ;;  %v5753_v25 = vld [vmem:[#allocation2 + $0x231] sm:$0xff] }
 0x5c5   :  { %v5794_v54 = vpack.c.bf16 %v5751_v18, %v5750_v61  ;;  %v5754_v6 = vld [vmem:[#allocation2 + $0x241] sm:$0xff]  ;;  %v5755_v19 = vld [vmem:[#allocation2 + $0x249] sm:$0xff]  ;;  %v5795_v31 = vpack.c.bf16 %v5753_v25, %v5752_v10  ;;  %v5756_v58 = vld [vmem:[#allocation2 + $0x259] sm:$0xff] }
 0x5c6   :  { %v5796_v0 = vpack.c.bf16 %v5755_v19, %v5754_v6  ;;  %v5757_v5 = vld [vmem:[#allocation2 + $0x261] sm:$0xff]  ;;  %v5758_v49 = vld [vmem:[#allocation2 + $0x271] sm:$0xff]  ;;  %v5759_v26 = vld [vmem:[#allocation2 + $0x279] sm:$0xff] }
 0x5c7   :  { %v5797_v56 = vpack.c.bf16 %v5757_v5, %v5756_v58  ;;  %v5798_v42 = vpack.c.bf16 %v5759_v26, %v5758_v49  ;;  %v5760_v1 = vld [vmem:[#allocation2 + $0x289] sm:$0xff]  ;;  %v5761_v22 = vld [vmem:[#allocation2 + $0x291] sm:$0xff]  ;;  %v5762_v4 = vld [vmem:[#allocation2 + $0x2a1] sm:$0xff] }
 0x5c8   :  { %v5763_v17 = vld [vmem:[#allocation2 + $0x2a9] sm:$0xff]  ;;  %v5799_v21 = vpack.c.bf16 %v5761_v22, %v5760_v1  ;;  %v5764_v20 = vld [vmem:[#allocation2 + $0x2b9] sm:$0xff]  ;;  %v5765_v62 = vld [vmem:[#allocation2 + $0x2c1] sm:$0xff] }
 0x5c9   :  { %v5800_v47 = vpack.c.bf16 %v5763_v17, %v5762_v4  ;;  %v5766_v7 = vld [vmem:[#allocation2 + $0x2d1] sm:$0xff]  ;;  %v5767_v33 = vld [vmem:[#allocation2 + $0x2d9] sm:$0xff]  ;;  %v5801_v60 = vpack.c.bf16 %v5765_v62, %v5764_v20  ;;  %v5768_v15 = vld [vmem:[#allocation2 + $0x2e9] sm:$0xff] }
 0x5ca   :  { %v5802_v63 = vpack.c.bf16 %v5767_v33, %v5766_v7  ;;  %v5771_v40 = vld [vmem:[#allocation2 + $0x309] sm:$0xff]  ;;  %v5613_v29 = vld [vmem:[#allocation2] sm:$0xff]  ;;  %v5615_v38 = vld [vmem:[#allocation2 + $0x18] sm:$0xff] }
 0x5cb   :  { %14107 = vmatmul.mubr.msk.bf16.gmra.mrb[44].mxu1 %vm4858_vm2, %v5781_v30  ;;  %v5769_v30 = vld [vmem:[#allocation2 + $0x2f1] sm:$0xff]  ;;  %v5773_v36 = vld [vmem:[#allocation2 + $0x321] sm:$0xff] }
 0x5cc   :  { %14110 = vmatprep.mubr.msk.bf16.mxu1 %vm4858_vm2, %v5782_v45  ;;  %v5770_v45 = vld [vmem:[#allocation2 + $0x301] sm:$0xff]  ;;  %v5803_v57 = vpack.c.bf16 %v5769_v30, %v5768_v15  ;;  %v5618_v46 = vld [vmem:[#allocation2 + $0x38] sm:$0xff]  ;;  %v5620_v55 = vld [vmem:[#allocation2 + $0x50] sm:$0xff] }
 0x5cd   :  { %v5804_v34 = vpack.c.bf16 %v5771_v40, %v5770_v45  ;;  %v5621_v35 = vld [vmem:[#allocation2 + $0x60] sm:$0xff]  ;;  %v5622_v13 = vld [vmem:[#allocation2 + $0x68] sm:$0xff]  ;;  %v5625_v59 = vld [vmem:[#allocation2 + $0x90] sm:$0xff] }
 0x5ce   :  { %v19384_v37 = vpack.c.bf16 %v5622_v13, %v5621_v35  ;;  %v5626_v51 = vld [vmem:[#allocation2 + $0x98] sm:$0xff]  ;;  %v5629_v28 = vld [vmem:[#allocation2 + $0xc0] sm:$0xff]  ;;  %v5630_v32 = vld [vmem:[#allocation2 + $0xc8] sm:$0xff] }
 0x5cf   :  { %v19392_v41 = vpack.c.bf16 %v5626_v51, %v5625_v59  ;;  %v19400_v18 = vpack.c.bf16 %v5630_v32, %v5629_v28  ;;  %v5633_v10 = vld [vmem:[#allocation2 + $0xf0] sm:$0xff]  ;;  %v5634_v25 = vld [vmem:[#allocation2 + $0xf8] sm:$0xff]  ;;  %v5637_v58 = vld [vmem:[#allocation2 + $0x120] sm:$0xff] }
 0x5d0   :  { %v19408_v19 = vpack.c.bf16 %v5634_v25, %v5633_v10  ;;  %v5638_v5 = vld [vmem:[#allocation2 + $0x128] sm:$0xff]  ;;  %v5641_v1 = vld [vmem:[#allocation2 + $0x150] sm:$0xff]  ;;  %v5642_v22 = vld [vmem:[#allocation2 + $0x158] sm:$0xff] }
 0x5d1   :  { %v19416_v26 = vpack.c.bf16 %v5638_v5, %v5637_v58  ;;  %v19424_v17 = vpack.c.bf16 %v5642_v22, %v5641_v1  ;;  %v5643_v20 = vld [vmem:[#allocation2 + $0x168] sm:$0xff]  ;;  %v5644_v62 = vld [vmem:[#allocation2 + $0x170] sm:$0xff]  ;;  %v5649_v15 = vld [vmem:[#allocation2 + $0x1e0] sm:$0xff] }
 0x5d2   :  { %v19430_v33 = vpack.c.bf16 %v5644_v62, %v5643_v20  ;;  %v5650_v30 = vld [vmem:[#allocation2 + $0x1e8] sm:$0xff]  ;;  %v5662_v35 = vld [vmem:[#allocation2 + $0x278] sm:$0xff]  ;;  %v5664_v59 = vld [vmem:[#allocation2 + $0x290] sm:$0xff] }
 0x5d3   :  { %14111 = vmatmul.mubr.msk.bf16.gmra.mrb[48].mxu1 %vm4858_vm2, %v5783_v8  ;;  %v5614_v8 = vld [vmem:[#allocation2 + $0x8] sm:$0xff]  ;;  %v19437_v40 = vpack.c.bf16 %v5650_v30, %v5649_v15  ;;  %v5665_v51 = vld [vmem:[#allocation2 + $0x2a0] sm:$0xff]  ;;  %v5667_v32 = vld [vmem:[#allocation2 + $0x2b8] sm:$0xff] }
 0x5d4   :  { %14114 = vmatprep.mubr.msk.bf16.mxu1 %vm4858_vm2, %v5784_v3  ;;  %v5772_v3 = vld [vmem:[#allocation2 + $0x319] sm:$0xff]  ;;  %v5677_v48 = vpack.c.bf16 %v5614_v8, %v5613_v29  ;;  %v5653_v29 = vld [vmem:[#allocation2 + $0x210] sm:$0xff]  ;;  %v6585_v22 = vld [vmem:[#allocation2 + $0x2] sm:$0xff] }
 0x5d5   :  { %v5805_v14 = vpack.c.bf16 %v5773_v36, %v5772_v3  ;;  %v5654_v8 = vld [vmem:[#allocation2 + $0x218] sm:$0xff]  ;;  %v5672_v58 = vld [vmem:[#allocation2 + $0x2f0] sm:$0xff]  ;;  %v5673_v5 = vld [vmem:[#allocation2 + $0x300] sm:$0xff] }
 0x5d6   :  { %v19445_v36 = vpack.c.bf16 %v5654_v8, %v5653_v29  ;;  %v5670_v10 = vld [vmem:[#allocation2 + $0x2d8] sm:$0xff]  ;;  %v5676_v20 = vld [vmem:[#allocation2 + $0x320] sm:$0xff]  ;;  %v19507_v8 = vld [vmem:[%s22110_s4 + $0x10] sm:$0xf] }
 0x5d7   :  { %v6589_v15 = vld [vmem:[#allocation2 + $0x32] sm:$0xff]  ;;  %v6590_v30 = vld [vmem:[#allocation2 + $0x3a] sm:$0xff] }
 0x5d8   :  { %v19500_v29 = vpack.c.bf16 %v6590_v30, %v6589_v15 }
 0x5db   :  { %14115 = vmatmul.mubr.msk.bf16.gmra.mrb[52].mxu1 %vm4858_vm2, %v5785_v53  ;;  %v5616_v53 = vld [vmem:[#allocation2 + $0x20] sm:$0xff] }
 0x5dc   :  { %14118 = vmatprep.mubr.msk.bf16.mxu1 %vm4858_vm2, %v5786_v43  ;;  %v5617_v43 = vld [vmem:[#allocation2 + $0x30] sm:$0xff]  ;;  %v19365_v9 = vpack.c.bf16 %v5616_v53, %v5615_v38  ;;  %v5657_v38 = vld [vmem:[#allocation2 + $0x240] sm:$0xff]  ;;  %v5658_v53 = vld [vmem:[#allocation2 + $0x248] sm:$0xff] }
 0x5dd   :  { %v19369_v2 = vpack.c.bf16 %v5618_v46, %v5617_v43  ;;  %v19453_v46 = vpack.c.bf16 %v5658_v53, %v5657_v38  ;;  %v6594_v38 = vld [vmem:[#allocation2 + $0x6a] sm:$0xff] }
 0x5e3   :  { %14119 = vmatmul.mubr.msk.bf16.gmra.mrb[56].mxu1 %vm4858_vm2, %v5787_v44  ;;  %v19376_v44 = vld [vmem:[%s22110_s4 + $0xc] sm:$0xf] }
 0x5e4   :  { %14122 = vmatprep.mubr.msk.bf16.mxu1 %vm4858_vm2, %v5788_v11  ;;  %v5619_v11 = vld [vmem:[#allocation2 + $0x48] sm:$0xff] }
 0x5e5   :  { %v19382_v23 = vpack.c.bf16 %v5620_v55, %v5619_v11  ;;  %v5660_v11 = vld [vmem:[#allocation2 + $0x260] sm:$0xff]  ;;  %v5661_v55 = vld [vmem:[#allocation2 + $0x270] sm:$0xff] }
 0x5eb   :  { %14123 = vmatmul.mubr.msk.bf16.gmra.mrb[60].mxu1 %vm4858_vm2, %v5789_v52  ;;  %v5624_v52 = vld [vmem:[#allocation2 + $0x80] sm:$0xff] }
 0x5ec   :  { %14126 = vmatprep.mubr.msk.bf16.mxu1 %vm4858_vm2, %v5790_v50  ;;  %v5623_v50 = vld [vmem:[#allocation2 + $0x78] sm:$0xff] }
 0x5ed   :  { %v19390_v27 = vpack.c.bf16 %v5624_v52, %v5623_v50  ;;  %v19461_v50 = vpack.c.bf16 %v5662_v35, %v5661_v55  ;;  %v5663_v52 = vld [vmem:[#allocation2 + $0x288] sm:$0xff]  ;;  %v6597_v35 = vld [vmem:[#allocation2 + $0x92] sm:$0xff] }
 0x5ee   :  { %v6596_v55 = vld [vmem:[#allocation2 + $0x82] sm:$0xff] }
 0x5f3   :  { %14127 = vmatmul.mubr.msk.bf16.gmra.mrb[64].mxu1 %vm4858_vm2, %v5791_v39  ;;  %v5627_v39 = vld [vmem:[#allocation2 + $0xa8] sm:$0xff] }
 0x5f4   :  { %14130 = vmatprep.mubr.msk.bf16.mxu1 %vm4858_vm2, %v5792_v16  ;;  %v5628_v16 = vld [vmem:[#allocation2 + $0xb0] sm:$0xff] }
 0x5f5   :  { %v19398_v61 = vpack.c.bf16 %v5628_v16, %v5627_v39  ;;  %v5666_v39 = vld [vmem:[#allocation2 + $0x2a8] sm:$0xff]  ;;  %v19467_v16 = vpack.c.bf16 %v5664_v59, %v5663_v52  ;;  %v6598_v52 = vld [vmem:[#allocation2 + $0x9a] sm:$0xff] }
 0x5f6   :  { %v19469_v28 = vpack.c.bf16 %v5666_v39, %v5665_v51  ;;  %v19523_v51 = vpack.c.bf16 %v6598_v52, %v6597_v35  ;;  %v6599_v39 = vld [vmem:[#allocation2 + $0xaa] sm:$0xff]  ;;  %v6618_v35 = vld [vmem:[#allocation2 + $0x1ba] sm:$0xff] }
 0x5f7   :  { %v6615_v52 = vld [vmem:[#allocation2 + $0x16a] sm:$0xff] }
 0x5fb   :  { %14131 = vmatmul.mubr.msk.bf16.gmra.mrb[68].mxu1 %vm4858_vm2, %v5793_v24  ;;  %v5631_v24 = vld [vmem:[#allocation2 + $0xd8] sm:$0xff] }
 0x5fc   :  { %14134 = vmatprep.mubr.msk.bf16.mxu1 %vm4858_vm2, %v5794_v54  ;;  %v5632_v54 = vld [vmem:[#allocation2 + $0xe0] sm:$0xff] }
 0x5fd   :  { %v19406_v6 = vpack.c.bf16 %v5632_v54, %v5631_v24  ;;  %v5668_v24 = vld [vmem:[#allocation2 + $0x2c0] sm:$0xff]  ;;  %v5669_v54 = vld [vmem:[#allocation2 + $0x2d0] sm:$0xff] }
 0x5fe   :  { %v19475_v25 = vpack.c.bf16 %v5668_v24, %v5667_v32  ;;  %v6600_v32 = vld [vmem:[#allocation2 + $0xb2] sm:$0xff]  ;;  %v6601_v24 = vld [vmem:[#allocation2 + $0xc2] sm:$0xff] }
 0x603   :  { %14135 = vmatmul.mubr.msk.bf16.gmra.mrb[72].mxu1 %vm4858_vm2, %v5795_v31  ;;  %v5635_v31 = vld [vmem:[#allocation2 + $0x108] sm:$0xff] }
 0x604   :  { %14138 = vmatprep.mubr.msk.bf16.mxu1 %vm4858_vm2, %v5796_v0  ;;  %v5636_v0 = vld [vmem:[#allocation2 + $0x110] sm:$0xff] }
 0x605   :  { %v19414_v49 = vpack.c.bf16 %v5636_v0, %v5635_v31  ;;  %v19477_v31 = vpack.c.bf16 %v5670_v10, %v5669_v54  ;;  %v5671_v0 = vld [vmem:[#allocation2 + $0x2e8] sm:$0xff]  ;;  %v19529_v10 = vpack.c.bf16 %v6600_v32, %v6599_v39  ;;  %v6616_v39 = vld [vmem:[#allocation2 + $0x172] sm:$0xff] }
 0x606   :  { %v6602_v54 = vld [vmem:[#allocation2 + $0xca] sm:$0xff] }
 0x60b   :  { %14139 = vmatmul.mubr.msk.bf16.gmra.mrb[76].mxu1 %vm4858_vm2, %v5797_v56  ;;  %v5639_v56 = vld [vmem:[#allocation2 + $0x138] sm:$0xff] }
 0x60c   :  { %14142 = vmatprep.mubr.msk.bf16.mxu1 %vm4858_vm2, %v5798_v42  ;;  %v5640_v42 = vld [vmem:[#allocation2 + $0x140] sm:$0xff] }
 0x60d   :  { %v19422_v4 = vpack.c.bf16 %v5640_v42, %v5639_v56  ;;  %v5674_v56 = vld [vmem:[#allocation2 + $0x308] sm:$0xff]  ;;  %v19483_v42 = vpack.c.bf16 %v5672_v58, %v5671_v0  ;;  %v19531_v0 = vpack.c.bf16 %v6602_v54, %v6601_v24  ;;  %v6603_v58 = vld [vmem:[#allocation2 + $0xda] sm:$0xff]  ;;  %v19561_v24 = vpack.c.bf16 %v6616_v39, %v6615_v52 }
 0x60e   :  { %v19485_v1 = vpack.c.bf16 %v5674_v56, %v5673_v5  ;;  %v6604_v5 = vld [vmem:[#allocation2 + $0xe2] sm:$0xff]  ;;  %v6605_v56 = vld [vmem:[#allocation2 + $0xf2] sm:$0xff]  ;;  %v6619_v54 = vld [vmem:[#allocation2 + $0x1ca] sm:$0xff] }
 0x60f   :  { %v6630_v52 = vld [vmem:[#allocation2 + $0x24a] sm:$0xff] }
 0x613   :  { %14143 = vmatmul.mubr.msk.bf16.gmra.mrb[80].mxu1 %vm4858_vm2, %v5799_v21  ;;  %v5645_v21 = vld [vmem:[#allocation2 + $0x1b0] sm:$0xff] }
 0x614   :  { %14146 = vmatprep.mubr.msk.bf16.mxu1 %vm4858_vm2, %v5800_v47  ;;  %v5646_v47 = vld [vmem:[#allocation2 + $0x1b8] sm:$0xff] }
 0x615   :  { %v5693_v7 = vpack.c.bf16 %v5646_v47, %v5645_v21  ;;  %v6586_v21 = vld [vmem:[#allocation2 + $0xa] sm:$0xff]  ;;  %v5675_v47 = vld [vmem:[#allocation2 + $0x318] sm:$0xff] }
 0x616   :  { %v6649_v62 = vpack.c.bf16 %v6586_v21, %v6585_v22  ;;  %v6606_v22 = vld [vmem:[#allocation2 + $0xfa] sm:$0xff]  ;;  %v19537_v21 = vpack.c.bf16 %v6604_v5, %v6603_v58  ;;  %v6620_v58 = vld [vmem:[#allocation2 + $0x1d2] sm:$0xff]  ;;  %v6621_v5 = vld [vmem:[#allocation2 + $0x1e2] sm:$0xff] }
 0x61b   :  { %14147 = vmatmul.mubr.msk.bf16.gmra.mrb[84].mxu1 %vm4858_vm2, %v5801_v60  ;;  %v5647_v60 = vld [vmem:[#allocation2 + $0x1c8] sm:$0xff] }
 0x61c   :  { %14150 = vmatprep.mubr.msk.bf16.mxu1 %vm4858_vm2, %v5802_v63  ;;  %v5648_v63 = vld [vmem:[#allocation2 + $0x1d0] sm:$0xff] }
 0x61d   :  { %v19435_v45 = vpack.c.bf16 %v5648_v63, %v5647_v60  ;;  %v6587_v60 = vld [vmem:[#allocation2 + $0x1a] sm:$0xff]  ;;  %v6588_v63 = vld [vmem:[#allocation2 + $0x22] sm:$0xff] }
 0x623   :  { %14151 = vmatmul.mubr.msk.bf16.gmra.mrb[88].mxu1 %vm4858_vm2, %v5803_v57  ;;  %v5651_v57 = vld [vmem:[#allocation2 + $0x1f8] sm:$0xff] }
 0x624   :  { %14154 = vmatprep.mubr.msk.bf16.mxu1 %vm4858_vm2, %v5804_v34  ;;  %v5652_v34 = vld [vmem:[#allocation2 + $0x200] sm:$0xff] }
 0x625   :  { %v19443_v3 = vpack.c.bf16 %v5652_v34, %v5651_v57  ;;  %v19496_v57 = vpack.c.bf16 %v6588_v63, %v6587_v60  ;;  %v7330_v34 = vsel %vm5904_vm3, %v19376_v44, 0  ;;  %v6609_v60 = vld [vmem:[#allocation2 + $0x122] sm:$0xff]  ;;  %v6610_v63 = vld [vmem:[#allocation2 + $0x12a] sm:$0xff] }
 0x626   :  { %v19547_v30 = vpack.c.bf16 %v6610_v63, %v6609_v60  ;;  %v6624_v60 = vld [vmem:[#allocation2 + $0x202] sm:$0xff]  ;;  %v6625_v63 = vld [vmem:[#allocation2 + $0x212] sm:$0xff] }
 0x62b   :  { %14155 = vmatmul.mubr.msk.bf16.gmra.mrb[92].mxu1 %vm4858_vm2, %v5805_v14  ;;  %v5656_v14 = vld [vmem:[#allocation2 + $0x230] sm:$0xff] }
 0x62c   :  { %14160 = vmatprep.mubr.msk.bf16.mxu1 %vm4858_vm2, %v5677_v48  ;;  %v5655_v48 = vld [vmem:[#allocation2 + $0x228] sm:$0xff] }
 0x62d   :  { %v19451_v43 = vpack.c.bf16 %v5656_v14, %v5655_v48  ;;  %v6591_v48 = vld [vmem:[#allocation2 + $0x4a] sm:$0xff]  ;;  %v6592_v14 = vld [vmem:[#allocation2 + $0x52] sm:$0xff] }
 0x62e   :  { %v19513_v53 = vpack.c.bf16 %v6592_v14, %v6591_v48  ;;  %v6612_v48 = vld [vmem:[#allocation2 + $0x142] sm:$0xff]  ;;  %v6613_v14 = vld [vmem:[#allocation2 + $0x152] sm:$0xff] }
 0x633   :  { %14161 = vmatmul.mubr.msk.bf16.vlgmr.msra.gmra.mrb[32].mxu1 %vm4858_vm2, %v19365_v9 }
 0x634   :  { %14164 = vmatprep.mubr.msk.bf16.mxu1 %vm4858_vm2, %v19369_v2  ;;  %14225 = vmatpush3.bf16.msra.mxu1 %v6780_v12  ;;  %v5659_v12 = vld [vmem:[#allocation2 + $0x258] sm:$0xff] }
 0x635   :  { %15791 = vmatprep.subr.msk.bf16.mxu1 %vm5904_vm3, %v19376_v44  ;;  %v19459_v13 = vpack.c.bf16 %v5660_v11, %v5659_v12  ;;  %v6593_v44 = vld [vmem:[#allocation2 + $0x62] sm:$0xff]  ;;  %v6595_v11 = vld [vmem:[#allocation2 + $0x7a] sm:$0xff] }
 0x636   :  { %v19515_v12 = vpack.c.bf16 %v6594_v38, %v6593_v44  ;;  %v19521_v59 = vpack.c.bf16 %v6596_v55, %v6595_v11  ;;  %v6614_v44 = vld [vmem:[#allocation2 + $0x15a] sm:$0xff]  ;;  %v6617_v55 = vld [vmem:[#allocation2 + $0x1b2] sm:$0xff] }
 0x637   :  { %v19555_v11 = vpack.c.bf16 %v6614_v44, %v6613_v14  ;;  %v6665_v32 = vpack.c.bf16 %v6618_v35, %v6617_v55  ;;  %v6627_v44 = vld [vmem:[#allocation2 + $0x22a] sm:$0xff]  ;;  %v6628_v55 = vld [vmem:[#allocation2 + $0x232] sm:$0xff]  ;;  %v6629_v35 = vld [vmem:[#allocation2 + $0x242] sm:$0xff] }
 0x638   :  { %v19582_v39 = vpack.c.bf16 %v6628_v55, %v6627_v44  ;;  %v6637_v44 = vld [vmem:[#allocation2 + $0x2a2] sm:$0xff]  ;;  %v6638_v55 = vld [vmem:[#allocation2 + $0x2aa] sm:$0xff] }
 0x63b   :  { %14165 = vmatmul.mubr.msk.bf16.gmra.mrb[36].mxu1 %vm4858_vm2, %v19382_v23 }
 0x63c   :  { %14168 = vmatprep.mubr.msk.bf16.mxu1 %vm4858_vm2, %v19384_v37 }
 0x643   :  { %14169 = vmatmul.mubr.msk.bf16.gmra.mrb[40].mxu1 %vm4858_vm2, %v19390_v27 }
 0x644   :  { %14172 = vmatprep.mubr.msk.bf16.mxu1 %vm4858_vm2, %v19392_v41 }
 0x64b   :  { %14173 = vmatmul.mubr.msk.bf16.gmra.mrb[44].mxu1 %vm4858_vm2, %v19398_v61 }
 0x64c   :  { %14176 = vmatprep.mubr.msk.bf16.mxu1 %vm4858_vm2, %v19400_v18 }
 0x653   :  { %14177 = vmatmul.mubr.msk.bf16.gmra.mrb[48].mxu1 %vm4858_vm2, %v19406_v6 }
 0x654   :  { %14180 = vmatprep.mubr.msk.bf16.mxu1 %vm4858_vm2, %v19408_v19 }
 0x65b   :  { %14181 = vmatmul.mubr.msk.bf16.gmra.mrb[52].mxu1 %vm4858_vm2, %v19414_v49 }
 0x65c   :  { %14184 = vmatprep.mubr.msk.bf16.mxu1 %vm4858_vm2, %v19416_v26 }
 0x663   :  { %14185 = vmatmul.mubr.msk.bf16.gmra.mrb[56].mxu1 %vm4858_vm2, %v19422_v4 }
 0x664   :  { %14188 = vmatprep.mubr.msk.bf16.mxu1 %vm4858_vm2, %v19424_v17 }
 0x66b   :  { %14189 = vmatmul.mubr.msk.bf16.gmra.mrb[60].mxu1 %vm4858_vm2, %v19430_v33 }
 0x66c   :  { %14192 = vmatprep.mubr.msk.bf16.mxu1 %vm4858_vm2, %v5693_v7  ;;  %v19491_v7 = vpack.c.bf16 %v5676_v20, %v5675_v47  ;;  %v19539_v47 = vpack.c.bf16 %v6606_v22, %v6605_v56  ;;  %v6607_v20 = vld [vmem:[#allocation2 + $0x10a] sm:$0xff]  ;;  %v19566_v22 = vpack.c.bf16 %v6620_v58, %v6619_v54  ;;  %v6631_v54 = vld [vmem:[#allocation2 + $0x25a] sm:$0xff]  ;;  %v6632_v58 = vld [vmem:[#allocation2 + $0x262] sm:$0xff] }
 0x66d   :  { %v6622_v56 = vld [vmem:[#allocation2 + $0x1ea] sm:$0xff] }
 0x673   :  { %14193 = vmatmul.mubr.msk.bf16.gmra.mrb[64].mxu1 %vm4858_vm2, %v19435_v45 }
 0x674   :  { %14196 = vmatprep.mubr.msk.bf16.mxu1 %vm4858_vm2, %v19437_v40 }
 0x67b   :  { %14197 = vmatmul.mubr.msk.bf16.gmra.mrb[68].mxu1 %vm4858_vm2, %v19443_v3 }
 0x67c   :  { %14200 = vmatprep.mubr.msk.bf16.mxu1 %vm4858_vm2, %v19445_v36 }
 0x683   :  { %14201 = vmatmul.mubr.msk.bf16.gmra.mrb[72].mxu1 %vm4858_vm2, %v19451_v43 }
 0x684   :  { %14204 = vmatprep.mubr.msk.bf16.mxu1 %vm4858_vm2, %v19453_v46 }
 0x68b   :  { %14205 = vmatmul.mubr.msk.bf16.gmra.mrb[76].mxu1 %vm4858_vm2, %v19459_v13 }
 0x68c   :  { %14208 = vmatprep.mubr.msk.bf16.mxu1 %vm4858_vm2, %v19461_v50 }
 0x693   :  { %14209 = vmatmul.mubr.msk.bf16.gmra.mrb[80].mxu1 %vm4858_vm2, %v19467_v16 }
 0x694   :  { %14212 = vmatprep.mubr.msk.bf16.mxu1 %vm4858_vm2, %v19469_v28 }
 0x69b   :  { %14213 = vmatmul.mubr.msk.bf16.gmra.mrb[84].mxu1 %vm4858_vm2, %v19475_v25 }
 0x69c   :  { %14216 = vmatprep.mubr.msk.bf16.mxu1 %vm4858_vm2, %v19477_v31 }
 0x6a3   :  { %14217 = vmatmul.mubr.msk.bf16.gmra.mrb[88].mxu1 %vm4858_vm2, %v19483_v42 }
 0x6a4   :  { %14220 = vmatprep.mubr.msk.bf16.mxu1 %vm4858_vm2, %v19485_v1 }
 0x6ab   :  { %14221 = vmatmul.mubr.msk.bf16.gmra.mrb[92].mxu1 %vm4858_vm2, %v19491_v7 }
 0x6ac   :  { %14226 = vmatprep.mubr.msk.bf16.mxu1 %vm4858_vm2, %v6649_v62  ;;  %v6608_v62 = vld [vmem:[#allocation2 + $0x112] sm:$0xff] }
 0x6ad   :  { %v19545_v15 = vpack.c.bf16 %v6608_v62, %v6607_v20  ;;  %v19568_v20 = vpack.c.bf16 %v6622_v56, %v6621_v5  ;;  %v6623_v62 = vld [vmem:[#allocation2 + $0x1fa] sm:$0xff]  ;;  %v6633_v5 = vld [vmem:[#allocation2 + $0x272] sm:$0xff] }
 0x6ae   :  { %v6634_v56 = vld [vmem:[#allocation2 + $0x27a] sm:$0xff] }
 0x6b3   :  { %14227 = vmatmul.mubr.msk.bf16.vlgmr.msra.gmra.mrb[32].mxu1 %vm4858_vm2, %v19496_v57 }
 0x6b4   :  { %14230 = vmatprep.mubr.msk.bf16.mxu1 %vm4858_vm2, %v19500_v29  ;;  %14291 = vmatpush3.bf16.msra.mxu1 %v7330_v34  ;;  %v6611_v34 = vld [vmem:[#allocation2 + $0x13a] sm:$0xff] }
 0x6b5   :  { %15792 = vmatprep.subr.msk.bf16.mxu1 %vm5904_vm3, %v19507_v8  ;;  %v19553_v38 = vpack.c.bf16 %v6612_v48, %v6611_v34  ;;  %v6626_v34 = vld [vmem:[#allocation2 + $0x21a] sm:$0xff]  ;;  %v19574_v48 = vpack.c.bf16 %v6624_v60, %v6623_v62  ;;  %v19590_v62 = vpack.c.bf16 %v6632_v58, %v6631_v54  ;;  %v19592_v60 = vpack.c.bf16 %v6634_v56, %v6633_v5  ;;  %v6640_v58 = vld [vmem:[#allocation2 + $0x2c2] sm:$0xff]  ;;  %v6641_v5 = vld [vmem:[#allocation2 + $0x2d2] sm:$0xff] }
 0x6b6   :  { %v19576_v14 = vpack.c.bf16 %v6626_v34, %v6625_v63  ;;  %v6635_v63 = vld [vmem:[#allocation2 + $0x28a] sm:$0xff]  ;;  %v6636_v34 = vld [vmem:[#allocation2 + $0x292] sm:$0xff]  ;;  %v6639_v54 = vld [vmem:[#allocation2 + $0x2ba] sm:$0xff] }
 0x6b7   :  { %22480 = vst [vmem:[#allocation34_spill] sm:$0xff] %v19590_v62  ;;  %22481 = vst [vmem:[#allocation11_spill] sm:$0xff] %v19592_v60  ;;  %v6642_v56 = vld [vmem:[#allocation2 + $0x2da] sm:$0xff] }
 0x6bb   :  { %14231 = vmatmul.mubr.msk.bf16.gmra.mrb[36].mxu1 %vm4858_vm2, %v19513_v53 }
 0x6bc   :  { %14234 = vmatprep.mubr.msk.bf16.mxu1 %vm4858_vm2, %v19515_v12 }
 0x6c3   :  { %14235 = vmatmul.mubr.msk.bf16.gmra.mrb[40].mxu1 %vm4858_vm2, %v19521_v59 }
 0x6c4   :  { %14238 = vmatprep.mubr.msk.bf16.mxu1 %vm4858_vm2, %v19523_v51 }
 0x6cb   :  { %14239 = vmatmul.mubr.msk.bf16.gmra.mrb[44].mxu1 %vm4858_vm2, %v19529_v10 }
 0x6cc   :  { %14242 = vmatprep.mubr.msk.bf16.mxu1 %vm4858_vm2, %v19531_v0 }
 0x6d3   :  { %14243 = vmatmul.mubr.msk.bf16.gmra.mrb[48].mxu1 %vm4858_vm2, %v19537_v21 }
 0x6d4   :  { %14246 = vmatprep.mubr.msk.bf16.mxu1 %vm4858_vm2, %v19539_v47 }
 0x6db   :  { %14247 = vmatmul.mubr.msk.bf16.gmra.mrb[52].mxu1 %vm4858_vm2, %v19545_v15 }
 0x6dc   :  { %14250 = vmatprep.mubr.msk.bf16.mxu1 %vm4858_vm2, %v19547_v30 }
 0x6e3   :  { %14251 = vmatmul.mubr.msk.bf16.gmra.mrb[56].mxu1 %vm4858_vm2, %v19553_v38 }
 0x6e4   :  { %14254 = vmatprep.mubr.msk.bf16.mxu1 %vm4858_vm2, %v19555_v11 }
 0x6eb   :  { %14255 = vmatmul.mubr.msk.bf16.gmra.mrb[60].mxu1 %vm4858_vm2, %v19561_v24 }
 0x6ec   :  { %14258 = vmatprep.mubr.msk.bf16.mxu1 %vm4858_vm2, %v6665_v32  ;;  %v19584_v32 = vpack.c.bf16 %v6630_v52, %v6629_v35  ;;  %v19598_v35 = vpack.c.bf16 %v6636_v34, %v6635_v63  ;;  %v19600_v52 = vpack.c.bf16 %v6638_v55, %v6637_v44  ;;  %v6643_v63 = vld [vmem:[#allocation2 + $0x2ea] sm:$0xff]  ;;  %v6644_v34 = vld [vmem:[#allocation2 + $0x2f2] sm:$0xff]  ;;  %v6645_v44 = vld [vmem:[#allocation2 + $0x302] sm:$0xff] }
 0x6ed   :  { %v6646_v55 = vld [vmem:[#allocation2 + $0x30a] sm:$0xff] }
 0x6ee   :  { %22482 = vst [vmem:[#allocation13_spill] sm:$0xff] %v19598_v35  ;;  %22483 = vst [vmem:[#allocation16_spill] sm:$0xff] %v19600_v52 }
 0x6f3   :  { %14259 = vmatmul.mubr.msk.bf16.gmra.mrb[64].mxu1 %vm4858_vm2, %v19566_v22 }
 0x6f4   :  { %14262 = vmatprep.mubr.msk.bf16.mxu1 %vm4858_vm2, %v19568_v20 }
 0x6fb   :  { %14263 = vmatmul.mubr.msk.bf16.gmra.mrb[68].mxu1 %vm4858_vm2, %v19574_v48 }
 0x6fc   :  { %14266 = vmatprep.mubr.msk.bf16.mxu1 %vm4858_vm2, %v19576_v14 }
 0x703   :  { %14267 = vmatmul.mubr.msk.bf16.gmra.mrb[72].mxu1 %vm4858_vm2, %v19582_v39 }
 0x704   :  { %14270 = vmatprep.mubr.msk.bf16.mxu1 %vm4858_vm2, %v19584_v32 }
 0x70b   :  { %14271 = vmatmul.mubr.msk.bf16.gmra.mrb[76].mxu1 %vm4858_vm2, %v19590_v62  ;;  %v19606_v62 = vpack.c.bf16 %v6640_v58, %v6639_v54  ;;  %v6647_v54 = vld [vmem:[#allocation2 + $0x31a] sm:$0xff]  ;;  %v6648_v58 = vld [vmem:[#allocation2 + $0x322] sm:$0xff] }
 0x70c   :  { %14274 = vmatprep.mubr.msk.bf16.mxu1 %vm4858_vm2, %v19592_v60  ;;  %v19608_v60 = vpack.c.bf16 %v6642_v56, %v6641_v5  ;;  %v19622_v5 = vpack.c.bf16 %v6648_v58, %v6647_v54  ;;  %v7880_v56 = vsel %vm5904_vm3, %v19507_v8, 0  ;;  %v7700_v8 = vld [vmem:[#allocation2 + $0xc9] sm:$0xff]  ;;  %v7703_v58 = vld [vmem:[#allocation2 + $0xf1] sm:$0xff] }
 0x713   :  { %14275 = vmatmul.mubr.msk.bf16.gmra.mrb[80].mxu1 %vm4858_vm2, %v19598_v35  ;;  %v19614_v35 = vpack.c.bf16 %v6644_v34, %v6643_v63  ;;  %v12642_v63 = vld [vmem:[%s22110_s4 + $0x14] sm:$0xf]  ;;  %v7701_v34 = vld [vmem:[#allocation2 + $0xd9] sm:$0xff] }
 0x714   :  { %14278 = vmatprep.mubr.msk.bf16.mxu1 %vm4858_vm2, %v19600_v52  ;;  %v19616_v52 = vpack.c.bf16 %v6646_v55, %v6645_v44  ;;  %v7702_v44 = vld [vmem:[#allocation2 + $0xe1] sm:$0xff] }
 0x715   :  { %v19735_v54 = vpack.c.bf16 %v7702_v44, %v7701_v34  ;;  %v7720_v34 = vld [vmem:[#allocation2 + $0x1e9] sm:$0xff]  ;;  %v7721_v44 = vld [vmem:[#allocation2 + $0x1f9] sm:$0xff] }
 0x71b   :  { %14279 = vmatmul.mubr.msk.bf16.gmra.mrb[84].mxu1 %vm4858_vm2, %v19606_v62 }
 0x71c   :  { %14282 = vmatprep.mubr.msk.bf16.mxu1 %vm4858_vm2, %v19608_v60 }
 0x723   :  { %14283 = vmatmul.mubr.msk.bf16.gmra.mrb[88].mxu1 %vm4858_vm2, %v19614_v35 }
 0x724   :  { %14286 = vmatprep.mubr.msk.bf16.mxu1 %vm4858_vm2, %v19616_v52 }
 0x72b   :  { %14287 = vmatmul.mubr.msk.bf16.gmra.mrb[92].mxu1 %vm4858_vm2, %v19622_v5 }
 0x72c   :  { %14292 = vmatprep.mubr.msk.bf16.mxu1 %vm4858_vm2, %v19365_v9  ;;  %v7165_v9 = vld [vmem:[#allocation2 + $0x180] sm:$0xff] }
 0x733   :  { %14293 = vmatmul.mubr.msk.bf16.vlgmr.msra.gmra.mrb[32].mxu1 %vm4858_vm2, %v19369_v2  ;;  %v7166_v2 = vld [vmem:[#allocation2 + $0x188] sm:$0xff] }
 0x734   :  { %14296 = vmatprep.mubr.msk.bf16.mxu1 %vm4858_vm2, %v19382_v23  ;;  %14357 = vmatpush3.bf16.msra.mxu1 %v7880_v56  ;;  %v19662_v23 = vpack.c.bf16 %v7166_v2, %v7165_v9  ;;  %v7704_v56 = vld [vmem:[#allocation2 + $0xf9] sm:$0xff]  ;;  %v7706_v9 = vld [vmem:[#allocation2 + $0x111] sm:$0xff] }
 0x735   :  { %15793 = vmatprep.subr.msk.bf16.mxu1 %vm5904_vm3, %v12642_v63  ;;  %v19741_v2 = vpack.c.bf16 %v7704_v56, %v7703_v58  ;;  %v7722_v58 = vld [vmem:[#allocation2 + $0x201] sm:$0xff] }
 0x73b   :  { %14297 = vmatmul.mubr.msk.bf16.gmra.mrb[36].mxu1 %vm4858_vm2, %v19384_v37  ;;  %v7197_v37 = vld [vmem:[#allocation2 + $0x330] sm:$0xff] }
 0x73c   :  { %14300 = vmatprep.mubr.msk.bf16.mxu1 %vm4858_vm2, %v19390_v27  ;;  %v7198_v27 = vld [vmem:[#allocation2 + $0x338] sm:$0xff] }
 0x743   :  { %14301 = vmatmul.mubr.msk.bf16.gmra.mrb[40].mxu1 %vm4858_vm2, %v19392_v41  ;;  %v7685_v41 = vld [vmem:[#allocation2 + $0x19] sm:$0xff] }
 0x744   :  { %14304 = vmatprep.mubr.msk.bf16.mxu1 %vm4858_vm2, %v19398_v61  ;;  %v7686_v61 = vld [vmem:[#allocation2 + $0x21] sm:$0xff] }
 0x74b   :  { %14305 = vmatmul.mubr.msk.bf16.gmra.mrb[44].mxu1 %vm4858_vm2, %v19400_v18  ;;  %v19696_v18 = vpack.c.bf16 %v7198_v27, %v7197_v37  ;;  %v7707_v27 = vld [vmem:[#allocation2 + $0x121] sm:$0xff] }
 0x74c   :  { %14308 = vmatprep.mubr.msk.bf16.mxu1 %vm4858_vm2, %v19406_v6  ;;  %v7749_v6 = vpack.c.bf16 %v7686_v61, %v7685_v41  ;;  %v7708_v41 = vld [vmem:[#allocation2 + $0x129] sm:$0xff]  ;;  %v7709_v61 = vld [vmem:[#allocation2 + $0x139] sm:$0xff] }
 0x753   :  { %14309 = vmatmul.mubr.msk.bf16.gmra.mrb[48].mxu1 %vm4858_vm2, %v19408_v19  ;;  %v7687_v19 = vld [vmem:[#allocation2 + $0x31] sm:$0xff] }
 0x754   :  { %14312 = vmatprep.mubr.msk.bf16.mxu1 %vm4858_vm2, %v19414_v49  ;;  %v7688_v49 = vld [vmem:[#allocation2 + $0x39] sm:$0xff] }
 0x75b   :  { %14313 = vmatmul.mubr.msk.bf16.gmra.mrb[52].mxu1 %vm4858_vm2, %v19416_v26  ;;  %v7689_v26 = vld [vmem:[#allocation2 + $0x49] sm:$0xff] }
 0x75c   :  { %14316 = vmatprep.mubr.msk.bf16.mxu1 %vm4858_vm2, %v19422_v4  ;;  %v7690_v4 = vld [vmem:[#allocation2 + $0x51] sm:$0xff] }
 0x763   :  { %14317 = vmatmul.mubr.msk.bf16.gmra.mrb[56].mxu1 %vm4858_vm2, %v19424_v17  ;;  %v19701_v17 = vpack.c.bf16 %v7688_v49, %v7687_v19  ;;  %v19749_v19 = vpack.c.bf16 %v7708_v41, %v7707_v27  ;;  %v7724_v27 = vld [vmem:[#allocation2 + $0x219] sm:$0xff]  ;;  %v7725_v41 = vld [vmem:[#allocation2 + $0x229] sm:$0xff] }
 0x764   :  { %14320 = vmatprep.mubr.msk.bf16.mxu1 %vm4858_vm2, %v19430_v33  ;;  %v8430_v33 = vsel %vm5904_vm3, %v12642_v63, 0  ;;  %v7705_v63 = vld [vmem:[#allocation2 + $0x109] sm:$0xff] }
 0x765   :  { %v19743_v37 = vpack.c.bf16 %v7706_v9, %v7705_v63  ;;  %v19772_v63 = vpack.c.bf16 %v7722_v58, %v7721_v44  ;;  %v7723_v9 = vld [vmem:[#allocation2 + $0x211] sm:$0xff] }
 0x76b   :  { %14321 = vmatmul.mubr.msk.bf16.gmra.mrb[60].mxu1 %vm4858_vm2, %v19662_v23 }
 0x76c   :  { %14324 = vmatprep.mubr.msk.bf16.mxu1 %vm4858_vm2, %v19435_v45  ;;  %v19704_v45 = vpack.c.bf16 %v7690_v4, %v7689_v26  ;;  %v7711_v26 = vld [vmem:[#allocation2 + $0x151] sm:$0xff]  ;;  %v7712_v4 = vld [vmem:[#allocation2 + $0x159] sm:$0xff] }
 0x773   :  { %14325 = vmatmul.mubr.msk.bf16.gmra.mrb[64].mxu1 %vm4858_vm2, %v19437_v40  ;;  %v19711_v40 = vld [vmem:[%s22110_s4 + $0x18] sm:$0xf] }
 0x774   :  { %14328 = vmatprep.mubr.msk.bf16.mxu1 %vm4858_vm2, %v19443_v3  ;;  %v7691_v3 = vld [vmem:[#allocation2 + $0x61] sm:$0xff] }
 0x77b   :  { %14329 = vmatmul.mubr.msk.bf16.gmra.mrb[68].mxu1 %vm4858_vm2, %v19445_v36  ;;  %v7692_v36 = vld [vmem:[#allocation2 + $0x69] sm:$0xff] }
 0x77c   :  { %14332 = vmatprep.mubr.msk.bf16.mxu1 %vm4858_vm2, %v19451_v43  ;;  %v7693_v43 = vld [vmem:[#allocation2 + $0x79] sm:$0xff] }
 0x783   :  { %14333 = vmatmul.mubr.msk.bf16.gmra.mrb[72].mxu1 %vm4858_vm2, %v19453_v46  ;;  %v7694_v46 = vld [vmem:[#allocation2 + $0x81] sm:$0xff] }
 0x784   :  { %14336 = vmatprep.mubr.msk.bf16.mxu1 %vm4858_vm2, %v19459_v13  ;;  %v19717_v13 = vpack.c.bf16 %v7692_v36, %v7691_v3  ;;  %v7714_v3 = vld [vmem:[#allocation2 + $0x171] sm:$0xff]  ;;  %v19757_v36 = vpack.c.bf16 %v7712_v4, %v7711_v26  ;;  %v7727_v4 = vld [vmem:[#allocation2 + $0x241] sm:$0xff] }
 0x78b   :  { %14337 = vmatmul.mubr.msk.bf16.gmra.mrb[76].mxu1 %vm4858_vm2, %v19461_v50  ;;  %v19719_v50 = vpack.c.bf16 %v7694_v46, %v7693_v43  ;;  %v7715_v46 = vld [vmem:[#allocation2 + $0x181] sm:$0xff] }
 0x78c   :  { %14340 = vmatprep.mubr.msk.bf16.mxu1 %vm4858_vm2, %v19467_v16  ;;  %v7695_v16 = vld [vmem:[#allocation2 + $0x91] sm:$0xff] }
 0x793   :  { %14341 = vmatmul.mubr.msk.bf16.gmra.mrb[80].mxu1 %vm4858_vm2, %v19469_v28  ;;  %v7696_v28 = vld [vmem:[#allocation2 + $0x99] sm:$0xff] }
 0x794   :  { %14344 = vmatprep.mubr.msk.bf16.mxu1 %vm4858_vm2, %v19475_v25  ;;  %v7697_v25 = vld [vmem:[#allocation2 + $0xa9] sm:$0xff] }
 0x79b   :  { %14345 = vmatmul.mubr.msk.bf16.gmra.mrb[84].mxu1 %vm4858_vm2, %v19477_v31  ;;  %v7698_v31 = vld [vmem:[#allocation2 + $0xb1] sm:$0xff] }
 0x79c   :  { %14348 = vmatprep.mubr.msk.bf16.mxu1 %vm4858_vm2, %v19483_v42  ;;  %v19725_v42 = vpack.c.bf16 %v7696_v28, %v7695_v16  ;;  %v7716_v16 = vld [vmem:[#allocation2 + $0x189] sm:$0xff] }
 0x79d   :  { %v7717_v28 = vld [vmem:[#allocation2 + $0x1c9] sm:$0xff] }
 0x7a3   :  { %14349 = vmatmul.mubr.msk.bf16.gmra.mrb[88].mxu1 %vm4858_vm2, %v19485_v1  ;;  %v19727_v1 = vpack.c.bf16 %v7698_v31, %v7697_v25  ;;  %v7718_v25 = vld [vmem:[#allocation2 + $0x1d1] sm:$0xff]  ;;  %v19765_v31 = vpack.c.bf16 %v7716_v16, %v7715_v46  ;;  %v7730_v46 = vld [vmem:[#allocation2 + $0x261] sm:$0xff] }
 0x7a4   :  { %14352 = vmatprep.mubr.msk.bf16.mxu1 %vm4858_vm2, %v19491_v7  ;;  %v7699_v7 = vld [vmem:[#allocation2 + $0xc1] sm:$0xff] }
 0x7a5   :  { %v19733_v55 = vpack.c.bf16 %v7700_v8, %v7699_v7  ;;  %v7765_v7 = vpack.c.bf16 %v7718_v25, %v7717_v28  ;;  %v7719_v8 = vld [vmem:[#allocation2 + $0x1e1] sm:$0xff]  ;;  %v7731_v25 = vld [vmem:[#allocation2 + $0x271] sm:$0xff] }
 0x7a6   :  { %v19770_v56 = vpack.c.bf16 %v7720_v34, %v7719_v8  ;;  %v7733_v8 = vld [vmem:[#allocation2 + $0x289] sm:$0xff]  ;;  %v7734_v34 = vld [vmem:[#allocation2 + $0x291] sm:$0xff] }
 0x7a7   :  { %v19796_v58 = vpack.c.bf16 %v7734_v34, %v7733_v8 }
 0x7ab   :  { %14353 = vmatmul.mubr.msk.bf16.gmra.mrb[92].mxu1 %vm4858_vm2, %v19696_v18 }
 0x7ac   :  { %14358 = vmatprep.mubr.msk.bf16.mxu1 %vm4858_vm2, %v7749_v6  ;;  %v7710_v6 = vld [vmem:[#allocation2 + $0x141] sm:$0xff] }
 0x7ad   :  { %v19751_v49 = vpack.c.bf16 %v7710_v6, %v7709_v61  ;;  %v7726_v61 = vld [vmem:[#allocation2 + $0x231] sm:$0xff]  ;;  %v19778_v6 = vpack.c.bf16 %v7724_v27, %v7723_v9  ;;  %v7735_v9 = vld [vmem:[#allocation2 + $0x2a1] sm:$0xff]  ;;  %v7736_v27 = vld [vmem:[#allocation2 + $0x2a9] sm:$0xff] }
 0x7ae   :  { %v19780_v26 = vpack.c.bf16 %v7726_v61, %v7725_v41  ;;  %v7737_v41 = vld [vmem:[#allocation2 + $0x2b9] sm:$0xff]  ;;  %v7738_v61 = vld [vmem:[#allocation2 + $0x2c1] sm:$0xff] }
 0x7b3   :  { %14359 = vmatmul.mubr.msk.bf16.vlgmr.msra.gmra.mrb[32].mxu1 %vm4858_vm2, %v19701_v17 }
 0x7b4   :  { %14362 = vmatprep.mubr.msk.bf16.mxu1 %vm4858_vm2, %v19704_v45  ;;  %14423 = vmatpush3.bf16.msra.mxu1 %v8430_v33  ;;  %v7713_v33 = vld [vmem:[#allocation2 + $0x169] sm:$0xff] }
 0x7b5   :  { %15794 = vmatprep.subr.msk.bf16.mxu1 %vm5904_vm3, %v19711_v40  ;;  %v19759_v43 = vpack.c.bf16 %v7714_v3, %v7713_v33  ;;  %v7728_v33 = vld [vmem:[#allocation2 + $0x249] sm:$0xff]  ;;  %v7729_v3 = vld [vmem:[#allocation2 + $0x259] sm:$0xff] }
 0x7b6   :  { %v19786_v16 = vpack.c.bf16 %v7728_v33, %v7727_v4  ;;  %v19788_v28 = vpack.c.bf16 %v7730_v46, %v7729_v3  ;;  %v19802_v4 = vpack.c.bf16 %v7736_v27, %v7735_v9  ;;  %v19804_v33 = vpack.c.bf16 %v7738_v61, %v7737_v41  ;;  %v7739_v3 = vld [vmem:[#allocation2 + $0x2d1] sm:$0xff]  ;;  %v7740_v46 = vld [vmem:[#allocation2 + $0x2d9] sm:$0xff]  ;;  %v7743_v9 = vld [vmem:[#allocation2 + $0x301] sm:$0xff] }
 0x7b7   :  { %v19810_v8 = vpack.c.bf16 %v7740_v46, %v7739_v3  ;;  %v7744_v27 = vld [vmem:[#allocation2 + $0x309] sm:$0xff]  ;;  %v7745_v41 = vld [vmem:[#allocation2 + $0x319] sm:$0xff]  ;;  %v7746_v61 = vld [vmem:[#allocation2 + $0x321] sm:$0xff] }
 0x7b8   :  { %22484 = vst [vmem:[#allocation18_spill] sm:$0xff] %v19802_v4  ;;  %22485 = vst [vmem:[#allocation15_spill] sm:$0xff] %v19804_v33  ;;  %v7747_v3 = vld [vmem:[#allocation2 + $0x331] sm:$0xff]  ;;  %v7748_v46 = vld [vmem:[#allocation2 + $0x339] sm:$0xff] }
 0x7bb   :  { %14363 = vmatmul.mubr.msk.bf16.gmra.mrb[36].mxu1 %vm4858_vm2, %v19717_v13 }
 0x7bc   :  { %14366 = vmatprep.mubr.msk.bf16.mxu1 %vm4858_vm2, %v19719_v50 }
 0x7c3   :  { %14367 = vmatmul.mubr.msk.bf16.gmra.mrb[40].mxu1 %vm4858_vm2, %v19725_v42 }
 0x7c4   :  { %14370 = vmatprep.mubr.msk.bf16.mxu1 %vm4858_vm2, %v19727_v1 }
 0x7cb   :  { %14371 = vmatmul.mubr.msk.bf16.gmra.mrb[44].mxu1 %vm4858_vm2, %v19733_v55 }
 0x7cc   :  { %14374 = vmatprep.mubr.msk.bf16.mxu1 %vm4858_vm2, %v19735_v54 }
 0x7d3   :  { %14375 = vmatmul.mubr.msk.bf16.gmra.mrb[48].mxu1 %vm4858_vm2, %v19741_v2 }
 0x7d4   :  { %14378 = vmatprep.mubr.msk.bf16.mxu1 %vm4858_vm2, %v19743_v37 }
 0x7db   :  { %14379 = vmatmul.mubr.msk.bf16.gmra.mrb[52].mxu1 %vm4858_vm2, %v19749_v19 }
 0x7dc   :  { %14382 = vmatprep.mubr.msk.bf16.mxu1 %vm4858_vm2, %v19751_v49 }
 0x7e3   :  { %14383 = vmatmul.mubr.msk.bf16.gmra.mrb[56].mxu1 %vm4858_vm2, %v19757_v36 }
 0x7e4   :  { %14386 = vmatprep.mubr.msk.bf16.mxu1 %vm4858_vm2, %v19759_v43 }
 0x7eb   :  { %14387 = vmatmul.mubr.msk.bf16.gmra.mrb[60].mxu1 %vm4858_vm2, %v19765_v31 }
 0x7ec   :  { %14390 = vmatprep.mubr.msk.bf16.mxu1 %vm4858_vm2, %v7765_v7  ;;  %v7732_v7 = vld [vmem:[#allocation2 + $0x279] sm:$0xff] }
 0x7ed   :  { %v19794_v44 = vpack.c.bf16 %v7732_v7, %v7731_v25  ;;  %v7741_v25 = vld [vmem:[#allocation2 + $0x2e9] sm:$0xff]  ;;  %v7742_v7 = vld [vmem:[#allocation2 + $0x2f1] sm:$0xff] }
 0x7ee   :  { %v19812_v34 = vpack.c.bf16 %v7742_v7, %v7741_v25  ;;  %v19826_v25 = vpack.c.bf16 %v7748_v46, %v7747_v3  ;;  %v8981_v7 = vsel %vm5904_vm3, %v19711_v40, 0  ;;  %v8799_v3 = vld [vmem:[#allocation2 + $0xc8] sm:$0xff] }
 0x7f3   :  { %14391 = vmatmul.mubr.msk.bf16.gmra.mrb[64].mxu1 %vm4858_vm2, %v19770_v56 }
 0x7f4   :  { %14394 = vmatprep.mubr.msk.bf16.mxu1 %vm4858_vm2, %v19772_v63 }
 0x7fb   :  { %14395 = vmatmul.mubr.msk.bf16.gmra.mrb[68].mxu1 %vm4858_vm2, %v19778_v6 }
 0x7fc   :  { %14398 = vmatprep.mubr.msk.bf16.mxu1 %vm4858_vm2, %v19780_v26 }
 0x803   :  { %14399 = vmatmul.mubr.msk.bf16.gmra.mrb[72].mxu1 %vm4858_vm2, %v19786_v16 }
 0x804   :  { %14402 = vmatprep.mubr.msk.bf16.mxu1 %vm4858_vm2, %v19788_v28 }
 0x80b   :  { %14403 = vmatmul.mubr.msk.bf16.gmra.mrb[76].mxu1 %vm4858_vm2, %v19794_v44 }
 0x80c   :  { %14406 = vmatprep.mubr.msk.bf16.mxu1 %vm4858_vm2, %v19796_v58 }
 0x813   :  { %14407 = vmatmul.mubr.msk.bf16.gmra.mrb[80].mxu1 %vm4858_vm2, %v19802_v4  ;;  %v19818_v4 = vpack.c.bf16 %v7744_v27, %v7743_v9  ;;  %v12708_v9 = vld [vmem:[%s22110_s4 + $0x1c] sm:$0xf]  ;;  %v8796_v27 = vld [vmem:[#allocation2 + $0xa8] sm:$0xff] }
 0x814   :  { %14410 = vmatprep.mubr.msk.bf16.mxu1 %vm4858_vm2, %v19804_v33  ;;  %v19820_v33 = vpack.c.bf16 %v7746_v61, %v7745_v41  ;;  %v8797_v41 = vld [vmem:[#allocation2 + $0xb0] sm:$0xff]  ;;  %v8798_v61 = vld [vmem:[#allocation2 + $0xc0] sm:$0xff] }
 0x815   :  { %v8855_v46 = vpack.c.bf16 %v8797_v41, %v8796_v27  ;;  %v8818_v41 = vld [vmem:[#allocation2 + $0x1e0] sm:$0xff] }
 0x81b   :  { %14411 = vmatmul.mubr.msk.bf16.gmra.mrb[84].mxu1 %vm4858_vm2, %v19810_v8 }
 0x81c   :  { %14414 = vmatprep.mubr.msk.bf16.mxu1 %vm4858_vm2, %v19812_v34 }
 0x823   :  { %14415 = vmatmul.mubr.msk.bf16.gmra.mrb[88].mxu1 %vm4858_vm2, %v19818_v4 }
 0x824   :  { %14418 = vmatprep.mubr.msk.bf16.mxu1 %vm4858_vm2, %v19820_v33 }
 0x82b   :  { %14419 = vmatmul.mubr.msk.bf16.gmra.mrb[92].mxu1 %vm4858_vm2, %v19826_v25 }
 0x82c   :  { %14424 = vmatprep.mubr.msk.bf16.mxu1 %vm4858_vm2, %v19496_v57  ;;  %v8265_v57 = vld [vmem:[#allocation2 + $0x182] sm:$0xff] }
 0x833   :  { %14425 = vmatmul.mubr.msk.bf16.vlgmr.msra.gmra.mrb[32].mxu1 %vm4858_vm2, %v19500_v29  ;;  %v8266_v29 = vld [vmem:[#allocation2 + $0x18a] sm:$0xff] }
 0x834   :  { %14428 = vmatprep.mubr.msk.bf16.mxu1 %vm4858_vm2, %v19513_v53  ;;  %14489 = vmatpush3.bf16.msra.mxu1 %v8981_v7  ;;  %v19866_v53 = vpack.c.bf16 %v8266_v29, %v8265_v57  ;;  %v8856_v7 = vpack.c.bf16 %v8799_v3, %v8798_v61  ;;  %v8801_v57 = vld [vmem:[#allocation2 + $0xe0] sm:$0xff]  ;;  %v8802_v29 = vld [vmem:[#allocation2 + $0xf0] sm:$0xff]  ;;  %v8819_v61 = vld [vmem:[#allocation2 + $0x1e8] sm:$0xff] }
 0x835   :  { %15795 = vmatprep.subr.msk.bf16.mxu1 %vm5904_vm3, %v12708_v9  ;;  %v8866_v3 = vpack.c.bf16 %v8819_v61, %v8818_v41  ;;  %v8840_v61 = vld [vmem:[#allocation2 + $0x2e8] sm:$0xff] }
 0x83b   :  { %14429 = vmatmul.mubr.msk.bf16.gmra.mrb[36].mxu1 %vm4858_vm2, %v19515_v12  ;;  %v22486_v12 = vld [vmem:[#allocation34_spill] sm:$0xff] }
 0x83c   :  { %14432 = vmatprep.mubr.msk.bf16.mxu1 %vm4858_vm2, %v19521_v59  ;;  %v22487_v59 = vld [vmem:[#allocation11_spill] sm:$0xff] }
 0x843   :  { %14433 = vmatmul.mubr.msk.bf16.gmra.mrb[40].mxu1 %vm4858_vm2, %v19523_v51  ;;  %v22488_v51 = vld [vmem:[#allocation13_spill] sm:$0xff] }
 0x844   :  { %14436 = vmatprep.mubr.msk.bf16.mxu1 %vm4858_vm2, %v19529_v10  ;;  %v22489_v10 = vld [vmem:[#allocation16_spill] sm:$0xff] }
 0x84b   :  { %14437 = vmatmul.mubr.msk.bf16.gmra.mrb[44].mxu1 %vm4858_vm2, %v19531_v0  ;;  %v8297_v0 = vld [vmem:[#allocation2 + $0x332] sm:$0xff] }
 0x84c   :  { %14440 = vmatprep.mubr.msk.bf16.mxu1 %vm4858_vm2, %v19537_v21  ;;  %v8298_v21 = vld [vmem:[#allocation2 + $0x33a] sm:$0xff] }
 0x853   :  { %14441 = vmatmul.mubr.msk.bf16.gmra.mrb[48].mxu1 %vm4858_vm2, %v19539_v47  ;;  %v8786_v47 = vld [vmem:[#allocation2 + $0x30] sm:$0xff] }
 0x854   :  { %14444 = vmatprep.mubr.msk.bf16.mxu1 %vm4858_vm2, %v19545_v15  ;;  %v8787_v15 = vld [vmem:[#allocation2 + $0x38] sm:$0xff] }
 0x85b   :  { %14445 = vmatmul.mubr.msk.bf16.gmra.mrb[52].mxu1 %vm4858_vm2, %v19547_v30  ;;  %v19900_v30 = vpack.c.bf16 %v8298_v21, %v8297_v0  ;;  %v8805_v0 = vld [vmem:[#allocation2 + $0x110] sm:$0xff]  ;;  %v8806_v21 = vld [vmem:[#allocation2 + $0x120] sm:$0xff] }
 0x85c   :  { %14448 = vmatprep.mubr.msk.bf16.mxu1 %vm4858_vm2, %v19553_v38  ;;  %v8850_v38 = vpack.c.bf16 %v8787_v15, %v8786_v47  ;;  %v8807_v47 = vld [vmem:[#allocation2 + $0x128] sm:$0xff] }
 0x863   :  { %14449 = vmatmul.mubr.msk.bf16.gmra.mrb[56].mxu1 %vm4858_vm2, %v19555_v11  ;;  %v8788_v11 = vld [vmem:[#allocation2 + $0x48] sm:$0xff] }
 0x864   :  { %14452 = vmatprep.mubr.msk.bf16.mxu1 %vm4858_vm2, %v19561_v24  ;;  %v8789_v24 = vld [vmem:[#allocation2 + $0x50] sm:$0xff] }
 0x86b   :  { %14453 = vmatmul.mubr.msk.bf16.gmra.mrb[60].mxu1 %vm4858_vm2, %v19866_v53 }
 0x86c   :  { %14456 = vmatprep.mubr.msk.bf16.mxu1 %vm4858_vm2, %v19566_v22  ;;  %v8790_v22 = vld [vmem:[#allocation2 + $0x60] sm:$0xff] }
 0x873   :  { %14457 = vmatmul.mubr.msk.bf16.gmra.mrb[64].mxu1 %vm4858_vm2, %v19568_v20  ;;  %v8791_v20 = vld [vmem:[#allocation2 + $0x68] sm:$0xff] }
 0x874   :  { %14460 = vmatprep.mubr.msk.bf16.mxu1 %vm4858_vm2, %v19574_v48  ;;  %v8851_v48 = vpack.c.bf16 %v8789_v24, %v8788_v11  ;;  %v8808_v11 = vld [vmem:[#allocation2 + $0x138] sm:$0xff]  ;;  %v8809_v24 = vld [vmem:[#allocation2 + $0x140] sm:$0xff] }
 0x87b   :  { %14461 = vmatmul.mubr.msk.bf16.gmra.mrb[68].mxu1 %vm4858_vm2, %v19576_v14  ;;  %v9531_v14 = vsel %vm5904_vm3, %v12708_v9, 0  ;;  %v8800_v9 = vld [vmem:[#allocation2 + $0xd8] sm:$0xff] }
 0x87c   :  { %14464 = vmatprep.mubr.msk.bf16.mxu1 %vm4858_vm2, %v19582_v39  ;;  %v8852_v39 = vpack.c.bf16 %v8791_v20, %v8790_v22  ;;  %v8810_v22 = vld [vmem:[#allocation2 + $0x150] sm:$0xff]  ;;  %v8811_v20 = vld [vmem:[#allocation2 + $0x158] sm:$0xff] }
 0x883   :  { %14465 = vmatmul.mubr.msk.bf16.gmra.mrb[72].mxu1 %vm4858_vm2, %v19584_v32  ;;  %v19910_v32 = vld [vmem:[%s22110_s4 + $0x20] sm:$0xf] }
 0x884   :  { %14468 = vmatprep.mubr.msk.bf16.mxu1 %vm4858_vm2, %v22486_v12  ;;  %v8803_v12 = vld [vmem:[#allocation2 + $0xf8] sm:$0xff] }
 0x88b   :  { %14469 = vmatmul.mubr.msk.bf16.gmra.mrb[76].mxu1 %vm4858_vm2, %v22487_v59  ;;  %v8857_v59 = vpack.c.bf16 %v8801_v57, %v8800_v9  ;;  %v8823_v9 = vld [vmem:[#allocation2 + $0x218] sm:$0xff] }
 0x88c   :  { %14472 = vmatprep.mubr.msk.bf16.mxu1 %vm4858_vm2, %v22488_v51  ;;  %v8858_v51 = vpack.c.bf16 %v8803_v12, %v8802_v29  ;;  %v8824_v12 = vld [vmem:[#allocation2 + $0x228] sm:$0xff] }
 0x893   :  { %14473 = vmatmul.mubr.msk.bf16.gmra.mrb[80].mxu1 %vm4858_vm2, %v22489_v10  ;;  %v8804_v10 = vld [vmem:[#allocation2 + $0x108] sm:$0xff] }
 0x894   :  { %14476 = vmatprep.mubr.msk.bf16.mxu1 %vm4858_vm2, %v19606_v62  ;;  %v8792_v62 = vld [vmem:[#allocation2 + $0x78] sm:$0xff]  ;;  %v8859_v15 = vpack.c.bf16 %v8805_v0, %v8804_v10  ;;  %v8827_v10 = vld [vmem:[#allocation2 + $0x248] sm:$0xff] }
 0x89b   :  { %14477 = vmatmul.mubr.msk.bf16.gmra.mrb[84].mxu1 %vm4858_vm2, %v19608_v60  ;;  %v8793_v60 = vld [vmem:[#allocation2 + $0x80] sm:$0xff] }
 0x89c   :  { %14480 = vmatprep.mubr.msk.bf16.mxu1 %vm4858_vm2, %v19614_v35  ;;  %v8794_v35 = vld [vmem:[#allocation2 + $0x90] sm:$0xff] }
 0x8a3   :  { %14481 = vmatmul.mubr.msk.bf16.gmra.mrb[88].mxu1 %vm4858_vm2, %v19616_v52  ;;  %v8795_v52 = vld [vmem:[#allocation2 + $0x98] sm:$0xff] }
 0x8a4   :  { %14484 = vmatprep.mubr.msk.bf16.mxu1 %vm4858_vm2, %v19622_v5  ;;  %v8853_v5 = vpack.c.bf16 %v8793_v60, %v8792_v62  ;;  %v8854_v40 = vpack.c.bf16 %v8795_v52, %v8794_v35  ;;  %v8813_v62 = vld [vmem:[#allocation2 + $0x170] sm:$0xff]  ;;  %v8816_v35 = vld [vmem:[#allocation2 + $0x198] sm:$0xff]  ;;  %v8817_v52 = vld [vmem:[#allocation2 + $0x1a0] sm:$0xff] }
 0x8a5   :  { %v8865_v27 = vpack.c.bf16 %v8817_v52, %v8816_v35  ;;  %v8836_v35 = vld [vmem:[#allocation2 + $0x2b8] sm:$0xff]  ;;  %v8837_v52 = vld [vmem:[#allocation2 + $0x2c0] sm:$0xff] }
 0x8ab   :  { %14485 = vmatmul.mubr.msk.bf16.gmra.mrb[92].mxu1 %vm4858_vm2, %v19900_v30 }
 0x8ac   :  { %14490 = vmatprep.mubr.msk.bf16.mxu1 %vm4858_vm2, %v8850_v38  ;;  %v8860_v38 = vpack.c.bf16 %v8807_v47, %v8806_v21  ;;  %v8828_v47 = vld [vmem:[#allocation2 + $0x258] sm:$0xff] }
 0x8b3   :  { %14491 = vmatmul.mubr.msk.bf16.vlgmr.msra.gmra.mrb[32].mxu1 %vm4858_vm2, %v8851_v48  ;;  %v8861_v48 = vpack.c.bf16 %v8809_v24, %v8808_v11  ;;  %v8831_v11 = vld [vmem:[#allocation2 + $0x278] sm:$0xff] }
 0x8b4   :  { %14494 = vmatprep.mubr.msk.bf16.mxu1 %vm4858_vm2, %v8852_v39  ;;  %14555 = vmatpush3.bf16.msra.mxu1 %v9531_v14  ;;  %v8862_v14 = vpack.c.bf16 %v8811_v20, %v8810_v22  ;;  %v8812_v39 = vld [vmem:[#allocation2 + $0x168] sm:$0xff] }
 0x8b5   :  { %15796 = vmatprep.subr.msk.bf16.mxu1 %vm5904_vm3, %v19910_v32  ;;  %v8863_v60 = vpack.c.bf16 %v8813_v62, %v8812_v39  ;;  %v8832_v20 = vld [vmem:[#allocation2 + $0x288] sm:$0xff] }
 0x8b6   :  { %v8835_v39 = vld [vmem:[#allocation2 + $0x2a8] sm:$0xff] }
 0x8bb   :  { %14495 = vmatmul.mubr.msk.bf16.gmra.mrb[36].mxu1 %vm4858_vm2, %v8853_v5  ;;  %v11142_v5 = vld [vmem:[%s22113_s7] sm:$0x3] }
 0x8bc   :  { %14498 = vmatprep.mubr.msk.bf16.mxu1 %vm4858_vm2, %v8854_v40  ;;  %15797 = vmatprep.subr.msk.bf16.mxu0 %vm325_vm0, %v11142_v5  ;;  %v11247_v40 = vsel %vm325_vm0, %v11142_v5, 0  ;;  %v8838_v5 = vld [vmem:[#allocation2 + $0x2d0] sm:$0xff] }
 0x8bd   :  { %14687 = vmatpush3.bf16.msra.mxu0 %v11247_v40  ;;  %v8839_v40 = vld [vmem:[#allocation2 + $0x2d8] sm:$0xff] }
 0x8be   :  { %v8876_v41 = vpack.c.bf16 %v8839_v40, %v8838_v5  ;;  %v22491_v5 = vld [vmem:[#allocation15_spill] sm:$0xff] }
 0x8bf   :  { %v12798_v40 = vld [vmem:[%s22109_s0 + $0x139] sm:$0xff] }
 0x8c3   :  { %14499 = vmatmul.mubr.msk.bf16.gmra.mrb[40].mxu1 %vm4858_vm2, %v8855_v46  ;;  %v8821_v46 = vld [vmem:[#allocation2 + $0x200] sm:$0xff] }
 0x8c4   :  { %14502 = vmatprep.mubr.msk.bf16.mxu1 %vm4858_vm2, %v8856_v7  ;;  %v8822_v7 = vld [vmem:[#allocation2 + $0x210] sm:$0xff] }
 0x8c5   :  { %v8868_v29 = vpack.c.bf16 %v8823_v9, %v8822_v7 }
 0x8cb   :  { %14503 = vmatmul.mubr.msk.bf16.gmra.mrb[44].mxu1 %vm4858_vm2, %v8857_v59  ;;  %v8825_v59 = vld [vmem:[#allocation2 + $0x230] sm:$0xff] }
 0x8cc   :  { %14506 = vmatprep.mubr.msk.bf16.mxu1 %vm4858_vm2, %v8858_v51  ;;  %v8826_v51 = vld [vmem:[#allocation2 + $0x240] sm:$0xff]  ;;  %v8869_v0 = vpack.c.bf16 %v8825_v59, %v8824_v12  ;;  %v8848_v59 = vld [vmem:[#allocation2 + $0x348] sm:$0xff] }
 0x8cd   :  { %v8870_v21 = vpack.c.bf16 %v8827_v10, %v8826_v51  ;;  %v8849_v51 = vld [vmem:[#allocation2 + $0x350] sm:$0xff] }
 0x8ce   :  { %v8881_v10 = vpack.c.bf16 %v8849_v51, %v8848_v59  ;;  %v12807_v59 = vld [vmem:[%s22109_s0 + $0x1d1] sm:$0xff]  ;;  %v12808_v51 = vld [vmem:[%s22109_s0 + $0x1e1] sm:$0xff] }
 0x8d3   :  { %14507 = vmatmul.mubr.msk.bf16.gmra.mrb[48].mxu1 %vm4858_vm2, %v8859_v15  ;;  %v8829_v15 = vld [vmem:[#allocation2 + $0x260] sm:$0xff] }
 0x8d4   :  { %14510 = vmatprep.mubr.msk.bf16.mxu1 %vm4858_vm2, %v8860_v38  ;;  %v8830_v38 = vld [vmem:[#allocation2 + $0x270] sm:$0xff]  ;;  %v8871_v24 = vpack.c.bf16 %v8829_v15, %v8828_v47 }
 0x8d5   :  { %v8872_v22 = vpack.c.bf16 %v8831_v11, %v8830_v38  ;;  %v12787_v15 = vld [vmem:[%s22109_s0 + $0xb1] sm:$0xff]  ;;  %v12788_v38 = vld [vmem:[%s22109_s0 + $0xc1] sm:$0xff] }
 0x8db   :  { %14511 = vmatmul.mubr.msk.bf16.gmra.mrb[52].mxu1 %vm4858_vm2, %v8861_v48  ;;  %v8833_v48 = vld [vmem:[#allocation2 + $0x290] sm:$0xff] }
 0x8dc   :  { %14514 = vmatprep.mubr.msk.bf16.mxu1 %vm4858_vm2, %v8862_v14  ;;  %v8834_v14 = vld [vmem:[#allocation2 + $0x2a0] sm:$0xff]  ;;  %v8873_v62 = vpack.c.bf16 %v8833_v48, %v8832_v20  ;;  %v12792_v20 = vld [vmem:[%s22109_s0 + $0xf1] sm:$0xff] }
 0x8e3   :  { %14515 = vmatmul.mubr.msk.bf16.gmra.mrb[56].mxu1 %vm4858_vm2, %v8863_v60  ;;  %v8874_v60 = vpack.c.bf16 %v8835_v39, %v8834_v14  ;;  %v12794_v39 = vld [vmem:[%s22109_s0 + $0x109] sm:$0xff] }
 0x8e4   :  { %14518 = vmatprep.mubr.msk.bf16.mxu1 %vm4858_vm2, %v19662_v23  ;;  %v8820_v23 = vld [vmem:[#allocation2 + $0x1f8] sm:$0xff] }
 0x8e5   :  { %v8867_v57 = vpack.c.bf16 %v8821_v46, %v8820_v23  ;;  %v8842_v23 = vld [vmem:[#allocation2 + $0x300] sm:$0xff]  ;;  %v8843_v46 = vld [vmem:[#allocation2 + $0x308] sm:$0xff] }
 0x8e6   :  { %v8878_v9 = vpack.c.bf16 %v8843_v46, %v8842_v23  ;;  %v12803_v46 = vld [vmem:[%s22109_s0 + $0x171] sm:$0xff] }
 0x8eb   :  { %14519 = vmatmul.mubr.msk.bf16.gmra.mrb[60].mxu1 %vm4858_vm2, %v8865_v27  ;;  %v8875_v27 = vpack.c.bf16 %v8837_v52, %v8836_v35 }
 0x8ec   :  { %14522 = vmatprep.mubr.msk.bf16.mxu1 %vm4858_vm2, %v8866_v3  ;;  %v8841_v3 = vld [vmem:[#allocation2 + $0x2f0] sm:$0xff] }
 0x8ed   :  { %v8877_v7 = vpack.c.bf16 %v8841_v3, %v8840_v61  ;;  %v12801_v3 = vld [vmem:[%s22109_s0 + $0x159] sm:$0xff] }
 0x8f3   :  { %14523 = vmatmul.mubr.msk.bf16.gmra.mrb[64].mxu1 %vm4858_vm2, %v8867_v57  ;;  %v8844_v57 = vld [vmem:[#allocation2 + $0x318] sm:$0xff] }
 0x8f4   :  { %14526 = vmatprep.mubr.msk.bf16.mxu1 %vm4858_vm2, %v8868_v29  ;;  %v8845_v29 = vld [vmem:[#allocation2 + $0x320] sm:$0xff] }
 0x8f5   :  { %v8879_v12 = vpack.c.bf16 %v8845_v29, %v8844_v57  ;;  %v9399_v29 = vld [vmem:[#allocation2 + $0x351] sm:$0xff] }
 0x8fb   :  { %14527 = vmatmul.mubr.msk.bf16.gmra.mrb[68].mxu1 %vm4858_vm2, %v8869_v0  ;;  %v10081_v0 = vsel %vm5904_vm3, %v19910_v32, 0  ;;  %v12784_v32 = vld [vmem:[%s22109_s0 + $0x91] sm:$0xff] }
 0x8fc   :  { %14530 = vmatprep.mubr.msk.bf16.mxu1 %vm4858_vm2, %v8870_v21 }
 0x903   :  { %14531 = vmatmul.mubr.msk.bf16.gmra.mrb[72].mxu1 %vm4858_vm2, %v8871_v24 }
 0x904   :  { %14534 = vmatprep.mubr.msk.bf16.mxu1 %vm4858_vm2, %v8872_v22  ;;  %v12791_v22 = vld [vmem:[%s22109_s0 + $0xe1] sm:$0xff] }
 0x90b   :  { %14535 = vmatmul.mubr.msk.bf16.gmra.mrb[76].mxu1 %vm4858_vm2, %v8873_v62  ;;  %v12795_v62 = vld [vmem:[%s22109_s0 + $0x111] sm:$0xff] }
 0x90c   :  { %14538 = vmatprep.mubr.msk.bf16.mxu1 %vm4858_vm2, %v8874_v60  ;;  %v12796_v60 = vld [vmem:[%s22109_s0 + $0x121] sm:$0xff]  ;;  %v11120_v35 = vpack.c.bf16 %v12795_v62, %v12794_v39 }
 0x913   :  { %14539 = vmatmul.mubr.msk.bf16.gmra.mrb[80].mxu1 %vm4858_vm2, %v8875_v27  ;;  %v12799_v27 = vld [vmem:[%s22109_s0 + $0x141] sm:$0xff] }
 0x914   :  { %14542 = vmatprep.mubr.msk.bf16.mxu1 %vm4858_vm2, %v8876_v41  ;;  %v12800_v41 = vld [vmem:[%s22109_s0 + $0x151] sm:$0xff]  ;;  %v11122_v61 = vpack.c.bf16 %v12799_v27, %v12798_v40  ;;  %v12824_v40 = vld [vmem:[%s22109_s0 + $0x2a1] sm:$0xff]  ;;  %v12825_v27 = vld [vmem:[%s22109_s0 + $0x2a9] sm:$0xff] }
 0x915   :  { %v11123_v23 = vpack.c.bf16 %v12801_v3, %v12800_v41  ;;  %v12827_v3 = vld [vmem:[%s22109_s0 + $0x2c1] sm:$0xff] }
 0x91b   :  { %14543 = vmatmul.mubr.msk.bf16.gmra.mrb[84].mxu1 %vm4858_vm2, %v8877_v7  ;;  %v12804_v7 = vld [vmem:[%s22109_s0 + $0x181] sm:$0xff] }
 0x91c   :  { %14546 = vmatprep.mubr.msk.bf16.mxu1 %vm4858_vm2, %v8878_v9 }
 0x923   :  { %14547 = vmatmul.mubr.msk.bf16.gmra.mrb[88].mxu1 %vm4858_vm2, %v8879_v12  ;;  %v12806_v12 = vld [vmem:[%s22109_s0 + $0x1c9] sm:$0xff] }
 0x924   :  { %14550 = vmatprep.mubr.msk.bf16.mxu1 %vm4858_vm2, %v19696_v18  ;;  %v9366_v18 = vld [vmem:[#allocation2 + $0x199] sm:$0xff] }
 0x92b   :  { %14551 = vmatmul.mubr.msk.bf16.gmra.mrb[92].mxu1 %vm4858_vm2, %v8881_v10  ;;  %v11126_v10 = vpack.c.bf16 %v12807_v59, %v12806_v12  ;;  %v12830_v59 = vld [vmem:[%s22109_s0 + $0x2e9] sm:$0xff] }
 0x92c   :  { %14556 = vmatprep.mubr.msk.bf16.mxu1 %vm4858_vm2, %v19701_v17  ;;  %v9367_v17 = vld [vmem:[#allocation2 + $0x1a1] sm:$0xff] }
 0x933   :  { %14557 = vmatmul.mubr.msk.bf16.vlgmr.msra.gmra.mrb[32].mxu1 %vm4858_vm2, %v19704_v45  ;;  %v12774_v45 = vld [vmem:[%s22109_s0 + $0x19] sm:$0xff] }
 0x934   :  { %14560 = vmatprep.mubr.msk.bf16.mxu1 %vm4858_vm2, %v19717_v13  ;;  %14621 = vmatpush3.bf16.msra.mxu1 %v10081_v0  ;;  %v12775_v13 = vld [vmem:[%s22109_s0 + $0x21] sm:$0xff] }
 0x93b   :  { %14561 = vmatmul.mubr.msk.bf16.gmra.mrb[36].mxu1 %vm4858_vm2, %v19719_v50  ;;  %v12776_v50 = vld [vmem:[%s22109_s0 + $0x31] sm:$0xff] }
 0x93c   :  { %14564 = vmatprep.mubr.msk.bf16.mxu1 %vm4858_vm2, %v19725_v42  ;;  %v11110_v42 = vpack.c.bf16 %v12775_v13, %v12774_v45  ;;  %v12810_v13 = vld [vmem:[%s22109_s0 + $0x1f9] sm:$0xff] }
 0x93e   :  { %14688 = vmatprep.mubr.msk.bf16.mxu0 %vm228_vm1, %v11110_v42  ;;  %v12812_v42 = vld [vmem:[%s22109_s0 + $0x211] sm:$0xff] }
 0x943   :  { %14565 = vmatmul.mubr.msk.bf16.gmra.mrb[40].mxu1 %vm4858_vm2, %v19727_v1  ;;  %v12777_v1 = vld [vmem:[%s22109_s0 + $0x39] sm:$0xff] }
 0x944   :  { %14568 = vmatprep.mubr.msk.bf16.mxu1 %vm4858_vm2, %v19733_v55  ;;  %v11111_v55 = vpack.c.bf16 %v12777_v1, %v12776_v50  ;;  %v12811_v50 = vld [vmem:[%s22109_s0 + $0x201] sm:$0xff] }
 0x945   :  { %v11128_v1 = vpack.c.bf16 %v12811_v50, %v12810_v13  ;;  %v12832_v13 = vld [vmem:[%s22109_s0 + $0x301] sm:$0xff]  ;;  %v12833_v50 = vld [vmem:[%s22109_s0 + $0x309] sm:$0xff] }
 0x946   :  { %14689 = vmatmul.mubr.msk.bf16.vlgmr.msra.gmra.mrb[64].mxu0 %vm228_vm1, %v11111_v55  ;;  %v12813_v55 = vld [vmem:[%s22109_s0 + $0x219] sm:$0xff] }
 0x94b   :  { %14569 = vmatmul.mubr.msk.bf16.gmra.mrb[44].mxu1 %vm4858_vm2, %v19735_v54  ;;  %v9415_v54 = vpack.c.bf16 %v9367_v17, %v9366_v18  ;;  %v9887_v17 = vld [vmem:[#allocation2 + $0x3a] sm:$0xff] }
 0x94c   :  { %14572 = vmatprep.mubr.msk.bf16.mxu1 %vm4858_vm2, %v19741_v2  ;;  %v12778_v2 = vld [vmem:[%s22109_s0 + $0x49] sm:$0xff] }
 0x953   :  { %14573 = vmatmul.mubr.msk.bf16.gmra.mrb[48].mxu1 %vm4858_vm2, %v19743_v37  ;;  %v12779_v37 = vld [vmem:[%s22109_s0 + $0x51] sm:$0xff] }
 0x954   :  { %14576 = vmatprep.mubr.msk.bf16.mxu1 %vm4858_vm2, %v19749_v19  ;;  %v12780_v19 = vld [vmem:[%s22109_s0 + $0x61] sm:$0xff] }
 0x95b   :  { %14577 = vmatmul.mubr.msk.bf16.gmra.mrb[52].mxu1 %vm4858_vm2, %v19751_v49  ;;  %v11112_v49 = vpack.c.bf16 %v12779_v37, %v12778_v2  ;;  %v12815_v2 = vld [vmem:[%s22109_s0 + $0x231] sm:$0xff]  ;;  %v11129_v37 = vpack.c.bf16 %v12813_v55, %v12812_v42  ;;  %v12835_v55 = vld [vmem:[%s22109_s0 + $0x321] sm:$0xff] }
 0x95c   :  { %14580 = vmatprep.mubr.msk.bf16.mxu1 %vm4858_vm2, %v19757_v36  ;;  %v12781_v36 = vld [vmem:[%s22109_s0 + $0x69] sm:$0xff] }
 0x95d   :  { %14692 = vmatprep.mubr.msk.bf16.mxu0 %vm228_vm1, %v11112_v49  ;;  %v9888_v49 = vld [vmem:[#allocation2 + $0x4a] sm:$0xff] }
 0x963   :  { %14581 = vmatmul.mubr.msk.bf16.gmra.mrb[56].mxu1 %vm4858_vm2, %v19759_v43  ;;  %v11113_v43 = vpack.c.bf16 %v12781_v36, %v12780_v19  ;;  %v9889_v36 = vld [vmem:[#allocation2 + $0x52] sm:$0xff] }
 0x964   :  { %14584 = vmatprep.mubr.msk.bf16.mxu1 %vm4858_vm2, %v19765_v31  ;;  %v12782_v31 = vld [vmem:[%s22109_s0 + $0x79] sm:$0xff] }
 0x965   :  { %14693 = vmatmul.mubr.msk.bf16.gmra.mrb[68].mxu0 %vm228_vm1, %v11113_v43  ;;  %v9890_v43 = vld [vmem:[#allocation2 + $0x62] sm:$0xff] }
 0x96b   :  { %14585 = vmatmul.mubr.msk.bf16.gmra.mrb[60].mxu1 %vm4858_vm2, %v9415_v54  ;;  %v12814_v54 = vld [vmem:[%s22109_s0 + $0x229] sm:$0xff] }
 0x96c   :  { %14588 = vmatprep.mubr.msk.bf16.mxu1 %vm4858_vm2, %v19770_v56  ;;  %v12783_v56 = vld [vmem:[%s22109_s0 + $0x81] sm:$0xff]  ;;  %v11130_v19 = vpack.c.bf16 %v12815_v2, %v12814_v54  ;;  %v11139_v54 = vpack.c.bf16 %v12833_v50, %v12832_v13  ;;  %v9948_v50 = vld [vmem:[#allocation2 + $0x34a] sm:$0xff] }
 0x96d   :  { %v11114_v21 = vpack.c.bf16 %v12783_v56, %v12782_v31  ;;  %v9891_v31 = vld [vmem:[#allocation2 + $0x6a] sm:$0xff]  ;;  %v9951_v56 = vpack.c.bf16 %v9889_v36, %v9888_v49  ;;  %v9910_v49 = vld [vmem:[#allocation2 + $0x152] sm:$0xff]  ;;  %v9911_v36 = vld [vmem:[#allocation2 + $0x15a] sm:$0xff] }
 0x96f   :  { %14696 = vmatprep.mubr.msk.bf16.mxu0 %vm228_vm1, %v11114_v21  ;;  %v12817_v21 = vld [vmem:[%s22109_s0 + $0x249] sm:$0xff] }
 0x973   :  { %14589 = vmatmul.mubr.msk.bf16.gmra.mrb[64].mxu1 %vm4858_vm2, %v19772_v63  ;;  %v12785_v63 = vld [vmem:[%s22109_s0 + $0x99] sm:$0xff] }
 0x974   :  { %14592 = vmatprep.mubr.msk.bf16.mxu1 %vm4858_vm2, %v19778_v6  ;;  %v11115_v47 = vpack.c.bf16 %v12785_v63, %v12784_v32  ;;  %v12786_v6 = vld [vmem:[%s22109_s0 + $0xa9] sm:$0xff]  ;;  %v12816_v32 = vld [vmem:[%s22109_s0 + $0x241] sm:$0xff]  ;;  %v9952_v63 = vpack.c.bf16 %v9891_v31, %v9890_v43  ;;  %v12836_v31 = vld [vmem:[%s22109_s0 + $0x331] sm:$0xff] }
 0x975   :  { %v11116_v11 = vpack.c.bf16 %v12787_v15, %v12786_v6  ;;  %v12819_v6 = vld [vmem:[%s22109_s0 + $0x261] sm:$0xff]  ;;  %v11131_v15 = vpack.c.bf16 %v12817_v21, %v12816_v32  ;;  %v9962_v32 = vpack.c.bf16 %v9911_v36, %v9910_v49 }
 0x976   :  { %14697 = vmatmul.mubr.msk.bf16.gmra.mrb[72].mxu0 %vm228_vm1, %v11115_v47  ;;  %v12818_v47 = vld [vmem:[%s22109_s0 + $0x259] sm:$0xff] }
 0x977   :  { %14700 = vmatprep.mubr.msk.bf16.mxu0 %vm228_vm1, %v11116_v11  ;;  %v9892_v11 = vld [vmem:[#allocation2 + $0x7a] sm:$0xff] }
 0x97b   :  { %14593 = vmatmul.mubr.msk.bf16.gmra.mrb[68].mxu1 %vm4858_vm2, %v19780_v26  ;;  %v12789_v26 = vld [vmem:[%s22109_s0 + $0xc9] sm:$0xff] }
 0x97c   :  { %14596 = vmatprep.mubr.msk.bf16.mxu1 %vm4858_vm2, %v19786_v16  ;;  %v11117_v24 = vpack.c.bf16 %v12789_v26, %v12788_v38  ;;  %v12790_v16 = vld [vmem:[%s22109_s0 + $0xd9] sm:$0xff]  ;;  %v11132_v38 = vpack.c.bf16 %v12819_v6, %v12818_v47  ;;  %v9893_v26 = vld [vmem:[#allocation2 + $0x82] sm:$0xff] }
 0x97d   :  { %v11118_v48 = vpack.c.bf16 %v12791_v22, %v12790_v16  ;;  %v9895_v16 = vld [vmem:[#allocation2 + $0x9a] sm:$0xff]  ;;  %v9953_v22 = vpack.c.bf16 %v9893_v26, %v9892_v11  ;;  %v9913_v47 = vld [vmem:[#allocation2 + $0x172] sm:$0xff]  ;;  %v9918_v26 = vld [vmem:[#allocation2 + $0x1e2] sm:$0xff] }
 0x97e   :  { %14701 = vmatmul.mubr.msk.bf16.gmra.mrb[76].mxu0 %vm228_vm1, %v11117_v24  ;;  %v9894_v24 = vld [vmem:[#allocation2 + $0x92] sm:$0xff] }
 0x97f   :  { %14704 = vmatprep.mubr.msk.bf16.mxu0 %vm228_vm1, %v11118_v48  ;;  %v12821_v48 = vld [vmem:[%s22109_s0 + $0x279] sm:$0xff] }
 0x983   :  { %14597 = vmatmul.mubr.msk.bf16.gmra.mrb[72].mxu1 %vm4858_vm2, %v19788_v28  ;;  %v12793_v28 = vld [vmem:[%s22109_s0 + $0xf9] sm:$0xff] }
 0x984   :  { %14600 = vmatprep.mubr.msk.bf16.mxu1 %vm4858_vm2, %v19794_v44  ;;  %v11119_v14 = vpack.c.bf16 %v12793_v28, %v12792_v20  ;;  %v22490_v44 = vld [vmem:[#allocation18_spill] sm:$0xff]  ;;  %v9954_v28 = vpack.c.bf16 %v9895_v16, %v9894_v24  ;;  %v9919_v24 = vld [vmem:[#allocation2 + $0x1ea] sm:$0xff] }
 0x985   :  { %v12820_v20 = vld [vmem:[%s22109_s0 + $0x271] sm:$0xff]  ;;  %v9966_v16 = vpack.c.bf16 %v9919_v24, %v9918_v26 }
 0x986   :  { %14705 = vmatmul.mubr.msk.bf16.gmra.mrb[80].mxu0 %vm228_vm1, %v11119_v14  ;;  %v12822_v14 = vld [vmem:[%s22109_s0 + $0x289] sm:$0xff]  ;;  %v11133_v39 = vpack.c.bf16 %v12821_v48, %v12820_v20  ;;  %v9922_v48 = vld [vmem:[#allocation2 + $0x212] sm:$0xff] }
 0x987   :  { %14708 = vmatprep.mubr.msk.bf16.mxu0 %vm228_vm1, %v11120_v35  ;;  %v9897_v35 = vld [vmem:[#allocation2 + $0xb2] sm:$0xff]  ;;  %v9921_v20 = vld [vmem:[#allocation2 + $0x202] sm:$0xff] }
 0x98b   :  { %14601 = vmatmul.mubr.msk.bf16.gmra.mrb[76].mxu1 %vm4858_vm2, %v19796_v58  ;;  %v12797_v58 = vld [vmem:[%s22109_s0 + $0x129] sm:$0xff] }
 0x98c   :  { %14604 = vmatprep.mubr.msk.bf16.mxu1 %vm4858_vm2, %v22490_v44  ;;  %v11121_v52 = vpack.c.bf16 %v12797_v58, %v12796_v60  ;;  %v12823_v44 = vld [vmem:[%s22109_s0 + $0x291] sm:$0xff]  ;;  %v9898_v58 = vld [vmem:[#allocation2 + $0xc2] sm:$0xff] }
 0x98d   :  { %v11134_v62 = vpack.c.bf16 %v12823_v44, %v12822_v14  ;;  %v9896_v60 = vld [vmem:[#allocation2 + $0xaa] sm:$0xff] }
 0x98e   :  { %14709 = vmatmul.mubr.msk.bf16.gmra.mrb[84].mxu0 %vm228_vm1, %v11121_v52  ;;  %v9899_v52 = vld [vmem:[#allocation2 + $0xca] sm:$0xff] }
 0x98f   :  { %14712 = vmatprep.mubr.msk.bf16.mxu0 %vm228_vm1, %v11122_v61  ;;  %v9956_v41 = vpack.c.bf16 %v9899_v52, %v9898_v58  ;;  %v12826_v61 = vld [vmem:[%s22109_s0 + $0x2b9] sm:$0xff] }
 0x990   :  { %v9928_v52 = vld [vmem:[#allocation2 + $0x25a] sm:$0xff] }
 0x993   :  { %14605 = vmatmul.mubr.msk.bf16.gmra.mrb[80].mxu1 %vm4858_vm2, %v22491_v5  ;;  %v9955_v5 = vpack.c.bf16 %v9897_v35, %v9896_v60  ;;  %v9927_v60 = vld [vmem:[#allocation2 + $0x24a] sm:$0xff] }
 0x994   :  { %14608 = vmatprep.mubr.msk.bf16.mxu1 %vm4858_vm2, %v19810_v8  ;;  %v12802_v8 = vld [vmem:[%s22109_s0 + $0x169] sm:$0xff] }
 0x995   :  { %v11124_v9 = vpack.c.bf16 %v12803_v46, %v12802_v8  ;;  %v11136_v8 = vpack.c.bf16 %v12827_v3, %v12826_v61  ;;  %v9900_v46 = vld [vmem:[#allocation2 + $0xda] sm:$0xff]  ;;  %v9932_v3 = vld [vmem:[#allocation2 + $0x28a] sm:$0xff] }
 0x996   :  { %14713 = vmatmul.mubr.msk.bf16.gmra.mrb[88].mxu0 %vm228_vm1, %v11123_v23  ;;  %v11135_v23 = vpack.c.bf16 %v12825_v27, %v12824_v40  ;;  %v9930_v40 = vld [vmem:[#allocation2 + $0x272] sm:$0xff]  ;;  %v9931_v27 = vld [vmem:[#allocation2 + $0x27a] sm:$0xff] }
 0x997   :  { %14716 = vmatprep.mubr.msk.bf16.mxu0 %vm228_vm1, %v11124_v9  ;;  %v9902_v9 = vld [vmem:[#allocation2 + $0xf2] sm:$0xff]  ;;  %v9972_v61 = vpack.c.bf16 %v9931_v27, %v9930_v40 }
 0x99b   :  { %14609 = vmatmul.mubr.msk.bf16.gmra.mrb[84].mxu1 %vm4858_vm2, %v19812_v34  ;;  %v12805_v34 = vld [vmem:[%s22109_s0 + $0x189] sm:$0xff] }
 0x99c   :  { %14612 = vmatprep.mubr.msk.bf16.mxu1 %vm4858_vm2, %v19818_v4  ;;  %v11125_v57 = vpack.c.bf16 %v12805_v34, %v12804_v7  ;;  %v9398_v4 = vld [vmem:[#allocation2 + $0x349] sm:$0xff]  ;;  %v9903_v34 = vld [vmem:[#allocation2 + $0xfa] sm:$0xff] }
 0x99d   :  { %v9431_v18 = vpack.c.bf16 %v9399_v29, %v9398_v4  ;;  %v9901_v7 = vld [vmem:[#allocation2 + $0xe2] sm:$0xff]  ;;  %v12828_v4 = vld [vmem:[%s22109_s0 + $0x2d1] sm:$0xff]  ;;  %v12829_v29 = vld [vmem:[%s22109_s0 + $0x2d9] sm:$0xff]  ;;  %v9958_v12 = vpack.c.bf16 %v9903_v34, %v9902_v9 }
 0x99e   :  { %14717 = vmatmul.mubr.msk.bf16.gmra.mrb[92].mxu0 %vm228_vm1, %v11125_v57  ;;  %v9957_v57 = vpack.c.bf16 %v9901_v7, %v9900_v46  ;;  %v9935_v46 = vld [vmem:[#allocation2 + $0x2aa] sm:$0xff]  ;;  %v9936_v34 = vld [vmem:[#allocation2 + $0x2ba] sm:$0xff] }
 0x99f   :  { %14720 = vmatprep.mubr.msk.bf16.mxu0 %vm228_vm1, %v11126_v10  ;;  %v11137_v10 = vpack.c.bf16 %v12829_v29, %v12828_v4  ;;  %v9938_v4 = vld [vmem:[#allocation2 + $0x2d2] sm:$0xff]  ;;  %v9939_v29 = vld [vmem:[#allocation2 + $0x2da] sm:$0xff] }
 0x9a3   :  { %14613 = vmatmul.mubr.msk.bf16.gmra.mrb[88].mxu1 %vm4858_vm2, %v19820_v33  ;;  %v12809_v33 = vld [vmem:[%s22109_s0 + $0x1e9] sm:$0xff] }
 0x9a4   :  { %14616 = vmatprep.mubr.msk.bf16.mxu1 %vm4858_vm2, %v19826_v25  ;;  %v11127_v0 = vpack.c.bf16 %v12809_v33, %v12808_v51  ;;  %v9886_v25 = vld [vmem:[#allocation2 + $0x32] sm:$0xff] }
 0x9a5   :  { %v9950_v45 = vpack.c.bf16 %v9887_v17, %v9886_v25  ;;  %v12831_v51 = vld [vmem:[%s22109_s0 + $0x2f1] sm:$0xff]  ;;  %v9906_v25 = vld [vmem:[#allocation2 + $0x122] sm:$0xff] }
 0x9a6   :  { %14721 = vmatmul.mubr.msk.bf16.gmra.mrb[96].mxu0 %vm228_vm1, %v11127_v0  ;;  %v11138_v33 = vpack.c.bf16 %v12831_v51, %v12830_v59  ;;  %v9904_v0 = vld [vmem:[#allocation2 + $0x10a] sm:$0xff]  ;;  %v9976_v59 = vpack.c.bf16 %v9939_v29, %v9938_v4 }
 0x9a7   :  { %14724 = vmatprep.mubr.msk.bf16.mxu0 %vm228_vm1, %v11128_v1  ;;  %v9907_v17 = vld [vmem:[#allocation2 + $0x12a] sm:$0xff]  ;;  %v12834_v1 = vld [vmem:[%s22109_s0 + $0x319] sm:$0xff] }
 0x9a8   :  { %v9960_v42 = vpack.c.bf16 %v9907_v17, %v9906_v25  ;;  %v11140_v2 = vpack.c.bf16 %v12835_v55, %v12834_v1  ;;  %v9940_v51 = vld [vmem:[#allocation2 + $0x2ea] sm:$0xff]  ;;  %v9944_v17 = vld [vmem:[#allocation2 + $0x31a] sm:$0xff] }
 0x9ab   :  { %14617 = vmatmul.mubr.msk.bf16.gmra.mrb[92].mxu1 %vm4858_vm2, %v9431_v18  ;;  %v9905_v18 = vld [vmem:[#allocation2 + $0x112] sm:$0xff] }
 0x9ac   :  { %14622 = vmatprep.mubr.msk.bf16.mxu1 %vm4858_vm2, %v9950_v45  ;;  %v9959_v45 = vpack.c.bf16 %v9905_v18, %v9904_v0  ;;  %v9943_v0 = vld [vmem:[#allocation2 + $0x30a] sm:$0xff] }
 0x9ae   :  { %14725 = vmatmul.mubr.msk.bf16.gmra.mrb[100].mxu0 %vm228_vm1, %v11129_v37  ;;  %v9908_v37 = vld [vmem:[#allocation2 + $0x13a] sm:$0xff] }
 0x9af   :  { %14728 = vmatprep.mubr.msk.bf16.mxu0 %vm228_vm1, %v11130_v19  ;;  %v9909_v19 = vld [vmem:[#allocation2 + $0x142] sm:$0xff] }
 0x9b0   :  { %v9961_v43 = vpack.c.bf16 %v9909_v19, %v9908_v37 }
 0x9b3   :  { %14623 = vmatmul.mubr.msk.bf16.vlgmr.msra.gmra.mrb[32].mxu1 %vm4858_vm2, %v9951_v56  ;;  %v12837_v56 = vld [vmem:[%s22109_s0 + $0x339] sm:$0xff] }
 0x9b4   :  { %14626 = vmatprep.mubr.msk.bf16.mxu1 %vm4858_vm2, %v9952_v63  ;;  %v11141_v21 = vpack.c.bf16 %v12837_v56, %v12836_v31  ;;  %v9912_v63 = vld [vmem:[#allocation2 + $0x16a] sm:$0xff] }
 0x9b5   :  { %v9963_v6 = vpack.c.bf16 %v9913_v47, %v9912_v63 }
 0x9b6   :  { %14729 = vmatmul.mubr.msk.bf16.gmra.mrb[104].mxu0 %vm228_vm1, %v11131_v15  ;;  %v9916_v15 = vld [vmem:[#allocation2 + $0x19a] sm:$0xff] }
 0x9b7   :  { %14732 = vmatprep.mubr.msk.bf16.mxu0 %vm228_vm1, %v11132_v38  ;;  %v9917_v38 = vld [vmem:[#allocation2 + $0x1a2] sm:$0xff] }
 0x9b8   :  { %v9965_v11 = vpack.c.bf16 %v9917_v38, %v9916_v15 }
 0x9bb   :  { %14627 = vmatmul.mubr.msk.bf16.gmra.mrb[36].mxu1 %vm4858_vm2, %v9953_v22  ;;  %v9920_v22 = vld [vmem:[#allocation2 + $0x1fa] sm:$0xff] }
 0x9bc   :  { %14630 = vmatprep.mubr.msk.bf16.mxu1 %vm4858_vm2, %v9954_v28  ;;  %v9923_v28 = vld [vmem:[#allocation2 + $0x21a] sm:$0xff]  ;;  %v9967_v14 = vpack.c.bf16 %v9921_v20, %v9920_v22 }
 0x9bd   :  { %v9968_v44 = vpack.c.bf16 %v9923_v28, %v9922_v48 }
 0x9be   :  { %14733 = vmatmul.mubr.msk.bf16.gmra.mrb[108].mxu0 %vm228_vm1, %v11133_v39  ;;  %v9925_v39 = vld [vmem:[#allocation2 + $0x232] sm:$0xff] }
 0x9bf   :  { %14736 = vmatprep.mubr.msk.bf16.mxu0 %vm228_vm1, %v11134_v62  ;;  %v9926_v62 = vld [vmem:[#allocation2 + $0x242] sm:$0xff] }
 0x9c0   :  { %v9970_v58 = vpack.c.bf16 %v9927_v60, %v9926_v62 }
 0x9c3   :  { %14631 = vmatmul.mubr.msk.bf16.gmra.mrb[40].mxu1 %vm4858_vm2, %v9955_v5  ;;  %v9929_v5 = vld [vmem:[#allocation2 + $0x262] sm:$0xff] }
 0x9c4   :  { %14634 = vmatprep.mubr.msk.bf16.mxu1 %vm4858_vm2, %v9956_v41  ;;  %v9971_v41 = vpack.c.bf16 %v9929_v5, %v9928_v52 }
 0x9c6   :  { %14737 = vmatmul.mubr.msk.bf16.gmra.mrb[112].mxu0 %vm228_vm1, %v11135_v23  ;;  %v9933_v23 = vld [vmem:[#allocation2 + $0x292] sm:$0xff] }
 0x9c7   :  { %14740 = vmatprep.mubr.msk.bf16.mxu0 %vm228_vm1, %v11136_v8  ;;  %v9934_v8 = vld [vmem:[#allocation2 + $0x2a2] sm:$0xff]  ;;  %v9973_v7 = vpack.c.bf16 %v9933_v23, %v9932_v3 }
 0x9c8   :  { %v9974_v9 = vpack.c.bf16 %v9935_v46, %v9934_v8 }
 0x9cb   :  { %14635 = vmatmul.mubr.msk.bf16.gmra.mrb[44].mxu1 %vm4858_vm2, %v9957_v57  ;;  %v9937_v57 = vld [vmem:[#allocation2 + $0x2c2] sm:$0xff] }
 0x9cc   :  { %14638 = vmatprep.mubr.msk.bf16.mxu1 %vm4858_vm2, %v9958_v12  ;;  %v9975_v12 = vpack.c.bf16 %v9937_v57, %v9936_v34 }
 0x9ce   :  { %14741 = vmatmul.mubr.msk.bf16.gmra.mrb[116].mxu0 %vm228_vm1, %v11137_v10  ;;  %v9941_v10 = vld [vmem:[#allocation2 + $0x2f2] sm:$0xff] }
 0x9cf   :  { %14744 = vmatprep.mubr.msk.bf16.mxu0 %vm228_vm1, %v11138_v33  ;;  %v9942_v33 = vld [vmem:[#allocation2 + $0x302] sm:$0xff]  ;;  %v9977_v18 = vpack.c.bf16 %v9941_v10, %v9940_v51 }
 0x9d0   :  { %v9978_v25 = vpack.c.bf16 %v9943_v0, %v9942_v33 }
 0x9d3   :  { %14639 = vmatmul.mubr.msk.bf16.gmra.mrb[48].mxu1 %vm4858_vm2, %v9959_v45  ;;  %v9945_v45 = vld [vmem:[#allocation2 + $0x322] sm:$0xff] }
 0x9d4   :  { %14642 = vmatprep.mubr.msk.bf16.mxu1 %vm4858_vm2, %v9960_v42  ;;  %v9979_v13 = vpack.c.bf16 %v9945_v45, %v9944_v17  ;;  %v9949_v42 = vld [vmem:[#allocation2 + $0x352] sm:$0xff] }
 0x9d5   :  { %v9981_v1 = vpack.c.bf16 %v9949_v42, %v9948_v50 }
 0x9d6   :  { %14745 = vmatmul.mubr.msk.bf16.gmra.mrb[120].mxu0 %vm228_vm1, %v11139_v54 }
 0x9d7   :  { %14748 = vmatprep.mubr.msk.bf16.mxu0 %vm228_vm1, %v11140_v2 }
 0x9db   :  { %14643 = vmatmul.mubr.msk.bf16.gmra.mrb[52].mxu1 %vm4858_vm2, %v9961_v43 }
 0x9dc   :  { %14646 = vmatprep.mubr.msk.bf16.mxu1 %vm4858_vm2, %v9962_v32 }
 0x9de   :  { %14749 = vmatmul.mubr.msk.bf16.gmra.mrb[124].mxu0 %vm228_vm1, %v11141_v21 }
 0x9e3   :  { %14647 = vmatmul.mubr.msk.bf16.gmra.mrb[56].mxu1 %vm4858_vm2, %v9963_v6 }
 0x9e4   :  { %14650 = vmatprep.mubr.msk.bf16.mxu1 %vm4858_vm2, %v19866_v53  ;;  %v9924_v53 = vld [vmem:[#allocation2 + $0x22a] sm:$0xff] }
 0x9e5   :  { %v9969_v35 = vpack.c.bf16 %v9925_v39, %v9924_v53 }
 0x9eb   :  { %14651 = vmatmul.mubr.msk.bf16.gmra.mrb[60].mxu1 %vm4858_vm2, %v9965_v11 }
 0x9ec   :  { %14654 = vmatprep.mubr.msk.bf16.mxu1 %vm4858_vm2, %v9966_v16 }
 0x9f3   :  { %14655 = vmatmul.mubr.msk.bf16.gmra.mrb[64].mxu1 %vm4858_vm2, %v9967_v14 }
 0x9f4   :  { %14658 = vmatprep.mubr.msk.bf16.mxu1 %vm4858_vm2, %v9968_v44 }
 0x9fb   :  { %14659 = vmatmul.mubr.msk.bf16.gmra.mrb[68].mxu1 %vm4858_vm2, %v9969_v35 }
 0x9fc   :  { %14662 = vmatprep.mubr.msk.bf16.mxu1 %vm4858_vm2, %v9970_v58 }
 0xa03   :  { %14663 = vmatmul.mubr.msk.bf16.gmra.mrb[72].mxu1 %vm4858_vm2, %v9971_v41 }
 0xa04   :  { %14666 = vmatprep.mubr.msk.bf16.mxu1 %vm4858_vm2, %v9972_v61 }
 0xa0b   :  { %14667 = vmatmul.mubr.msk.bf16.gmra.mrb[76].mxu1 %vm4858_vm2, %v9973_v7 }
 0xa0c   :  { %14670 = vmatprep.mubr.msk.bf16.mxu1 %vm4858_vm2, %v9974_v9 }
 0xa13   :  { %14671 = vmatmul.mubr.msk.bf16.gmra.mrb[80].mxu1 %vm4858_vm2, %v9975_v12 }
 0xa14   :  { %14674 = vmatprep.mubr.msk.bf16.mxu1 %vm4858_vm2, %v9976_v59 }
 0xa19   :  { %v20273_v55 = vpop.f32.mrb[64].mxu0 }
 0xa1a   :  { %v20275_v54 = vpop.f32.mrb[65].mxu0 }
 0xa1b   :  { %14675 = vmatmul.mubr.msk.bf16.gmra.mrb[84].mxu1 %vm4858_vm2, %v9977_v18  ;;  %v20277_v2 = vpop.f32.mrb[66].mxu0 }
 0xa1c   :  { %14678 = vmatprep.mubr.msk.bf16.mxu1 %vm4858_vm2, %v9978_v25  ;;  %v20279_v37 = vpop.f32.mrb[67].mxu0 }
 0xa23   :  { %14679 = vmatmul.mubr.msk.bf16.gmra.mrb[88].mxu1 %vm4858_vm2, %v9979_v13 }
 0xa24   :  { %14682 = vmatprep.mubr.msk.bf16.mxu1 %vm4858_vm2, %v19900_v30 }
 0xa2b   :  { %14683 = vmatmul.mubr.msk.bf16.gmra.mrb[92].mxu1 %vm4858_vm2, %v9981_v1 }
 0xa38   :  { %v20281_v19 = vpop.f32.mrb[68].mxu0 }
 0xa39   :  { %v20283_v49 = vpop.f32.mrb[69].mxu0 }
 0xa3a   :  { %v20285_v36 = vpop.f32.mrb[70].mxu0 }
 0xa3b   :  { %v20287_v30 = vpop.f32.mrb[71].mxu0 }
 0xa49   :  { %v20289_v43 = vpop.f32.mrb[72].mxu0 }
 0xa4a   :  { %v20291_v31 = vpop.f32.mrb[73].mxu0 }
 0xa4b   :  { %v20293_v56 = vpop.f32.mrb[74].mxu0 }
 0xa4c   :  { %v20295_v32 = vpop.f32.mrb[75].mxu0 }
 0xa51   :  { %v20297_v21 = vpop.f32.mrb[76].mxu0 }
 0xa52   :  { %v20299_v63 = vpop.f32.mrb[77].mxu0 }
 0xa53   :  { %v20301_v47 = vpop.f32.mrb[78].mxu0 }
 0xa54   :  { %v20303_v6 = vpop.f32.mrb[79].mxu0 }
 0xa59   :  { %v20305_v15 = vpop.f32.mrb[80].mxu0 }
 0xa5a   :  { %v20307_v38 = vpop.f32.mrb[81].mxu0 }
 0xa5b   :  { %v20309_v11 = vpop.f32.mrb[82].mxu0 }
 0xa5c   :  { %v20311_v26 = vpop.f32.mrb[83].mxu0 }
 0xa61   :  { %v20313_v24 = vpop.f32.mrb[84].mxu0 }
 0xa62   :  { %v20315_v16 = vpop.f32.mrb[85].mxu0 }
 0xa63   :  { %v20317_v22 = vpop.f32.mrb[86].mxu0 }
 0xa64   :  { %v20319_v20 = vpop.f32.mrb[87].mxu0 }
 0xa69   :  { %v20321_v48 = vpop.f32.mrb[88].mxu0 }
 0xa6a   :  { %v20323_v28 = vpop.f32.mrb[89].mxu0 }
 0xa6b   :  { %v20325_v14 = vpop.f32.mrb[90].mxu0 }
 0xa6c   :  { %v20327_v44 = vpop.f32.mrb[91].mxu0 }
 0xa71   :  { %v20329_v53 = vpop.f32.mrb[92].mxu0 }
 0xa72   :  { %v20331_v39 = vpop.f32.mrb[93].mxu0 }
 0xa73   :  { %v20333_v62 = vpop.f32.mrb[94].mxu0 }
 0xa74   :  { %v20335_v60 = vpop.f32.mrb[95].mxu0 }
 0xa79   :  { %v20337_v35 = vpop.f32.mrb[96].mxu0 }
 0xa7a   :  { %v20339_v58 = vpop.f32.mrb[97].mxu0 }
 0xa7b   :  { %v20341_v52 = vpop.f32.mrb[98].mxu0 }
 0xa7c   :  { %v20343_v5 = vpop.f32.mrb[99].mxu0 }
 0xa81   :  { %v20345_v40 = vpop.f32.mrb[100].mxu0 }
 0xa86   :  { %v20347_v27 = vpop.f32.mrb[32].mxu1 }
 0xa87   :  { %22492 = vst [vmem:[#allocation17_spill] sm:$0xff] %v20347_v27  ;;  %v20349_v41 = vpop.f32.mrb[33].mxu1  ;;  %v10572_v8 = vmul.f32 %v20347_v27, %v20347_v27  ;;  %v10439_v57 = vsel %vm4858_vm2, %v20347_v27, 0.0 }
 0xa88   :  { %22493 = vst [vmem:[#allocation20_spill] sm:$0xff] %v20349_v41  ;;  %v10570_v61 = vmul.f32 %v20349_v41, %v20349_v41  ;;  %v20353_v3 = vpop.f32.mrb[34].mxu1  ;;  %v10436_v46 = vsel %vm4858_vm2, %v20349_v41, 0.0 }
 0xa89   :  { %22494 = vst [vmem:[#allocation19_spill] sm:$0xff] %v20353_v3  ;;  %v20355_v23 = vpop.f32.mrb[35].mxu1  ;;  %v10573_v29 = vmul.f32 %v20353_v3, %v20353_v3  ;;  %v10637_v10 = vsel %vm4858_vm2, %v10572_v8, 0.0  ;;  %v10441_v33 = vsel %vm4858_vm2, %v20353_v3, 0.0 }
 0xa8a   :  { %22495 = vst [vmem:[#allocation21_spill] sm:$0xff] %v20355_v23  ;;  %v10437_v7 = vsel %vm4858_vm2, %v20355_v23, 0.0  ;;  %v10571_v9 = vmul.f32 %v20355_v23, %v20355_v23  ;;  %v10634_v4 = vsel %vm4858_vm2, %v10570_v61, 0.0 }
 0xa8b   :  { %v10438_v34 = vadd.f32 %v10437_v7, %v10436_v46  ;;  %v10639_v45 = vsel %vm4858_vm2, %v10573_v29, 0.0 }
 0xa8c   :  { %v10635_v12 = vsel %vm4858_vm2, %v10571_v9, 0.0 }
 0xa8d   :  { %v10440_v59 = vadd.f32 %v10439_v57, %v10438_v34  ;;  %v10636_v51 = vadd.f32 %v10635_v12, %v10634_v4 }
 0xa8e   :  { %v20374_v0 = vpop.f32.mrb[36].mxu1 }
 0xa8f   :  { %22496 = vst [vmem:[#allocation9_spill] sm:$0xff] %v20374_v0  ;;  %v10638_v18 = vadd.f32 %v10637_v10, %v10636_v51  ;;  %v20376_v25 = vpop.f32.mrb[37].mxu1  ;;  %v10442_v17 = vadd.f32 %v10441_v33, %v10440_v59  ;;  %v10576_v46 = vmul.f32 %v20374_v0, %v20374_v0  ;;  %v10447_v29 = vsel %vm4858_vm2, %v20374_v0, 0.0 }
 0xa90   :  { %22497 = vst [vmem:[#allocation23_spill] sm:$0xff] %v20376_v25  ;;  %v10443_v13 = vsel %vm4858_vm2, %v20376_v25, 0.0  ;;  %v10574_v50 = vmul.f32 %v20376_v25, %v20376_v25  ;;  %v20383_v42 = vpop.f32.mrb[38].mxu1 }
 0xa91   :  { %22498 = vst [vmem:[#allocation14_spill] sm:$0xff] %v20383_v42  ;;  %v10444_v1 = vadd.f32 %v10443_v13, %v10442_v17  ;;  %v10640_v61 = vadd.f32 %v10639_v45, %v10638_v18  ;;  %v20385_v8 = vpop.f32.mrb[39].mxu1  ;;  %v10577_v12 = vmul.f32 %v20383_v42, %v20383_v42  ;;  %v10645_v33 = vsel %vm4858_vm2, %v10576_v46, 0.0 }
 0xa92   :  { %22499 = vst [vmem:[#allocation24_spill] sm:$0xff] %v20385_v8  ;;  %v10641_v7 = vsel %vm4858_vm2, %v10574_v50, 0.0  ;;  %v10445_v9 = vsel %vm4858_vm2, %v20385_v8, 0.0  ;;  %v10575_v34 = vmul.f32 %v20385_v8, %v20385_v8  ;;  %v10449_v18 = vsel %vm4858_vm2, %v20383_v42, 0.0 }
 0xa93   :  { %v10642_v57 = vadd.f32 %v10641_v7, %v10640_v61  ;;  %v10446_v4 = vadd.f32 %v10445_v9, %v10444_v1  ;;  %v10647_v1 = vsel %vm4858_vm2, %v10577_v12, 0.0 }
 0xa94   :  { %v10643_v59 = vsel %vm4858_vm2, %v10575_v34, 0.0 }
 0xa95   :  { %v10448_v51 = vadd.f32 %v10447_v29, %v10446_v4  ;;  %v10644_v10 = vadd.f32 %v10643_v59, %v10642_v57 }
 0xa96   :  { %v20402_v17 = vpop.f32.mrb[40].mxu1 }
 0xa97   :  { %22500 = vst [vmem:[#allocation38_spill] sm:$0xff] %v20402_v17  ;;  %v10646_v45 = vadd.f32 %v10645_v33, %v10644_v10  ;;  %v20404_v13 = vpop.f32.mrb[41].mxu1  ;;  %v10450_v50 = vadd.f32 %v10449_v18, %v10448_v51  ;;  %v10580_v4 = vmul.f32 %v20402_v17, %v20402_v17  ;;  %v10455_v33 = vsel %vm4858_vm2, %v20402_v17, 0.0 }
 0xa98   :  { %22501 = vst [vmem:[#allocation26_spill] sm:$0xff] %v20404_v13  ;;  %v10451_v61 = vsel %vm4858_vm2, %v20404_v13, 0.0  ;;  %v10578_v7 = vmul.f32 %v20404_v13, %v20404_v13  ;;  %v20411_v9 = vpop.f32.mrb[42].mxu1 }
 0xa99   :  { %22502 = vst [vmem:[#allocation39_spill] sm:$0xff] %v20411_v9  ;;  %v10452_v46 = vadd.f32 %v10451_v61, %v10450_v50  ;;  %v10648_v34 = vadd.f32 %v10647_v1, %v10646_v45  ;;  %v20413_v57 = vpop.f32.mrb[43].mxu1  ;;  %v10581_v18 = vmul.f32 %v20411_v9, %v20411_v9  ;;  %v10653_v61 = vsel %vm4858_vm2, %v10580_v4, 0.0 }
 0xa9a   :  { %22503 = vst [vmem:[#allocation25_spill] sm:$0xff] %v20413_v57  ;;  %v10649_v29 = vsel %vm4858_vm2, %v10578_v7, 0.0  ;;  %v10453_v12 = vsel %vm4858_vm2, %v20413_v57, 0.0  ;;  %v10579_v59 = vmul.f32 %v20413_v57, %v20413_v57  ;;  %v10457_v7 = vsel %vm4858_vm2, %v20411_v9, 0.0 }
 0xa9b   :  { %v10650_v51 = vadd.f32 %v10649_v29, %v10648_v34  ;;  %v10454_v10 = vadd.f32 %v10453_v12, %v10452_v46  ;;  %v10655_v29 = vsel %vm4858_vm2, %v10581_v18, 0.0 }
 0xa9c   :  { %v10651_v45 = vsel %vm4858_vm2, %v10579_v59, 0.0 }
 0xa9d   :  { %v10456_v50 = vadd.f32 %v10455_v33, %v10454_v10  ;;  %v10652_v1 = vadd.f32 %v10651_v45, %v10650_v51 }
 0xa9e   :  { %v20430_v13 = vpop.f32.mrb[44].mxu1 }
 0xa9f   :  { %22504 = vst [vmem:[#allocation27_spill] sm:$0xff] %v20430_v13  ;;  %v10654_v57 = vadd.f32 %v10653_v61, %v10652_v1  ;;  %v20432_v34 = vpop.f32.mrb[45].mxu1  ;;  %v10458_v46 = vadd.f32 %v10457_v7, %v10456_v50  ;;  %v10584_v45 = vmul.f32 %v20430_v13, %v20430_v13 }
 0xaa0   :  { %22505 = vst [vmem:[#allocation4_spill] sm:$0xff] %v20432_v34  ;;  %v10459_v12 = vsel %vm4858_vm2, %v20432_v34, 0.0  ;;  %v10582_v59 = vmul.f32 %v20432_v34, %v20432_v34  ;;  %v20439_v51 = vpop.f32.mrb[46].mxu1  ;;  %v10463_v34 = vsel %vm4858_vm2, %v20430_v13, 0.0 }
 0xaa1   :  { %22506 = vst [vmem:[#allocation40_spill] sm:$0xff] %v20439_v51  ;;  %v10460_v4 = vadd.f32 %v10459_v12, %v10458_v46  ;;  %v10656_v10 = vadd.f32 %v10655_v29, %v10654_v57  ;;  %v20441_v33 = vpop.f32.mrb[47].mxu1  ;;  %v10585_v57 = vmul.f32 %v20439_v51, %v20439_v51  ;;  %v10465_v9 = vsel %vm4858_vm2, %v20439_v51, 0.0 }
 0xaa2   :  { %22507 = vst [vmem:[#allocation6_spill] sm:$0xff] %v20441_v33  ;;  %v10657_v1 = vsel %vm4858_vm2, %v10582_v59, 0.0  ;;  %v10461_v18 = vsel %vm4858_vm2, %v20441_v33, 0.0  ;;  %v10583_v50 = vmul.f32 %v20441_v33, %v20441_v33  ;;  %v10661_v59 = vsel %vm4858_vm2, %v10584_v45, 0.0 }
 0xaa3   :  { %v10658_v61 = vadd.f32 %v10657_v1, %v10656_v10  ;;  %v10462_v7 = vadd.f32 %v10461_v18, %v10460_v4  ;;  %v10663_v1 = vsel %vm4858_vm2, %v10585_v57, 0.0 }
 0xaa4   :  { %v10659_v46 = vsel %vm4858_vm2, %v10583_v50, 0.0 }
 0xaa5   :  { %v10464_v29 = vadd.f32 %v10463_v34, %v10462_v7  ;;  %v10660_v12 = vadd.f32 %v10659_v46, %v10658_v61 }
 0xaa6   :  { %v20458_v17 = vpop.f32.mrb[48].mxu1 }
 0xaa7   :  { %22508 = vst [vmem:[#allocation3_spill] sm:$0xff] %v20458_v17  ;;  %v10662_v33 = vadd.f32 %v10661_v59, %v10660_v12  ;;  %v20460_v10 = vpop.f32.mrb[49].mxu1  ;;  %v10466_v4 = vadd.f32 %v10465_v9, %v10464_v29  ;;  %v10588_v46 = vmul.f32 %v20458_v17, %v20458_v17 }
 0xaa8   :  { %22509 = vst [vmem:[#allocation29_spill] sm:$0xff] %v20460_v10  ;;  %v10467_v18 = vsel %vm4858_vm2, %v20460_v10, 0.0  ;;  %v10586_v34 = vmul.f32 %v20460_v10, %v20460_v10  ;;  %v20467_v50 = vpop.f32.mrb[50].mxu1  ;;  %v10471_v10 = vsel %vm4858_vm2, %v20458_v17, 0.0 }
 0xaa9   :  { %22510 = vst [vmem:[#allocation37_spill] sm:$0xff] %v20467_v50  ;;  %v10468_v45 = vadd.f32 %v10467_v18, %v10466_v4  ;;  %v10664_v61 = vadd.f32 %v10663_v1, %v10662_v33  ;;  %v20469_v7 = vpop.f32.mrb[51].mxu1  ;;  %v10589_v33 = vmul.f32 %v20467_v50, %v20467_v50  ;;  %v10473_v51 = vsel %vm4858_vm2, %v20467_v50, 0.0 }
 0xaaa   :  { %22511 = vst [vmem:[#allocation30_spill] sm:$0xff] %v20469_v7  ;;  %v10665_v12 = vsel %vm4858_vm2, %v10586_v34, 0.0  ;;  %v10469_v9 = vsel %vm4858_vm2, %v20469_v7, 0.0  ;;  %v10587_v57 = vmul.f32 %v20469_v7, %v20469_v7  ;;  %v10669_v34 = vsel %vm4858_vm2, %v10588_v46, 0.0 }
 0xaab   :  { %v10666_v29 = vadd.f32 %v10665_v12, %v10664_v61  ;;  %v10470_v59 = vadd.f32 %v10469_v9, %v10468_v45  ;;  %v10671_v12 = vsel %vm4858_vm2, %v10589_v33, 0.0 }
 0xaac   :  { %v10667_v4 = vsel %vm4858_vm2, %v10587_v57, 0.0 }
 0xaad   :  { %v10472_v1 = vadd.f32 %v10471_v10, %v10470_v59  ;;  %v10668_v18 = vadd.f32 %v10667_v4, %v10666_v29 }
 0xaae   :  { %v20486_v13 = vpop.f32.mrb[52].mxu1 }
 0xaaf   :  { %22512 = vst [vmem:[#allocation5_spill] sm:$0xff] %v20486_v13  ;;  %v10670_v7 = vadd.f32 %v10669_v34, %v10668_v18  ;;  %v20488_v61 = vpop.f32.mrb[53].mxu1  ;;  %v10474_v45 = vadd.f32 %v10473_v51, %v10472_v1  ;;  %v10592_v4 = vmul.f32 %v20486_v13, %v20486_v13 }
 0xab0   :  { %22513 = vst [vmem:[#allocation7_spill] sm:$0xff] %v20488_v61  ;;  %v10475_v9 = vsel %vm4858_vm2, %v20488_v61, 0.0  ;;  %v10590_v10 = vmul.f32 %v20488_v61, %v20488_v61  ;;  %v20495_v57 = vpop.f32.mrb[54].mxu1  ;;  %v10479_v61 = vsel %vm4858_vm2, %v20486_v13, 0.0 }
 0xab1   :  { %22514 = vst [vmem:[#allocation8_spill] sm:$0xff] %v20495_v57  ;;  %v10476_v46 = vadd.f32 %v10475_v9, %v10474_v45  ;;  %v10672_v29 = vadd.f32 %v10671_v12, %v10670_v7  ;;  %v20497_v59 = vpop.f32.mrb[55].mxu1  ;;  %v10593_v7 = vmul.f32 %v20495_v57, %v20495_v57  ;;  %v10481_v50 = vsel %vm4858_vm2, %v20495_v57, 0.0 }
 0xab2   :  { %22515 = vst [vmem:[#allocation41_spill] sm:$0xff] %v20497_v59  ;;  %v10673_v18 = vsel %vm4858_vm2, %v10590_v10, 0.0  ;;  %v10477_v51 = vsel %vm4858_vm2, %v20497_v59, 0.0  ;;  %v10591_v33 = vmul.f32 %v20497_v59, %v20497_v59  ;;  %v10677_v10 = vsel %vm4858_vm2, %v10592_v4, 0.0 }
 0xab3   :  { %v10674_v1 = vadd.f32 %v10673_v18, %v10672_v29  ;;  %v10478_v34 = vadd.f32 %v10477_v51, %v10476_v46  ;;  %v10679_v18 = vsel %vm4858_vm2, %v10593_v7, 0.0 }
 0xab4   :  { %v10675_v45 = vsel %vm4858_vm2, %v10591_v33, 0.0 }
 0xab5   :  { %v10480_v12 = vadd.f32 %v10479_v61, %v10478_v34  ;;  %v10676_v9 = vadd.f32 %v10675_v45, %v10674_v1 }
 0xab6   :  { %v20514_v17 = vpop.f32.mrb[56].mxu1 }
 0xab7   :  { %22516 = vst [vmem:[#allocation10_spill] sm:$0xff] %v20514_v17  ;;  %v10678_v59 = vadd.f32 %v10677_v10, %v10676_v9  ;;  %v20516_v29 = vpop.f32.mrb[57].mxu1  ;;  %v10482_v46 = vadd.f32 %v10481_v50, %v10480_v12  ;;  %v10596_v45 = vmul.f32 %v20514_v17, %v20514_v17 }
 0xab8   :  { %22517 = vst [vmem:[#allocation31_spill] sm:$0xff] %v20516_v29  ;;  %v10483_v51 = vsel %vm4858_vm2, %v20516_v29, 0.0  ;;  %v10594_v61 = vmul.f32 %v20516_v29, %v20516_v29  ;;  %v20523_v33 = vpop.f32.mrb[58].mxu1  ;;  %v10487_v29 = vsel %vm4858_vm2, %v20514_v17, 0.0 }
 0xab9   :  { %22518 = vst [vmem:[#allocation32_spill] sm:$0xff] %v20523_v33  ;;  %v10484_v4 = vadd.f32 %v10483_v51, %v10482_v46  ;;  %v10680_v1 = vadd.f32 %v10679_v18, %v10678_v59  ;;  %v20525_v34 = vpop.f32.mrb[59].mxu1  ;;  %v10597_v59 = vmul.f32 %v20523_v33, %v20523_v33  ;;  %v10489_v57 = vsel %vm4858_vm2, %v20523_v33, 0.0 }
 0xaba   :  { %22519 = vst [vmem:[#allocation33_spill] sm:$0xff] %v20525_v34  ;;  %v10681_v9 = vsel %vm4858_vm2, %v10594_v61, 0.0  ;;  %v10485_v50 = vsel %vm4858_vm2, %v20525_v34, 0.0  ;;  %v10595_v7 = vmul.f32 %v20525_v34, %v20525_v34  ;;  %v10685_v61 = vsel %vm4858_vm2, %v10596_v45, 0.0 }
 0xabb   :  { %v10682_v12 = vadd.f32 %v10681_v9, %v10680_v1  ;;  %v10486_v10 = vadd.f32 %v10485_v50, %v10484_v4  ;;  %v10687_v9 = vsel %vm4858_vm2, %v10597_v59, 0.0 }
 0xabc   :  { %v10683_v46 = vsel %vm4858_vm2, %v10595_v7, 0.0 }
 0xabd   :  { %v10488_v18 = vadd.f32 %v10487_v29, %v10486_v10  ;;  %v10684_v51 = vadd.f32 %v10683_v46, %v10682_v12 }
 0xabe   :  { %v20542_v13 = vpop.f32.mrb[60].mxu1 }
 0xabf   :  { %22520 = vst [vmem:[#allocation35_spill] sm:$0xff] %v20542_v13  ;;  %v10686_v34 = vadd.f32 %v10685_v61, %v10684_v51  ;;  %v20544_v1 = vpop.f32.mrb[61].mxu1  ;;  %v10490_v4 = vadd.f32 %v10489_v57, %v10488_v18  ;;  %v10600_v46 = vmul.f32 %v20542_v13, %v20542_v13 }
 0xac0   :  { %22521 = vst [vmem:[#allocation12_spill] sm:$0xff] %v20544_v1  ;;  %v10491_v50 = vsel %vm4858_vm2, %v20544_v1, 0.0  ;;  %v10598_v29 = vmul.f32 %v20544_v1, %v20544_v1  ;;  %v20551_v7 = vpop.f32.mrb[62].mxu1  ;;  %v10495_v1 = vsel %vm4858_vm2, %v20542_v13, 0.0 }
 0xac1   :  { %22522 = vst [vmem:[#allocation36_spill] sm:$0xff] %v20551_v7  ;;  %v10492_v45 = vadd.f32 %v10491_v50, %v10490_v4  ;;  %v10688_v12 = vadd.f32 %v10687_v9, %v10686_v34  ;;  %v20553_v10 = vpop.f32.mrb[63].mxu1  ;;  %v10601_v34 = vmul.f32 %v20551_v7, %v20551_v7  ;;  %v10497_v33 = vsel %vm4858_vm2, %v20551_v7, 0.0 }
 0xac2   :  { %22523 = vst [vmem:[#allocation22_spill] sm:$0xff] %v20553_v10  ;;  %v10689_v51 = vsel %vm4858_vm2, %v10598_v29, 0.0  ;;  %v10493_v57 = vsel %vm4858_vm2, %v20553_v10, 0.0  ;;  %v10599_v59 = vmul.f32 %v20553_v10, %v20553_v10  ;;  %v10693_v29 = vsel %vm4858_vm2, %v10600_v46, 0.0 }
 0xac3   :  { %v10690_v18 = vadd.f32 %v10689_v51, %v10688_v12  ;;  %v10494_v61 = vadd.f32 %v10493_v57, %v10492_v45  ;;  %v10695_v51 = vsel %vm4858_vm2, %v10601_v34, 0.0 }
 0xac4   :  { %v10691_v4 = vsel %vm4858_vm2, %v10599_v59, 0.0 }
 0xac5   :  { %v10496_v9 = vadd.f32 %v10495_v1, %v10494_v61  ;;  %v10692_v50 = vadd.f32 %v10691_v4, %v10690_v18 }
 0xac6   :  { %v20570_v17 = vpop.f32.mrb[64].mxu1 }
 0xac7   :  { %22524 = vst [vmem:[#allocation34_spill] sm:$0xff] %v20570_v17  ;;  %v10694_v10 = vadd.f32 %v10693_v29, %v10692_v50  ;;  %v20572_v12 = vpop.f32.mrb[65].mxu1  ;;  %v10498_v45 = vadd.f32 %v10497_v33, %v10496_v9  ;;  %v10604_v4 = vmul.f32 %v20570_v17, %v20570_v17 }
 0xac8   :  { %22525 = vst [vmem:[#allocation11_spill] sm:$0xff] %v20572_v12  ;;  %v10499_v57 = vsel %vm4858_vm2, %v20572_v12, 0.0  ;;  %v10602_v1 = vmul.f32 %v20572_v12, %v20572_v12  ;;  %v20579_v59 = vpop.f32.mrb[66].mxu1  ;;  %v10503_v12 = vsel %vm4858_vm2, %v20570_v17, 0.0 }
 0xac9   :  { %22526 = vst [vmem:[#allocation13_spill] sm:$0xff] %v20579_v59  ;;  %v10500_v46 = vadd.f32 %v10499_v57, %v10498_v45  ;;  %v10696_v18 = vadd.f32 %v10695_v51, %v10694_v10  ;;  %v20581_v61 = vpop.f32.mrb[67].mxu1  ;;  %v10605_v10 = vmul.f32 %v20579_v59, %v20579_v59  ;;  %v10505_v7 = vsel %vm4858_vm2, %v20579_v59, 0.0 }
 0xaca   :  { %22527 = vst [vmem:[#allocation16_spill] sm:$0xff] %v20581_v61  ;;  %v10697_v50 = vsel %vm4858_vm2, %v10602_v1, 0.0  ;;  %v10501_v33 = vsel %vm4858_vm2, %v20581_v61, 0.0  ;;  %v10603_v34 = vmul.f32 %v20581_v61, %v20581_v61  ;;  %v10701_v1 = vsel %vm4858_vm2, %v10604_v4, 0.0 }
 0xacb   :  { %v10698_v9 = vadd.f32 %v10697_v50, %v10696_v18  ;;  %v10502_v29 = vadd.f32 %v10501_v33, %v10500_v46  ;;  %v10703_v50 = vsel %vm4858_vm2, %v10605_v10, 0.0 }
 0xacc   :  { %v10699_v45 = vsel %vm4858_vm2, %v10603_v34, 0.0 }
 0xacd   :  { %v10504_v51 = vadd.f32 %v10503_v12, %v10502_v29  ;;  %v10700_v57 = vadd.f32 %v10699_v45, %v10698_v9 }
 0xace   :  { %v20598_v13 = vpop.f32.mrb[68].mxu1 }
 0xacf   :  { %22528 = vst [vmem:[#allocation18_spill] sm:$0xff] %v20598_v13  ;;  %v10702_v61 = vadd.f32 %v10701_v1, %v10700_v57  ;;  %v20600_v18 = vpop.f32.mrb[69].mxu1  ;;  %v10506_v46 = vadd.f32 %v10505_v7, %v10504_v51  ;;  %v10608_v45 = vmul.f32 %v20598_v13, %v20598_v13 }
 0xad0   :  { %22529 = vst [vmem:[#allocation15_spill] sm:$0xff] %v20600_v18  ;;  %v10507_v33 = vsel %vm4858_vm2, %v20600_v18, 0.0  ;;  %v10606_v12 = vmul.f32 %v20600_v18, %v20600_v18  ;;  %v20607_v34 = vpop.f32.mrb[70].mxu1  ;;  %v10511_v18 = vsel %vm4858_vm2, %v20598_v13, 0.0 }
 0xad1   :  { %22530 = vst [vmem:[#allocation42_spill] sm:$0xff] %v20607_v34  ;;  %v10508_v4 = vadd.f32 %v10507_v33, %v10506_v46  ;;  %v10704_v9 = vadd.f32 %v10703_v50, %v10702_v61  ;;  %v20609_v29 = vpop.f32.mrb[71].mxu1  ;;  %v10609_v61 = vmul.f32 %v20607_v34, %v20607_v34  ;;  %v10513_v59 = vsel %vm4858_vm2, %v20607_v34, 0.0 }
 0xad2   :  { %22531 = vst [vmem:[#allocation43_spill] sm:$0xff] %v20609_v29  ;;  %v10705_v57 = vsel %vm4858_vm2, %v10606_v12, 0.0  ;;  %v10509_v7 = vsel %vm4858_vm2, %v20609_v29, 0.0  ;;  %v10607_v10 = vmul.f32 %v20609_v29, %v20609_v29  ;;  %v10709_v12 = vsel %vm4858_vm2, %v10608_v45, 0.0  ;;  %v20628_v29 = vpop.f32.mrb[101].mxu0 }
 0xad3   :  { %v10706_v51 = vadd.f32 %v10705_v57, %v10704_v9  ;;  %v10510_v1 = vadd.f32 %v10509_v7, %v10508_v4  ;;  %v10711_v7 = vsel %vm4858_vm2, %v10609_v61, 0.0 }
 0xad4   :  { %v10707_v46 = vsel %vm4858_vm2, %v10607_v10, 0.0 }
 0xad5   :  { %v10512_v50 = vadd.f32 %v10511_v18, %v10510_v1  ;;  %v10708_v33 = vadd.f32 %v10707_v46, %v10706_v51 }
 0xad6   :  { %v20626_v17 = vpop.f32.mrb[72].mxu1 }
 0xad7   :  { %22532 = vst [vmem:[#allocation44_spill] sm:$0xff] %v20626_v17  ;;  %v10710_v4 = vadd.f32 %v10709_v12, %v10708_v33  ;;  %v20630_v9 = vpop.f32.mrb[73].mxu1  ;;  %v10514_v57 = vadd.f32 %v10513_v59, %v10512_v50  ;;  %v10612_v33 = vmul.f32 %v20626_v17, %v20626_v17 }
 0xad8   :  { %22533 = vst [vmem:[#allocation45_spill] sm:$0xff] %v20630_v9  ;;  %v10515_v10 = vsel %vm4858_vm2, %v20630_v9, 0.0  ;;  %v10610_v18 = vmul.f32 %v20630_v9, %v20630_v9  ;;  %v20637_v45 = vpop.f32.mrb[74].mxu1  ;;  %v10519_v9 = vsel %vm4858_vm2, %v20626_v17, 0.0 }
 0xad9   :  { %22534 = vst [vmem:[#allocation46_spill] sm:$0xff] %v20637_v45  ;;  %v10516_v51 = vadd.f32 %v10515_v10, %v10514_v57  ;;  %v10712_v1 = vadd.f32 %v10711_v7, %v10710_v4  ;;  %v20639_v46 = vpop.f32.mrb[75].mxu1  ;;  %v10613_v4 = vmul.f32 %v20637_v45, %v20637_v45  ;;  %v10521_v13 = vsel %vm4858_vm2, %v20637_v45, 0.0 }
 0xada   :  { %22535 = vst [vmem:[#allocation47_spill] sm:$0xff] %v20639_v46  ;;  %v10713_v12 = vsel %vm4858_vm2, %v10610_v18, 0.0  ;;  %v10517_v59 = vsel %vm4858_vm2, %v20639_v46, 0.0  ;;  %v10611_v61 = vmul.f32 %v20639_v46, %v20639_v46  ;;  %v10717_v18 = vsel %vm4858_vm2, %v10612_v33, 0.0 }
 0xadb   :  { %v10714_v50 = vadd.f32 %v10713_v12, %v10712_v1  ;;  %v10518_v34 = vadd.f32 %v10517_v59, %v10516_v51  ;;  %v10719_v12 = vsel %vm4858_vm2, %v10613_v4, 0.0 }
 0xadc   :  { %v10715_v57 = vsel %vm4858_vm2, %v10611_v61, 0.0 }
 0xadd   :  { %v10520_v7 = vadd.f32 %v10519_v9, %v10518_v34  ;;  %v10716_v10 = vadd.f32 %v10715_v57, %v10714_v50 }
 0xade   :  { %v20656_v42 = vpop.f32.mrb[76].mxu1 }
 0xadf   :  { %22536 = vst [vmem:[#allocation48_spill] sm:$0xff] %v20656_v42  ;;  %v10718_v46 = vadd.f32 %v10717_v18, %v10716_v10  ;;  %v20658_v1 = vpop.f32.mrb[77].mxu1  ;;  %v10522_v51 = vadd.f32 %v10521_v13, %v10520_v7  ;;  %v10616_v57 = vmul.f32 %v20656_v42, %v20656_v42 }
 0xae0   :  { %22537 = vst [vmem:[#allocation49_spill] sm:$0xff] %v20658_v1  ;;  %v10523_v59 = vsel %vm4858_vm2, %v20658_v1, 0.0  ;;  %v10614_v34 = vmul.f32 %v20658_v1, %v20658_v1  ;;  %v20665_v9 = vpop.f32.mrb[78].mxu1  ;;  %v10527_v1 = vsel %vm4858_vm2, %v20656_v42, 0.0 }
 0xae1   :  { %22538 = vst [vmem:[#allocation50_spill] sm:$0xff] %v20665_v9  ;;  %v10524_v33 = vadd.f32 %v10523_v59, %v10522_v51  ;;  %v10720_v61 = vadd.f32 %v10719_v12, %v10718_v46  ;;  %v20667_v50 = vpop.f32.mrb[79].mxu1  ;;  %v10617_v46 = vmul.f32 %v20665_v9, %v20665_v9  ;;  %v10529_v45 = vsel %vm4858_vm2, %v20665_v9, 0.0 }
 0xae2   :  { %22539 = vst [vmem:[#allocation51_spill] sm:$0xff] %v20667_v50  ;;  %v10721_v10 = vsel %vm4858_vm2, %v10614_v34, 0.0  ;;  %v10525_v13 = vsel %vm4858_vm2, %v20667_v50, 0.0  ;;  %v10615_v4 = vmul.f32 %v20667_v50, %v20667_v50  ;;  %v10725_v34 = vsel %vm4858_vm2, %v10616_v57, 0.0 }
 0xae3   :  { %v10722_v7 = vadd.f32 %v10721_v10, %v10720_v61  ;;  %v10526_v18 = vadd.f32 %v10525_v13, %v10524_v33  ;;  %v10727_v10 = vsel %vm4858_vm2, %v10617_v46, 0.0 }
 0xae4   :  { %v10723_v51 = vsel %vm4858_vm2, %v10615_v4, 0.0 }
 0xae5   :  { %v10528_v12 = vadd.f32 %v10527_v1, %v10526_v18  ;;  %v10724_v59 = vadd.f32 %v10723_v51, %v10722_v7 }
 0xae6   :  { %v20684_v17 = vpop.f32.mrb[80].mxu1 }
 0xae7   :  { %22540 = vst [vmem:[#allocation52_spill] sm:$0xff] %v20684_v17  ;;  %v10726_v50 = vadd.f32 %v10725_v34, %v10724_v59  ;;  %v20686_v61 = vpop.f32.mrb[81].mxu1  ;;  %v10530_v33 = vadd.f32 %v10529_v45, %v10528_v12  ;;  %v10620_v51 = vmul.f32 %v20684_v17, %v20684_v17 }
 0xae8   :  { %22541 = vst [vmem:[#allocation53_spill] sm:$0xff] %v20686_v61  ;;  %v10531_v13 = vsel %vm4858_vm2, %v20686_v61, 0.0  ;;  %v10618_v1 = vmul.f32 %v20686_v61, %v20686_v61  ;;  %v20693_v4 = vpop.f32.mrb[82].mxu1  ;;  %v10535_v61 = vsel %vm4858_vm2, %v20684_v17, 0.0 }
 0xae9   :  { %22542 = vst [vmem:[#allocation54_spill] sm:$0xff] %v20693_v4  ;;  %v10532_v57 = vadd.f32 %v10531_v13, %v10530_v33  ;;  %v10728_v7 = vadd.f32 %v10727_v10, %v10726_v50  ;;  %v20695_v18 = vpop.f32.mrb[83].mxu1  ;;  %v10621_v50 = vmul.f32 %v20693_v4, %v20693_v4  ;;  %v10537_v9 = vsel %vm4858_vm2, %v20693_v4, 0.0 }
 0xaea   :  { %22543 = vst [vmem:[#allocation55_spill] sm:$0xff] %v20695_v18  ;;  %v10729_v59 = vsel %vm4858_vm2, %v10618_v1, 0.0  ;;  %v10533_v45 = vsel %vm4858_vm2, %v20695_v18, 0.0  ;;  %v10619_v46 = vmul.f32 %v20695_v18, %v20695_v18  ;;  %v10733_v1 = vsel %vm4858_vm2, %v10620_v51, 0.0  ;;  %v20723_v51 = vpop.f32.mrb[102].mxu0 }
 0xaeb   :  { %v10730_v12 = vadd.f32 %v10729_v59, %v10728_v7  ;;  %v10534_v34 = vadd.f32 %v10533_v45, %v10532_v57  ;;  %v10735_v59 = vsel %vm4858_vm2, %v10621_v50, 0.0 }
 0xaec   :  { %v10731_v33 = vsel %vm4858_vm2, %v10619_v46, 0.0 }
 0xaed   :  { %v10536_v10 = vadd.f32 %v10535_v61, %v10534_v34  ;;  %v10732_v13 = vadd.f32 %v10731_v33, %v10730_v12 }
 0xaee   :  { %v20712_v42 = vpop.f32.mrb[84].mxu1 }
 0xaef   :  { %22544 = vst [vmem:[#allocation56_spill] sm:$0xff] %v20712_v42  ;;  %v10734_v18 = vadd.f32 %v10733_v1, %v10732_v13  ;;  %v20714_v7 = vpop.f32.mrb[85].mxu1  ;;  %v10538_v57 = vadd.f32 %v10537_v9, %v10536_v10  ;;  %v20727_v13 = vpop.f32.mrb[103].mxu0  ;;  %v10624_v9 = vmul.f32 %v20712_v42, %v20712_v42 }
 0xaf0   :  { %22545 = vst [vmem:[#allocation57_spill] sm:$0xff] %v20714_v7  ;;  %v10539_v45 = vsel %vm4858_vm2, %v20714_v7, 0.0  ;;  %v10622_v61 = vmul.f32 %v20714_v7, %v20714_v7  ;;  %v20721_v46 = vpop.f32.mrb[86].mxu1 }
 0xaf1   :  { %22546 = vst [vmem:[#allocation58_spill] sm:$0xff] %v20721_v46  ;;  %v10540_v12 = vadd.f32 %v10539_v45, %v10538_v57  ;;  %v10736_v34 = vadd.f32 %v10735_v59, %v10734_v18  ;;  %v20725_v33 = vpop.f32.mrb[87].mxu1  ;;  %v10543_v18 = vsel %vm4858_vm2, %v20712_v42, 0.0  ;;  %v10625_v57 = vmul.f32 %v20721_v46, %v20721_v46 }
 0xaf2   :  { %22547 = vst [vmem:[#allocation59_spill] sm:$0xff] %v20725_v33  ;;  %v10737_v50 = vsel %vm4858_vm2, %v10622_v61, 0.0  ;;  %v10541_v10 = vsel %vm4858_vm2, %v20725_v33, 0.0  ;;  %v10623_v1 = vmul.f32 %v20725_v33, %v20725_v33  ;;  %v10741_v61 = vsel %vm4858_vm2, %v10624_v9, 0.0  ;;  %v20746_v33 = vpop.f32.mrb[104].mxu0 }
 0xaf3   :  { %v10738_v7 = vadd.f32 %v10737_v50, %v10736_v34  ;;  %v10542_v4 = vadd.f32 %v10541_v10, %v10540_v12  ;;  %v10545_v0 = vsel %vm4858_vm2, %v20721_v46, 0.0  ;;  %v20750_v10 = vpop.f32.mrb[105].mxu0  ;;  %v10743_v42 = vsel %vm4858_vm2, %v10625_v57, 0.0 }
 0xaf4   :  { %v10739_v59 = vsel %vm4858_vm2, %v10623_v1, 0.0  ;;  %v20759_v1 = vpop.f32.mrb[106].mxu0 }
 0xaf5   :  { %v10544_v45 = vadd.f32 %v10543_v18, %v10542_v4  ;;  %v10740_v17 = vadd.f32 %v10739_v59, %v10738_v7 }
 0xaf6   :  { %v20744_v8 = vpop.f32.mrb[88].mxu1 }
 0xaf7   :  { %22548 = vst [vmem:[#allocation60_spill] sm:$0xff] %v20744_v8  ;;  %v10742_v12 = vadd.f32 %v10741_v61, %v10740_v17  ;;  %v20748_v34 = vpop.f32.mrb[89].mxu1  ;;  %v10546_v50 = vadd.f32 %v10545_v0, %v10544_v45  ;;  %v20763_v61 = vpop.f32.mrb[107].mxu0  ;;  %v10628_v0 = vmul.f32 %v20744_v8, %v20744_v8 }
 0xaf8   :  { %22549 = vst [vmem:[#allocation61_spill] sm:$0xff] %v20748_v34  ;;  %v10547_v4 = vsel %vm4858_vm2, %v20748_v34, 0.0  ;;  %v10626_v7 = vmul.f32 %v20748_v34, %v20748_v34  ;;  %v20757_v9 = vpop.f32.mrb[90].mxu1 }
 0xaf9   :  { %22550 = vst [vmem:[#allocation62_spill] sm:$0xff] %v20757_v9  ;;  %v10548_v18 = vadd.f32 %v10547_v4, %v10546_v50  ;;  %v10744_v59 = vadd.f32 %v10743_v42, %v10742_v12  ;;  %v20761_v17 = vpop.f32.mrb[91].mxu1  ;;  %v10551_v42 = vsel %vm4858_vm2, %v20744_v8, 0.0  ;;  %v10629_v12 = vmul.f32 %v20757_v9, %v20757_v9 }
 0xafa   :  { %22551 = vst [vmem:[#allocation63_spill] sm:$0xff] %v20761_v17  ;;  %v10745_v57 = vsel %vm4858_vm2, %v10626_v7, 0.0  ;;  %v10549_v45 = vsel %vm4858_vm2, %v20761_v17, 0.0  ;;  %v10627_v34 = vmul.f32 %v20761_v17, %v20761_v17  ;;  %v10749_v7 = vsel %vm4858_vm2, %v10628_v0, 0.0  ;;  %v20782_v17 = vpop.f32.mrb[108].mxu0 }
 0xafb   :  { %v10746_v46 = vadd.f32 %v10745_v57, %v10744_v59  ;;  %v10550_v25 = vadd.f32 %v10549_v45, %v10548_v18  ;;  %v10553_v27 = vsel %vm4858_vm2, %v20757_v9, 0.0  ;;  %22553 = vst [vmem:[#allocation65_spill] sm:$0xff] %v20782_v17  ;;  %v20786_v45 = vpop.f32.mrb[109].mxu0  ;;  %v10751_v8 = vsel %vm4858_vm2, %v10629_v12, 0.0 }
 0xafc   :  { %v10747_v50 = vsel %vm4858_vm2, %v10627_v34, 0.0  ;;  %22555 = vst [vmem:[#allocation67_spill] sm:$0xff] %v20786_v45  ;;  %v20795_v0 = vpop.f32.mrb[110].mxu0 }
 0xafd   :  { %v10552_v4 = vadd.f32 %v10551_v42, %v10550_v25  ;;  %v10748_v3 = vadd.f32 %v10747_v50, %v10746_v46  ;;  %22557 = vst [vmem:[#allocation69_spill] sm:$0xff] %v20795_v0 }
 0xafe   :  { %v20780_v23 = vpop.f32.mrb[92].mxu1 }
 0xaff   :  { %22552 = vst [vmem:[#allocation64_spill] sm:$0xff] %v20780_v23  ;;  %v10750_v18 = vadd.f32 %v10749_v7, %v10748_v3  ;;  %v20784_v59 = vpop.f32.mrb[93].mxu1  ;;  %v10554_v57 = vadd.f32 %v10553_v27, %v10552_v4  ;;  %v20799_v7 = vpop.f32.mrb[111].mxu0  ;;  %v10632_v27 = vmul.f32 %v20780_v23, %v20780_v23 }
 0xb00   :  { %22554 = vst [vmem:[#allocation66_spill] sm:$0xff] %v20784_v59  ;;  %v10555_v25 = vsel %vm4858_vm2, %v20784_v59, 0.0  ;;  %v10630_v46 = vmul.f32 %v20784_v59, %v20784_v59  ;;  %v20793_v34 = vpop.f32.mrb[94].mxu1  ;;  %22559 = vst [vmem:[#allocation71_spill] sm:$0xff] %v20799_v7  ;;  %v20816_v45 = vpop.f32.mrb[112].mxu0 }
 0xb01   :  { %22556 = vst [vmem:[#allocation68_spill] sm:$0xff] %v20793_v34  ;;  %v10556_v42 = vadd.f32 %v10555_v25, %v10554_v57  ;;  %v10752_v50 = vadd.f32 %v10751_v8, %v10750_v18  ;;  %v20797_v3 = vpop.f32.mrb[95].mxu1  ;;  %v10559_v8 = vsel %vm4858_vm2, %v20780_v23, 0.0  ;;  %v10633_v18 = vmul.f32 %v20793_v34, %v20793_v34  ;;  %22560 = vst [vmem:[#allocation72_spill] sm:$0xff] %v20816_v45 }
 0xb02   :  { %22558 = vst [vmem:[#allocation70_spill] sm:$0xff] %v20797_v3  ;;  %v10753_v12 = vsel %vm4858_vm2, %v10630_v46, 0.0  ;;  %v10557_v4 = vsel %vm4858_vm2, %v20797_v3, 0.0  ;;  %v10631_v59 = vmul.f32 %v20797_v3, %v20797_v3  ;;  %v10757_v46 = vsel %vm4858_vm2, %v10632_v27, 0.0 }
 0xb03   :  { %v10754_v9 = vadd.f32 %v10753_v12, %v10752_v50  ;;  %v10558_v41 = vadd.f32 %v10557_v4, %v10556_v42  ;;  %v10561_v0 = vsel %vm4858_vm2, %v20793_v34, 0.0  ;;  %v20818_v42 = vpop.f32.mrb[113].mxu0  ;;  %v10759_v12 = vsel %vm4858_vm2, %v10633_v18, 0.0 }
 0xb04   :  { %v10755_v57 = vsel %vm4858_vm2, %v10631_v59, 0.0  ;;  %v20821_v4 = vpop.f32.mrb[114].mxu0 }
 0xb05   :  { %v10560_v25 = vadd.f32 %v10559_v8, %v10558_v41  ;;  %v10756_v7 = vadd.f32 %v10755_v57, %v10754_v9  ;;  %22561 = vst [vmem:[#allocation73_spill] sm:$0xff] %v20821_v4  ;;  %v20823_v59 = vpop.f32.mrb[115].mxu0 }
 0xb06   :  { %v20825_v57 = vpop.f32.mrb[116].mxu0 }
 0xb07   :  { %v10562_v3 = vadd.f32 %v10561_v0, %v10560_v25  ;;  %v10758_v50 = vadd.f32 %v10757_v46, %v10756_v7  ;;  %v20827_v0 = vpop.f32.mrb[117].mxu0 }
 0xb08   :  { %22562 = vst [vmem:[#allocation74_spill] sm:$0xff] %v20827_v0  ;;  %v20829_v7 = vpop.f32.mrb[118].mxu0 }
 0xb09   :  { %v10563_v23 = vrot.slane %v10562_v3, 4  ;;  %v10760_v17 = vadd.f32 %v10759_v12, %v10758_v50  ;;  %22563 = vst [vmem:[#allocation75_spill] sm:$0xff] %v20829_v7  ;;  %v20831_v46 = vpop.f32.mrb[119].mxu0 }
 0xb0b   :  { %v10564_v41 = vadd.f32 %v10563_v23, %v10562_v3  ;;  %v10761_v9 = vrot.slane %v10760_v17, 4  ;;  %v20835_v3 = vpop.f32.mrb[120].mxu0 }
 0xb0d   :  { %v10565_v27 = vrot.slane %v10564_v41, 2  ;;  %v10762_v8 = vadd.f32 %v10761_v9, %v10760_v17  ;;  %v20839_v9 = vpop.f32.mrb[121].mxu0 }
 0xb0f   :  { %v10566_v34 = vadd.f32 %v10565_v27, %v10564_v41  ;;  %v10763_v45 = vrot.slane %v10762_v8, 2  ;;  %v20841_v27 = vpop.f32.mrb[122].mxu0 }
 0xb10   :  { %v20843_v0 = vpop.f32.mrb[123].mxu0 }
 0xb11   :  { %v10567_v25 = vrot.slane %v10566_v34, 1  ;;  %v10764_v18 = vadd.f32 %v10763_v45, %v10762_v8  ;;  %v20848_v45 = vld [vmem:[%s22114_s8] ss:$0 sm:$0xff] }
 0xb12   :  { %v20856_v8 = vadd.f32 %v20848_v45, %v20275_v54  ;;  %v20876_v54 = vadd.f32 %v20285_v36, %v20848_v45  ;;  %v20894_v36 = vadd.f32 %v20293_v56, %v20848_v45  ;;  %v20916_v56 = vadd.f32 %v20848_v45, %v20303_v6 }
 0xb13   :  { %v10568_v4 = vadd.f32 %v10567_v25, %v10566_v34  ;;  %v10765_v50 = vrot.slane %v10764_v18, 1  ;;  %v20860_v25 = vadd.f32 %v20277_v2, %v20848_v45  ;;  %v20882_v2 = vadd.f32 %v20848_v45, %v20287_v30 }
 0xb14   :  { %22565 = vst [vmem:[#allocation77_spill] sm:$0xff] %v20856_v8  ;;  %22570 = vst [vmem:[#allocation82_spill] sm:$0xff] %v20876_v54  ;;  %v20902_v30 = vadd.f32 %v20297_v21, %v20848_v45  ;;  %v20924_v21 = vadd.f32 %v20848_v45, %v20307_v38  ;;  %v20936_v6 = vadd.f32 %v20313_v24, %v20848_v45 }
 0xb15   :  { %v20833_v12 = vmul.f32 0.001953125, %v10568_v4  ;;  %v10766_v23 = vadd.f32 %v10765_v50, %v10764_v18  ;;  %v20852_v4 = vadd.f32 %v20273_v55, %v20848_v45  ;;  %22566 = vst [vmem:[#allocation78_spill] sm:$0xff] %v20860_v25  ;;  %v20864_v50 = vadd.f32 %v20848_v45, %v20279_v37  ;;  %22571 = vst [vmem:[#allocation83_spill] sm:$0xff] %v20882_v2 }
 0xb16   :  { %v20872_v55 = vadd.f32 %v20848_v45, %v20283_v49  ;;  %v20886_v37 = vadd.f32 %v20289_v43, %v20848_v45  ;;  %22574 = vst [vmem:[#allocation86_spill] sm:$0xff] %v20894_v36  ;;  %22576 = vst [vmem:[#allocation88_spill] sm:$0xff] %v20902_v30  ;;  %v20906_v43 = vadd.f32 %v20848_v45, %v20299_v63 }
 0xb17   :  { %v10767_v17 = vmul.f32 0.001953125, %v10766_v23  ;;  %v10768_v41 = vmul.f32 %v20833_v12, %v20833_v12  ;;  %22564 = vst [vmem:[#allocation76_spill] sm:$0xff] %v20852_v4  ;;  %22567 = vst [vmem:[#allocation79_spill] sm:$0xff] %v20864_v50  ;;  %v20878_v23 = vpop.f32.mrb[124].mxu0  ;;  %v20944_v38 = vadd.f32 %v20317_v22, %v20848_v45  ;;  %v20956_v24 = vadd.f32 %v20848_v45, %v20323_v28 }
 0xb18   :  { %22569 = vst [vmem:[#allocation81_spill] sm:$0xff] %v20872_v55  ;;  %22572 = vst [vmem:[#allocation84_spill] sm:$0xff] %v20886_v37  ;;  %v11523_v49 = vpop.f32.mrb[125].mxu0  ;;  %v20964_v22 = vadd.f32 %v20848_v45, %v20327_v44  ;;  %v20976_v28 = vadd.f32 %v20333_v62, %v20848_v45  ;;  %v20984_v44 = vadd.f32 %v20337_v35, %v20848_v45 }
 0xb19   :  { %v10769_v7 = vsub.f32 %v10767_v17, %v10768_v41  ;;  %v20898_v17 = vadd.f32 %v20848_v45, %v20295_v32  ;;  %22577 = vst [vmem:[#allocation89_spill] sm:$0xff] %v20906_v43  ;;  %v20912_v41 = vadd.f32 %v20301_v47, %v20848_v45  ;;  %22580 = vst [vmem:[#allocation92_spill] sm:$0xff] %v20916_v56  ;;  %v22679_v56 = vld [vmem:[#allocation43_spill] sm:$0xff] }
 0xb1a   :  { %v20920_v32 = vadd.f32 %v20305_v15, %v20848_v45  ;;  %22582 = vst [vmem:[#allocation94_spill] sm:$0xff] %v20924_v21  ;;  %v20932_v47 = vadd.f32 %v20848_v45, %v20311_v26  ;;  %22585 = vst [vmem:[#allocation97_spill] sm:$0xff] %v20936_v6  ;;  %v20940_v15 = vadd.f32 %v20848_v45, %v20315_v16  ;;  %v22675_v21 = vld [vmem:[#allocation70_spill] sm:$0xff] }
 0xb1b   :  { %v10770_v34 = vmax.f32 %v10769_v7, 0.0  ;;  %v20868_v7 = vadd.f32 %v20281_v19, %v20848_v45  ;;  %v20890_v19 = vadd.f32 %v20848_v45, %v20291_v31  ;;  %22575 = vst [vmem:[#allocation87_spill] sm:$0xff] %v20898_v17  ;;  %v20908_v31 = vpop.f32.mrb[126].mxu0  ;;  %22579 = vst [vmem:[#allocation91_spill] sm:$0xff] %v20912_v41  ;;  %v20952_v26 = vadd.f32 %v20321_v48, %v20848_v45  ;;  %v22677_v41 = vld [vmem:[#allocation15_spill] sm:$0xff] }
 0xb1c   :  { %22578 = vst [vmem:[#allocation90_spill] sm:$0xff] %v20908_v31  ;;  %22581 = vst [vmem:[#allocation93_spill] sm:$0xff] %v20920_v32  ;;  %v11526_v63 = vpop.f32.mrb[127].mxu0  ;;  %v20960_v16 = vadd.f32 %v20325_v14, %v20848_v45  ;;  %v20972_v48 = vadd.f32 %v20848_v45, %v20331_v39  ;;  %v20980_v14 = vadd.f32 %v20848_v45, %v20335_v60  ;;  %v22609_v31 = vld [vmem:[#allocation65_spill] sm:$0xff] }
 0xb1d   :  { %v10772_v18 = vadd.f32 1e-05, %v10770_v34  ;;  %22568 = vst [vmem:[#allocation80_spill] sm:$0xff] %v20868_v7  ;;  %22573 = vst [vmem:[#allocation85_spill] sm:$0xff] %v20890_v19  ;;  %v20928_v34 = vadd.f32 %v20309_v11, %v20848_v45  ;;  %v20948_v11 = vadd.f32 %v20848_v45, %v20319_v20  ;;  %v20968_v20 = vadd.f32 %v20329_v53, %v20848_v45 }
 0xb1e   :  { %22584 = vst [vmem:[#allocation96_spill] sm:$0xff] %v20932_v47  ;;  %22586 = vst [vmem:[#allocation98_spill] sm:$0xff] %v20940_v15  ;;  %v20988_v53 = vadd.f32 %v20848_v45, %v20339_v58  ;;  %v20992_v39 = vadd.f32 %v20341_v52, %v20848_v45  ;;  %v20996_v62 = vadd.f32 %v20848_v45, %v20343_v5  ;;  %v10771_v58 = vld [vmem:[%s22115_s5] sm:$0x1]  ;;  %v22671_v15 = vld [vmem:[#allocation16_spill] sm:$0xff] }
 0xb1f   :  { %15801 = vrsqrt.f32 %v10772_v18  ;;  %22583 = vst [vmem:[#allocation95_spill] sm:$0xff] %v20928_v34  ;;  %22587 = vst [vmem:[#allocation99_spill] sm:$0xff] %v20944_v38  ;;  %v21000_v60 = vadd.f32 %v20345_v40, %v20848_v45  ;;  %v21004_v35 = vadd.f32 %v20848_v45, %v20628_v29  ;;  %v21011_v52 = vadd.f32 %v20723_v51, %v20848_v45 }
 0xb20   :  { %22588 = vst [vmem:[#allocation100_spill] sm:$0xff] %v20948_v11  ;;  %22589 = vst [vmem:[#allocation101_spill] sm:$0xff] %v20952_v26  ;;  %v21015_v5 = vadd.f32 %v20848_v45, %v20727_v13  ;;  %v21019_v40 = vadd.f32 %v20746_v33, %v20848_v45  ;;  %v21023_v29 = vadd.f32 %v20848_v45, %v20750_v10  ;;  %v22613_v10 = vld [vmem:[#allocation69_spill] sm:$0xff]  ;;  %v22670_v11 = vld [vmem:[#allocation11_spill] sm:$0xff] }
 0xb21   :  { %22590 = vst [vmem:[#allocation102_spill] sm:$0xff] %v20956_v24  ;;  %22591 = vst [vmem:[#allocation103_spill] sm:$0xff] %v20960_v16  ;;  %v21027_v18 = vadd.f32 %v20759_v1, %v20848_v45  ;;  %v21031_v51 = vadd.f32 %v20848_v45, %v20763_v61  ;;  %v21035_v13 = vadd.f32 %v22609_v31, %v20848_v45  ;;  %v22617_v61 = vld [vmem:[#allocation72_spill] sm:$0xff]  ;;  %v22667_v24 = vld [vmem:[#allocation22_spill] sm:$0xff] }
 0xb22   :  { %22592 = vst [vmem:[#allocation104_spill] sm:$0xff] %v20964_v22  ;;  %22593 = vst [vmem:[#allocation105_spill] sm:$0xff] %v20968_v20  ;;  %v21055_v31 = vadd.f32 %v20848_v45, %v20818_v42  ;;  %v22666_v22 = vld [vmem:[#allocation12_spill] sm:$0xff] }
 0xb23   :  { %22594 = vst [vmem:[#allocation106_spill] sm:$0xff] %v20972_v48  ;;  %22595 = vst [vmem:[#allocation107_spill] sm:$0xff] %v20976_v28  ;;  %v22663_v48 = vld [vmem:[#allocation33_spill] sm:$0xff] }
 0xb24   :  { %22596 = vst [vmem:[#allocation108_spill] sm:$0xff] %v20980_v14  ;;  %22597 = vst [vmem:[#allocation109_spill] sm:$0xff] %v20984_v44  ;;  %v22662_v14 = vld [vmem:[#allocation31_spill] sm:$0xff] }
 0xb25   :  { %22598 = vst [vmem:[#allocation110_spill] sm:$0xff] %v20988_v53  ;;  %22599 = vst [vmem:[#allocation111_spill] sm:$0xff] %v20992_v39  ;;  %v22659_v53 = vld [vmem:[#allocation41_spill] sm:$0xff] }
 0xb26   :  { %22600 = vst [vmem:[#allocation112_spill] sm:$0xff] %v20996_v62  ;;  %22601 = vst [vmem:[#allocation113_spill] sm:$0xff] %v21000_v60  ;;  %v22654_v60 = vld [vmem:[#allocation29_spill] sm:$0xff]  ;;  %v22658_v62 = vld [vmem:[#allocation7_spill] sm:$0xff] }
 0xb27   :  { %22602 = vst [vmem:[#allocation114_spill] sm:$0xff] %v21004_v35  ;;  %22603 = vst [vmem:[#allocation115_spill] sm:$0xff] %v21011_v52  ;;  %v22615_v52 = vld [vmem:[#allocation71_spill] sm:$0xff]  ;;  %v22655_v35 = vld [vmem:[#allocation30_spill] sm:$0xff] }
 0xb28   :  { %22604 = vst [vmem:[#allocation116_spill] sm:$0xff] %v21015_v5  ;;  %22605 = vst [vmem:[#allocation117_spill] sm:$0xff] %v21019_v40  ;;  %v22611_v5 = vld [vmem:[#allocation67_spill] sm:$0xff]  ;;  %v21047_v1 = vadd.f32 %v20848_v45, %v22615_v52  ;;  %v21067_v52 = vadd.f32 %v20825_v57, %v20848_v45  ;;  %v21086_v57 = vadd.f32 %v20835_v3, %v20848_v45 }
 0xb29   :  { %22606 = vst [vmem:[#allocation118_spill] sm:$0xff] %v21023_v29  ;;  %22607 = vst [vmem:[#allocation119_spill] sm:$0xff] %v21027_v18  ;;  %v21039_v33 = vadd.f32 %v20848_v45, %v22611_v5  ;;  %v15802_v40 = vpop.eup %15801  ;;  %v21043_v29 = vadd.f32 %v22613_v10, %v20848_v45  ;;  %v22620_v5 = vld [vmem:[#allocation73_spill] sm:$0xff]  ;;  %v21063_v10 = vadd.f32 %v20848_v45, %v20823_v59 }
 0xb2a   :  { %22608 = vst [vmem:[#allocation120_spill] sm:$0xff] %v21031_v51  ;;  %22610 = vst [vmem:[#allocation65_spill] sm:$0xff] %v21035_v13  ;;  %v21051_v51 = vadd.f32 %v22617_v61, %v20848_v45  ;;  %v10774_v13 = vmul.f32 %v15802_v40, %v10771_v58  ;;  %v10775_v61 = vld [vmem:[%s22116_s6] sm:$0x1]  ;;  %v21082_v59 = vadd.f32 %v20848_v45, %v20831_v46 }
 0xb2b   :  { %22612 = vst [vmem:[#allocation67_spill] sm:$0xff] %v21039_v33  ;;  %22614 = vst [vmem:[#allocation69_spill] sm:$0xff] %v21043_v29  ;;  %v21059_v33 = vadd.f32 %v22620_v5, %v20848_v45  ;;  %v22626_v58 = vld [vmem:[#allocation75_spill] sm:$0xff]  ;;  %v21102_v46 = vadd.f32 %v20848_v45, %v20843_v0  ;;  %v21106_v3 = vadd.f32 %v20878_v23, %v20848_v45  ;;  %v22640_v0 = vld [vmem:[#allocation17_spill] sm:$0xff] }
 0xb2c   :  { %22616 = vst [vmem:[#allocation71_spill] sm:$0xff] %v21047_v1  ;;  %22618 = vst [vmem:[#allocation72_spill] sm:$0xff] %v21051_v51  ;;  %v22624_v51 = vld [vmem:[#allocation74_spill] sm:$0xff]  ;;  %v21078_v40 = vadd.f32 %v22626_v58, %v20848_v45  ;;  %v10776_v5 = vmul.f32 %v10774_v13, %v20833_v12  ;;  %v21098_v58 = vadd.f32 %v20841_v27, %v20848_v45  ;;  %v22639_v27 = vld [vmem:[#allocation21_spill] sm:$0xff] }
 0xb2d   :  { %22619 = vst [vmem:[#allocation121_spill] sm:$0xff] %v21055_v31  ;;  %22621 = vst [vmem:[#allocation73_spill] sm:$0xff] %v21059_v33  ;;  %v21074_v42 = vadd.f32 %v20848_v45, %v22624_v51  ;;  %v21094_v51 = vadd.f32 %v20848_v45, %v20839_v9  ;;  %v21109_v12 = vadd.f32 %v20848_v45, %v11523_v49  ;;  %v22650_v31 = vld [vmem:[#allocation4_spill] sm:$0xff]  ;;  %v22651_v1 = vld [vmem:[#allocation6_spill] sm:$0xff] }
 0xb2e   :  { %22622 = vst [vmem:[#allocation122_spill] sm:$0xff] %v21063_v10  ;;  %22623 = vst [vmem:[#allocation123_spill] sm:$0xff] %v21067_v52  ;;  %v22630_v52 = vld [vmem:[#allocation28_spill] sm:$0xff]  ;;  %v10777_v9 = vsub.f32 %v10775_v61, %v10776_v5  ;;  %v22645_v5 = vld [vmem:[#allocation14_spill] sm:$0xff] }
 0xb2f   :  { %22625 = vst [vmem:[#allocation74_spill] sm:$0xff] %v21074_v42  ;;  %22627 = vst [vmem:[#allocation75_spill] sm:$0xff] %v21078_v40  ;;  %v21090_v10 = vrot.slane %v10774_v13, %v22630_v52  ;;  %v21112_v13 = vadd.f32 %v20848_v45, %v11526_v63  ;;  %v22644_v63 = vld [vmem:[#allocation9_spill] sm:$0xff] }
 0xb30   :  { %22628 = vst [vmem:[#allocation124_spill] sm:$0xff] %v21082_v59  ;;  %22629 = vst [vmem:[#allocation125_spill] sm:$0xff] %v21086_v57  ;;  %v22641_v59 = vld [vmem:[#allocation19_spill] sm:$0xff]  ;;  %v22647_v40 = vld [vmem:[#allocation25_spill] sm:$0xff] }
 0xb31   :  { %22631 = vst [vmem:[#allocation28_spill] sm:$0xff] %v21090_v10  ;;  %22632 = vst [vmem:[#allocation126_spill] sm:$0xff] %v21094_v51  ;;  %v22638_v51 = vld [vmem:[#allocation20_spill] sm:$0xff]  ;;  %v10787_v23 = vmul.f32 %v22641_v59, %v21090_v10  ;;  %v10790_v61 = vmul.f32 %v22644_v63, %v21090_v10  ;;  %v22648_v59 = vld [vmem:[#allocation38_spill] sm:$0xff]  ;;  %v10797_v63 = vmul.f32 %v21090_v10, %v22651_v1 }
 0xb32   :  { %22633 = vst [vmem:[#allocation127_spill] sm:$0xff] %v21098_v58  ;;  %22634 = vst [vmem:[#allocation128_spill] sm:$0xff] %v21102_v46  ;;  %v10784_v57 = vmul.f32 %v21090_v10, %v22638_v51  ;;  %v10785_v58 = vmul.f32 %v21090_v10, %v22639_v27  ;;  %v10786_v46 = vmul.f32 %v22640_v0, %v21090_v10 }
 0xb33   :  { %22635 = vst [vmem:[#allocation129_spill] sm:$0xff] %v21106_v3  ;;  %22636 = vst [vmem:[#allocation130_spill] sm:$0xff] %v21109_v12  ;;  %v22642_v3 = vld [vmem:[#allocation23_spill] sm:$0xff]  ;;  %v22643_v12 = vld [vmem:[#allocation24_spill] sm:$0xff]  ;;  %v10791_v51 = vmul.f32 %v22645_v5, %v21090_v10  ;;  %v10793_v0 = vmul.f32 %v21090_v10, %v22647_v40  ;;  %v10794_v42 = vmul.f32 %v22648_v59, %v21090_v10 }
 0xb34   :  { %22637 = vst [vmem:[#allocation131_spill] sm:$0xff] %v21112_v13  ;;  %v10788_v49 = vmul.f32 %v21090_v10, %v22642_v3  ;;  %v10789_v45 = vmul.f32 %v21090_v10, %v22643_v12  ;;  %v22646_v13 = vld [vmem:[#allocation26_spill] sm:$0xff]  ;;  %v22649_v3 = vld [vmem:[#allocation39_spill] sm:$0xff]  ;;  %v10796_v12 = vmul.f32 %v21090_v10, %v22650_v31  ;;  %v10800_v40 = vmul.f32 %v21090_v10, %v22654_v60  ;;  %v22657_v31 = vld [vmem:[#allocation37_spill] sm:$0xff] }
 0xb35   :  { %v10792_v27 = vmul.f32 %v21090_v10, %v22646_v13  ;;  %v10795_v33 = vmul.f32 %v22649_v3, %v21090_v10  ;;  %v22652_v5 = vld [vmem:[#allocation27_spill] sm:$0xff]  ;;  %v22653_v13 = vld [vmem:[#allocation40_spill] sm:$0xff]  ;;  %v10801_v59 = vmul.f32 %v21090_v10, %v22655_v35  ;;  %v10803_v44 = vmul.f32 %v22657_v31, %v21090_v10  ;;  %v22664_v31 = vld [vmem:[#allocation10_spill] sm:$0xff] }
 0xb36   :  { %v10798_v29 = vmul.f32 %v22652_v5, %v21090_v10  ;;  %v10799_v18 = vmul.f32 %v22653_v13, %v21090_v10  ;;  %v22656_v3 = vld [vmem:[#allocation3_spill] sm:$0xff]  ;;  %v10804_v1 = vmul.f32 %v21090_v10, %v22658_v62  ;;  %v10805_v5 = vmul.f32 %v21090_v10, %v22659_v53  ;;  %v22660_v13 = vld [vmem:[#allocation5_spill] sm:$0xff]  ;;  %v22661_v60 = vld [vmem:[#allocation8_spill] sm:$0xff] }
 0xb37   :  { %v10802_v39 = vmul.f32 %v22656_v3, %v21090_v10  ;;  %v10806_v28 = vmul.f32 %v22660_v13, %v21090_v10  ;;  %v10807_v20 = vmul.f32 %v22661_v60, %v21090_v10  ;;  %v10808_v35 = vmul.f32 %v21090_v10, %v22662_v14  ;;  %v22665_v62 = vld [vmem:[#allocation32_spill] sm:$0xff]  ;;  %v22668_v60 = vld [vmem:[#allocation35_spill] sm:$0xff] }
 0xb38   :  { %v10809_v3 = vmul.f32 %v21090_v10, %v22663_v48  ;;  %v10810_v16 = vmul.f32 %v22664_v31, %v21090_v10  ;;  %v10811_v26 = vmul.f32 %v22665_v62, %v21090_v10  ;;  %v10812_v53 = vmul.f32 %v21090_v10, %v22666_v22  ;;  %v22669_v14 = vld [vmem:[#allocation36_spill] sm:$0xff]  ;;  %v22672_v62 = vld [vmem:[#allocation34_spill] sm:$0xff]  ;;  %v22673_v22 = vld [vmem:[#allocation13_spill] sm:$0xff] }
 0xb39   :  { %v10813_v13 = vmul.f32 %v21090_v10, %v22667_v24  ;;  %v10814_v38 = vmul.f32 %v22668_v60, %v21090_v10  ;;  %v10815_v6 = vmul.f32 %v22669_v14, %v21090_v10  ;;  %v10816_v48 = vmul.f32 %v21090_v10, %v22670_v11  ;;  %v22674_v24 = vld [vmem:[#allocation18_spill] sm:$0xff] }
 0xb3a   :  { %v10817_v31 = vmul.f32 %v21090_v10, %v22671_v15  ;;  %v10818_v34 = vmul.f32 %v22672_v62, %v21090_v10  ;;  %v10819_v32 = vmul.f32 %v22673_v22, %v21090_v10  ;;  %v10822_v47 = vmul.f32 %v22674_v24, %v21090_v10  ;;  %v22678_v15 = vld [vmem:[#allocation42_spill] sm:$0xff]  ;;  %v22681_v22 = vld [vmem:[#allocation44_spill] sm:$0xff] }
 0xb3b   :  { %v10845_v60 = vmul.f32 %v21090_v10, %v22675_v21  ;;  %v21191_v14 = vrot.slane %v10777_v9, %v22630_v52  ;;  %v10820_v11 = vmul.f32 %v21090_v10, %v22677_v41  ;;  %v10823_v30 = vmul.f32 %v22678_v15, %v21090_v10 }
 0xb3c   :  { %v21199_v62 = vmul.f32 %v21090_v10, %v22679_v56  ;;  %v21203_v43 = vmul.f32 %v22681_v22, %v21090_v10 }
 0xb3d   :  { %22676 = vst [vmem:[#allocation20_spill] sm:$0xff] %v21191_v14  ;;  %v21206_v24 = vadd.f32 %v21191_v14, %v10784_v57  ;;  %v21209_v21 = vadd.f32 %v21191_v14, %v10785_v58  ;;  %v21212_v52 = vadd.f32 %v21191_v14, %v10786_v46  ;;  %v21215_v41 = vadd.f32 %v21191_v14, %v10787_v23 }
 0xb3e   :  { %22680 = vst [vmem:[#allocation21_spill] sm:$0xff] %v21199_v62  ;;  %22682 = vst [vmem:[#allocation17_spill] sm:$0xff] %v21203_v43  ;;  %v21218_v9 = vadd.f32 %v21191_v14, %v10788_v49  ;;  %v21221_v56 = vadd.f32 %v21191_v14, %v10789_v45  ;;  %v21224_v15 = vadd.f32 %v21191_v14, %v10790_v61 }
 0xb3f   :  { %22683 = vst [vmem:[#allocation19_spill] sm:$0xff] %v21206_v24  ;;  %22684 = vst [vmem:[#allocation23_spill] sm:$0xff] %v21209_v21  ;;  %v21227_v57 = vadd.f32 %v21191_v14, %v10791_v51  ;;  %v21230_v58 = vadd.f32 %v21191_v14, %v10792_v27  ;;  %v21233_v46 = vadd.f32 %v21191_v14, %v10793_v0 }
 0xb40   :  { %22685 = vst [vmem:[#allocation24_spill] sm:$0xff] %v21212_v52  ;;  %v21236_v23 = vadd.f32 %v21191_v14, %v10794_v42  ;;  %v21239_v49 = vadd.f32 %v21191_v14, %v10795_v33  ;;  %v21242_v45 = vadd.f32 %v21191_v14, %v10796_v12  ;;  %v21245_v61 = vadd.f32 %v21191_v14, %v10797_v63 }
 0xb41   :  { %v21248_v51 = vadd.f32 %v21191_v14, %v10798_v29  ;;  %v21251_v27 = vadd.f32 %v21191_v14, %v10799_v18  ;;  %v21254_v0 = vadd.f32 %v21191_v14, %v10800_v40  ;;  %v21257_v42 = vadd.f32 %v21191_v14, %v10801_v59 }
 0xb42   :  { %v21260_v33 = vadd.f32 %v21191_v14, %v10802_v39  ;;  %v21263_v12 = vadd.f32 %v21191_v14, %v10803_v44  ;;  %v21266_v63 = vadd.f32 %v21191_v14, %v10804_v1  ;;  %v21269_v29 = vadd.f32 %v21191_v14, %v10805_v5 }
 0xb43   :  { %v21272_v18 = vadd.f32 %v21191_v14, %v10806_v28  ;;  %v21275_v40 = vadd.f32 %v21191_v14, %v10807_v20  ;;  %v21278_v59 = vadd.f32 %v21191_v14, %v10808_v35  ;;  %v21281_v39 = vadd.f32 %v21191_v14, %v10809_v3 }
 0xb44   :  { %v21284_v44 = vadd.f32 %v21191_v14, %v10810_v16  ;;  %v21287_v1 = vadd.f32 %v21191_v14, %v10811_v26  ;;  %v21290_v5 = vadd.f32 %v21191_v14, %v10812_v53  ;;  %v21293_v28 = vadd.f32 %v21191_v14, %v10813_v13 }
 0xb45   :  { %v21296_v20 = vadd.f32 %v21191_v14, %v10814_v38  ;;  %v21299_v35 = vadd.f32 %v21191_v14, %v10815_v6  ;;  %v21302_v3 = vadd.f32 %v21191_v14, %v10816_v48  ;;  %v21305_v16 = vadd.f32 %v21191_v14, %v10817_v31 }
 0xb46   :  { %v21308_v26 = vadd.f32 %v21191_v14, %v10818_v34  ;;  %v21311_v53 = vadd.f32 %v21191_v14, %v10819_v32  ;;  %v21314_v13 = vadd.f32 %v21191_v14, %v10822_v47  ;;  %v21317_v38 = vadd.f32 %v21191_v14, %v10845_v60 }
 0xb47   :  { %22686 = vst [vmem:[#allocation9_spill] sm:$0xff] %v21299_v35  ;;  %22687 = vst [vmem:[#allocation14_spill] sm:$0xff] %v21302_v3  ;;  %v21320_v6 = vadd.f32 %v21191_v14, %v10820_v11  ;;  %v21323_v48 = vmul.f32 0.01, %v21206_v24  ;;  %v21326_v31 = vmul.f32 0.01, %v21209_v21  ;;  %v21335_v47 = vadd.f32 %v21191_v14, %v10823_v30 }
 0xb48   :  { %22688 = vst [vmem:[#allocation26_spill] sm:$0xff] %v21308_v26  ;;  %22689 = vst [vmem:[#allocation25_spill] sm:$0xff] %v21311_v53  ;;  %v21329_v34 = vmul.f32 0.01, %v21212_v52  ;;  %v21332_v32 = vmul.f32 0.01, %v21215_v41 }
 0xb49   :  { %22690 = vst [vmem:[#allocation38_spill] sm:$0xff] %v21314_v13  ;;  %22691 = vst [vmem:[#allocation39_spill] sm:$0xff] %v21317_v38  ;;  %v21338_v60 = vmul.f32 0.01, %v21317_v38  ;;  %v21341_v11 = vmul.f32 0.01, %v21218_v9 }
 0xb4a   :  { %22692 = vst [vmem:[#allocation4_spill] sm:$0xff] %v21323_v48  ;;  %22693 = vst [vmem:[#allocation6_spill] sm:$0xff] %v21326_v31  ;;  %v21344_v22 = vmul.f32 0.01, %v21221_v56  ;;  %v21349_v43 = vmul.f32 0.01, %v21224_v15  ;;  %v10985_v17 = vmax.f32 %v21215_v41, %v21332_v32 }
 0xb4b   :  { %22694 = vst [vmem:[#allocation27_spill] sm:$0xff] %v21329_v34  ;;  %22695 = vst [vmem:[#allocation40_spill] sm:$0xff] %v21335_v47  ;;  %v21352_v62 = vmul.f32 0.01, %v21227_v57  ;;  %v21355_v30 = vmul.f32 0.01, %v21230_v58  ;;  %v10986_v7 = vmax.f32 %v21218_v9, %v21341_v11 }
 0xb4c   :  { %22696 = vst [vmem:[#allocation29_spill] sm:$0xff] %v21338_v60  ;;  %v21360_v60 = vmul.f32 0.01, %v21233_v46  ;;  %v21363_v47 = vmul.f32 0.01, %v21236_v23  ;;  %v10987_v32 = vmax.f32 %v21221_v56, %v21344_v22  ;;  %v10988_v11 = vmax.f32 %v21224_v15, %v21349_v43 }
 0xb4d   :  { %v21366_v10 = vmul.f32 0.01, %v21239_v49  ;;  %v21371_v36 = vmul.f32 0.01, %v21242_v45  ;;  %v21374_v37 = vmul.f32 0.01, %v21245_v61  ;;  %v10989_v22 = vmax.f32 %v21227_v57, %v21352_v62 }
 0xb4e   :  { %v21377_v38 = vmul.f32 0.01, %v21248_v51  ;;  %v21382_v19 = vmul.f32 0.01, %v21251_v27  ;;  %v21385_v54 = vmul.f32 0.01, %v21254_v0  ;;  %v10990_v15 = vmax.f32 %v21230_v58, %v21355_v30 }
 0xb4f   :  { %v21388_v14 = vmul.f32 0.01, %v21257_v42  ;;  %v21393_v2 = vmul.f32 0.01, %v21260_v33  ;;  %v21396_v55 = vmul.f32 0.01, %v21263_v12  ;;  %v10991_v57 = vmax.f32 %v21233_v46, %v21360_v60 }
 0xb50   :  { %v21399_v41 = vmul.f32 0.01, %v21266_v63  ;;  %v21404_v25 = vmul.f32 0.01, %v21269_v29  ;;  %v21407_v4 = vmul.f32 0.01, %v21272_v18  ;;  %v10992_v30 = vmax.f32 %v21236_v23, %v21363_v47 }
 0xb51   :  { %v21410_v9 = vmul.f32 0.01, %v21275_v40  ;;  %v21415_v34 = vmul.f32 0.01, %v21278_v59  ;;  %v21418_v52 = vmul.f32 0.01, %v21281_v39  ;;  %v10993_v46 = vmax.f32 %v21239_v49, %v21366_v10 }
 0xb52   :  { %v21421_v56 = vmul.f32 0.01, %v21284_v44  ;;  %v21426_v50 = vmul.f32 0.01, %v21287_v1  ;;  %v21429_v31 = vmul.f32 0.01, %v21290_v5  ;;  %v10994_v60 = vmax.f32 %v21242_v45, %v21371_v36 }
 0xb53   :  { %v21432_v43 = vmul.f32 0.01, %v21293_v28  ;;  %v21437_v21 = vmul.f32 0.01, %v21296_v20  ;;  %v21440_v8 = vmul.f32 0.01, %v21299_v35  ;;  %v10997_v23 = vmax.f32 %v21251_v27, %v21382_v19 }
 0xb54   :  { %v21443_v62 = vmul.f32 0.01, %v21302_v3  ;;  %v21448_v48 = vmul.f32 0.01, %v21305_v16  ;;  %v21451_v24 = vmul.f32 0.01, %v21308_v26  ;;  %v10995_v26 = vmax.f32 %v21245_v61, %v21374_v37 }
 0xb55   :  { %v21454_v58 = vmul.f32 0.01, %v21311_v53  ;;  %v21459_v35 = vmul.f32 0.01, %v21320_v6  ;;  %v21462_v3 = vmul.f32 0.01, %v21314_v13  ;;  %v10996_v53 = vmax.f32 %v21248_v51, %v21377_v38 }
 0xb56   :  { %v10998_v47 = vmax.f32 %v21254_v0, %v21385_v54  ;;  %v10999_v13 = vmax.f32 %v21257_v42, %v21388_v14  ;;  %v11000_v10 = vmax.f32 %v21260_v33, %v21393_v2  ;;  %v11001_v36 = vmax.f32 %v21263_v12, %v21396_v55  ;;  %v22697_v51 = vld [vmem:[#allocation9_spill] sm:$0xff]  ;;  %v22711_v38 = vld [vmem:[#allocation27_spill] sm:$0xff] }
 0xb57   :  { %v11002_v37 = vmax.f32 %v21266_v63, %v21399_v41  ;;  %v11003_v49 = vmax.f32 %v21269_v29, %v21404_v25  ;;  %v11004_v19 = vmax.f32 %v21272_v18, %v21407_v4  ;;  %v11005_v54 = vmax.f32 %v21275_v40, %v21410_v9  ;;  %v22700_v12 = vld [vmem:[#allocation25_spill] sm:$0xff]  ;;  %v22702_v40 = vld [vmem:[#allocation19_spill] sm:$0xff] }
 0xb58   :  { %v11006_v14 = vmax.f32 %v21278_v59, %v21415_v34  ;;  %v11007_v2 = vmax.f32 %v21281_v39, %v21418_v52  ;;  %v11008_v55 = vmax.f32 %v21284_v44, %v21421_v56  ;;  %v11009_v45 = vmax.f32 %v21287_v1, %v21426_v50  ;;  %v22698_v52 = vld [vmem:[#allocation14_spill] sm:$0xff]  ;;  %v22705_v39 = vld [vmem:[#allocation77_spill] sm:$0xff]  ;;  %v22706_v1 = vld [vmem:[#allocation23_spill] sm:$0xff] }
 0xb59   :  { %v11010_v25 = vmax.f32 %v21290_v5, %v21429_v31  ;;  %v11011_v4 = vmax.f32 %v21293_v28, %v21432_v43  ;;  %v11012_v61 = vmax.f32 %v21296_v20, %v21437_v21  ;;  %v11013_v27 = vmax.f32 %v22697_v51, %v21440_v8  ;;  %v22699_v50 = vld [vmem:[#allocation26_spill] sm:$0xff]  ;;  %v22703_v8 = vld [vmem:[#allocation4_spill] sm:$0xff]  ;;  %v22709_v20 = vld [vmem:[#allocation79_spill] sm:$0xff] }
 0xb5a   :  { %v11014_v0 = vmax.f32 %v22698_v52, %v21443_v62  ;;  %v11015_v42 = vmax.f32 %v21305_v16, %v21448_v48  ;;  %v11016_v33 = vmax.f32 %v22699_v50, %v21451_v24  ;;  %v11017_v63 = vmax.f32 %v22700_v12, %v21454_v58  ;;  %v22701_v21 = vld [vmem:[#allocation38_spill] sm:$0xff]  ;;  %v22710_v24 = vld [vmem:[#allocation24_spill] sm:$0xff]  ;;  %v22716_v9 = vld [vmem:[#allocation83_spill] sm:$0xff] }
 0xb5b   :  { %v11018_v29 = vmax.f32 %v21320_v6, %v21459_v35  ;;  %v11020_v18 = vmax.f32 %v22701_v21, %v21462_v3  ;;  %v22704_v59 = vmax.f32 %v22702_v40, %v22703_v8  ;;  %v22707_v5 = vld [vmem:[#allocation6_spill] sm:$0xff]  ;;  %v22712_v48 = vmax.f32 %v22710_v24, %v22711_v38  ;;  %v22713_v31 = vld [vmem:[#allocation76_spill] sm:$0xff]  ;;  %v22715_v3 = vld [vmem:[#allocation81_spill] sm:$0xff] }
 0xb5c   :  { %v22708_v28 = vmax.f32 %v22706_v1, %v22707_v5  ;;  %v22714_v35 = vld [vmem:[#allocation78_spill] sm:$0xff]  ;;  %v21536_v41 = vadd.f32 %v22715_v3, %v10986_v7  ;;  %v21539_v56 = vadd.f32 %v22716_v9, %v10987_v32  ;;  %v22717_v43 = vld [vmem:[#allocation80_spill] sm:$0xff]  ;;  %v22719_v52 = vld [vmem:[#allocation85_spill] sm:$0xff] }
 0xb5d   :  { %v11538_v44 = vadd.f32 %v22705_v39, %v22704_v59  ;;  %v21530_v34 = vadd.f32 %v22713_v31, %v22712_v48  ;;  %v21533_v6 = vadd.f32 %v22714_v35, %v10985_v17  ;;  %v21542_v62 = vadd.f32 %v22717_v43, %v10988_v11  ;;  %v22718_v58 = vld [vmem:[#allocation82_spill] sm:$0xff]  ;;  %v22720_v12 = vld [vmem:[#allocation87_spill] sm:$0xff]  ;;  %v22721_v17 = vld [vmem:[#allocation84_spill] sm:$0xff] }
 0xb5e   :  { %v11539_v16 = vadd.f32 %v22709_v20, %v22708_v28  ;;  %v21545_v51 = vadd.f32 %v22718_v58, %v10989_v22  ;;  %v21548_v50 = vadd.f32 %v22719_v52, %v10990_v15  ;;  %v21551_v21 = vadd.f32 %v22720_v12, %v10991_v57  ;;  %v22722_v7 = vld [vmem:[#allocation86_spill] sm:$0xff]  ;;  %v22723_v32 = vld [vmem:[#allocation89_spill] sm:$0xff]  ;;  %v22724_v11 = vld [vmem:[#allocation92_spill] sm:$0xff] }
 0xb5f   :  { %v21554_v40 = vadd.f32 %v22721_v17, %v10992_v30  ;;  %v21557_v8 = vadd.f32 %v22722_v7, %v10993_v46  ;;  %v21560_v59 = vadd.f32 %v22723_v32, %v10994_v60  ;;  %v21563_v39 = vadd.f32 %v22724_v11, %v10995_v26  ;;  %v22725_v22 = vld [vmem:[#allocation88_spill] sm:$0xff]  ;;  %v22726_v15 = vld [vmem:[#allocation91_spill] sm:$0xff]  ;;  %v22727_v57 = vld [vmem:[#allocation94_spill] sm:$0xff] }
 0xb60   :  { %v21566_v1 = vadd.f32 %v22725_v22, %v10996_v53  ;;  %v21569_v5 = vadd.f32 %v22726_v15, %v10997_v23  ;;  %v21572_v28 = vadd.f32 %v22727_v57, %v10998_v47  ;;  %v22728_v30 = vld [vmem:[#allocation96_spill] sm:$0xff]  ;;  %v22729_v46 = vld [vmem:[#allocation93_spill] sm:$0xff]  ;;  %v22730_v60 = vld [vmem:[#allocation95_spill] sm:$0xff] }
 0xb61   :  { %v21575_v20 = vadd.f32 %v22728_v30, %v10999_v13  ;;  %v21578_v24 = vadd.f32 %v22729_v46, %v11000_v10  ;;  %v21581_v38 = vadd.f32 %v22730_v60, %v11001_v36  ;;  %v22731_v26 = vld [vmem:[#allocation98_spill] sm:$0xff]  ;;  %v22732_v53 = vld [vmem:[#allocation100_spill] sm:$0xff]  ;;  %v22733_v23 = vld [vmem:[#allocation97_spill] sm:$0xff]  ;;  %v11603_v60 = vmul.f32 0.01, %v11539_v16 }
 0xb62   :  { %v21584_v48 = vadd.f32 %v22731_v26, %v11002_v37  ;;  %v21587_v31 = vadd.f32 %v22732_v53, %v11003_v49  ;;  %v21590_v35 = vadd.f32 %v22733_v23, %v11004_v19  ;;  %v22734_v47 = vld [vmem:[#allocation99_spill] sm:$0xff]  ;;  %v22735_v13 = vld [vmem:[#allocation102_spill] sm:$0xff]  ;;  %v22736_v10 = vld [vmem:[#allocation104_spill] sm:$0xff]  ;;  %v11605_v26 = vmul.f32 0.01, %v21533_v6 }
 0xb63   :  { %v21593_v3 = vadd.f32 %v22734_v47, %v11005_v54  ;;  %v21596_v9 = vadd.f32 %v22735_v13, %v11006_v14  ;;  %v21599_v43 = vadd.f32 %v22736_v10, %v11007_v2  ;;  %v22737_v36 = vld [vmem:[#allocation101_spill] sm:$0xff]  ;;  %v22738_v37 = vld [vmem:[#allocation103_spill] sm:$0xff]  ;;  %v22739_v49 = vld [vmem:[#allocation106_spill] sm:$0xff]  ;;  %v11610_v13 = vmul.f32 0.01, %v21548_v50 }
 0xb64   :  { %v21602_v58 = vadd.f32 %v22737_v36, %v11008_v55  ;;  %v21605_v52 = vadd.f32 %v22738_v37, %v11009_v45  ;;  %v21608_v12 = vadd.f32 %v22739_v49, %v11010_v25  ;;  %v22740_v19 = vld [vmem:[#allocation108_spill] sm:$0xff]  ;;  %v22741_v54 = vld [vmem:[#allocation105_spill] sm:$0xff]  ;;  %v22742_v14 = vld [vmem:[#allocation107_spill] sm:$0xff]  ;;  %v11611_v10 = vmul.f32 0.01, %v21551_v21 }
 0xb65   :  { %v21611_v17 = vadd.f32 %v22740_v19, %v11011_v4  ;;  %v21614_v7 = vadd.f32 %v22741_v54, %v11012_v61  ;;  %v21617_v32 = vadd.f32 %v22742_v14, %v11013_v27  ;;  %v22743_v2 = vld [vmem:[#allocation110_spill] sm:$0xff]  ;;  %v22744_v55 = vld [vmem:[#allocation112_spill] sm:$0xff]  ;;  %v22745_v45 = vld [vmem:[#allocation109_spill] sm:$0xff]  ;;  %v11602_v27 = vmul.f32 0.01, %v11538_v44 }
 0xb66   :  { %v21620_v11 = vadd.f32 %v22743_v2, %v11014_v0  ;;  %v21623_v22 = vadd.f32 %v22744_v55, %v11015_v42  ;;  %v21626_v15 = vadd.f32 %v22745_v45, %v11016_v33  ;;  %v22746_v25 = vld [vmem:[#allocation111_spill] sm:$0xff]  ;;  %v22747_v4 = vld [vmem:[#allocation114_spill] sm:$0xff]  ;;  %v22748_v61 = vld [vmem:[#allocation113_spill] sm:$0xff]  ;;  %v11604_v0 = vmul.f32 0.01, %v21530_v34 }
 0xb67   :  { %v21629_v57 = vadd.f32 %v22746_v25, %v11017_v63  ;;  %v21632_v30 = vadd.f32 %v22747_v4, %v11018_v29  ;;  %v21635_v46 = vadd.f32 %v22748_v61, %v11020_v18  ;;  %v22749_v42 = vld [vmem:[#allocation21_spill] sm:$0xff]  ;;  %v22750_v53 = vld [vmem:[#allocation20_spill] sm:$0xff]  ;;  %v11606_v33 = vmul.f32 0.01, %v21536_v41 }
 0xb68   :  { %v21641_v23 = vadd.f32 %v22750_v53, %v22749_v42  ;;  %v11607_v63 = vmul.f32 0.01, %v21539_v56  ;;  %v11608_v29 = vmul.f32 0.01, %v21542_v62  ;;  %v11666_v47 = vmax.f32 %v11538_v44, %v11602_v27 }
 0xb69   :  { %v11609_v18 = vmul.f32 0.01, %v21545_v51  ;;  %v11667_v36 = vmax.f32 %v11539_v16, %v11603_v60  ;;  %v11612_v37 = vmul.f32 0.01, %v21554_v40  ;;  %v11613_v49 = vmul.f32 0.01, %v21557_v8 }
 0xb6a   :  { %v11614_v19 = vmul.f32 0.01, %v21560_v59  ;;  %v11668_v54 = vmax.f32 %v21530_v34, %v11604_v0  ;;  %11730 = vst.msk [vmem:[%s22117_s9] sm:$0xff] %vm4858_vm2, %v11666_v47  ;;  %v11615_v44 = vmul.f32 0.01, %v21563_v39  ;;  %v11669_v16 = vmax.f32 %v21533_v6, %v11605_v26 }
 0xb6b   :  { %v11616_v14 = vmul.f32 0.01, %v21566_v1  ;;  %v11617_v2 = vmul.f32 0.01, %v21569_v5  ;;  %11731 = vst.msk [vmem:[%s22117_s9 + $0x8] sm:$0xff] %vm4858_vm2, %v11667_v36  ;;  %v11670_v25 = vmax.f32 %v21536_v41, %v11606_v33  ;;  %v11671_v27 = vmax.f32 %v21539_v56, %v11607_v63 }
 0xb6c   :  { %v11618_v34 = vmul.f32 0.01, %v21572_v28  ;;  %v11619_v55 = vmul.f32 0.01, %v21575_v20  ;;  %v21668_v45 = vmul.f32 0.01, %v21578_v24  ;;  %v11672_v26 = vmax.f32 %v21542_v62, %v11608_v29 }
 0xb6d   :  { %11732 = vst.msk [vmem:[%s22117_s9 + $0x10] sm:$0xff] %vm4858_vm2, %v11668_v54  ;;  %v11621_v6 = vmul.f32 0.01, %v21581_v38  ;;  %v11622_v4 = vmul.f32 0.01, %v21584_v48  ;;  %11733 = vst.msk [vmem:[%s22117_s9 + $0x18] sm:$0xff] %vm4858_vm2, %v11669_v16  ;;  %v11673_v63 = vmax.f32 %v21545_v51, %v11609_v18  ;;  %v11674_v36 = vmax.f32 %v21548_v50, %v11610_v13 }
 0xb6e   :  { %v11623_v61 = vmul.f32 0.01, %v21587_v31  ;;  %v21684_v41 = vmul.f32 0.01, %v21590_v35  ;;  %v21687_v60 = vmul.f32 0.01, %v21593_v3  ;;  %v11675_v16 = vmax.f32 %v21551_v21, %v11611_v10 }
 0xb6f   :  { %v21690_v0 = vmul.f32 0.01, %v21596_v9  ;;  %11734 = vst.msk [vmem:[%s22117_s9 + $0x20] sm:$0xff] %vm4858_vm2, %v11670_v25  ;;  %v11627_v56 = vmul.f32 0.01, %v21599_v43  ;;  %11735 = vst.msk [vmem:[%s22117_s9 + $0x28] sm:$0xff] %vm4858_vm2, %v11671_v27  ;;  %v11676_v27 = vmax.f32 %v21554_v40, %v11612_v37  ;;  %v11677_v10 = vmax.f32 %v21557_v8, %v11613_v49 }
 0xb70   :  { %v21699_v42 = vmul.f32 0.01, %v21602_v58  ;;  %v21702_v33 = vmul.f32 0.01, %v21605_v52  ;;  %v21710_v62 = vmul.f32 0.01, %v21608_v12  ;;  %v11680_v40 = vmax.f32 %v21566_v1, %v11616_v14 }
 0xb71   :  { %v21713_v29 = vmul.f32 0.01, %v21611_v17  ;;  %v21716_v47 = vmul.f32 0.01, %v21614_v7  ;;  %11736 = vst.msk [vmem:[%s22117_s9 + $0x30] sm:$0xff] %vm4858_vm2, %v11672_v26  ;;  %11737 = vst.msk [vmem:[%s22117_s9 + $0x38] sm:$0xff] %vm4858_vm2, %v11673_v63  ;;  %v11678_v26 = vmax.f32 %v21560_v59, %v11614_v19  ;;  %v11679_v63 = vmax.f32 %v21563_v39, %v11615_v44 }
 0xb72   :  { %v11633_v51 = vmul.f32 0.01, %v21617_v32  ;;  %v11634_v18 = vmul.f32 0.01, %v21620_v11  ;;  %v11635_v54 = vmul.f32 0.01, %v21623_v22  ;;  %v11681_v37 = vmax.f32 %v21569_v5, %v11617_v2 }
 0xb73   :  { %v21732_v50 = vmul.f32 0.01, %v21626_v15  ;;  %v21735_v13 = vmul.f32 0.01, %v21629_v57  ;;  %v21738_v25 = vmul.f32 0.01, %v21632_v30  ;;  %v11682_v53 = vmax.f32 %v21572_v28, %v11618_v34 }
 0xb74   :  { %11738 = vst.msk [vmem:[%s22117_s9 + $0x40] sm:$0xff] %vm4858_vm2, %v11674_v36  ;;  %v11640_v21 = vmul.f32 0.01, %v21635_v46  ;;  %11739 = vst.msk [vmem:[%s22117_s9 + $0x48] sm:$0xff] %vm4858_vm2, %v11675_v16  ;;  %v11683_v36 = vmax.f32 %v21575_v20, %v11619_v55  ;;  %v11684_v8 = vmax.f32 %v21578_v24, %v21668_v45  ;;  %v11685_v59 = vmax.f32 %v21581_v38, %v11621_v6  ;;  %v22756_v19 = vld [vmem:[#allocation46_spill] sm:$0xff]  ;;  %v22757_v14 = vld [vmem:[#allocation47_spill] sm:$0xff] }
 0xb75   :  { %11740 = vst.msk [vmem:[%s22117_s9 + $0x50] sm:$0xff] %vm4858_vm2, %v11676_v27  ;;  %v11686_v39 = vmax.f32 %v21584_v48, %v11622_v4  ;;  %v11687_v1 = vmax.f32 %v21587_v31, %v11623_v61  ;;  %11741 = vst.msk [vmem:[%s22117_s9 + $0x58] sm:$0xff] %vm4858_vm2, %v11677_v10  ;;  %v11688_v5 = vmax.f32 %v21590_v35, %v21684_v41  ;;  %v22758_v34 = vld [vmem:[#allocation48_spill] sm:$0xff]  ;;  %v22759_v45 = vld [vmem:[#allocation49_spill] sm:$0xff] }
 0xb76   :  { %11742 = vst.msk [vmem:[%s22117_s9 + $0x60] sm:$0xff] %vm4858_vm2, %v11678_v26  ;;  %11743 = vst.msk [vmem:[%s22117_s9 + $0x68] sm:$0xff] %vm4858_vm2, %v11679_v63  ;;  %v11689_v28 = vmax.f32 %v21593_v3, %v21687_v60  ;;  %v11690_v20 = vmax.f32 %v21596_v9, %v21690_v0  ;;  %v11691_v24 = vmax.f32 %v21599_v43, %v11627_v56  ;;  %v22763_v10 = vld [vmem:[#allocation117_spill] sm:$0xff] }
 0xb77   :  { %11744 = vst.msk [vmem:[%s22117_s9 + $0x70] sm:$0xff] %vm4858_vm2, %v11680_v40  ;;  %11745 = vst.msk [vmem:[%s22117_s9 + $0x78] sm:$0xff] %vm4858_vm2, %v11681_v37  ;;  %v11692_v38 = vmax.f32 %v21602_v58, %v21699_v42  ;;  %v11693_v48 = vmax.f32 %v21605_v52, %v21702_v33  ;;  %v11694_v31 = vmax.f32 %v21608_v12, %v21710_v62  ;;  %v22760_v62 = vld [vmem:[#allocation115_spill] sm:$0xff] }
 0xb78   :  { %11746 = vst.msk [vmem:[%s22117_s9 + $0x80] sm:$0xff] %vm4858_vm2, %v11682_v53  ;;  %11747 = vst.msk [vmem:[%s22117_s9 + $0x88] sm:$0xff] %vm4858_vm2, %v11683_v36  ;;  %v11695_v35 = vmax.f32 %v21611_v17, %v21713_v29  ;;  %v11696_v3 = vmax.f32 %v21614_v7, %v21716_v47  ;;  %v11697_v9 = vmax.f32 %v21617_v32, %v11633_v51  ;;  %v22751_v32 = vld [vmem:[#allocation40_spill] sm:$0xff] }
 0xb79   :  { %11748 = vst.msk [vmem:[%s22117_s9 + $0x90] sm:$0xff] %vm4858_vm2, %v11684_v8  ;;  %11749 = vst.msk [vmem:[%s22117_s9 + $0x98] sm:$0xff] %vm4858_vm2, %v11685_v59  ;;  %v11698_v43 = vmax.f32 %v21620_v11, %v11634_v18  ;;  %v11699_v58 = vmax.f32 %v21623_v22, %v11635_v54  ;;  %v11700_v52 = vmax.f32 %v21626_v15, %v21732_v50  ;;  %v10957_v11 = vmul.f32 0.01, %v22751_v32  ;;  %v22752_v15 = vld [vmem:[#allocation17_spill] sm:$0xff]  ;;  %v22755_v53 = vld [vmem:[#allocation28_spill] sm:$0xff] }
 0xb7a   :  { %11750 = vst.msk [vmem:[%s22117_s9 + $0xa0] sm:$0xff] %vm4858_vm2, %v11686_v39  ;;  %11751 = vst.msk [vmem:[%s22117_s9 + $0xa8] sm:$0xff] %vm4858_vm2, %v11687_v1  ;;  %v11701_v12 = vmax.f32 %v21629_v57, %v21735_v13  ;;  %v11702_v17 = vmax.f32 %v21632_v30, %v21738_v25  ;;  %v11704_v7 = vmax.f32 %v21635_v46, %v11640_v21  ;;  %v10955_v22 = vmul.f32 0.01, %v21641_v23  ;;  %v22753_v57 = vld [vmem:[#allocation20_spill] sm:$0xff]  ;;  %v22754_v46 = vld [vmem:[#allocation45_spill] sm:$0xff] }
 0xb7b   :  { %11752 = vst.msk [vmem:[%s22117_s9 + $0xb0] sm:$0xff] %vm4858_vm2, %v11688_v5  ;;  %11753 = vst.msk [vmem:[%s22117_s9 + $0xb8] sm:$0xff] %vm4858_vm2, %v11689_v28  ;;  %v10896_v30 = vadd.f32 %v22753_v57, %v22752_v15  ;;  %v10824_v49 = vmul.f32 %v22755_v53, %v22754_v46  ;;  %v10827_v44 = vmul.f32 %v22756_v19, %v22755_v53  ;;  %v22761_v47 = vld [vmem:[#allocation116_spill] sm:$0xff]  ;;  %v22762_v13 = vld [vmem:[#allocation50_spill] sm:$0xff] }
 0xb7c   :  { %11754 = vst.msk [vmem:[%s22117_s9 + $0xc0] sm:$0xff] %vm4858_vm2, %v11690_v20  ;;  %11755 = vst.msk [vmem:[%s22117_s9 + $0xc8] sm:$0xff] %vm4858_vm2, %v11691_v24  ;;  %v10825_v2 = vmul.f32 %v22755_v53, %v22757_v14  ;;  %v10830_v55 = vmul.f32 %v22758_v34, %v22755_v53  ;;  %v10828_v6 = vmul.f32 %v22755_v53, %v22759_v45  ;;  %v22764_v5 = vld [vmem:[#allocation118_spill] sm:$0xff]  ;;  %v22765_v20 = vld [vmem:[#allocation119_spill] sm:$0xff] }
 0xb7d   :  { %11756 = vst.msk [vmem:[%s22117_s9 + $0xd0] sm:$0xff] %vm4858_vm2, %v11692_v38  ;;  %11757 = vst.msk [vmem:[%s22117_s9 + $0xd8] sm:$0xff] %vm4858_vm2, %v11693_v48  ;;  %v11021_v4 = vmax.f32 %v22751_v32, %v10957_v11  ;;  %v11019_v61 = vmax.f32 %v21641_v23, %v10955_v22  ;;  %v10960_v41 = vmul.f32 0.01, %v10896_v30  ;;  %v10894_v60 = vadd.f32 %v22753_v57, %v10824_v49  ;;  %v22766_v38 = vld [vmem:[#allocation120_spill] sm:$0xff]  ;;  %v22769_v11 = vld [vmem:[#allocation67_spill] sm:$0xff] }
 0xb7e   :  { %11758 = vst.msk [vmem:[%s22117_s9 + $0xe0] sm:$0xff] %vm4858_vm2, %v11694_v31  ;;  %11759 = vst.msk [vmem:[%s22117_s9 + $0xe8] sm:$0xff] %vm4858_vm2, %v11695_v35  ;;  %v10897_v0 = vadd.f32 %v22753_v57, %v10827_v44  ;;  %v10895_v56 = vadd.f32 %v22753_v57, %v10825_v2  ;;  %v10900_v42 = vadd.f32 %v22753_v57, %v10830_v55  ;;  %v22767_v31 = vld [vmem:[#allocation65_spill] sm:$0xff]  ;;  %v22770_v49 = vld [vmem:[#allocation52_spill] sm:$0xff] }
 0xb7f   :  { %11760 = vst.msk [vmem:[%s22117_s9 + $0xf0] sm:$0xff] %vm4858_vm2, %v11696_v3  ;;  %11761 = vst.msk [vmem:[%s22117_s9 + $0xf8] sm:$0xff] %vm4858_vm2, %v11697_v9  ;;  %v10898_v33 = vadd.f32 %v22753_v57, %v10828_v6  ;;  %v11577_v29 = vadd.f32 %v22760_v62, %v11021_v4  ;;  %v11575_v51 = vadd.f32 %v22761_v47, %v11019_v61  ;;  %v10958_v54 = vmul.f32 0.01, %v10894_v60  ;;  %v22771_v4 = vld [vmem:[#allocation53_spill] sm:$0xff] }
 0xb80   :  { %11762 = vst.msk [vmem:[%s22117_s9 + $0x100] sm:$0xff] %vm4858_vm2, %v11698_v43  ;;  %11763 = vst.msk [vmem:[%s22117_s9 + $0x108] sm:$0xff] %vm4858_vm2, %v11699_v58  ;;  %v11024_v18 = vmax.f32 %v10896_v30, %v10960_v41  ;;  %v10961_v16 = vmul.f32 0.01, %v10897_v0  ;;  %v10959_v50 = vmul.f32 0.01, %v10895_v56  ;;  %v10831_v25 = vmul.f32 %v22762_v13, %v22755_v53 }
 0xb81   :  { %11764 = vst.msk [vmem:[%s22117_s9 + $0x110] sm:$0xff] %vm4858_vm2, %v11700_v52  ;;  %11765 = vst.msk [vmem:[%s22117_s9 + $0x118] sm:$0xff] %vm4858_vm2, %v11701_v12  ;;  %v10964_v23 = vmul.f32 0.01, %v10900_v42  ;;  %v11641_v27 = vmul.f32 0.01, %v11577_v29  ;;  %v11022_v63 = vmax.f32 %v10894_v60, %v10958_v54  ;;  %v10834_v19 = vmul.f32 %v22770_v49, %v22755_v53 }
 0xb82   :  { %11766 = vst.msk [vmem:[%s22117_s9 + $0x120] sm:$0xff] %vm4858_vm2, %v11702_v17  ;;  %11768 = vst.msk [vmem:[%s22117_s9 + $0x130] sm:$0xff] %vm4858_vm2, %v11704_v7  ;;  %v11639_v21 = vmul.f32 0.01, %v11575_v51  ;;  %v11580_v26 = vadd.f32 %v22763_v10, %v11024_v18  ;;  %v11025_v40 = vmax.f32 %v10897_v0, %v10961_v16  ;;  %v11023_v37 = vmax.f32 %v10895_v56, %v10959_v50  ;;  %v22768_v52 = vld [vmem:[#allocation51_spill] sm:$0xff]  ;;  %v22772_v60 = vld [vmem:[#allocation54_spill] sm:$0xff] }
 0xb83   :  { %v11028_v36 = vmax.f32 %v10900_v42, %v10964_v23  ;;  %v10962_v8 = vmul.f32 0.01, %v10898_v33  ;;  %v11705_v59 = vmax.f32 %v11577_v29, %v11641_v27  ;;  %v11578_v28 = vadd.f32 %v22764_v5, %v11022_v63  ;;  %v22773_v56 = vld [vmem:[#allocation55_spill] sm:$0xff]  ;;  %v22775_v29 = vld [vmem:[#allocation69_spill] sm:$0xff] }
 0xb84   :  { %v11703_v39 = vmax.f32 %v11575_v51, %v11639_v21  ;;  %v11644_v1 = vmul.f32 0.01, %v11580_v26  ;;  %v11581_v24 = vadd.f32 %v22765_v20, %v11025_v40  ;;  %v11579_v48 = vadd.f32 %v22766_v38, %v11023_v37  ;;  %v22776_v13 = vld [vmem:[#allocation57_spill] sm:$0xff]  ;;  %v22777_v21 = vld [vmem:[#allocation71_spill] sm:$0xff] }
 0xb85   :  { %v11584_v35 = vadd.f32 %v22767_v31, %v11028_v36  ;;  %v11026_v3 = vmax.f32 %v10898_v33, %v10962_v8  ;;  %11769 = vst.msk [vmem:[%s22117_s9 + $0x138] sm:$0xff] %vm4858_vm2, %v11705_v59  ;;  %v11642_v43 = vmul.f32 0.01, %v11578_v28  ;;  %v10901_v58 = vadd.f32 %v22753_v57, %v10831_v25  ;;  %v22774_v33 = vld [vmem:[#allocation56_spill] sm:$0xff]  ;;  %v22784_v49 = vld [vmem:[#allocation59_spill] sm:$0xff] }
 0xb86   :  { %11767 = vst.msk [vmem:[%s22117_s9 + $0x128] sm:$0xff] %vm4858_vm2, %v11703_v39  ;;  %v11708_v9 = vmax.f32 %v11580_v26, %v11644_v1  ;;  %v10829_v12 = vmul.f32 %v22755_v53, %v22768_v52  ;;  %v11645_v17 = vmul.f32 0.01, %v11581_v24  ;;  %v11643_v7 = vmul.f32 0.01, %v11579_v48  ;;  %v22778_v1 = vld [vmem:[#allocation72_spill] sm:$0xff] }
 0xb87   :  { %v11648_v32 = vmul.f32 0.01, %v11584_v35  ;;  %v11582_v22 = vadd.f32 %v22769_v11, %v11026_v3  ;;  %v11706_v15 = vmax.f32 %v11578_v28, %v11642_v43  ;;  %v10965_v30 = vmul.f32 0.01, %v10901_v58  ;;  %v22779_v3 = vld [vmem:[#allocation121_spill] sm:$0xff]  ;;  %v22780_v43 = vld [vmem:[#allocation58_spill] sm:$0xff] }
 0xb88   :  { %11772 = vst.msk [vmem:[%s22117_s9 + $0x150] sm:$0xff] %vm4858_vm2, %v11708_v9  ;;  %v10899_v46 = vadd.f32 %v22753_v57, %v10829_v12  ;;  %v11709_v44 = vmax.f32 %v11581_v24, %v11645_v17  ;;  %v11707_v14 = vmax.f32 %v11579_v48, %v11643_v7  ;;  %v10904_v6 = vadd.f32 %v22753_v57, %v10834_v19  ;;  %v22781_v52 = vld [vmem:[#allocation73_spill] sm:$0xff]  ;;  %v22782_v17 = vld [vmem:[#allocation122_spill] sm:$0xff] }
 0xb89   :  { %v11712_v2 = vmax.f32 %v11584_v35, %v11648_v32  ;;  %v11646_v34 = vmul.f32 0.01, %v11582_v22  ;;  %11770 = vst.msk [vmem:[%s22117_s9 + $0x140] sm:$0xff] %vm4858_vm2, %v11706_v15  ;;  %v11029_v55 = vmax.f32 %v10901_v58, %v10965_v30  ;;  %v10832_v61 = vmul.f32 %v22755_v53, %v22771_v4  ;;  %v22783_v32 = vld [vmem:[#allocation123_spill] sm:$0xff] }
 0xb8a   :  { %v10963_v45 = vmul.f32 0.01, %v10899_v46  ;;  %11773 = vst.msk [vmem:[%s22117_s9 + $0x158] sm:$0xff] %vm4858_vm2, %v11709_v44  ;;  %11771 = vst.msk [vmem:[%s22117_s9 + $0x148] sm:$0xff] %vm4858_vm2, %v11707_v14  ;;  %v10835_v0 = vmul.f32 %v22772_v60, %v22755_v53  ;;  %v10833_v42 = vmul.f32 %v22755_v53, %v22773_v56  ;;  %v10838_v62 = vmul.f32 %v22774_v33, %v22755_v53 }
 0xb8b   :  { %11776 = vst.msk [vmem:[%s22117_s9 + $0x170] sm:$0xff] %vm4858_vm2, %v11712_v2  ;;  %v11710_v41 = vmax.f32 %v11582_v22, %v11646_v34  ;;  %v11585_v47 = vadd.f32 %v22775_v29, %v11029_v55  ;;  %v10968_v18 = vmul.f32 0.01, %v10904_v6  ;;  %v10902_v54 = vadd.f32 %v22753_v57, %v10832_v61  ;;  %v22785_v34 = vld [vmem:[#allocation74_spill] sm:$0xff]  ;;  %v22786_v61 = vld [vmem:[#allocation60_spill] sm:$0xff] }
 0xb8c   :  { %v11027_v51 = vmax.f32 %v10899_v46, %v10963_v45  ;;  %v10905_v16 = vadd.f32 %v22753_v57, %v10835_v0  ;;  %v10903_v50 = vadd.f32 %v22753_v57, %v10833_v42  ;;  %v10908_v23 = vadd.f32 %v22753_v57, %v10838_v62 }
 0xb8d   :  { %11774 = vst.msk [vmem:[%s22117_s9 + $0x160] sm:$0xff] %vm4858_vm2, %v11710_v41  ;;  %v10836_v25 = vmul.f32 %v22755_v53, %v22776_v13  ;;  %v11649_v27 = vmul.f32 0.01, %v11585_v47  ;;  %v11032_v26 = vmax.f32 %v10904_v6, %v10968_v18  ;;  %v10966_v63 = vmul.f32 0.01, %v10902_v54  ;;  %v22790_v13 = vld [vmem:[#allocation64_spill] sm:$0xff] }
 0xb8e   :  { %v11583_v10 = vadd.f32 %v22777_v21, %v11027_v51  ;;  %v10969_v40 = vmul.f32 0.01, %v10905_v16  ;;  %v10967_v37 = vmul.f32 0.01, %v10903_v50  ;;  %v10972_v36 = vmul.f32 0.01, %v10908_v23 }
 0xb8f   :  { %v10906_v8 = vadd.f32 %v22753_v57, %v10836_v25  ;;  %v11713_v59 = vmax.f32 %v11585_v47, %v11649_v27  ;;  %v11588_v5 = vadd.f32 %v22778_v1, %v11032_v26  ;;  %v11030_v28 = vmax.f32 %v10902_v54, %v10966_v63  ;;  %v22787_v47 = vld [vmem:[#allocation61_spill] sm:$0xff]  ;;  %v22788_v54 = vld [vmem:[#allocation62_spill] sm:$0xff]  ;;  %v22791_v27 = vld [vmem:[#allocation75_spill] sm:$0xff] }
 0xb90   :  { %v11647_v39 = vmul.f32 0.01, %v11583_v10  ;;  %v11033_v20 = vmax.f32 %v10905_v16, %v10969_v40  ;;  %v11031_v24 = vmax.f32 %v10903_v50, %v10967_v37  ;;  %v11036_v38 = vmax.f32 %v10908_v23, %v10972_v36  ;;  %v22789_v50 = vld [vmem:[#allocation63_spill] sm:$0xff]  ;;  %v22793_v1 = vld [vmem:[#allocation124_spill] sm:$0xff] }
 0xb91   :  { %v10970_v48 = vmul.f32 0.01, %v10906_v8  ;;  %11777 = vst.msk [vmem:[%s22117_s9 + $0x178] sm:$0xff] %vm4858_vm2, %v11713_v59  ;;  %v11652_v35 = vmul.f32 0.01, %v11588_v5  ;;  %v11586_v9 = vadd.f32 %v22779_v3, %v11030_v28  ;;  %v10839_v58 = vmul.f32 %v22780_v43, %v22755_v53 }
 0xb92   :  { %v11711_v31 = vmax.f32 %v11583_v10, %v11647_v39  ;;  %v11589_v12 = vadd.f32 %v22781_v52, %v11033_v20  ;;  %v11587_v7 = vadd.f32 %v22782_v17, %v11031_v24  ;;  %v11592_v11 = vadd.f32 %v22783_v32, %v11036_v38 }
 0xb93   :  { %v11034_v22 = vmax.f32 %v10906_v8, %v10970_v48  ;;  %v11716_v15 = vmax.f32 %v11588_v5, %v11652_v35  ;;  %v11650_v30 = vmul.f32 0.01, %v11586_v9  ;;  %v10909_v46 = vadd.f32 %v22753_v57, %v10839_v58  ;;  %v22792_v8 = vld [vmem:[#allocation66_spill] sm:$0xff] }
 0xb94   :  { %11775 = vst.msk [vmem:[%s22117_s9 + $0x168] sm:$0xff] %vm4858_vm2, %v11711_v31  ;;  %v10837_v19 = vmul.f32 %v22755_v53, %v22784_v49  ;;  %v11653_v44 = vmul.f32 0.01, %v11589_v12  ;;  %v11651_v14 = vmul.f32 0.01, %v11587_v7  ;;  %v10842_v41 = vmul.f32 %v22786_v61, %v22755_v53  ;;  %v22797_v49 = vld [vmem:[#allocation127_spill] sm:$0xff] }
 0xb95   :  { %v11656_v2 = vmul.f32 0.01, %v11592_v11  ;;  %v11590_v55 = vadd.f32 %v22785_v34, %v11034_v22  ;;  %11780 = vst.msk [vmem:[%s22117_s9 + $0x190] sm:$0xff] %vm4858_vm2, %v11716_v15  ;;  %v11714_v45 = vmax.f32 %v11586_v9, %v11650_v30  ;;  %v10973_v6 = vmul.f32 0.01, %v10909_v46  ;;  %v22794_v9 = vld [vmem:[#allocation125_spill] sm:$0xff] }
 0xb96   :  { %v10907_v4 = vadd.f32 %v22753_v57, %v10837_v19  ;;  %v11717_v60 = vmax.f32 %v11589_v12, %v11653_v44  ;;  %v11715_v0 = vmax.f32 %v11587_v7, %v11651_v14  ;;  %v10912_v29 = vadd.f32 %v22753_v57, %v10842_v41  ;;  %v22795_v22 = vld [vmem:[#allocation126_spill] sm:$0xff]  ;;  %v22796_v30 = vld [vmem:[#allocation68_spill] sm:$0xff]  ;;  %v22800_v61 = vld [vmem:[#allocation29_spill] sm:$0xff] }
 0xb97   :  { %v11720_v56 = vmax.f32 %v11592_v11, %v11656_v2  ;;  %v11654_v42 = vmul.f32 0.01, %v11590_v55  ;;  %11778 = vst.msk [vmem:[%s22117_s9 + $0x180] sm:$0xff] %vm4858_vm2, %v11714_v45  ;;  %v11037_v33 = vmax.f32 %v10909_v46, %v10973_v6  ;;  %v10840_v51 = vmul.f32 %v22755_v53, %v22787_v47  ;;  %v22798_v44 = vld [vmem:[#allocation128_spill] sm:$0xff]  ;;  %v22799_v2 = vld [vmem:[#allocation129_spill] sm:$0xff]  ;;  %v22801_v41 = vld [vmem:[#allocation39_spill] sm:$0xff] }
 0xb98   :  { %v10971_v62 = vmul.f32 0.01, %v10907_v4  ;;  %11781 = vst.msk [vmem:[%s22117_s9 + $0x198] sm:$0xff] %vm4858_vm2, %v11717_v60  ;;  %11779 = vst.msk [vmem:[%s22117_s9 + $0x188] sm:$0xff] %vm4858_vm2, %v11715_v0  ;;  %v10843_v16 = vmul.f32 %v22788_v54, %v22755_v53  ;;  %v10841_v23 = vmul.f32 %v22755_v53, %v22789_v50  ;;  %v10846_v25 = vmul.f32 %v22790_v13, %v22755_v53  ;;  %v22803_v47 = vld [vmem:[#allocation131_spill] sm:$0xff]  ;;  %v22804_v13 = vld [vmem:[#allocation90_spill] sm:$0xff] }
 0xb99   :  { %11784 = vst.msk [vmem:[%s22117_s9 + $0x1b0] sm:$0xff] %vm4858_vm2, %v11720_v56  ;;  %v11718_v18 = vmax.f32 %v11590_v55, %v11654_v42  ;;  %v11593_v21 = vadd.f32 %v22791_v27, %v11037_v33  ;;  %v10976_v26 = vmul.f32 0.01, %v10912_v29  ;;  %v10910_v63 = vadd.f32 %v22753_v57, %v10840_v51  ;;  %v22802_v42 = vld [vmem:[#allocation130_spill] sm:$0xff] }
 0xb9a   :  { %v11035_v10 = vmax.f32 %v10907_v4, %v10971_v62  ;;  %v10913_v40 = vadd.f32 %v22753_v57, %v10843_v16  ;;  %v10911_v37 = vadd.f32 %v22753_v57, %v10841_v23  ;;  %v10916_v36 = vadd.f32 %v22753_v57, %v10846_v25  ;;  %v15803_v23 = vld [vmem:[%s22114_s8] ss:$0 sm:$0xff] }
 0xb9b   :  { %11782 = vst.msk [vmem:[%s22117_s9 + $0x1a0] sm:$0xff] %vm4858_vm2, %v11718_v18  ;;  %v10844_v59 = vmul.f32 %v22755_v53, %v22792_v8  ;;  %v11657_v39 = vmul.f32 0.01, %v11593_v21  ;;  %v11040_v28 = vmax.f32 %v10912_v29, %v10976_v26  ;;  %v10974_v20 = vmul.f32 0.01, %v10910_v63 }
 0xb9c   :  { %v11591_v5 = vadd.f32 %v22793_v1, %v11035_v10  ;;  %v10977_v24 = vmul.f32 0.01, %v10913_v40  ;;  %v10975_v38 = vmul.f32 0.01, %v10911_v37  ;;  %v10980_v48 = vmul.f32 0.01, %v10916_v36 }
 0xb9d   :  { %v10914_v31 = vadd.f32 %v22753_v57, %v10844_v59  ;;  %v11721_v35 = vmax.f32 %v11593_v21, %v11657_v39  ;;  %v11596_v43 = vadd.f32 %v22794_v9, %v11040_v28  ;;  %v11038_v58 = vmax.f32 %v10910_v63, %v10974_v20 }
 0xb9e   :  { %v11655_v3 = vmul.f32 0.01, %v11591_v5  ;;  %v11041_v52 = vmax.f32 %v10913_v40, %v10977_v24  ;;  %v11039_v12 = vmax.f32 %v10911_v37, %v10975_v38  ;;  %v11044_v17 = vmax.f32 %v10916_v36, %v10980_v48 }
 0xb9f   :  { %v10978_v7 = vmul.f32 0.01, %v10914_v31  ;;  %11785 = vst.msk [vmem:[%s22117_s9 + $0x1b8] sm:$0xff] %vm4858_vm2, %v11721_v35  ;;  %v11660_v11 = vmul.f32 0.01, %v11596_v43  ;;  %v11594_v15 = vadd.f32 %v22795_v22, %v11038_v58  ;;  %v10847_v46 = vmul.f32 %v22796_v30, %v22755_v53 }
 0xba0   :  { %v11719_v32 = vmax.f32 %v11591_v5, %v11655_v3  ;;  %v11597_v19 = vadd.f32 %v22797_v49, %v11041_v52  ;;  %v11595_v14 = vadd.f32 %v22798_v44, %v11039_v12  ;;  %v11600_v34 = vadd.f32 %v22799_v2, %v11044_v17 }
 0xba1   :  { %v11042_v55 = vmax.f32 %v10914_v31, %v10978_v7  ;;  %v11724_v45 = vmax.f32 %v11596_v43, %v11660_v11  ;;  %v11658_v6 = vmul.f32 0.01, %v11594_v15  ;;  %v10917_v4 = vadd.f32 %v22753_v57, %v10847_v46 }
 0xba2   :  { %11783 = vst.msk [vmem:[%s22117_s9 + $0x1a8] sm:$0xff] %vm4858_vm2, %v11719_v32  ;;  %v11043_v60 = vmax.f32 %v22801_v41, %v22800_v61  ;;  %v11661_v53 = vmul.f32 0.01, %v11597_v19  ;;  %v11659_v0 = vmul.f32 0.01, %v11595_v14  ;;  %v11535_v25 = vadd.f32 %v15803_v23, %v22804_v13 }
 0xba3   :  { %v11664_v56 = vmul.f32 0.01, %v11600_v34  ;;  %v11598_v33 = vadd.f32 %v22802_v42, %v11042_v55  ;;  %11788 = vst.msk [vmem:[%s22117_s9 + $0x1d0] sm:$0xff] %vm4858_vm2, %v11724_v45  ;;  %v11722_v62 = vmax.f32 %v11594_v15, %v11658_v6  ;;  %v10981_v29 = vmul.f32 0.01, %v10917_v4 }
 0xba4   :  { %v11599_v51 = vadd.f32 %v22803_v47, %v11043_v60  ;;  %v11725_v18 = vmax.f32 %v11597_v19, %v11661_v53  ;;  %v11723_v54 = vmax.f32 %v11595_v14, %v11659_v0 }
 0xba5   :  { %v11728_v57 = vmax.f32 %v11600_v34, %v11664_v56  ;;  %v11662_v16 = vmul.f32 0.01, %v11598_v33  ;;  %11786 = vst.msk [vmem:[%s22117_s9 + $0x1c0] sm:$0xff] %vm4858_vm2, %v11722_v62  ;;  %v11045_v50 = vmax.f32 %v10917_v4, %v10981_v29 }
 0xba6   :  { %v11663_v27 = vmul.f32 0.01, %v11599_v51  ;;  %11789 = vst.msk [vmem:[%s22117_s9 + $0x1d8] sm:$0xff] %vm4858_vm2, %v11725_v18  ;;  %11787 = vst.msk [vmem:[%s22117_s9 + $0x1c8] sm:$0xff] %vm4858_vm2, %v11723_v54 }
 0xba7   :  { %11792 = vst.msk [vmem:[%s22117_s9 + $0x1f0] sm:$0xff] %vm4858_vm2, %v11728_v57  ;;  %v11726_v21 = vmax.f32 %v11598_v33, %v11662_v16  ;;  %v11601_v10 = vadd.f32 %v11535_v25, %v11045_v50 }
 0xba8   :  { %v11727_v26 = vmax.f32 %v11599_v51, %v11663_v27 }
 0xba9   :  { %11790 = vst.msk [vmem:[%s22117_s9 + $0x1e0] sm:$0xff] %vm4858_vm2, %v11726_v21  ;;  %v11665_v63 = vmul.f32 0.01, %v11601_v10 }
 0xbaa   :  { %11791 = vst.msk [vmem:[%s22117_s9 + $0x1e8] sm:$0xff] %vm4858_vm2, %v11727_v26 }
 0xbab   :  { %v11729_v40 = vmax.f32 %v11601_v10, %v11665_v63 }
 0xbad   :  { %11793 = vst.msk [vmem:[%s22117_s9 + $0x1f8] sm:$0xff] %vm4858_vm2, %v11729_v40 }

</bundles_post_ra>
